<compile_context>
chip_gen: v7x
topology: tpu7x:2x2x1
jax: 0.10.0
libtpu: 0.0.40
codegen_flags: <defaults>
</compile_context>

<pallas_src>
import functools

import jax
import jax.numpy as jnp
import numpy as np
from jax.experimental import pallas as pl
from jax.experimental.pallas import tpu as pltpu

EPSILON = 1e-6


# ----------------------------------------------------------------------------
# Generation detection / VMEM budgets
# ----------------------------------------------------------------------------
def _tpu_generation():
    try:
        kind = jax.devices()[0].device_kind.lower()
    except Exception:  # pragma: no cover - CPU/interpret fallback
        return "unknown"
    if "v5" in kind:
        return "v5e"
    if "v6" in kind:
        return "v6e"
    if "v7" in kind:
        return "v7x"
    return "unknown"


_GEN = _tpu_generation()
_NUM_TC = 2 if _GEN == "v7x" else 1
# Target roughly half the scoped VMEM limit per generation (v5e 16 MiB scoped,
# v6e 32 MiB, v7x 32 MiB scoped of 64 MiB physical).
_VMEM_BUDGET_BYTES = {"v5e": 8 << 20, "v6e": 20 << 20, "v7x": 16 << 20}.get(_GEN, 8 << 20)


def _row_tile(n, per_row_bytes, *, fixed_bytes=0, min_steps=1):
    """Largest row tile (multiple of 8, dividing n) fitting the VMEM budget.

    `per_row_bytes` must already account for double-buffering of pipelined operands;
    `fixed_bytes` covers tile-size-independent allocations (e.g. the weight slab).
    `min_steps` forces a minimum grid length (per-core pipelining / megacore split)
    when that is achievable without violating the VMEM budget.
    """
    if n % 8 != 0:
        return n                                   # irregular row count: single block
    cands = [t for t in range(8, n + 1, 8) if n % t == 0]
    fits = [t for t in cands if t * per_row_bytes + fixed_bytes <= _VMEM_BUDGET_BYTES]
    if not fits:
        return 8
    good = [t for t in fits if n // t >= min_steps]
    return max(good) if good else max(fits)


def _atanh(x):
    # 0.5*log((1+x)/(1-x)); inputs stay well inside (-1, 1) for this loss.
    # (Accuracy degrades only as |x| -> 1, which the stated |x| <= 0.9 inputs avoid.)
    return 0.5 * jnp.log((1.0 + x) / (1.0 - x))


# ----------------------------------------------------------------------------
# Kernels
# ----------------------------------------------------------------------------
def _fused_project_kernel(t_ref, p_ref, w_ref, *refs, tm, emit_atanh):
    """atanh fused in front of a single MXU push of the stacked [atanh(t); atanh(p)]."""
    if emit_atanh:
        xo_ref, yo_ref, to_ref, po_ref, lhs_s = refs
    else:
        xo_ref, yo_ref, lhs_s = refs
        to_ref = po_ref = None

    # Compute atanh only on the first column step; the (2*tm, D) scratch is reused
    # for every lane tile of this row block (column axis is "arbitrary").
    @pl.when(pl.program_id(1) == 0)
    def _():
        at = _atanh(t_ref[...])
        ap = _atanh(p_ref[...])
        lhs_s[0:tm, :] = at
        lhs_s[tm:2 * tm, :] = ap
        if emit_atanh:
            to_ref[...] = at
            po_ref[...] = ap

    # One MXU matmul for both sides: halves the RHS weight-push overhead of the
    # tiny-K matmul versus two separate dots.
    out = jnp.dot(lhs_s[...], w_ref[...], preferred_element_type=jnp.float32)
    xo_ref[...] = out[0:tm]
    yo_ref[...] = out[tm:2 * tm]


def project_atanh_pallas(t, p, w, *, emit_atanh=False):
    """Returns (atanh(t) @ w, atanh(p) @ w[, atanh(t), atanh(p)]) for (N, D) inputs."""
    n, d = t.shape
    w_cols = w.shape[1]

    # Optional lane tiling of the output columns keeps row tiles big when W grows
    # (important on v7x's 64 MiB physical VMEM); stays lane-dense (multiples of 128).
    tn = w_cols
    if w_cols > 2048 and w_cols % 128 == 0:
        tn = max(c for c in range(128, 2048 + 1, 128) if w_cols % c == 0)
    n_col = w_cols // tn

    # Double-buffered per-row footprint: t/p inputs, the two projected outputs,
    # optional atanh outputs, plus the single-buffered (2*tm, D) LHS scratch.
    per_row = 4 * (4 * d + 4 * tn + (4 * d if emit_atanh else 0) + 2 * d)
    fixed = 2 * 4 * d * tn                       # double-buffered weight slab
    # >= 2 row steps per TensorCore on 2-TC parts; no forced split on v5e/v6e.
    min_steps = 4 if _NUM_TC == 2 else 1
    tm = _row_tile(n, per_row, fixed_bytes=fixed, min_steps=min_steps)

    out_shape = [
        jax.ShapeDtypeStruct((n, w_cols), jnp.float32),
        jax.ShapeDtypeStruct((n, w_cols), jnp.float32),
    ]
    out_specs = [
        pl.BlockSpec((tm, tn), lambda i, j: (i, j)),
        pl.BlockSpec((tm, tn), lambda i, j: (i, j)),
    ]
    if emit_atanh:
        out_shape += [
            jax.ShapeDtypeStruct((n, d), jnp.float32),
            jax.ShapeDtypeStruct((n, d), jnp.float32),
        ]
        out_specs += [
            pl.BlockSpec((tm, d), lambda i, j: (i, 0)),
            pl.BlockSpec((tm, d), lambda i, j: (i, 0)),
        ]

    kernel = functools.partial(_fused_project_kernel, tm=tm, emit_atanh=emit_atanh)
    return pl.pallas_call(
        kernel,
        out_shape=tuple(out_shape),
        grid=(n // tm, n_col),
        in_specs=[
            pl.BlockSpec((tm, d), lambda i, j: (i, 0)),
            pl.BlockSpec((tm, d), lambda i, j: (i, 0)),
            pl.BlockSpec((d, tn), lambda i, j: (0, j)),
        ],
        out_specs=tuple(out_specs),
        scratch_shapes=[pltpu.VMEM((2 * tm, d), jnp.float32)],
        # column axis must be "arbitrary": the atanh scratch is cached across it.
        compiler_params=pltpu.CompilerParams(
            dimension_semantics=("parallel", "arbitrary")),
    )(t, p, w)


def _abs_diff_sum_kernel(x_ref, y_ref, o_ref, acc_ref, *, acc_rows, inv_count):
    # Per-sublane partial sums live in an (acc_rows, W) VMEM scratch (pure VPU adds
    # per step); the cross-sublane/lane reduce, the 1/(N*W) scale and the masked
    # (1,1) store happen exactly once on the last grid step.
    @pl.when(pl.program_id(0) == 0)
    def _():
        acc_ref[...] = jnp.zeros_like(acc_ref)

    diff = jnp.abs(x_ref[...] - y_ref[...])
    tm, w = diff.shape
    acc_ref[...] += diff.reshape(tm // acc_rows, acc_rows, w).sum(axis=0)

    @pl.when(pl.program_id(0) == pl.num_programs(0) - 1)
    def _():
        o_ref[0, 0] = jnp.sum(acc_ref[...]) * inv_count


def _sswd_kernel(x_ref, y_ref, mean_ref, std_ref, o_ref, *, chunk_len):
    # hoisted reciprocal on the (1, W) std vector: EUP approx + one Newton step
    # (restores ~f32 accuracy), then two multiplies instead of two divides.
    denom = std_ref[...] + EPSILON
    inv = pl.reciprocal(denom, approx=True)
    inv = inv * (2.0 - denom * inv)
    xn = (x_ref[...] - mean_ref[...]) * inv
    yn = (y_ref[...] - mean_ref[...]) * inv
    # unbiased per-column std of the predicts-side chunk (torch.std default);
    # each chunk is a d-wide column group, so axis-0 stats are per-chunk stats.
    ym = jnp.mean(yn, axis=0, keepdims=True)
    var_y = jnp.sum((yn - ym) ** 2, axis=0, keepdims=True) * (1.0 / (chunk_len - 1))
    std_y = jnp.sqrt(var_y)
    o_ref[0, 0] = jnp.sum(jnp.abs(xn - yn) * std_y)


# ----------------------------------------------------------------------------
# SWD variants (sorting stays in plain JAX)
# ----------------------------------------------------------------------------
def _swd_plain(x, y):
    """swd_type == 'SWD':  mean(|sort(x, dim=0) - sort(y, dim=0)|)."""
    # TODO(synk): column-wise sort has no clean Pallas TPU equivalent; plain JAX.
    x = jnp.sort(x, axis=0)
    y = jnp.sort(y, axis=0)
    n, w = x.shape
    # >= 2 "arbitrary" steps so the next tile's DMA hides under this tile's compute.
    tm = _row_tile(n, per_row_bytes=4 * 4 * w, fixed_bytes=4 * 8 * w, min_steps=2)
    acc_rows = 8 if tm % 8 == 0 else 1
    kernel = functools.partial(_abs_diff_sum_kernel, acc_rows=acc_rows,
                               inv_count=1.0 / (n * w))
    s = pl.pallas_call(
        kernel,
        out_shape=jax.ShapeDtypeStruct((1, 1), jnp.float32),
        grid=(n // tm,),
        in_specs=[
            pl.BlockSpec((tm, w), lambda i: (i, 0)),
            pl.BlockSpec((tm, w), lambda i: (i, 0)),
        ],
        out_specs=pl.BlockSpec((1, 1), lambda i: (0, 0)),
        scratch_shapes=[pltpu.VMEM((acc_rows, w), jnp.float32)],
        compiler_params=pltpu.CompilerParams(dimension_semantics=("arbitrary",)),
    )(x, y)
    return s[0, 0]


def _swd_specific(x, y):
    """swd_type == 'S-SWD' (x = targets side, y = predicts side), both (N, D)."""
    # TODO(synk): column-wise sort has no clean Pallas TPU equivalent; plain JAX.
    x = jnp.sort(x, axis=0)
    y = jnp.sort(y, axis=0)
    n, d = x.shape

    split_length = n // 32            # int(x.shape[0] / 32) in the torch code
    if split_length == 0:
        raise ValueError("N must be >= 32 for the torch S-SWD chunking")
    chunk_len = n // split_length     # reassigned `split_length` in the torch code
    num_chunks = chunk_len            # torch quirk: chunk count == chunk length
    residual = n % chunk_len

    if num_chunks * chunk_len > n:
        # The torch reference would slice empty chunks and return NaN here.
        raise ValueError("unsupported N: torch reference yields NaN (empty chunks)")
    if chunk_len < 2:
        raise ValueError("chunk_len < 2 gives NaN std in the torch reference")

    mean_x = jnp.mean(x, axis=0, keepdims=True)                 # (1, d)
    std_x = jnp.std(x, axis=0, ddof=1, keepdims=True)           # unbiased, like torch

    # NOTE: when num_chunks*chunk_len < N with residual == 0 (e.g. N=2048), rows
    # beyond num_chunks*chunk_len are dropped -- this faithfully mirrors the torch
    # reference and is intentional.
    body = num_chunks * chunk_len
    # Lane-dense slab: chunk c occupies columns [c*d, (c+1)*d); the whole S-SWD
    # reduction becomes a single grid step instead of 32 tiny (32, 8) steps.
    xs = (x[:body].reshape(num_chunks, chunk_len, d)
          .transpose(1, 0, 2).reshape(chunk_len, num_chunks * d))
    ys = (y[:body].reshape(num_chunks, chunk_len, d)
          .transpose(1, 0, 2).reshape(chunk_len, num_chunks * d))
    mean_t = jnp.tile(mean_x, (1, num_chunks))
    std_t = jnp.tile(std_x, (1, num_chunks))

    kernel = functools.partial(_sswd_kernel, chunk_len=chunk_len)
    s = pl.pallas_call(
        kernel,
        out_shape=jax.ShapeDtypeStruct((1, 1), jnp.float32),
    )(xs, ys, mean_t, std_t)

    chunk_mean_sum = s[0, 0] / (chunk_len * d)   # sum of per-chunk means
    if residual != 0:
        # TODO(synk): tiny residual tail chunk handled in plain JAX (same math).
        xr = (x[body:] - mean_x) / (std_x + EPSILON)
        yr = (y[body:] - mean_x) / (std_x + EPSILON)
        chunk_mean_sum = chunk_mean_sum + jnp.mean(
            jnp.abs(xr - yr) * jnp.std(yr, axis=0, ddof=1))
        return chunk_mean_sum / (num_chunks + 1)
    return chunk_mean_sum / num_chunks


def _swd(x, y, swd_type):
    if swd_type == "S-SWD":
        return _swd_specific(x, y)
    return _swd_plain(x, y)


# ----------------------------------------------------------------------------
# SWDLoss.forward equivalent
# ----------------------------------------------------------------------------
def swd_loss_forward(
    predicts,
    targets,
    random_projection,
    gamma,
    random_projection_swd_type="SWD",
    specific_projection_swd_type="S-SWD",
):
    assert predicts.shape == targets.shape
    e, q, d = predicts.shape
    predicts2 = predicts.reshape(e * q, d)
    targets2 = targets.reshape(e * q, d)

    # Batched projection: all R projectors concatenated into one (D, R*P) weight
    # slab with the atanh fused into the matmul kernel.  Averaging per-projector
    # losses over equal-width column groups equals one loss over the concatenated
    # columns, so a single sort + reduction replaces the per-projector loop.
    r, d2, proj_dim = random_projection.shape
    assert d2 == d
    w_all = jnp.transpose(random_projection, (1, 0, 2)).reshape(d, r * proj_dim)

    emit_atanh = (gamma != 0)
    res = project_atanh_pallas(targets2, predicts2, w_all, emit_atanh=emit_atanh)
    if emit_atanh:
        xt, yp, t_at, p_at = res
        # atanh reused from the projection kernel -- no duplicate EUP pass.
        one_dimensional_loss = _swd(t_at, p_at, swd_type=specific_projection_swd_type)
    else:
        xt, yp = res
        one_dimensional_loss = jnp.float32(0.0)

    multi_dimensional_loss = _swd(xt, yp, swd_type=random_projection_swd_type)
    return gamma * one_dimensional_loss + multi_dimensional_loss


# ----------------------------------------------------------------------------
# Pure-JAX reference (mirrors the torch code) for a sanity check
# ----------------------------------------------------------------------------
def _ref_sort_wd(x, y):
    return jnp.mean(jnp.abs(x - y) * jnp.std(y, axis=0, ddof=1))


def _ref_swd(x, y, swd_type):
    x = jnp.sort(x, axis=0)
    y = jnp.sort(y, axis=0)
    split_length = x.shape[0] // 32
    if swd_type == "S-SWD":
        mean_x = jnp.mean(x, axis=0)
        std_x = jnp.std(x, axis=0, ddof=1)
        x = (x - mean_x) / (std_x + EPSILON)
        y = (y - mean_x) / (std_x + EPSILON)
        split_length = x.shape[0] // split_length
        split_residual = x.shape[0] % split_length
        loss = 0.0
        for i in range(split_length):
            loss = loss + _ref_sort_wd(
                x[i * split_length:(i + 1) * split_length],
                y[i * split_length:(i + 1) * split_length],
            )
        if split_residual != 0:
            loss = loss + _ref_sort_wd(
                x[(i + 1) * split_length:], y[(i + 1) * split_length:]
            )
            loss = loss / (split_length + 1)
        else:
            loss = loss / split_length
    else:
        loss = jnp.mean(jnp.abs(x - y))
    return loss


def swd_loss_reference(predicts, targets, random_projection, gamma):
    predicts = jnp.arctanh(predicts)
    targets = jnp.arctanh(targets)
    predicts = predicts.reshape(predicts.shape[0] * predicts.shape[1], predicts.shape[2])
    targets = targets.reshape(targets.shape[0] * targets.shape[1], targets.shape[2])
    one_d = 0.0 if gamma == 0 else _ref_swd(targets, predicts, "S-SWD")
    multi = 0.0
    for i in range(random_projection.shape[0]):
        multi = multi + _ref_swd(
            targets @ random_projection[i], predicts @ random_projection[i], "SWD"
        )
    multi = multi / random_projection.shape[0]
    return gamma * one_d + multi


# ----------------------------------------------------------------------------
if __name__ == "__main__":
    key = jax.random.PRNGKey(0)
    k1, k2, k3 = jax.random.split(key, 3)

    # (events, quantities, features) -> flattened rows N = 32*32 = 1024
    # (the torch S-SWD chunking only makes sense for N a multiple of 32 with N>=1024)
    E, Q, D = 32, 32, 8
    R, PROJ_DIM = 2, 128
    gamma = 1

    predicts = jax.random.uniform(k1, (E, Q, D), jnp.float32, -0.9, 0.9)
    targets = jax.random.uniform(k2, (E, Q, D), jnp.float32, -0.9, 0.9)
    # deterministic stand-in for torch.randn projectors (shape (R, D, projector_dim))
    random_projection = jax.random.normal(k3, (R, D, PROJ_DIM), jnp.float32)

    # gamma != 0 path (projection kernel also emits atanh for the S-SWD branch)
    loss = swd_loss_forward(predicts, targets, random_projection, gamma)
    loss = jax.block_until_ready(loss)
    ref = jax.block_until_ready(
        swd_loss_reference(predicts, targets, random_projection, gamma)
    )
    np.testing.assert_allclose(np.asarray(loss), np.asarray(ref), rtol=2e-3, atol=1e-5)

    # gamma == 0 path (projection-only kernel variant)
    loss0 = jax.block_until_ready(
        swd_loss_forward(predicts, targets, random_projection, 0)
    )
    ref0 = jax.block_until_ready(
        swd_loss_reference(predicts, targets, random_projection, 0)
    )
    np.testing.assert_allclose(np.asarray(loss0), np.asarray(ref0), rtol=2e-3, atol=1e-5)

    print("KERNEL_OK")
</pallas_src>

<mosaic_0001>
module attributes {stable_mosaic.version = 11 : i64} {
  func.func @_fused_project_kernel(%arg0: i32, %arg1: i32, %arg2: memref<1024x8xf32, #tpu.memory_space<vmem>>, %arg3: memref<1024x8xf32, #tpu.memory_space<vmem>>, %arg4: memref<8x256xf32, #tpu.memory_space<vmem>>, %arg5: memref<1024x256xf32, #tpu.memory_space<vmem>>, %arg6: memref<1024x256xf32, #tpu.memory_space<vmem>>, %arg7: memref<1024x8xf32, #tpu.memory_space<vmem>>, %arg8: memref<1024x8xf32, #tpu.memory_space<vmem>>, %arg9: memref<2048x8xf32, #tpu.memory_space<vmem>>) attributes {dimension_semantics = [#tpu.dimension_semantics<parallel>, #tpu.dimension_semantics<arbitrary>], iteration_bounds = array<i64: 1, 1>, scalar_prefetch = 0 : i64, scratch_operands = 1 : i64, tpu.core_type = #tpu.core_type<tc>, window_params = [{transform_indices = @transform_0, window_bounds = array<i64: 1024, 8>}, {transform_indices = @transform_1, window_bounds = array<i64: 1024, 8>}, {transform_indices = @transform_2, window_bounds = array<i64: 8, 256>}, {transform_indices = @transform_3, window_bounds = array<i64: 1024, 256>}, {transform_indices = @transform_4, window_bounds = array<i64: 1024, 256>}, {transform_indices = @transform_5, window_bounds = array<i64: 1024, 8>}, {transform_indices = @transform_6, window_bounds = array<i64: 1024, 8>}]} {
    %c0_i32 = arith.constant 0 : i32
    %0 = arith.cmpi eq, %arg1, %c0_i32 : i32
    %1 = arith.extui %0 : i1 to i32
    %c0_i32_0 = arith.constant 0 : i32
    %2 = arith.cmpi ne, %1, %c0_i32_0 : i32
    scf.if %2 {
      %c0_8 = arith.constant 0 : index
      %c0_9 = arith.constant 0 : index
      %10 = vector.load %arg2[%c0_8, %c0_9] : memref<1024x8xf32, #tpu.memory_space<vmem>>, vector<1024x8xf32>
      %cst_10 = arith.constant 1.000000e+00 : f32
      %11 = vector.broadcast %cst_10 : f32 to vector<1024x8xf32>
      %12 = arith.addf %11, %10 : vector<1024x8xf32>
      %cst_11 = arith.constant 1.000000e+00 : f32
      %13 = vector.broadcast %cst_11 : f32 to vector<1024x8xf32>
      %14 = arith.subf %13, %10 : vector<1024x8xf32>
      %15 = arith.divf %12, %14 : vector<1024x8xf32>
      %16 = math.log %15 : vector<1024x8xf32>
      %cst_12 = arith.constant 5.000000e-01 : f32
      %17 = vector.broadcast %cst_12 : f32 to vector<1024x8xf32>
      %18 = arith.mulf %17, %16 : vector<1024x8xf32>
      %c0_13 = arith.constant 0 : index
      %c0_14 = arith.constant 0 : index
      %19 = vector.load %arg3[%c0_13, %c0_14] : memref<1024x8xf32, #tpu.memory_space<vmem>>, vector<1024x8xf32>
      %cst_15 = arith.constant 1.000000e+00 : f32
      %20 = vector.broadcast %cst_15 : f32 to vector<1024x8xf32>
      %21 = arith.addf %20, %19 : vector<1024x8xf32>
      %cst_16 = arith.constant 1.000000e+00 : f32
      %22 = vector.broadcast %cst_16 : f32 to vector<1024x8xf32>
      %23 = arith.subf %22, %19 : vector<1024x8xf32>
      %24 = arith.divf %21, %23 : vector<1024x8xf32>
      %25 = math.log %24 : vector<1024x8xf32>
      %cst_17 = arith.constant 5.000000e-01 : f32
      %26 = vector.broadcast %cst_17 : f32 to vector<1024x8xf32>
      %27 = arith.mulf %26, %25 : vector<1024x8xf32>
      %c0_18 = arith.constant 0 : index
      %c0_19 = arith.constant 0 : index
      %28 = vector.load %arg9[%c0_18, %c0_19] : memref<2048x8xf32, #tpu.memory_space<vmem>>, vector<1024x8xf32>
      tpu.vector_store %arg9[%c0_18, %c0_19], %18 {strides = array<i32>} : memref<2048x8xf32, #tpu.memory_space<vmem>>, vector<1024x8xf32>,
      %c1024 = arith.constant 1024 : index
      %c0_20 = arith.constant 0 : index
      %29 = vector.load %arg9[%c1024, %c0_20] : memref<2048x8xf32, #tpu.memory_space<vmem>>, vector<1024x8xf32>
      tpu.vector_store %arg9[%c1024, %c0_20], %27 {strides = array<i32>} : memref<2048x8xf32, #tpu.memory_space<vmem>>, vector<1024x8xf32>,
      %c0_21 = arith.constant 0 : index
      %c0_22 = arith.constant 0 : index
      %30 = vector.load %arg7[%c0_21, %c0_22] : memref<1024x8xf32, #tpu.memory_space<vmem>>, vector<1024x8xf32>
      tpu.vector_store %arg7[%c0_21, %c0_22], %18 {strides = array<i32>} : memref<1024x8xf32, #tpu.memory_space<vmem>>, vector<1024x8xf32>,
      %c0_23 = arith.constant 0 : index
      %c0_24 = arith.constant 0 : index
      %31 = vector.load %arg8[%c0_23, %c0_24] : memref<1024x8xf32, #tpu.memory_space<vmem>>, vector<1024x8xf32>
      tpu.vector_store %arg8[%c0_23, %c0_24], %27 {strides = array<i32>} : memref<1024x8xf32, #tpu.memory_space<vmem>>, vector<1024x8xf32>,
    } else {
    }
    %c0 = arith.constant 0 : index
    %c0_1 = arith.constant 0 : index
    %3 = vector.load %arg9[%c0, %c0_1] : memref<2048x8xf32, #tpu.memory_space<vmem>>, vector<2048x8xf32>
    %c0_2 = arith.constant 0 : index
    %c0_3 = arith.constant 0 : index
    %4 = vector.load %arg4[%c0_2, %c0_3] : memref<8x256xf32, #tpu.memory_space<vmem>>, vector<8x256xf32>
    %cst = arith.constant dense<0.000000e+00> : vector<2048x256xf32>
    %5 = tpu.matmul %3, %4, %cst {dimension_numbers = #tpu.dot_dimension_numbers<[1], [0], [0], [1], [0, 0, 1, 1], [], []>} : vector<2048x8xf32>, vector<8x256xf32>, vector<2048x256xf32> -> vector<2048x256xf32>
    %6 = vector.extract_strided_slice %5 {offsets = [0, 0], sizes = [1024, 256], strides = [1, 1]} : vector<2048x256xf32> to vector<1024x256xf32>
    %c0_4 = arith.constant 0 : index
    %c0_5 = arith.constant 0 : index
    %7 = vector.load %arg5[%c0_4, %c0_5] : memref<1024x256xf32, #tpu.memory_space<vmem>>, vector<1024x256xf32>
    tpu.vector_store %arg5[%c0_4, %c0_5], %6 {strides = array<i32>} : memref<1024x256xf32, #tpu.memory_space<vmem>>, vector<1024x256xf32>,
    %8 = vector.extract_strided_slice %5 {offsets = [1024, 0], sizes = [1024, 256], strides = [1, 1]} : vector<2048x256xf32> to vector<1024x256xf32>
    %c0_6 = arith.constant 0 : index
    %c0_7 = arith.constant 0 : index
    %9 = vector.load %arg6[%c0_6, %c0_7] : memref<1024x256xf32, #tpu.memory_space<vmem>>, vector<1024x256xf32>
    tpu.vector_store %arg6[%c0_6, %c0_7], %8 {strides = array<i32>} : memref<1024x256xf32, #tpu.memory_space<vmem>>, vector<1024x256xf32>,
    return
  }
  func.func @transform_0(%arg0: i32, %arg1: i32) -> (i32, i32) {
    %c0_i32 = arith.constant 0 : i32
    %c0_i32_0 = arith.constant 0 : i32
    return %arg0, %c0_i32 : i32, i32
  }
  func.func @transform_1(%arg0: i32, %arg1: i32) -> (i32, i32) {
    %c0_i32 = arith.constant 0 : i32
    %c0_i32_0 = arith.constant 0 : i32
    return %arg0, %c0_i32 : i32, i32
  }
  func.func @transform_2(%arg0: i32, %arg1: i32) -> (i32, i32) {
    %c0_i32 = arith.constant 0 : i32
    %c0_i32_0 = arith.constant 0 : i32
    return %c0_i32, %arg1 : i32, i32
  }
  func.func @transform_3(%arg0: i32, %arg1: i32) -> (i32, i32) {
    %c0_i32 = arith.constant 0 : i32
    return %arg0, %arg1 : i32, i32
  }
  func.func @transform_4(%arg0: i32, %arg1: i32) -> (i32, i32) {
    %c0_i32 = arith.constant 0 : i32
    return %arg0, %arg1 : i32, i32
  }
  func.func @transform_5(%arg0: i32, %arg1: i32) -> (i32, i32) {
    %c0_i32 = arith.constant 0 : i32
    %c0_i32_0 = arith.constant 0 : i32
    return %arg0, %c0_i32 : i32, i32
  }
  func.func @transform_6(%arg0: i32, %arg1: i32) -> (i32, i32) {
    %c0_i32 = arith.constant 0 : i32
    %c0_i32_0 = arith.constant 0 : i32
    return %arg0, %c0_i32 : i32, i32
  }
}

</mosaic_0001>

<bundles_post_ra>
// kernel: tpu_custom_call.1
= control target key start
LH: loop header
LB: loop body
LE: loop exit
PB: predicated region body
PF: predicated region fallthrough
CT: control target
= control target key end

     0   :  { %12 = vsyncpa [#allocation4], 0  ;;  %v7100_v11 = vmov 0.0   ;;  %vm2072_vm0 = vcmask 64512   ;;  %s10812_s0 = inlined_call_operand.vmem [shape: f32[1024,8], index: 0, kind: input, shape index: {}]   ;;  %s10813_s1 = inlined_call_operand.vmem [shape: f32[1024,8], index: 1, kind: input, shape index: {}]   ;;  %s10814_s2 = inlined_call_operand.vmem [shape: f32[8,256], index: 2, kind: input, shape index: {}]   ;;  %s10815_s3 = inlined_call_operand.hbm [shape: f32[1024,256], index: 3, kind: output, shape index: {0}]   ;;  %s10816_s4 = inlined_call_operand.hbm [shape: f32[1024,256], index: 4, kind: output, shape index: {1}]   ;;  %s10817_s5 = inlined_call_operand.vmem [shape: f32[1024,8], index: 5, kind: output, shape index: {2}]   ;;  %s10818_s6 = inlined_call_operand.vmem [shape: f32[1024,8], index: 6, kind: output, shape index: {3}]  }
   0x1   :  { %v2842_v0 = vld [vmem:[%s10814_s2 + $0x8] sm:$0xff]  ;;  %v2841_v1 = vld [vmem:[%s10814_s2] sm:$0xff]  ;;  %v26_v9 = vld [vmem:[%s10812_s0 + $0x10] sm:$0xff]  ;;  %3676 = vmatprep.mubr.f32.mxu0 %v7100_v11  ;;  %4444 = vmatprep.mubr.f32.mxu1 %v7100_v11 }
   0x2   :  { %v24_v2 = vld [vmem:[%s10812_s0] sm:$0xff]  ;;  %3612 = vmatprep.subr.mxu0 %v2842_v0  ;;  %6021 = vmatprep.subr.mxu1 %v2842_v0  ;;  %v25_v5 = vld [vmem:[%s10812_s0 + $0x8] sm:$0xff]  ;;  %v1050_v10 = vld [vmem:[%s10813_s1 + $0x10] sm:$0xff]  ;;  %v282_v15 = vsub.f32 1.0, %v26_v9  ;;  %v154_v36 = vadd.f32 1.0, %v26_v9 }
   0x3   :  { %v280_v3 = vsub.f32 1.0, %v24_v2  ;;  %v1048_v4 = vld [vmem:[%s10813_s1] sm:$0xff]  ;;  %v1049_v6 = vld [vmem:[%s10813_s1 + $0x8] sm:$0xff]  ;;  %3613 = vmatpush1.msra.mxu0 %v2841_v1  ;;  %6022 = vmatpush1.msra.mxu1 %v2841_v1  ;;  %v281_v8 = vsub.f32 1.0, %v25_v5  ;;  %v27_v13 = vld [vmem:[%s10812_s0 + $0x18] sm:$0xff]  ;;  %v1306_v16 = vsub.f32 1.0, %v1050_v10 }
   0x4   :  { %v1304_v7 = vsub.f32 1.0, %v1048_v4  ;;  %v1305_v12 = vsub.f32 1.0, %v1049_v6  ;;  %v1051_v14 = vld [vmem:[%s10813_s1 + $0x18] sm:$0xff]  ;;  %v28_v17 = vld [vmem:[%s10812_s0 + $0x20] sm:$0xff]  ;;  %v283_v18 = vsub.f32 1.0, %v27_v13  ;;  %v29_v21 = vld [vmem:[%s10812_s0 + $0x28] sm:$0xff] }
   0x5   :  { %6028 = vrcp.f32 %v280_v3  ;;  %v1052_v19 = vld [vmem:[%s10813_s1 + $0x20] sm:$0xff]  ;;  %v1307_v20 = vsub.f32 1.0, %v1051_v14  ;;  %v284_v22 = vsub.f32 1.0, %v28_v17  ;;  %v1053_v23 = vld [vmem:[%s10813_s1 + $0x28] sm:$0xff]  ;;  %v30_v25 = vld [vmem:[%s10812_s0 + $0x30] sm:$0xff]  ;;  %v285_v26 = vsub.f32 1.0, %v29_v21 }
   0x6   :  { %6030 = vrcp.f32 %v1304_v7  ;;  %v1308_v24 = vsub.f32 1.0, %v1052_v19  ;;  %v152_v27 = vadd.f32 1.0, %v24_v2  ;;  %v1309_v28 = vsub.f32 1.0, %v1053_v23  ;;  %v1054_v61 = vld [vmem:[%s10813_s1 + $0x30] sm:$0xff]  ;;  %v31_v0 = vld [vmem:[%s10812_s0 + $0x38] sm:$0xff]  ;;  %v7201_v7 = vld [vmem:[%s10812_s0 + $0x40] sm:$0xff] }
   0x7   :  { %6032 = vrcp.f32 %v281_v8  ;;  %v1176_v29 = vadd.f32 1.0, %v1048_v4  ;;  %v286_v30 = vsub.f32 1.0, %v30_v25  ;;  %v153_v31 = vadd.f32 1.0, %v25_v5  ;;  %v7196_v3 = vld [vmem:[%s10813_s1 + $0x38] sm:$0xff] }
   0x8   :  { %6034 = vrcp.f32 %v1305_v12  ;;  %v1177_v33 = vadd.f32 1.0, %v1049_v6  ;;  %v1178_v39 = vadd.f32 1.0, %v1050_v10  ;;  %v155_v42 = vadd.f32 1.0, %v27_v13  ;;  %v7206_v12 = vld [vmem:[%s10813_s1 + $0x40] sm:$0xff]  ;;  %v7211_v13 = vld [vmem:[%s10812_s0 + $0x48] sm:$0xff] }
   0x9   :  { %6036 = vrcp.f32 %v282_v15  ;;  %v1179_v45 = vadd.f32 1.0, %v1051_v14  ;;  %v156_v48 = vadd.f32 1.0, %v28_v17  ;;  %v1180_v51 = vadd.f32 1.0, %v1052_v19 }
   0xa   :  { %6038 = vrcp.f32 %v1306_v16  ;;  %v157_v54 = vadd.f32 1.0, %v29_v21  ;;  %v1181_v57 = vadd.f32 1.0, %v1053_v23  ;;  %v158_v60 = vadd.f32 1.0, %v30_v25 }
   0xb   :  { %6040 = vrcp.f32 %v283_v18  ;;  %v1310_v6 = vsub.f32 1.0, %v1054_v61  ;;  %v287_v10 = vsub.f32 1.0, %v31_v0  ;;  %v7213_v16 = vadd.f32 1.0, %v1054_v61 }
   0xc   :  { %6042 = vrcp.f32 %v1307_v20  ;;  %v1311_v17 = vsub.f32 1.0, %v7196_v3 }
   0xd   :  { %6044 = vrcp.f32 %v284_v22 }
   0xe   :  { %6046 = vrcp.f32 %v1308_v24 }
   0xf   :  { %v6029_v32 = vpop.eup %6028  ;;  %6048 = vrcp.f32 %v285_v26 }
  0x10   :  { %v6031_v34 = vpop.eup %6030  ;;  %v409_v35 = vmul.f32 %v6029_v32, %v152_v27  ;;  %6050 = vrcp.f32 %v1309_v28 }
  0x11   :  { %v6033_v37 = vpop.eup %6032  ;;  %v1433_v38 = vmul.f32 %v6031_v34, %v1176_v29  ;;  %6052 = vrcp.f32 %v286_v30 }
  0x12   :  { %v6035_v40 = vpop.eup %6034  ;;  %6054 = vlog2.f32 %v409_v35  ;;  %v411_v41 = vmul.f32 %v6033_v37, %v153_v31 }
  0x13   :  { %v6037_v43 = vpop.eup %6036  ;;  %6056 = vlog2.f32 %v1433_v38  ;;  %v1435_v44 = vmul.f32 %v6035_v40, %v1177_v33 }
  0x14   :  { %v6039_v46 = vpop.eup %6038  ;;  %6058 = vlog2.f32 %v411_v41  ;;  %v413_v47 = vmul.f32 %v6037_v43, %v154_v36 }
  0x15   :  { %v6041_v49 = vpop.eup %6040  ;;  %6060 = vlog2.f32 %v1435_v44  ;;  %v1437_v50 = vmul.f32 %v6039_v46, %v1178_v39 }
  0x16   :  { %v6043_v52 = vpop.eup %6042  ;;  %6062 = vlog2.f32 %v413_v47  ;;  %v415_v53 = vmul.f32 %v6041_v49, %v155_v42 }
  0x17   :  { %v6045_v55 = vpop.eup %6044  ;;  %6064 = vlog2.f32 %v1437_v50  ;;  %v1439_v56 = vmul.f32 %v6043_v52, %v1179_v45 }
  0x18   :  { %v6047_v58 = vpop.eup %6046  ;;  %6066 = vlog2.f32 %v415_v53  ;;  %v417_v59 = vmul.f32 %v6045_v55, %v156_v48 }
  0x19   :  { %v6049_v62 = vpop.eup %6048  ;;  %6068 = vlog2.f32 %v1439_v56  ;;  %v1441_v63 = vmul.f32 %v6047_v58, %v1180_v51 }
  0x1a   :  { %v6051_v1 = vpop.eup %6050  ;;  %6070 = vlog2.f32 %v417_v59  ;;  %v419_v2 = vmul.f32 %v6049_v62, %v157_v54 }
  0x1b   :  { %v6053_v4 = vpop.eup %6052  ;;  %6072 = vlog2.f32 %v1441_v63  ;;  %v1443_v5 = vmul.f32 %v6051_v1, %v1181_v57 }
  0x1c   :  { %v6055_v8 = vpop.eup %6054  ;;  %6074 = vlog2.f32 %v419_v2  ;;  %v421_v9 = vmul.f32 %v6053_v4, %v158_v60 }
  0x1d   :  { %v6057_v14 = vpop.eup %6056  ;;  %v665_v15 = vmul.f32 0.6931472, %v6055_v8  ;;  %6076 = vlog2.f32 %v1443_v5 }
  0x1e   :  { %13 = vsyncpa [#allocation6], 0  ;;  %v6059_v18 = vpop.eup %6058  ;;  %v1689_v19 = vmul.f32 0.6931472, %v6057_v14  ;;  %6078 = vlog2.f32 %v421_v9  ;;  %v7216_v20 = vadd.f32 1.0, %v31_v0  ;;  %v288_v21 = vsub.f32 1.0, %v7201_v7 }
  0x1f   :  { %v7222_v22 = vld [vmem:[%s10813_s1 + $0x48] sm:$0xff]  ;;  %v6061_v23 = vpop.eup %6060  ;;  %v920_v24 = vmul.f32 0.5, %v665_v15  ;;  %v667_v25 = vmul.f32 0.6931472, %v6059_v18  ;;  %6080 = vrcp.f32 %v1310_v6  ;;  %v1312_v26 = vsub.f32 1.0, %v7206_v12  ;;  %v7228_v27 = vld [vmem:[%s10812_s0 + $0x50] sm:$0xff] }
  0x20   :  { %v6063_v28 = vpop.eup %6062  ;;  %v1944_v29 = vmul.f32 0.5, %v1689_v19  ;;  %v1691_v30 = vmul.f32 0.6931472, %v6061_v23  ;;  %6082 = vrcp.f32 %v287_v10  ;;  %v289_v31 = vsub.f32 1.0, %v7211_v13  ;;  %v7234_v32 = vld [vmem:[%s10813_s1 + $0x50] sm:$0xff]  ;;  %v7245_v37 = vld [vmem:[%s10812_s0 + $0x58] sm:$0xff] }
  0x21   :  { %v6065_v33 = vpop.eup %6064  ;;  %2073 = vst.msk [vmem:[#allocation2] sm:$0xff] %vm2072_vm0, %v920_v24  ;;  %2329 = vst.msk [vmem:[%s10817_s5] sm:$0xff] %vm2072_vm0, %v920_v24  ;;  %v921_v34 = vmul.f32 0.5, %v667_v25  ;;  %v669_v35 = vmul.f32 0.6931472, %v6063_v28  ;;  %6084 = vrcp.f32 %v1311_v17  ;;  %v1313_v36 = vsub.f32 1.0, %v7222_v22 }
  0x22   :  { %v6067_v38 = vpop.eup %6066  ;;  %2201 = vst.msk [vmem:[#allocation2 + $0x400] sm:$0xff] %vm2072_vm0, %v1944_v29  ;;  %2457 = vst.msk [vmem:[%s10818_s6] sm:$0xff] %vm2072_vm0, %v1944_v29  ;;  %v1945_v39 = vmul.f32 0.5, %v1691_v30  ;;  %v1693_v40 = vmul.f32 0.6931472, %v6065_v33  ;;  %6086 = vrcp.f32 %v288_v21  ;;  %v290_v41 = vsub.f32 1.0, %v7228_v27 }
  0x23   :  { %v7256_v42 = vld [vmem:[%s10813_s1 + $0x58] sm:$0xff]  ;;  %v6069_v43 = vpop.eup %6068  ;;  %2074 = vst.msk [vmem:[#allocation2 + $0x8] sm:$0xff] %vm2072_vm0, %v921_v34  ;;  %2330 = vst.msk [vmem:[%s10817_s5 + $0x8] sm:$0xff] %vm2072_vm0, %v921_v34  ;;  %v922_v44 = vmul.f32 0.5, %v669_v35  ;;  %v671_v45 = vmul.f32 0.6931472, %v6067_v38  ;;  %6088 = vrcp.f32 %v1312_v26 }
  0x24   :  { %v1314_v46 = vsub.f32 1.0, %v7234_v32  ;;  %v7267_v47 = vld [vmem:[%s10812_s0 + $0x60] sm:$0xff]  ;;  %v6071_v48 = vpop.eup %6070  ;;  %2202 = vst.msk [vmem:[#allocation2 + $0x408] sm:$0xff] %vm2072_vm0, %v1945_v39  ;;  %2458 = vst.msk [vmem:[%s10818_s6 + $0x8] sm:$0xff] %vm2072_vm0, %v1945_v39  ;;  %v1946_v49 = vmul.f32 0.5, %v1693_v40  ;;  %6090 = vrcp.f32 %v289_v31  ;;  %v291_v51 = vsub.f32 1.0, %v7245_v37 }
  0x25   :  { %v1695_v50 = vmul.f32 0.6931472, %v6069_v43  ;;  %v7278_v52 = vld [vmem:[%s10813_s1 + $0x60] sm:$0xff]  ;;  %v6073_v53 = vpop.eup %6072  ;;  %2075 = vst.msk [vmem:[#allocation2 + $0x10] sm:$0xff] %vm2072_vm0, %v922_v44  ;;  %2331 = vst.msk [vmem:[%s10817_s5 + $0x10] sm:$0xff] %vm2072_vm0, %v922_v44  ;;  %v923_v54 = vmul.f32 0.5, %v671_v45  ;;  %6092 = vrcp.f32 %v1313_v36 }
  0x26   :  { %v673_v55 = vmul.f32 0.6931472, %v6071_v48  ;;  %v1315_v56 = vsub.f32 1.0, %v7256_v42  ;;  %v6075_v57 = vpop.eup %6074  ;;  %2203 = vst.msk [vmem:[#allocation2 + $0x410] sm:$0xff] %vm2072_vm0, %v1946_v49  ;;  %2459 = vst.msk [vmem:[%s10818_s6 + $0x10] sm:$0xff] %vm2072_vm0, %v1946_v49  ;;  %6094 = vrcp.f32 %v290_v41  ;;  %v292_v60 = vsub.f32 1.0, %v7267_v47 }
  0x27   :  { %v1947_v58 = vmul.f32 0.5, %v1695_v50  ;;  %v1697_v59 = vmul.f32 0.6931472, %v6073_v53  ;;  %v6077_v61 = vpop.eup %6076  ;;  %2076 = vst.msk [vmem:[#allocation2 + $0x18] sm:$0xff] %vm2072_vm0, %v923_v54  ;;  %2332 = vst.msk [vmem:[%s10817_s5 + $0x18] sm:$0xff] %vm2072_vm0, %v923_v54  ;;  %6096 = vrcp.f32 %v1314_v46  ;;  %v1316_v0 = vsub.f32 1.0, %v7278_v52 }
  0x28   :  { %v924_v62 = vmul.f32 0.5, %v673_v55  ;;  %v675_v63 = vmul.f32 0.6931472, %v6075_v57  ;;  %v6079_v1 = vpop.eup %6078  ;;  %v2585_v2 = vld [vmem:[#allocation2] sm:$0xff]  ;;  %v1699_v5 = vmul.f32 0.6931472, %v6077_v61  ;;  %6098 = vrcp.f32 %v291_v51 }
  0x29   :  { %2204 = vst.msk [vmem:[#allocation2 + $0x418] sm:$0xff] %vm2072_vm0, %v1947_v58  ;;  %2460 = vst.msk [vmem:[%s10818_s6 + $0x18] sm:$0xff] %vm2072_vm0, %v1947_v58  ;;  %v1948_v4 = vmul.f32 0.5, %v1697_v59  ;;  %v1183_v6 = vadd.f32 1.0, %v7196_v3  ;;  %v6081_v8 = vpop.eup %6080  ;;  %5765 = vmatmul.mubr.msk.f32.vlgmr.msra.gmra.mrb[0].mxu0 %vm2072_vm0, %v2585_v2  ;;  %v2713_v9 = vld [vmem:[#allocation2 + $0x400] sm:$0xff]  ;;  %v160_v15 = vadd.f32 1.0, %v7201_v7  ;;  %6100 = vrcp.f32 %v1315_v56 }
  0x2a   :  { %2077 = vst.msk [vmem:[#allocation2 + $0x20] sm:$0xff] %vm2072_vm0, %v924_v62  ;;  %2333 = vst.msk [vmem:[%s10817_s5 + $0x20] sm:$0xff] %vm2072_vm0, %v924_v62  ;;  %v925_v10 = vmul.f32 0.5, %v675_v63  ;;  %v677_v14 = vmul.f32 0.6931472, %v6079_v1  ;;  %v6083_v17 = vpop.eup %6082  ;;  %5893 = vmatmul.mubr.msk.f32.vlgmr.msra.gmra.mrb[0].mxu1 %vm2072_vm0, %v2713_v9  ;;  %3682 = vmatprep.mubr.f32.mxu0 %v7100_v11  ;;  %v2586_v3 = vld [vmem:[#allocation2 + $0x8] sm:$0xff]  ;;  %v1445_v19 = vmul.f32 %v6081_v8, %v7213_v16  ;;  %6102 = vrcp.f32 %v292_v60 }
  0x2b   :  { %2205 = vst.msk [vmem:[#allocation2 + $0x420] sm:$0xff] %vm2072_vm0, %v1948_v4  ;;  %2461 = vst.msk [vmem:[%s10818_s6 + $0x20] sm:$0xff] %vm2072_vm0, %v1948_v4  ;;  %v1949_v18 = vmul.f32 0.5, %v1699_v5  ;;  %v1184_v21 = vadd.f32 1.0, %v7206_v12  ;;  %v6085_v7 = vpop.eup %6084  ;;  %4450 = vmatprep.mubr.f32.mxu1 %v7100_v11  ;;  %v2714_v23 = vld [vmem:[#allocation2 + $0x408] sm:$0xff]  ;;  %v423_v25 = vmul.f32 %v6083_v17, %v7216_v20  ;;  %v161_v26 = vadd.f32 1.0, %v7211_v13 }
  0x2c   :  { %2078 = vst.msk [vmem:[#allocation2 + $0x28] sm:$0xff] %vm2072_vm0, %v925_v10  ;;  %2334 = vst.msk [vmem:[%s10817_s5 + $0x28] sm:$0xff] %vm2072_vm0, %v925_v10  ;;  %v926_v24 = vmul.f32 0.5, %v677_v14  ;;  %6104 = vrcp.f32 %v1316_v0  ;;  %v6087_v16 = vpop.eup %6086  ;;  %v1447_v12 = vmul.f32 %v6085_v7, %v1183_v6  ;;  %v1185_v28 = vadd.f32 1.0, %v7222_v22  ;;  %v2587_v22 = vld [vmem:[#allocation2 + $0x10] sm:$0xff]  ;;  %v1061_v50 = vld [vmem:[%s10813_s1 + $0x68] sm:$0xff] }
  0x2d   :  { %2206 = vst.msk [vmem:[#allocation2 + $0x428] sm:$0xff] %vm2072_vm0, %v1949_v18  ;;  %2462 = vst.msk [vmem:[%s10818_s6 + $0x28] sm:$0xff] %vm2072_vm0, %v1949_v18  ;;  %6106 = vlog2.f32 %v1445_v19  ;;  %v6089_v29 = vpop.eup %6088  ;;  %5766 = vmatmul.mubr.msk.f32.gmra.mrb[2].mxu0 %vm2072_vm0, %v2586_v3  ;;  %v425_v13 = vmul.f32 %v6087_v16, %v160_v15  ;;  %v162_v20 = vadd.f32 1.0, %v7228_v27  ;;  %v1186_v33 = vadd.f32 1.0, %v7234_v32  ;;  %v2715_v35 = vld [vmem:[#allocation2 + $0x410] sm:$0xff]  ;;  %v7375_v62 = vld [vmem:[%s10812_s0 + $0x78] sm:$0xff] }
  0x2e   :  { %2079 = vst.msk [vmem:[#allocation2 + $0x30] sm:$0xff] %vm2072_vm0, %v926_v24  ;;  %2335 = vst.msk [vmem:[%s10817_s5 + $0x30] sm:$0xff] %vm2072_vm0, %v926_v24  ;;  %6108 = vlog2.f32 %v423_v25  ;;  %v6091_v30 = vpop.eup %6090  ;;  %5894 = vmatmul.mubr.msk.f32.gmra.mrb[2].mxu1 %vm2072_vm0, %v2714_v23  ;;  %3688 = vmatprep.mubr.f32.mxu0 %v7100_v11  ;;  %v1449_v31 = vmul.f32 %v6089_v29, %v1184_v21  ;;  %v163_v38 = vadd.f32 1.0, %v7245_v37  ;;  %v1187_v40 = vadd.f32 1.0, %v7256_v42  ;;  %v2588_v45 = vld [vmem:[#allocation2 + $0x18] sm:$0xff]  ;;  %v37_v42 = vld [vmem:[%s10812_s0 + $0x68] sm:$0xff] }
  0x2f   :  { %6110 = vlog2.f32 %v1447_v12  ;;  %v6093_v34 = vpop.eup %6092  ;;  %4456 = vmatprep.mubr.f32.mxu1 %v7100_v11  ;;  %v427_v36 = vmul.f32 %v6091_v30, %v161_v26  ;;  %v164_v32 = vadd.f32 1.0, %v7267_v47  ;;  %v1188_v46 = vadd.f32 1.0, %v7278_v52  ;;  %v7362_v52 = vld [vmem:[%s10812_s0 + $0x70] sm:$0xff]  ;;  %v7384_v5 = vld [vmem:[%s10813_s1 + $0x78] sm:$0xff]  ;;  %v7392_v14 = vld [vmem:[%s10812_s0 + $0x80] sm:$0xff]  ;;  %s7102_s20 = smov [#allocation5]  }
  0x30   :  { %6112 = vlog2.f32 %v425_v13  ;;  %v6095_v39 = vpop.eup %6094  ;;  %v1451_v27 = vmul.f32 %v6093_v34, %v1185_v28  ;;  %v2716_v49 = vld [vmem:[#allocation2 + $0x418] sm:$0xff]  ;;  %v293_v56 = vsub.f32 1.0, %v37_v42  ;;  %v7368_v57 = vld [vmem:[%s10813_s1 + $0x70] sm:$0xff]  ;;  %v1317_v61 = vsub.f32 1.0, %v1061_v50  ;;  %v7399_v19 = vld [vmem:[%s10813_s1 + $0x80] sm:$0xff]  ;;  %s5742_s21 = sshll.u32 %s7102_s20, 4  ;;  %s10776_s21 = int_to_ptr.vmem [resolvable:$true] %s5742_s21 }
  0x31   :  { %6114 = vlog2.f32 %v1449_v31  ;;  %v6097_v41 = vpop.eup %6096  ;;  %5767 = vmatmul.mubr.msk.f32.gmra.mrb[4].mxu0 %vm2072_vm0, %v2587_v22  ;;  %v429_v43 = vmul.f32 %v6095_v39, %v162_v20  ;;  %v2589_v59 = vld [vmem:[#allocation2 + $0x20] sm:$0xff]  ;;  %v7378_v2 = vadd.f32 1.0, %v37_v42  ;;  %v294_v4 = vsub.f32 1.0, %v7362_v52  ;;  %v7407_v26 = vld [vmem:[%s10812_s0 + $0x88] sm:$0xff]  ;;  %v7430_v34 = vld [vmem:[%s10812_s0 + $0x90] sm:$0xff] }
  0x32   :  { %6116 = vlog2.f32 %v427_v36  ;;  %v6099_v44 = vpop.eup %6098  ;;  %5895 = vmatmul.mubr.msk.f32.gmra.mrb[4].mxu1 %vm2072_vm0, %v2715_v35  ;;  %3694 = vmatprep.mubr.f32.mxu0 %v7100_v11  ;;  %v1453_v37 = vmul.f32 %v6097_v41, %v1186_v33  ;;  %v2717_v0 = vld [vmem:[#allocation2 + $0x420] sm:$0xff]  ;;  %v7386_v9 = vadd.f32 1.0, %v1061_v50  ;;  %v1318_v10 = vsub.f32 1.0, %v7368_v57  ;;  %v7419_v20 = vld [vmem:[%s10813_s1 + $0x88] sm:$0xff] }
  0x33   :  { %6118 = vlog2.f32 %v1451_v27  ;;  %v6101_v48 = vpop.eup %6100  ;;  %4462 = vmatprep.mubr.f32.mxu1 %v7100_v11  ;;  %v431_v47 = vmul.f32 %v6099_v44, %v163_v38  ;;  %v295_v18 = vsub.f32 1.0, %v7375_v62  ;;  %v2590_v7 = vld [vmem:[#allocation2 + $0x28] sm:$0xff]  ;;  %v1319_v25 = vsub.f32 1.0, %v7384_v5  ;;  %v7442_v27 = vld [vmem:[%s10813_s1 + $0x90] sm:$0xff] }
  0x34   :  { %6120 = vlog2.f32 %v429_v43  ;;  %v6103_v51 = vpop.eup %6102  ;;  %v1455_v53 = vmul.f32 %v6101_v48, %v1187_v40  ;;  %v2718_v12 = vld [vmem:[#allocation2 + $0x428] sm:$0xff]  ;;  %v296_v13 = vsub.f32 1.0, %v7392_v14  ;;  %v1320_v33 = vsub.f32 1.0, %v7399_v19 }
  0x35   :  { %6122 = vlog2.f32 %v1453_v37  ;;  %5768 = vmatmul.mubr.msk.f32.gmra.mrb[6].mxu0 %vm2072_vm0, %v2588_v45  ;;  %v433_v55 = vmul.f32 %v6103_v51, %v164_v32  ;;  %v297_v39 = vsub.f32 1.0, %v7407_v26  ;;  %v2591_v41 = vld [vmem:[#allocation2 + $0x30] sm:$0xff]  ;;  %v1321_v44 = vsub.f32 1.0, %v7419_v20  ;;  %v7455_v45 = vld [vmem:[%s10812_s0 + $0x98] sm:$0xff] }
  0x36   :  { %v6105_v54 = vpop.eup %6104  ;;  %6124 = vlog2.f32 %v431_v47  ;;  %5896 = vmatmul.mubr.msk.f32.gmra.mrb[6].mxu1 %vm2072_vm0, %v2716_v49  ;;  %3700 = vmatprep.mubr.f32.mxu0 %v7100_v11  ;;  %v298_v48 = vsub.f32 1.0, %v7430_v34  ;;  %v1322_v51 = vsub.f32 1.0, %v7442_v27 }
  0x37   :  { %v6107_v58 = vpop.eup %6106  ;;  %6126 = vlog2.f32 %v1455_v53  ;;  %v1457_v60 = vmul.f32 %v6105_v54, %v1188_v46  ;;  %4468 = vmatprep.mubr.f32.mxu1 %v7100_v11 }
  0x38   :  { %v6109_v63 = vpop.eup %6108  ;;  %v1701_v1 = vmul.f32 0.6931472, %v6107_v58  ;;  %6128 = vlog2.f32 %v433_v55 }
  0x39   :  { %v6111_v6 = vpop.eup %6110  ;;  %v679_v8 = vmul.f32 0.6931472, %v6109_v63  ;;  %6130 = vlog2.f32 %v1457_v60  ;;  %5769 = vmatmul.mubr.msk.f32.gmra.mrb[8].mxu0 %vm2072_vm0, %v2589_v59  ;;  %v166_v63 = vadd.f32 1.0, %v7362_v52 }
  0x3a   :  { %v6113_v15 = vpop.eup %6112  ;;  %v1950_v17 = vmul.f32 0.5, %v1701_v1  ;;  %v1703_v3 = vmul.f32 0.6931472, %v6111_v6  ;;  %6132 = vrcp.f32 %v293_v56  ;;  %5897 = vmatmul.mubr.msk.f32.gmra.mrb[8].mxu1 %vm2072_vm0, %v2717_v0  ;;  %3706 = vmatprep.mubr.f32.mxu0 %v7100_v11  ;;  %v299_v56 = vsub.f32 1.0, %v7455_v45 }
  0x3b   :  { %v6115_v21 = vpop.eup %6114  ;;  %v927_v23 = vmul.f32 0.5, %v679_v8  ;;  %v681_v24 = vmul.f32 0.6931472, %v6113_v15  ;;  %6134 = vrcp.f32 %v1317_v61  ;;  %4474 = vmatprep.mubr.f32.mxu1 %v7100_v11  ;;  %v1190_v8 = vadd.f32 1.0, %v7368_v57 }
  0x3c   :  { %v6117_v16 = vpop.eup %6116  ;;  %2207 = vst.msk [vmem:[#allocation2 + $0x430] sm:$0xff] %vm2072_vm0, %v1950_v17  ;;  %2463 = vst.msk [vmem:[%s10818_s6 + $0x30] sm:$0xff] %vm2072_vm0, %v1950_v17  ;;  %v1951_v28 = vmul.f32 0.5, %v1703_v3  ;;  %v1705_v29 = vmul.f32 0.6931472, %v6115_v21  ;;  %6136 = vrcp.f32 %v294_v4  ;;  %v167_v3 = vadd.f32 1.0, %v7375_v62 }
  0x3d   :  { %v6119_v30 = vpop.eup %6118  ;;  %2080 = vst.msk [vmem:[#allocation2 + $0x38] sm:$0xff] %vm2072_vm0, %v927_v23  ;;  %2336 = vst.msk [vmem:[%s10817_s5 + $0x38] sm:$0xff] %vm2072_vm0, %v927_v23  ;;  %v928_v22 = vmul.f32 0.5, %v681_v24  ;;  %v683_v31 = vmul.f32 0.6931472, %v6117_v16  ;;  %6138 = vrcp.f32 %v1318_v10  ;;  %5770 = vmatmul.mubr.msk.f32.gmra.mrb[10].mxu0 %vm2072_vm0, %v2590_v7  ;;  %v1191_v7 = vadd.f32 1.0, %v7384_v5 }
  0x3e   :  { %v6121_v35 = vpop.eup %6120  ;;  %2208 = vst.msk [vmem:[#allocation2 + $0x438] sm:$0xff] %vm2072_vm0, %v1951_v28  ;;  %2464 = vst.msk [vmem:[%s10818_s6 + $0x38] sm:$0xff] %vm2072_vm0, %v1951_v28  ;;  %v1952_v36 = vmul.f32 0.5, %v1705_v29  ;;  %v1707_v38 = vmul.f32 0.6931472, %v6119_v30  ;;  %6140 = vrcp.f32 %v295_v18  ;;  %5898 = vmatmul.mubr.msk.f32.gmra.mrb[10].mxu1 %vm2072_vm0, %v2718_v12  ;;  %3712 = vmatprep.mubr.f32.mxu0 %v7100_v11  ;;  %v168_v24 = vadd.f32 1.0, %v7392_v14 }
  0x3f   :  { %v6123_v40 = vpop.eup %6122  ;;  %2081 = vst.msk [vmem:[#allocation2 + $0x40] sm:$0xff] %vm2072_vm0, %v928_v22  ;;  %2337 = vst.msk [vmem:[%s10817_s5 + $0x40] sm:$0xff] %vm2072_vm0, %v928_v22  ;;  %v929_v43 = vmul.f32 0.5, %v683_v31  ;;  %v685_v32 = vmul.f32 0.6931472, %v6121_v35  ;;  %6142 = vrcp.f32 %v1319_v25  ;;  %4480 = vmatprep.mubr.f32.mxu1 %v7100_v11  ;;  %v169_v28 = vadd.f32 1.0, %v7407_v26 }
  0x40   :  { %v6125_v37 = vpop.eup %6124  ;;  %2209 = vst.msk [vmem:[#allocation2 + $0x440] sm:$0xff] %vm2072_vm0, %v1952_v36  ;;  %2465 = vst.msk [vmem:[%s10818_s6 + $0x40] sm:$0xff] %vm2072_vm0, %v1952_v36  ;;  %v1953_v46 = vmul.f32 0.5, %v1707_v38  ;;  %v1709_v42 = vmul.f32 0.6931472, %v6123_v40  ;;  %6144 = vrcp.f32 %v296_v13  ;;  %v1193_v30 = vadd.f32 1.0, %v7419_v20 }
  0x41   :  { %v6127_v49 = vpop.eup %6126  ;;  %2082 = vst.msk [vmem:[#allocation2 + $0x48] sm:$0xff] %vm2072_vm0, %v929_v43  ;;  %2338 = vst.msk [vmem:[%s10817_s5 + $0x48] sm:$0xff] %vm2072_vm0, %v929_v43  ;;  %v930_v47 = vmul.f32 0.5, %v685_v32  ;;  %v687_v50 = vmul.f32 0.6931472, %v6125_v37  ;;  %6146 = vrcp.f32 %v1320_v33  ;;  %5771 = vmatmul.mubr.msk.f32.gmra.mrb[12].mxu0 %vm2072_vm0, %v2591_v41  ;;  %v170_v33 = vadd.f32 1.0, %v7430_v34 }
  0x42   :  { %v6129_v53 = vpop.eup %6128  ;;  %2210 = vst.msk [vmem:[#allocation2 + $0x448] sm:$0xff] %vm2072_vm0, %v1953_v46  ;;  %2466 = vst.msk [vmem:[%s10818_s6 + $0x48] sm:$0xff] %vm2072_vm0, %v1953_v46  ;;  %v1954_v54 = vmul.f32 0.5, %v1709_v42  ;;  %v1711_v55 = vmul.f32 0.6931472, %v6127_v49  ;;  %6148 = vrcp.f32 %v297_v39  ;;  %3718 = vmatprep.mubr.f32.mxu0 %v7100_v11  ;;  %v1194_v36 = vadd.f32 1.0, %v7442_v27 }
  0x43   :  { %v6131_v58 = vpop.eup %6130  ;;  %v2719_v59 = vld [vmem:[#allocation2 + $0x430] sm:$0xff]  ;;  %2083 = vst.msk [vmem:[#allocation2 + $0x50] sm:$0xff] %vm2072_vm0, %v930_v47  ;;  %2339 = vst.msk [vmem:[%s10817_s5 + $0x50] sm:$0xff] %vm2072_vm0, %v930_v47  ;;  %v931_v60 = vmul.f32 0.5, %v687_v50  ;;  %v689_v61 = vmul.f32 0.6931472, %v6129_v53  ;;  %6150 = vrcp.f32 %v1321_v44 }
  0x44   :  { %v6133_v0 = vpop.eup %6132  ;;  %5899 = vmatmul.mubr.msk.f32.gmra.mrb[12].mxu1 %vm2072_vm0, %v2719_v59  ;;  %v2592_v1 = vld [vmem:[#allocation2 + $0x38] sm:$0xff]  ;;  %2211 = vst.msk [vmem:[#allocation2 + $0x450] sm:$0xff] %vm2072_vm0, %v1954_v54  ;;  %2467 = vst.msk [vmem:[%s10818_s6 + $0x50] sm:$0xff] %vm2072_vm0, %v1954_v54  ;;  %v1955_v4 = vmul.f32 0.5, %v1711_v55  ;;  %v1713_v6 = vmul.f32 0.6931472, %v6131_v58  ;;  %6152 = vrcp.f32 %v298_v48 }
  0x45   :  { %v6135_v10 = vpop.eup %6134  ;;  %4486 = vmatprep.mubr.f32.mxu1 %v7100_v11  ;;  %v2720_v52 = vld [vmem:[#allocation2 + $0x438] sm:$0xff]  ;;  %2084 = vst.msk [vmem:[#allocation2 + $0x58] sm:$0xff] %vm2072_vm0, %v931_v60  ;;  %2340 = vst.msk [vmem:[%s10817_s5 + $0x58] sm:$0xff] %vm2072_vm0, %v931_v60  ;;  %v932_v15 = vmul.f32 0.5, %v689_v61  ;;  %v435_v17 = vmul.f32 %v6133_v0, %v7378_v2  ;;  %6154 = vrcp.f32 %v1322_v51  ;;  %5772 = vmatmul.mubr.msk.f32.gmra.mrb[14].mxu0 %vm2072_vm0, %v2592_v1  ;;  %v171_v40 = vadd.f32 1.0, %v7455_v45  ;;  %v44_v27 = vld [vmem:[%s10812_s0 + $0xa0] sm:$0xff] }
  0x46   :  { %v6137_v18 = vpop.eup %6136  ;;  %2212 = vst.msk [vmem:[#allocation2 + $0x458] sm:$0xff] %vm2072_vm0, %v1955_v4  ;;  %2468 = vst.msk [vmem:[%s10818_s6 + $0x58] sm:$0xff] %vm2072_vm0, %v1955_v4  ;;  %v1956_v57 = vmul.f32 0.5, %v1713_v6  ;;  %v1459_v21 = vmul.f32 %v6135_v10, %v7386_v9  ;;  %6156 = vrcp.f32 %v299_v56  ;;  %3724 = vmatprep.mubr.f32.mxu0 %v7100_v11  ;;  %v2593_v62 = vld [vmem:[#allocation2 + $0x40] sm:$0xff]  ;;  %v1192_v9 = vadd.f32 1.0, %v7399_v19  ;;  %v1067_v41 = vld [vmem:[%s10813_s1 + $0x98] sm:$0xff] }
  0x47   :  { %v6139_v2 = vpop.eup %6138  ;;  %2085 = vst.msk [vmem:[#allocation2 + $0x60] sm:$0xff] %vm2072_vm0, %v932_v15  ;;  %2341 = vst.msk [vmem:[%s10817_s5 + $0x60] sm:$0xff] %vm2072_vm0, %v932_v15  ;;  %6158 = vlog2.f32 %v435_v17  ;;  %v437_v23 = vmul.f32 %v6137_v18, %v166_v63  ;;  %v2721_v12 = vld [vmem:[#allocation2 + $0x440] sm:$0xff]  ;;  %v1323_v48 = vsub.f32 1.0, %v1067_v41  ;;  %v7548_v49 = vld [vmem:[%s10812_s0 + $0xa8] sm:$0xff]  ;;  %v300_v53 = vsub.f32 1.0, %v44_v27 }
  0x48   :  { %v6141_v25 = vpop.eup %6140  ;;  %5900 = vmatmul.mubr.msk.f32.gmra.mrb[14].mxu1 %vm2072_vm0, %v2720_v52  ;;  %2213 = vst.msk [vmem:[#allocation2 + $0x460] sm:$0xff] %vm2072_vm0, %v1956_v57  ;;  %2469 = vst.msk [vmem:[%s10818_s6 + $0x60] sm:$0xff] %vm2072_vm0, %v1956_v57  ;;  %6160 = vlog2.f32 %v1459_v21  ;;  %v1461_v5 = vmul.f32 %v6139_v2, %v1190_v8  ;;  %v2594_v31 = vld [vmem:[#allocation2 + $0x48] sm:$0xff]  ;;  %v7542_v45 = vld [vmem:[%s10813_s1 + $0xa0] sm:$0xff]  ;;  %v7557_v58 = vadd.f32 1.0, %v1067_v41  ;;  %v7566_v1 = vadd.f32 1.0, %v44_v27 }
  0x49   :  { %v6143_v16 = vpop.eup %6142  ;;  %4492 = vmatprep.mubr.f32.mxu1 %v7100_v11  ;;  %6162 = vlog2.f32 %v437_v23  ;;  %v439_v14 = vmul.f32 %v6141_v25, %v167_v3  ;;  %5773 = vmatmul.mubr.msk.f32.gmra.mrb[16].mxu0 %vm2072_vm0, %v2593_v62  ;;  %v2722_v39 = vld [vmem:[#allocation2 + $0x448] sm:$0xff]  ;;  %v1324_v59 = vsub.f32 1.0, %v7542_v45  ;;  %v7563_v60 = vld [vmem:[%s10812_s0 + $0xb0] sm:$0xff]  ;;  %v301_v4 = vsub.f32 1.0, %v7548_v49  ;;  %v7579_v17 = vld [vmem:[%s10812_s0 + $0xb8] sm:$0xff] }
  0x4a   :  { %v6145_v29 = vpop.eup %6144  ;;  %6164 = vlog2.f32 %v1461_v5  ;;  %v1463_v13 = vmul.f32 %v6143_v16, %v1191_v7  ;;  %3730 = vmatprep.mubr.f32.mxu0 %v7100_v11  ;;  %v2595_v44 = vld [vmem:[#allocation2 + $0x50] sm:$0xff]  ;;  %v7554_v54 = vld [vmem:[%s10813_s1 + $0xa8] sm:$0xff]  ;;  %v302_v7 = vsub.f32 1.0, %v7563_v60  ;;  %v7586_v2 = vld [vmem:[%s10813_s1 + $0xb8] sm:$0xff] }
  0x4b   :  { %v6147_v22 = vpop.eup %6146  ;;  %6166 = vlog2.f32 %v439_v14  ;;  %v441_v19 = vmul.f32 %v6145_v29, %v168_v24  ;;  %v2723_v50 = vld [vmem:[#allocation2 + $0x450] sm:$0xff]  ;;  %v1325_v15 = vsub.f32 1.0, %v7554_v54  ;;  %v7598_v5 = vld [vmem:[%s10812_s0 + $0xc0] sm:$0xff] }
  0x4c   :  { %v6149_v35 = vpop.eup %6148  ;;  %5901 = vmatmul.mubr.msk.f32.gmra.mrb[16].mxu1 %vm2072_vm0, %v2721_v12  ;;  %6168 = vlog2.f32 %v1463_v13  ;;  %v1465_v26 = vmul.f32 %v6147_v22, %v1192_v9  ;;  %v2596_v63 = vld [vmem:[#allocation2 + $0x58] sm:$0xff]  ;;  %v7572_v6 = vld [vmem:[%s10813_s1 + $0xb0] sm:$0xff]  ;;  %v7610_v29 = vld [vmem:[%s10813_s1 + $0xc0] sm:$0xff] }
  0x4d   :  { %v6151_v38 = vpop.eup %6150  ;;  %4498 = vmatprep.mubr.f32.mxu1 %v7100_v11  ;;  %6170 = vlog2.f32 %v441_v19  ;;  %v443_v20 = vmul.f32 %v6149_v35, %v169_v28  ;;  %5774 = vmatmul.mubr.msk.f32.gmra.mrb[18].mxu0 %vm2072_vm0, %v2594_v31  ;;  %v2724_v18 = vld [vmem:[#allocation2 + $0x458] sm:$0xff]  ;;  %v1326_v25 = vsub.f32 1.0, %v7572_v6  ;;  %v303_v28 = vsub.f32 1.0, %v7579_v17  ;;  %v7622_v19 = vld [vmem:[%s10812_s0 + $0xc8] sm:$0xff] }
  0x4e   :  { %v6153_v34 = vpop.eup %6152  ;;  %6172 = vlog2.f32 %v1465_v26  ;;  %v1467_v43 = vmul.f32 %v6151_v38, %v1193_v30  ;;  %3736 = vmatprep.mubr.f32.mxu0 %v7100_v11  ;;  %v2597_v16 = vld [vmem:[#allocation2 + $0x60] sm:$0xff]  ;;  %v1327_v31 = vsub.f32 1.0, %v7586_v2  ;;  %v304_v38 = vsub.f32 1.0, %v7598_v5 }
  0x4f   :  { %v6155_v32 = vpop.eup %6154  ;;  %6174 = vlog2.f32 %v443_v20  ;;  %v445_v37 = vmul.f32 %v6153_v34, %v170_v33  ;;  %v2725_v35 = vld [vmem:[#allocation2 + $0x460] sm:$0xff]  ;;  %v1328_v34 = vsub.f32 1.0, %v7610_v29 }
  0x50   :  { %v6157_v46 = vpop.eup %6156  ;;  %5902 = vmatmul.mubr.msk.f32.gmra.mrb[18].mxu1 %vm2072_vm0, %v2722_v39  ;;  %6176 = vlog2.f32 %v1467_v43  ;;  %v1469_v42 = vmul.f32 %v6155_v32, %v1194_v36  ;;  %v7634_v39 = vld [vmem:[%s10813_s1 + $0xc8] sm:$0xff] }
  0x51   :  { %v6159_v47 = vpop.eup %6158  ;;  %4504 = vmatprep.mubr.f32.mxu1 %v7100_v11  ;;  %6178 = vlog2.f32 %v445_v37  ;;  %v447_v51 = vmul.f32 %v6157_v46, %v171_v40  ;;  %5775 = vmatmul.mubr.msk.f32.gmra.mrb[20].mxu0 %vm2072_vm0, %v2595_v44  ;;  %v305_v44 = vsub.f32 1.0, %v7622_v19 }
  0x52   :  { %v6161_v55 = vpop.eup %6160  ;;  %v691_v56 = vmul.f32 0.6931472, %v6159_v47  ;;  %6180 = vlog2.f32 %v1469_v42  ;;  %3742 = vmatprep.mubr.f32.mxu0 %v7100_v11 }
  0x53   :  { %v6163_v61 = vpop.eup %6162  ;;  %v1715_v0 = vmul.f32 0.6931472, %v6161_v55  ;;  %6182 = vlog2.f32 %v447_v51  ;;  %v1196_v55 = vadd.f32 1.0, %v7542_v45 }
  0x54   :  { %v6165_v8 = vpop.eup %6164  ;;  %5903 = vmatmul.mubr.msk.f32.gmra.mrb[20].mxu1 %vm2072_vm0, %v2723_v50  ;;  %v933_v10 = vmul.f32 0.5, %v691_v56  ;;  %v693_v52 = vmul.f32 0.6931472, %v6163_v61  ;;  %6184 = vrcp.f32 %v1323_v48  ;;  %v1329_v48 = vsub.f32 1.0, %v7634_v39 }
  0x55   :  { %v6167_v3 = vpop.eup %6166  ;;  %4510 = vmatprep.mubr.f32.mxu1 %v7100_v11  ;;  %v1957_v57 = vmul.f32 0.5, %v1715_v0  ;;  %v1717_v21 = vmul.f32 0.6931472, %v6165_v8  ;;  %6186 = vrcp.f32 %v300_v53  ;;  %5776 = vmatmul.mubr.msk.f32.gmra.mrb[22].mxu0 %vm2072_vm0, %v2596_v63  ;;  %v173_v0 = vadd.f32 1.0, %v7548_v49 }
  0x56   :  { %v6169_v62 = vpop.eup %6168  ;;  %2086 = vst.msk [vmem:[#allocation2 + $0x68] sm:$0xff] %vm2072_vm0, %v933_v10  ;;  %2342 = vst.msk [vmem:[%s10817_s5 + $0x68] sm:$0xff] %vm2072_vm0, %v933_v10  ;;  %v934_v23 = vmul.f32 0.5, %v693_v52  ;;  %v695_v24 = vmul.f32 0.6931472, %v6167_v3  ;;  %6188 = vrcp.f32 %v1324_v59  ;;  %3748 = vmatprep.mubr.f32.mxu0 %v7100_v11  ;;  %v1197_v52 = vadd.f32 1.0, %v7554_v54 }
  0x57   :  { %v6171_v9 = vpop.eup %6170  ;;  %2214 = vst.msk [vmem:[#allocation2 + $0x468] sm:$0xff] %vm2072_vm0, %v1957_v57  ;;  %2470 = vst.msk [vmem:[%s10818_s6 + $0x68] sm:$0xff] %vm2072_vm0, %v1957_v57  ;;  %v1958_v12 = vmul.f32 0.5, %v1717_v21  ;;  %v1719_v14 = vmul.f32 0.6931472, %v6169_v62  ;;  %6190 = vrcp.f32 %v301_v4  ;;  %v1198_v21 = vadd.f32 1.0, %v7572_v6 }
  0x58   :  { %v6173_v13 = vpop.eup %6172  ;;  %5904 = vmatmul.mubr.msk.f32.gmra.mrb[22].mxu1 %vm2072_vm0, %v2724_v18  ;;  %2087 = vst.msk [vmem:[#allocation2 + $0x70] sm:$0xff] %vm2072_vm0, %v934_v23  ;;  %2343 = vst.msk [vmem:[%s10817_s5 + $0x70] sm:$0xff] %vm2072_vm0, %v934_v23  ;;  %v935_v30 = vmul.f32 0.5, %v695_v24  ;;  %v697_v22 = vmul.f32 0.6931472, %v6171_v9  ;;  %6192 = vrcp.f32 %v1325_v15  ;;  %v174_v18 = vadd.f32 1.0, %v7563_v60 }
  0x59   :  { %v6175_v33 = vpop.eup %6174  ;;  %4516 = vmatprep.mubr.f32.mxu1 %v7100_v11  ;;  %2215 = vst.msk [vmem:[#allocation2 + $0x470] sm:$0xff] %vm2072_vm0, %v1958_v12  ;;  %2471 = vst.msk [vmem:[%s10818_s6 + $0x70] sm:$0xff] %vm2072_vm0, %v1958_v12  ;;  %v1959_v26 = vmul.f32 0.5, %v1719_v14  ;;  %v1721_v36 = vmul.f32 0.6931472, %v6173_v13  ;;  %6194 = vrcp.f32 %v302_v7  ;;  %5777 = vmatmul.mubr.msk.f32.gmra.mrb[24].mxu0 %vm2072_vm0, %v2597_v16  ;;  %v1199_v24 = vadd.f32 1.0, %v7586_v2 }
  0x5a   :  { %v6177_v20 = vpop.eup %6176  ;;  %2088 = vst.msk [vmem:[#allocation2 + $0x78] sm:$0xff] %vm2072_vm0, %v935_v30  ;;  %2344 = vst.msk [vmem:[%s10817_s5 + $0x78] sm:$0xff] %vm2072_vm0, %v935_v30  ;;  %v936_v40 = vmul.f32 0.5, %v697_v22  ;;  %v699_v41 = vmul.f32 0.6931472, %v6175_v33  ;;  %6196 = vrcp.f32 %v1326_v25  ;;  %3754 = vmatprep.mubr.f32.mxu0 %v7100_v11  ;;  %v176_v16 = vadd.f32 1.0, %v7598_v5 }
  0x5b   :  { %v6179_v43 = vpop.eup %6178  ;;  %2216 = vst.msk [vmem:[#allocation2 + $0x478] sm:$0xff] %vm2072_vm0, %v1959_v26  ;;  %2472 = vst.msk [vmem:[%s10818_s6 + $0x78] sm:$0xff] %vm2072_vm0, %v1959_v26  ;;  %v1960_v27 = vmul.f32 0.5, %v1721_v36  ;;  %v1723_v32 = vmul.f32 0.6931472, %v6177_v20  ;;  %6198 = vrcp.f32 %v303_v28  ;;  %v1200_v28 = vadd.f32 1.0, %v7610_v29 }
  0x5c   :  { %v6181_v37 = vpop.eup %6180  ;;  %5905 = vmatmul.mubr.msk.f32.gmra.mrb[24].mxu1 %vm2072_vm0, %v2725_v35  ;;  %2089 = vst.msk [vmem:[#allocation2 + $0x80] sm:$0xff] %vm2072_vm0, %v936_v40  ;;  %2345 = vst.msk [vmem:[%s10817_s5 + $0x80] sm:$0xff] %vm2072_vm0, %v936_v40  ;;  %v937_v46 = vmul.f32 0.5, %v699_v41  ;;  %v701_v42 = vmul.f32 0.6931472, %v6179_v43  ;;  %6200 = vrcp.f32 %v1327_v31  ;;  %v177_v30 = vadd.f32 1.0, %v7622_v19 }
  0x5d   :  { %v6183_v47 = vpop.eup %6182  ;;  %4522 = vmatprep.mubr.f32.mxu1 %v7100_v11  ;;  %v2598_v50 = vld [vmem:[#allocation2 + $0x68] sm:$0xff]  ;;  %2217 = vst.msk [vmem:[#allocation2 + $0x480] sm:$0xff] %vm2072_vm0, %v1960_v27  ;;  %2473 = vst.msk [vmem:[%s10818_s6 + $0x80] sm:$0xff] %vm2072_vm0, %v1960_v27  ;;  %v1961_v51 = vmul.f32 0.5, %v1723_v32  ;;  %v1725_v53 = vmul.f32 0.6931472, %v6181_v37  ;;  %6202 = vrcp.f32 %v304_v38 }
  0x5e   :  { %v6185_v56 = vpop.eup %6184  ;;  %5778 = vmatmul.mubr.msk.f32.gmra.mrb[26].mxu0 %vm2072_vm0, %v2598_v50  ;;  %v2726_v59 = vld [vmem:[#allocation2 + $0x468] sm:$0xff]  ;;  %2090 = vst.msk [vmem:[#allocation2 + $0x88] sm:$0xff] %vm2072_vm0, %v937_v46  ;;  %2346 = vst.msk [vmem:[%s10817_s5 + $0x88] sm:$0xff] %vm2072_vm0, %v937_v46  ;;  %v938_v61 = vmul.f32 0.5, %v701_v42  ;;  %v703_v63 = vmul.f32 0.6931472, %v6183_v47  ;;  %6204 = vrcp.f32 %v1328_v34 }
  0x5f   :  { %v6187_v4 = vpop.eup %6186  ;;  %3760 = vmatprep.mubr.f32.mxu0 %v7100_v11  ;;  %v2599_v45 = vld [vmem:[#allocation2 + $0x70] sm:$0xff]  ;;  %2218 = vst.msk [vmem:[#allocation2 + $0x488] sm:$0xff] %vm2072_vm0, %v1961_v51  ;;  %2474 = vst.msk [vmem:[%s10818_s6 + $0x88] sm:$0xff] %vm2072_vm0, %v1961_v51  ;;  %v1962_v8 = vmul.f32 0.5, %v1725_v53  ;;  %v1471_v10 = vmul.f32 %v6185_v56, %v7557_v58  ;;  %6206 = vrcp.f32 %v305_v44  ;;  %v1201_v33 = vadd.f32 1.0, %v7634_v39  ;;  %v7722_v39 = vld [vmem:[%s10812_s0 + $0xd8] sm:$0xff] }
  0x60   :  { %v6189_v15 = vpop.eup %6188  ;;  %5906 = vmatmul.mubr.msk.f32.gmra.mrb[26].mxu1 %vm2072_vm0, %v2726_v59  ;;  %2091 = vst.msk [vmem:[#allocation2 + $0x90] sm:$0xff] %vm2072_vm0, %v938_v61  ;;  %2347 = vst.msk [vmem:[%s10817_s5 + $0x90] sm:$0xff] %vm2072_vm0, %v938_v61  ;;  %v939_v49 = vmul.f32 0.5, %v703_v63  ;;  %v449_v3 = vmul.f32 %v6187_v4, %v7566_v1  ;;  %6208 = vrcp.f32 %v1329_v48  ;;  %v2727_v54 = vld [vmem:[#allocation2 + $0x470] sm:$0xff]  ;;  %v175_v1 = vadd.f32 1.0, %v7579_v17  ;;  %v7728_v43 = vld [vmem:[%s10813_s1 + $0xd8] sm:$0xff] }
  0x61   :  { %v6191_v58 = vpop.eup %6190  ;;  %4528 = vmatprep.mubr.f32.mxu1 %v7100_v11  ;;  %2219 = vst.msk [vmem:[#allocation2 + $0x490] sm:$0xff] %vm2072_vm0, %v1962_v8  ;;  %2475 = vst.msk [vmem:[%s10818_s6 + $0x90] sm:$0xff] %vm2072_vm0, %v1962_v8  ;;  %6210 = vlog2.f32 %v1471_v10  ;;  %v1473_v57 = vmul.f32 %v6189_v15, %v1196_v55  ;;  %v2600_v23 = vld [vmem:[#allocation2 + $0x78] sm:$0xff]  ;;  %v50_v35 = vld [vmem:[%s10812_s0 + $0xd0] sm:$0xff]  ;;  %v307_v50 = vsub.f32 1.0, %v7722_v39  ;;  %v1331_v61 = vsub.f32 1.0, %v7728_v43 }
  0x62   :  { %v6193_v7 = vpop.eup %6192  ;;  %5779 = vmatmul.mubr.msk.f32.gmra.mrb[28].mxu0 %vm2072_vm0, %v2599_v45  ;;  %2092 = vst.msk [vmem:[#allocation2 + $0x98] sm:$0xff] %vm2072_vm0, %v939_v49  ;;  %2348 = vst.msk [vmem:[%s10817_s5 + $0x98] sm:$0xff] %vm2072_vm0, %v939_v49  ;;  %6212 = vlog2.f32 %v449_v3  ;;  %v451_v60 = vmul.f32 %v6191_v58, %v173_v0  ;;  %v2728_v14 = vld [vmem:[#allocation2 + $0x478] sm:$0xff]  ;;  %v1074_v19 = vld [vmem:[%s10813_s1 + $0xd0] sm:$0xff]  ;;  %v306_v34 = vsub.f32 1.0, %v50_v35  ;;  %v7737_v47 = vadd.f32 1.0, %v50_v35 }
  0x63   :  { %v6195_v62 = vpop.eup %6194  ;;  %3766 = vmatprep.mubr.f32.mxu0 %v7100_v11  ;;  %6214 = vlog2.f32 %v1473_v57  ;;  %v1475_v6 = vmul.f32 %v6193_v7, %v1197_v52  ;;  %v2601_v31 = vld [vmem:[#allocation2 + $0x80] sm:$0xff]  ;;  %v1330_v37 = vsub.f32 1.0, %v1074_v19  ;;  %v7746_v59 = vadd.f32 1.0, %v1074_v19  ;;  %v7752_v63 = vld [vmem:[%s10812_s0 + $0xe8] sm:$0xff]  ;;  %v7766_v58 = vld [vmem:[%s10812_s0 + $0xf0] sm:$0xff] }
  0x64   :  { %v6197_v25 = vpop.eup %6196  ;;  %5907 = vmatmul.mubr.msk.f32.gmra.mrb[28].mxu1 %vm2072_vm0, %v2727_v54  ;;  %6216 = vlog2.f32 %v451_v60  ;;  %v453_v9 = vmul.f32 %v6195_v62, %v174_v18  ;;  %v2729_v38 = vld [vmem:[#allocation2 + $0x480] sm:$0xff]  ;;  %v7759_v10 = vld [vmem:[%s10813_s1 + $0xe8] sm:$0xff]  ;;  %v309_v7 = vsub.f32 1.0, %v7752_v63  ;;  %v7778_v60 = vld [vmem:[%s10813_s1 + $0xf0] sm:$0xff] }
  0x65   :  { %v6199_v12 = vpop.eup %6198  ;;  %4534 = vmatprep.mubr.f32.mxu1 %v7100_v11  ;;  %6218 = vlog2.f32 %v1475_v6  ;;  %v1477_v17 = vmul.f32 %v6197_v25, %v1198_v21  ;;  %v2602_v32 = vld [vmem:[#allocation2 + $0x88] sm:$0xff]  ;;  %v7734_v46 = vld [vmem:[%s10812_s0 + $0xe0] sm:$0xff]  ;;  %v7790_v25 = vld [vmem:[%s10812_s0 + $0xf8] sm:$0xff] }
  0x66   :  { %v6201_v13 = vpop.eup %6200  ;;  %5780 = vmatmul.mubr.msk.f32.gmra.mrb[30].mxu0 %vm2072_vm0, %v2600_v23  ;;  %6220 = vlog2.f32 %v453_v9  ;;  %v455_v2 = vmul.f32 %v6199_v12, %v175_v1  ;;  %v7743_v51 = vld [vmem:[%s10813_s1 + $0xe0] sm:$0xff]  ;;  %v2730_v55 = vld [vmem:[#allocation2 + $0x488] sm:$0xff]  ;;  %v308_v8 = vsub.f32 1.0, %v7734_v46 }
  0x67   :  { %v6203_v22 = vpop.eup %6202  ;;  %3772 = vmatprep.mubr.f32.mxu0 %v7100_v11  ;;  %6222 = vlog2.f32 %v1477_v17  ;;  %v1479_v5 = vmul.f32 %v6201_v13, %v1199_v24  ;;  %v2603_v15 = vld [vmem:[#allocation2 + $0x90] sm:$0xff]  ;;  %v1332_v18 = vsub.f32 1.0, %v7743_v51  ;;  %v1333_v24 = vsub.f32 1.0, %v7759_v10  ;;  %v7802_v17 = vld [vmem:[%s10813_s1 + $0xf8] sm:$0xff] }
  0x68   :  { %v6205_v29 = vpop.eup %6204  ;;  %5908 = vmatmul.mubr.msk.f32.gmra.mrb[30].mxu1 %vm2072_vm0, %v2728_v14  ;;  %6224 = vlog2.f32 %v455_v2  ;;  %v457_v26 = vmul.f32 %v6203_v22, %v176_v16  ;;  %v2731_v62 = vld [vmem:[#allocation2 + $0x490] sm:$0xff]  ;;  %v310_v14 = vsub.f32 1.0, %v7766_v58  ;;  %v1334_v22 = vsub.f32 1.0, %v7778_v60 }
  0x69   :  { %v6207_v36 = vpop.eup %6206  ;;  %4540 = vmatprep.mubr.f32.mxu1 %v7100_v11  ;;  %6226 = vlog2.f32 %v1479_v5  ;;  %v1481_v20 = vmul.f32 %v6205_v29, %v1200_v28  ;;  %v2604_v13 = vld [vmem:[#allocation2 + $0x98] sm:$0xff]  ;;  %v311_v29 = vsub.f32 1.0, %v7790_v25 }
  0x6a   :  { %v6209_v40 = vpop.eup %6208  ;;  %5781 = vmatmul.mubr.msk.f32.gmra.mrb[32].mxu0 %vm2072_vm0, %v2601_v31  ;;  %6228 = vlog2.f32 %v457_v26  ;;  %v459_v41 = vmul.f32 %v6207_v36, %v177_v30  ;;  %v7814_v31 = vld [vmem:[%s10812_s0 + $0x100] sm:$0xff] }
  0x6b   :  { %v6211_v27 = vpop.eup %6210  ;;  %3778 = vmatprep.mubr.f32.mxu0 %v7100_v11  ;;  %6230 = vlog2.f32 %v1481_v20  ;;  %v1483_v44 = vmul.f32 %v6209_v40, %v1201_v33 }
  0x6c   :  { %v6213_v42 = vpop.eup %6212  ;;  %5909 = vmatmul.mubr.msk.f32.gmra.mrb[32].mxu1 %vm2072_vm0, %v2729_v38  ;;  %v1727_v48 = vmul.f32 0.6931472, %v6211_v27  ;;  %6232 = vlog2.f32 %v459_v41  ;;  %v1335_v38 = vsub.f32 1.0, %v7802_v17 }
  0x6d   :  { %v6215_v53 = vpop.eup %6214  ;;  %4546 = vmatprep.mubr.f32.mxu1 %v7100_v11  ;;  %v705_v56 = vmul.f32 0.6931472, %v6213_v42  ;;  %6234 = vlog2.f32 %v1483_v44  ;;  %v179_v42 = vadd.f32 1.0, %v7722_v39 }
  0x6e   :  { %v6217_v0 = vpop.eup %6216  ;;  %5782 = vmatmul.mubr.msk.f32.gmra.mrb[34].mxu0 %vm2072_vm0, %v2602_v32  ;;  %v1963_v4 = vmul.f32 0.5, %v1727_v48  ;;  %v1729_v45 = vmul.f32 0.6931472, %v6215_v53  ;;  %6236 = vrcp.f32 %v306_v34  ;;  %v312_v34 = vsub.f32 1.0, %v7814_v31 }
  0x6f   :  { %v6219_v52 = vpop.eup %6218  ;;  %3784 = vmatprep.mubr.f32.mxu0 %v7100_v11  ;;  %v940_v49 = vmul.f32 0.5, %v705_v56  ;;  %v707_v3 = vmul.f32 0.6931472, %v6217_v0  ;;  %6238 = vrcp.f32 %v1330_v37  ;;  %v1203_v56 = vadd.f32 1.0, %v7728_v43 }
  0x70   :  { %v6221_v54 = vpop.eup %6220  ;;  %5910 = vmatmul.mubr.msk.f32.gmra.mrb[34].mxu1 %vm2072_vm0, %v2730_v55  ;;  %2220 = vst.msk [vmem:[#allocation2 + $0x498] sm:$0xff] %vm2072_vm0, %v1963_v4  ;;  %2476 = vst.msk [vmem:[%s10818_s6 + $0x98] sm:$0xff] %vm2072_vm0, %v1963_v4  ;;  %v1964_v57 = vmul.f32 0.5, %v1729_v45  ;;  %v1731_v21 = vmul.f32 0.6931472, %v6219_v52  ;;  %6240 = vrcp.f32 %v307_v50  ;;  %v180_v45 = vadd.f32 1.0, %v7734_v46 }
  0x71   :  { %v6223_v1 = vpop.eup %6222  ;;  %4552 = vmatprep.mubr.f32.mxu1 %v7100_v11  ;;  %2093 = vst.msk [vmem:[#allocation2 + $0xa0] sm:$0xff] %vm2072_vm0, %v940_v49  ;;  %2349 = vst.msk [vmem:[%s10817_s5 + $0xa0] sm:$0xff] %vm2072_vm0, %v940_v49  ;;  %v941_v23 = vmul.f32 0.5, %v707_v3  ;;  %v709_v6 = vmul.f32 0.6931472, %v6221_v54  ;;  %6242 = vrcp.f32 %v1331_v61  ;;  %v181_v3 = vadd.f32 1.0, %v7752_v63 }
  0x72   :  { %v6225_v9 = vpop.eup %6224  ;;  %5783 = vmatmul.mubr.msk.f32.gmra.mrb[36].mxu0 %vm2072_vm0, %v2603_v15  ;;  %2221 = vst.msk [vmem:[#allocation2 + $0x4a0] sm:$0xff] %vm2072_vm0, %v1964_v57  ;;  %2477 = vst.msk [vmem:[%s10818_s6 + $0xa0] sm:$0xff] %vm2072_vm0, %v1964_v57  ;;  %v1965_v16 = vmul.f32 0.5, %v1731_v21  ;;  %v1733_v12 = vmul.f32 0.6931472, %v6223_v1  ;;  %6244 = vrcp.f32 %v308_v8  ;;  %v1204_v15 = vadd.f32 1.0, %v7743_v51 }
  0x73   :  { %v6227_v28 = vpop.eup %6226  ;;  %3790 = vmatprep.mubr.f32.mxu0 %v7100_v11  ;;  %2094 = vst.msk [vmem:[#allocation2 + $0xa8] sm:$0xff] %vm2072_vm0, %v941_v23  ;;  %2350 = vst.msk [vmem:[%s10817_s5 + $0xa8] sm:$0xff] %vm2072_vm0, %v941_v23  ;;  %v942_v2 = vmul.f32 0.5, %v709_v6  ;;  %v711_v30 = vmul.f32 0.6931472, %v6225_v9  ;;  %6246 = vrcp.f32 %v1332_v18  ;;  %v182_v21 = vadd.f32 1.0, %v7766_v58 }
  0x74   :  { %v6229_v5 = vpop.eup %6228  ;;  %5911 = vmatmul.mubr.msk.f32.gmra.mrb[36].mxu1 %vm2072_vm0, %v2731_v62  ;;  %2222 = vst.msk [vmem:[#allocation2 + $0x4a8] sm:$0xff] %vm2072_vm0, %v1965_v16  ;;  %2478 = vst.msk [vmem:[%s10818_s6 + $0xa8] sm:$0xff] %vm2072_vm0, %v1965_v16  ;;  %v1966_v33 = vmul.f32 0.5, %v1733_v12  ;;  %v1735_v35 = vmul.f32 0.6931472, %v6227_v28  ;;  %6248 = vrcp.f32 %v309_v7  ;;  %v1206_v62 = vadd.f32 1.0, %v7778_v60 }
  0x75   :  { %v6231_v26 = vpop.eup %6230  ;;  %4558 = vmatprep.mubr.f32.mxu1 %v7100_v11  ;;  %2095 = vst.msk [vmem:[#allocation2 + $0xb0] sm:$0xff] %vm2072_vm0, %v942_v2  ;;  %2351 = vst.msk [vmem:[%s10817_s5 + $0xb0] sm:$0xff] %vm2072_vm0, %v942_v2  ;;  %v943_v19 = vmul.f32 0.5, %v711_v30  ;;  %v713_v36 = vmul.f32 0.6931472, %v6229_v5  ;;  %6250 = vrcp.f32 %v1333_v24  ;;  %v183_v24 = vadd.f32 1.0, %v7790_v25 }
  0x76   :  { %v6233_v20 = vpop.eup %6232  ;;  %5784 = vmatmul.mubr.msk.f32.gmra.mrb[38].mxu0 %vm2072_vm0, %v2604_v13  ;;  %2223 = vst.msk [vmem:[#allocation2 + $0x4b0] sm:$0xff] %vm2072_vm0, %v1966_v33  ;;  %2479 = vst.msk [vmem:[%s10818_s6 + $0xb0] sm:$0xff] %vm2072_vm0, %v1966_v33  ;;  %v1967_v40 = vmul.f32 0.5, %v1735_v35  ;;  %v1737_v41 = vmul.f32 0.6931472, %v6231_v26  ;;  %6252 = vrcp.f32 %v310_v14  ;;  %v1207_v16 = vadd.f32 1.0, %v7802_v17 }
  0x77   :  { %v6235_v27 = vpop.eup %6234  ;;  %v2732_v32 = vld [vmem:[#allocation2 + $0x498] sm:$0xff]  ;;  %3796 = vmatprep.mubr.f32.mxu0 %v7100_v11  ;;  %2096 = vst.msk [vmem:[#allocation2 + $0xb8] sm:$0xff] %vm2072_vm0, %v943_v19  ;;  %2352 = vst.msk [vmem:[%s10817_s5 + $0xb8] sm:$0xff] %vm2072_vm0, %v943_v19  ;;  %v944_v44 = vmul.f32 0.5, %v713_v36  ;;  %v715_v37 = vmul.f32 0.6931472, %v6233_v20  ;;  %6254 = vrcp.f32 %v1334_v22 }
  0x78   :  { %v6237_v48 = vpop.eup %6236  ;;  %5912 = vmatmul.mubr.msk.f32.gmra.mrb[38].mxu1 %vm2072_vm0, %v2732_v32  ;;  %v2605_v50 = vld [vmem:[#allocation2 + $0xa0] sm:$0xff]  ;;  %2224 = vst.msk [vmem:[#allocation2 + $0x4b8] sm:$0xff] %vm2072_vm0, %v1967_v40  ;;  %2480 = vst.msk [vmem:[%s10818_s6 + $0xb8] sm:$0xff] %vm2072_vm0, %v1967_v40  ;;  %v1968_v53 = vmul.f32 0.5, %v1737_v41  ;;  %v1739_v55 = vmul.f32 0.6931472, %v6235_v27  ;;  %6256 = vrcp.f32 %v311_v29 }
  0x79   :  { %v6239_v61 = vpop.eup %6238  ;;  %4564 = vmatprep.mubr.f32.mxu1 %v7100_v11  ;;  %v2733_v39 = vld [vmem:[#allocation2 + $0x4a0] sm:$0xff]  ;;  %2097 = vst.msk [vmem:[#allocation2 + $0xc0] sm:$0xff] %vm2072_vm0, %v944_v44  ;;  %2353 = vst.msk [vmem:[%s10817_s5 + $0xc0] sm:$0xff] %vm2072_vm0, %v944_v44  ;;  %v945_v0 = vmul.f32 0.5, %v715_v37  ;;  %v461_v4 = vmul.f32 %v6237_v48, %v7737_v47  ;;  %6258 = vrcp.f32 %v1335_v38  ;;  %v184_v28 = vadd.f32 1.0, %v7814_v31  ;;  %v57_v17 = vld [vmem:[%s10812_s0 + $0x108] sm:$0xff] }
  0x7a   :  { %v6241_v8 = vpop.eup %6240  ;;  %5785 = vmatmul.mubr.msk.f32.gmra.mrb[40].mxu0 %vm2072_vm0, %v2605_v50  ;;  %2225 = vst.msk [vmem:[#allocation2 + $0x4c0] sm:$0xff] %vm2072_vm0, %v1968_v53  ;;  %2481 = vst.msk [vmem:[%s10818_s6 + $0xc0] sm:$0xff] %vm2072_vm0, %v1968_v53  ;;  %v1969_v43 = vmul.f32 0.5, %v1739_v55  ;;  %v1485_v52 = vmul.f32 %v6239_v61, %v7746_v59  ;;  %6260 = vrcp.f32 %v312_v34  ;;  %v2606_v46 = vld [vmem:[#allocation2 + $0xa8] sm:$0xff]  ;;  %v1205_v59 = vadd.f32 1.0, %v7759_v10  ;;  %v1080_v13 = vld [vmem:[%s10813_s1 + $0x100] sm:$0xff] }
  0x7b   :  { %v6243_v47 = vpop.eup %6242  ;;  %3802 = vmatprep.mubr.f32.mxu0 %v7100_v11  ;;  %2098 = vst.msk [vmem:[#allocation2 + $0xc8] sm:$0xff] %vm2072_vm0, %v945_v0  ;;  %2354 = vst.msk [vmem:[%s10817_s5 + $0xc8] sm:$0xff] %vm2072_vm0, %v945_v0  ;;  %6262 = vlog2.f32 %v461_v4  ;;  %v463_v49 = vmul.f32 %v6241_v8, %v179_v42  ;;  %v2734_v57 = vld [vmem:[#allocation2 + $0x4a8] sm:$0xff]  ;;  %v1336_v29 = vsub.f32 1.0, %v1080_v13  ;;  %v7908_v26 = vld [vmem:[%s10812_s0 + $0x110] sm:$0xff]  ;;  %v313_v20 = vsub.f32 1.0, %v57_v17 }
  0x7c   :  { %v6245_v18 = vpop.eup %6244  ;;  %5913 = vmatmul.mubr.msk.f32.gmra.mrb[40].mxu1 %vm2072_vm0, %v2733_v39  ;;  %2226 = vst.msk [vmem:[#allocation2 + $0x4c8] sm:$0xff] %vm2072_vm0, %v1969_v43  ;;  %2482 = vst.msk [vmem:[%s10818_s6 + $0xc8] sm:$0xff] %vm2072_vm0, %v1969_v43  ;;  %6264 = vlog2.f32 %v1485_v52  ;;  %v1487_v51 = vmul.f32 %v6243_v47, %v1203_v56  ;;  %v2607_v6 = vld [vmem:[#allocation2 + $0xb0] sm:$0xff]  ;;  %v7902_v31 = vld [vmem:[%s10813_s1 + $0x108] sm:$0xff]  ;;  %v7917_v27 = vadd.f32 1.0, %v1080_v13  ;;  %v7926_v50 = vadd.f32 1.0, %v57_v17 }
  0x7d   :  { %v6247_v54 = vpop.eup %6246  ;;  %4570 = vmatprep.mubr.f32.mxu1 %v7100_v11  ;;  %6266 = vlog2.f32 %v463_v49  ;;  %v465_v63 = vmul.f32 %v6245_v18, %v180_v45  ;;  %v2735_v14 = vld [vmem:[#allocation2 + $0x4b0] sm:$0xff]  ;;  %v1337_v32 = vsub.f32 1.0, %v7902_v31  ;;  %v7923_v44 = vld [vmem:[%s10812_s0 + $0x118] sm:$0xff]  ;;  %v314_v53 = vsub.f32 1.0, %v7908_v26  ;;  %v7939_v4 = vld [vmem:[%s10812_s0 + $0x120] sm:$0xff] }
  0x7e   :  { %v6249_v7 = vpop.eup %6248  ;;  %5786 = vmatmul.mubr.msk.f32.gmra.mrb[42].mxu0 %vm2072_vm0, %v2606_v46  ;;  %6268 = vlog2.f32 %v1487_v51  ;;  %v1489_v1 = vmul.f32 %v6247_v54, %v1204_v15  ;;  %v2608_v22 = vld [vmem:[#allocation2 + $0xb8] sm:$0xff]  ;;  %v7914_v40 = vld [vmem:[%s10813_s1 + $0x110] sm:$0xff]  ;;  %v315_v15 = vsub.f32 1.0, %v7923_v44  ;;  %v7946_v47 = vld [vmem:[%s10813_s1 + $0x120] sm:$0xff] }
  0x7f   :  { %v6251_v23 = vpop.eup %6250  ;;  %3808 = vmatprep.mubr.f32.mxu0 %v7100_v11  ;;  %6270 = vlog2.f32 %v465_v63  ;;  %v467_v10 = vmul.f32 %v6249_v7, %v181_v3  ;;  %v2736_v36 = vld [vmem:[#allocation2 + $0x4b8] sm:$0xff]  ;;  %v1338_v0 = vsub.f32 1.0, %v7914_v40  ;;  %v7958_v51 = vld [vmem:[%s10812_s0 + $0x128] sm:$0xff] }
  0x80   :  { %v6253_v9 = vpop.eup %6252  ;;  %5914 = vmatmul.mubr.msk.f32.gmra.mrb[42].mxu1 %vm2072_vm0, %v2734_v57  ;;  %6272 = vlog2.f32 %v1489_v1  ;;  %v1491_v58 = vmul.f32 %v6251_v23, %v1205_v59  ;;  %v2609_v42 = vld [vmem:[#allocation2 + $0xc0] sm:$0xff]  ;;  %v7932_v55 = vld [vmem:[%s10813_s1 + $0x118] sm:$0xff]  ;;  %v7970_v7 = vld [vmem:[%s10813_s1 + $0x128] sm:$0xff] }
  0x81   :  { %v6255_v12 = vpop.eup %6254  ;;  %4576 = vmatprep.mubr.f32.mxu1 %v7100_v11  ;;  %6274 = vlog2.f32 %v467_v10  ;;  %v469_v60 = vmul.f32 %v6253_v9, %v182_v21  ;;  %v2737_v8 = vld [vmem:[#allocation2 + $0x4c0] sm:$0xff]  ;;  %v1339_v18 = vsub.f32 1.0, %v7932_v55  ;;  %v316_v21 = vsub.f32 1.0, %v7939_v4  ;;  %v7982_v10 = vld [vmem:[%s10812_s0 + $0x130] sm:$0xff] }
  0x82   :  { %v6257_v25 = vpop.eup %6256  ;;  %5787 = vmatmul.mubr.msk.f32.gmra.mrb[44].mxu0 %vm2072_vm0, %v2607_v6  ;;  %6276 = vlog2.f32 %v1491_v58  ;;  %v1493_v2 = vmul.f32 %v6255_v12, %v1206_v62  ;;  %v2610_v54 = vld [vmem:[#allocation2 + $0xc8] sm:$0xff]  ;;  %v1340_v6 = vsub.f32 1.0, %v7946_v47  ;;  %v317_v12 = vsub.f32 1.0, %v7958_v51 }
  0x83   :  { %v6259_v30 = vpop.eup %6258  ;;  %3814 = vmatprep.mubr.f32.mxu0 %v7100_v11  ;;  %6278 = vlog2.f32 %v469_v60  ;;  %v471_v5 = vmul.f32 %v6257_v25, %v183_v24  ;;  %v2738_v9 = vld [vmem:[#allocation2 + $0x4c8] sm:$0xff]  ;;  %v1341_v25 = vsub.f32 1.0, %v7970_v7 }
  0x84   :  { %v6261_v33 = vpop.eup %6260  ;;  %5915 = vmatmul.mubr.msk.f32.gmra.mrb[44].mxu1 %vm2072_vm0, %v2735_v14  ;;  %6280 = vlog2.f32 %v1493_v2  ;;  %v1495_v35 = vmul.f32 %v6259_v30, %v1207_v16  ;;  %v7994_v14 = vld [vmem:[%s10813_s1 + $0x130] sm:$0xff] }
  0x85   :  { %v6263_v19 = vpop.eup %6262  ;;  %4582 = vmatprep.mubr.f32.mxu1 %v7100_v11  ;;  %6282 = vlog2.f32 %v471_v5  ;;  %v473_v38 = vmul.f32 %v6261_v33, %v184_v28 }
  0x86   :  { %v6265_v41 = vpop.eup %6264  ;;  %5788 = vmatmul.mubr.msk.f32.gmra.mrb[46].mxu0 %vm2072_vm0, %v2608_v22  ;;  %v717_v34 = vmul.f32 0.6931472, %v6263_v19  ;;  %6284 = vlog2.f32 %v1495_v35  ;;  %v318_v22 = vsub.f32 1.0, %v7982_v10 }
  0x87   :  { %v6267_v37 = vpop.eup %6266  ;;  %3820 = vmatprep.mubr.f32.mxu0 %v7100_v11  ;;  %v1741_v48 = vmul.f32 0.6931472, %v6265_v41  ;;  %6286 = vlog2.f32 %v473_v38  ;;  %v1209_v41 = vadd.f32 1.0, %v7902_v31 }
  0x88   :  { %v6269_v56 = vpop.eup %6268  ;;  %5916 = vmatmul.mubr.msk.f32.gmra.mrb[46].mxu1 %vm2072_vm0, %v2736_v36  ;;  %v946_v61 = vmul.f32 0.5, %v717_v34  ;;  %v719_v39 = vmul.f32 0.6931472, %v6267_v37  ;;  %6288 = vrcp.f32 %v1336_v29  ;;  %v1342_v29 = vsub.f32 1.0, %v7994_v14 }
  0x89   :  { %v6271_v45 = vpop.eup %6270  ;;  %4588 = vmatprep.mubr.f32.mxu1 %v7100_v11  ;;  %v1970_v43 = vmul.f32 0.5, %v1741_v48  ;;  %v1743_v52 = vmul.f32 0.6931472, %v6269_v56  ;;  %6290 = vrcp.f32 %v313_v20  ;;  %v186_v48 = vadd.f32 1.0, %v7908_v26 }
  0x8a   :  { %v6273_v46 = vpop.eup %6272  ;;  %5789 = vmatmul.mubr.msk.f32.gmra.mrb[48].mxu0 %vm2072_vm0, %v2609_v42  ;;  %2099 = vst.msk [vmem:[#allocation2 + $0xd0] sm:$0xff] %vm2072_vm0, %v946_v61  ;;  %2355 = vst.msk [vmem:[%s10817_s5 + $0xd0] sm:$0xff] %vm2072_vm0, %v946_v61  ;;  %v947_v49 = vmul.f32 0.5, %v719_v39  ;;  %v721_v3 = vmul.f32 0.6931472, %v6271_v45  ;;  %6292 = vrcp.f32 %v1337_v32  ;;  %v1210_v39 = vadd.f32 1.0, %v7914_v40 }
  0x8b   :  { %v6275_v59 = vpop.eup %6274  ;;  %3826 = vmatprep.mubr.f32.mxu0 %v7100_v11  ;;  %2227 = vst.msk [vmem:[#allocation2 + $0x4d0] sm:$0xff] %vm2072_vm0, %v1970_v43  ;;  %2483 = vst.msk [vmem:[%s10818_s6 + $0xd0] sm:$0xff] %vm2072_vm0, %v1970_v43  ;;  %v1971_v57 = vmul.f32 0.5, %v1743_v52  ;;  %v1745_v63 = vmul.f32 0.6931472, %v6273_v46  ;;  %6294 = vrcp.f32 %v314_v53  ;;  %v1211_v52 = vadd.f32 1.0, %v7932_v55 }
  0x8c   :  { %v6277_v1 = vpop.eup %6276  ;;  %5917 = vmatmul.mubr.msk.f32.gmra.mrb[48].mxu1 %vm2072_vm0, %v2737_v8  ;;  %2100 = vst.msk [vmem:[#allocation2 + $0xd8] sm:$0xff] %vm2072_vm0, %v947_v49  ;;  %2356 = vst.msk [vmem:[%s10817_s5 + $0xd8] sm:$0xff] %vm2072_vm0, %v947_v49  ;;  %v948_v62 = vmul.f32 0.5, %v721_v3  ;;  %v723_v23 = vmul.f32 0.6931472, %v6275_v59  ;;  %6296 = vrcp.f32 %v1338_v0  ;;  %v187_v8 = vadd.f32 1.0, %v7923_v44 }
  0x8d   :  { %v6279_v24 = vpop.eup %6278  ;;  %4594 = vmatprep.mubr.f32.mxu1 %v7100_v11  ;;  %2228 = vst.msk [vmem:[#allocation2 + $0x4d8] sm:$0xff] %vm2072_vm0, %v1971_v57  ;;  %2484 = vst.msk [vmem:[%s10818_s6 + $0xd8] sm:$0xff] %vm2072_vm0, %v1971_v57  ;;  %v1972_v58 = vmul.f32 0.5, %v1745_v63  ;;  %v1747_v16 = vmul.f32 0.6931472, %v6277_v1  ;;  %6298 = vrcp.f32 %v315_v15  ;;  %v1212_v3 = vadd.f32 1.0, %v7946_v47 }
  0x8e   :  { %v6281_v60 = vpop.eup %6280  ;;  %5790 = vmatmul.mubr.msk.f32.gmra.mrb[50].mxu0 %vm2072_vm0, %v2610_v54  ;;  %2101 = vst.msk [vmem:[#allocation2 + $0xe0] sm:$0xff] %vm2072_vm0, %v948_v62  ;;  %2357 = vst.msk [vmem:[%s10817_s5 + $0xe0] sm:$0xff] %vm2072_vm0, %v948_v62  ;;  %v949_v28 = vmul.f32 0.5, %v723_v23  ;;  %v725_v13 = vmul.f32 0.6931472, %v6279_v24  ;;  %6300 = vrcp.f32 %v1339_v18  ;;  %v189_v54 = vadd.f32 1.0, %v7958_v51 }
  0x8f   :  { %v6283_v2 = vpop.eup %6282  ;;  %3832 = vmatprep.mubr.f32.mxu0 %v7100_v11  ;;  %2229 = vst.msk [vmem:[#allocation2 + $0x4e0] sm:$0xff] %vm2072_vm0, %v1972_v58  ;;  %2485 = vst.msk [vmem:[%s10818_s6 + $0xe0] sm:$0xff] %vm2072_vm0, %v1972_v58  ;;  %v1973_v17 = vmul.f32 0.5, %v1747_v16  ;;  %v1749_v30 = vmul.f32 0.6931472, %v6281_v60  ;;  %6302 = vrcp.f32 %v316_v21  ;;  %v1213_v21 = vadd.f32 1.0, %v7970_v7 }
  0x90   :  { %v6285_v5 = vpop.eup %6284  ;;  %5918 = vmatmul.mubr.msk.f32.gmra.mrb[50].mxu1 %vm2072_vm0, %v2738_v9  ;;  %2102 = vst.msk [vmem:[#allocation2 + $0xe8] sm:$0xff] %vm2072_vm0, %v949_v28  ;;  %2358 = vst.msk [vmem:[%s10817_s5 + $0xe8] sm:$0xff] %vm2072_vm0, %v949_v28  ;;  %v950_v33 = vmul.f32 0.5, %v725_v13  ;;  %v727_v35 = vmul.f32 0.6931472, %v6283_v2  ;;  %6304 = vrcp.f32 %v1340_v6  ;;  %v190_v62 = vadd.f32 1.0, %v7982_v10 }
  0x91   :  { %v6287_v19 = vpop.eup %6286  ;;  %4600 = vmatprep.mubr.f32.mxu1 %v7100_v11  ;;  %v2611_v36 = vld [vmem:[#allocation2 + $0xd0] sm:$0xff]  ;;  %2230 = vst.msk [vmem:[#allocation2 + $0x4e8] sm:$0xff] %vm2072_vm0, %v1973_v17  ;;  %2486 = vst.msk [vmem:[%s10818_s6 + $0xe8] sm:$0xff] %vm2072_vm0, %v1973_v17  ;;  %v1974_v38 = vmul.f32 0.5, %v1749_v30  ;;  %v1751_v20 = vmul.f32 0.6931472, %v6285_v5  ;;  %6306 = vrcp.f32 %v317_v12 }
  0x92   :  { %v6289_v34 = vpop.eup %6288  ;;  %5791 = vmatmul.mubr.msk.f32.gmra.mrb[52].mxu0 %vm2072_vm0, %v2611_v36  ;;  %v2739_v32 = vld [vmem:[#allocation2 + $0x4d0] sm:$0xff]  ;;  %2103 = vst.msk [vmem:[#allocation2 + $0xf0] sm:$0xff] %vm2072_vm0, %v950_v33  ;;  %2359 = vst.msk [vmem:[%s10817_s5 + $0xf0] sm:$0xff] %vm2072_vm0, %v950_v33  ;;  %v951_v37 = vmul.f32 0.5, %v727_v35  ;;  %v729_v42 = vmul.f32 0.6931472, %v6287_v19  ;;  %6308 = vrcp.f32 %v1341_v25 }
  0x93   :  { %v6291_v53 = vpop.eup %6290  ;;  %3838 = vmatprep.mubr.f32.mxu0 %v7100_v11  ;;  %v2612_v31 = vld [vmem:[#allocation2 + $0xd8] sm:$0xff]  ;;  %2231 = vst.msk [vmem:[#allocation2 + $0x4f0] sm:$0xff] %vm2072_vm0, %v1974_v38  ;;  %2487 = vst.msk [vmem:[%s10818_s6 + $0xf0] sm:$0xff] %vm2072_vm0, %v1974_v38  ;;  %v1975_v56 = vmul.f32 0.5, %v1751_v20  ;;  %v1497_v61 = vmul.f32 %v6289_v34, %v7917_v27  ;;  %6310 = vrcp.f32 %v318_v22  ;;  %v1214_v24 = vadd.f32 1.0, %v7994_v14  ;;  %v8082_v14 = vld [vmem:[%s10812_s0 + $0x140] sm:$0xff] }
  0x94   :  { %v6293_v0 = vpop.eup %6292  ;;  %5919 = vmatmul.mubr.msk.f32.gmra.mrb[52].mxu1 %vm2072_vm0, %v2739_v32  ;;  %2104 = vst.msk [vmem:[#allocation2 + $0xf8] sm:$0xff] %vm2072_vm0, %v951_v37  ;;  %2360 = vst.msk [vmem:[%s10817_s5 + $0xf8] sm:$0xff] %vm2072_vm0, %v951_v37  ;;  %v952_v26 = vmul.f32 0.5, %v729_v42  ;;  %v475_v45 = vmul.f32 %v6291_v53, %v7926_v50  ;;  %6312 = vrcp.f32 %v1342_v29  ;;  %v2740_v40 = vld [vmem:[#allocation2 + $0x4d8] sm:$0xff]  ;;  %v188_v50 = vadd.f32 1.0, %v7939_v4  ;;  %v8088_v2 = vld [vmem:[%s10813_s1 + $0x140] sm:$0xff] }
  0x95   :  { %v6295_v27 = vpop.eup %6294  ;;  %4606 = vmatprep.mubr.f32.mxu1 %v7100_v11  ;;  %2232 = vst.msk [vmem:[#allocation2 + $0x4f8] sm:$0xff] %vm2072_vm0, %v1975_v56  ;;  %2488 = vst.msk [vmem:[%s10818_s6 + $0xf8] sm:$0xff] %vm2072_vm0, %v1975_v56  ;;  %6314 = vlog2.f32 %v1497_v61  ;;  %v1499_v43 = vmul.f32 %v6293_v0, %v1209_v41  ;;  %v2613_v49 = vld [vmem:[#allocation2 + $0xe0] sm:$0xff]  ;;  %v63_v9 = vld [vmem:[%s10812_s0 + $0x138] sm:$0xff]  ;;  %v320_v36 = vsub.f32 1.0, %v8082_v14  ;;  %v1344_v37 = vsub.f32 1.0, %v8088_v2 }
  0x96   :  { %v6297_v15 = vpop.eup %6296  ;;  %5792 = vmatmul.mubr.msk.f32.gmra.mrb[54].mxu0 %vm2072_vm0, %v2612_v31  ;;  %2105 = vst.msk [vmem:[#allocation2 + $0x100] sm:$0xff] %vm2072_vm0, %v952_v26  ;;  %2361 = vst.msk [vmem:[%s10817_s5 + $0x100] sm:$0xff] %vm2072_vm0, %v952_v26  ;;  %6316 = vlog2.f32 %v475_v45  ;;  %v477_v44 = vmul.f32 %v6295_v27, %v186_v48  ;;  %v2741_v63 = vld [vmem:[#allocation2 + $0x4e0] sm:$0xff]  ;;  %v1087_v10 = vld [vmem:[%s10813_s1 + $0x138] sm:$0xff]  ;;  %v319_v25 = vsub.f32 1.0, %v63_v9  ;;  %v8097_v19 = vadd.f32 1.0, %v63_v9 }
  0x97   :  { %v6299_v46 = vpop.eup %6298  ;;  %3844 = vmatprep.mubr.f32.mxu0 %v7100_v11  ;;  %6318 = vlog2.f32 %v1499_v43  ;;  %v1501_v55 = vmul.f32 %v6297_v15, %v1210_v39  ;;  %v2614_v6 = vld [vmem:[#allocation2 + $0xe8] sm:$0xff]  ;;  %v1343_v5 = vsub.f32 1.0, %v1087_v10  ;;  %v8106_v32 = vadd.f32 1.0, %v1087_v10  ;;  %v8112_v42 = vld [vmem:[%s10812_s0 + $0x150] sm:$0xff]  ;;  %v8126_v27 = vld [vmem:[%s10812_s0 + $0x158] sm:$0xff] }
  0x98   :  { %v6301_v18 = vpop.eup %6300  ;;  %5920 = vmatmul.mubr.msk.f32.gmra.mrb[54].mxu1 %vm2072_vm0, %v2740_v40  ;;  %6320 = vlog2.f32 %v477_v44  ;;  %v479_v59 = vmul.f32 %v6299_v46, %v187_v8  ;;  %v2742_v12 = vld [vmem:[#allocation2 + $0x4e8] sm:$0xff]  ;;  %v8119_v61 = vld [vmem:[%s10813_s1 + $0x150] sm:$0xff]  ;;  %v322_v15 = vsub.f32 1.0, %v8112_v42  ;;  %v8138_v44 = vld [vmem:[%s10813_s1 + $0x158] sm:$0xff] }
  0x99   :  { %v6303_v57 = vpop.eup %6302  ;;  %4612 = vmatprep.mubr.f32.mxu1 %v7100_v11  ;;  %6322 = vlog2.f32 %v1501_v55  ;;  %v1503_v4 = vmul.f32 %v6301_v18, %v1211_v52  ;;  %v2615_v30 = vld [vmem:[#allocation2 + $0xf0] sm:$0xff]  ;;  %v8094_v33 = vld [vmem:[%s10812_s0 + $0x148] sm:$0xff]  ;;  %v8150_v18 = vld [vmem:[%s10812_s0 + $0x160] sm:$0xff] }
  0x9a   :  { %v6305_v1 = vpop.eup %6304  ;;  %5793 = vmatmul.mubr.msk.f32.gmra.mrb[56].mxu0 %vm2072_vm0, %v2613_v49  ;;  %6324 = vlog2.f32 %v479_v59  ;;  %v481_v47 = vmul.f32 %v6303_v57, %v188_v50  ;;  %v8103_v38 = vld [vmem:[%s10813_s1 + $0x148] sm:$0xff]  ;;  %v2743_v41 = vld [vmem:[#allocation2 + $0x4f0] sm:$0xff]  ;;  %v321_v56 = vsub.f32 1.0, %v8094_v33 }
  0x9b   :  { %v6307_v23 = vpop.eup %6306  ;;  %3850 = vmatprep.mubr.f32.mxu0 %v7100_v11  ;;  %6326 = vlog2.f32 %v1503_v4  ;;  %v1505_v51 = vmul.f32 %v6305_v1, %v1212_v3  ;;  %v2616_v0 = vld [vmem:[#allocation2 + $0xf8] sm:$0xff]  ;;  %v1345_v8 = vsub.f32 1.0, %v8103_v38  ;;  %v1346_v3 = vsub.f32 1.0, %v8119_v61  ;;  %v8162_v4 = vld [vmem:[%s10813_s1 + $0x160] sm:$0xff] }
  0x9c   :  { %v6309_v7 = vpop.eup %6308  ;;  %5921 = vmatmul.mubr.msk.f32.gmra.mrb[56].mxu1 %vm2072_vm0, %v2741_v63  ;;  %6328 = vlog2.f32 %v481_v47  ;;  %v483_v58 = vmul.f32 %v6307_v23, %v189_v54  ;;  %v2744_v46 = vld [vmem:[#allocation2 + $0x4f8] sm:$0xff]  ;;  %v323_v63 = vsub.f32 1.0, %v8126_v27  ;;  %v1347_v23 = vsub.f32 1.0, %v8138_v44 }
  0x9d   :  { %v6311_v16 = vpop.eup %6310  ;;  %4618 = vmatprep.mubr.f32.mxu1 %v7100_v11  ;;  %6330 = vlog2.f32 %v1505_v51  ;;  %v1507_v60 = vmul.f32 %v6309_v7, %v1213_v21  ;;  %v2617_v1 = vld [vmem:[#allocation2 + $0x100] sm:$0xff]  ;;  %v324_v7 = vsub.f32 1.0, %v8150_v18 }
  0x9e   :  { %v6313_v28 = vpop.eup %6312  ;;  %5794 = vmatmul.mubr.msk.f32.gmra.mrb[58].mxu0 %vm2072_vm0, %v2614_v6  ;;  %6332 = vlog2.f32 %v483_v58  ;;  %v485_v13 = vmul.f32 %v6311_v16, %v190_v62  ;;  %v8174_v6 = vld [vmem:[%s10812_s0 + $0x168] sm:$0xff] }
  0x9f   :  { %v6315_v17 = vpop.eup %6314  ;;  %3856 = vmatprep.mubr.f32.mxu0 %v7100_v11  ;;  %6334 = vlog2.f32 %v1507_v60  ;;  %v1509_v22 = vmul.f32 %v6313_v28, %v1214_v24 }
  0xa0   :  { %v6317_v35 = vpop.eup %6316  ;;  %5922 = vmatmul.mubr.msk.f32.gmra.mrb[58].mxu1 %vm2072_vm0, %v2742_v12  ;;  %v1753_v29 = vmul.f32 0.6931472, %v6315_v17  ;;  %6336 = vlog2.f32 %v485_v13  ;;  %v1348_v12 = vsub.f32 1.0, %v8162_v4 }
  0xa1   :  { %v6319_v20 = vpop.eup %6318  ;;  %4624 = vmatprep.mubr.f32.mxu1 %v7100_v11  ;;  %v731_v34 = vmul.f32 0.6931472, %v6317_v35  ;;  %6338 = vlog2.f32 %v1509_v22  ;;  %v192_v35 = vadd.f32 1.0, %v8082_v14 }
  0xa2   :  { %v6321_v48 = vpop.eup %6320  ;;  %5795 = vmatmul.mubr.msk.f32.gmra.mrb[60].mxu0 %vm2072_vm0, %v2615_v30  ;;  %v1976_v53 = vmul.f32 0.5, %v1753_v29  ;;  %v1755_v31 = vmul.f32 0.6931472, %v6319_v20  ;;  %6340 = vrcp.f32 %v319_v25  ;;  %v325_v25 = vsub.f32 1.0, %v8174_v6 }
  0xa3   :  { %v6323_v39 = vpop.eup %6322  ;;  %3862 = vmatprep.mubr.f32.mxu0 %v7100_v11  ;;  %v953_v26 = vmul.f32 0.5, %v731_v34  ;;  %v733_v45 = vmul.f32 0.6931472, %v6321_v48  ;;  %6342 = vrcp.f32 %v1343_v5  ;;  %v1216_v34 = vadd.f32 1.0, %v8088_v2 }
  0xa4   :  { %v6325_v40 = vpop.eup %6324  ;;  %5923 = vmatmul.mubr.msk.f32.gmra.mrb[60].mxu1 %vm2072_vm0, %v2743_v41  ;;  %2233 = vst.msk [vmem:[#allocation2 + $0x500] sm:$0xff] %vm2072_vm0, %v1976_v53  ;;  %2489 = vst.msk [vmem:[%s10818_s6 + $0x100] sm:$0xff] %vm2072_vm0, %v1976_v53  ;;  %v1977_v43 = vmul.f32 0.5, %v1755_v31  ;;  %v1757_v52 = vmul.f32 0.6931472, %v6323_v39  ;;  %6344 = vrcp.f32 %v320_v36  ;;  %v193_v31 = vadd.f32 1.0, %v8094_v33 }
  0xa5   :  { %v6327_v50 = vpop.eup %6326  ;;  %4630 = vmatprep.mubr.f32.mxu1 %v7100_v11  ;;  %2106 = vst.msk [vmem:[#allocation2 + $0x108] sm:$0xff] %vm2072_vm0, %v953_v26  ;;  %2362 = vst.msk [vmem:[%s10817_s5 + $0x108] sm:$0xff] %vm2072_vm0, %v953_v26  ;;  %v954_v49 = vmul.f32 0.5, %v733_v45  ;;  %v735_v55 = vmul.f32 0.6931472, %v6325_v40  ;;  %6346 = vrcp.f32 %v1344_v37  ;;  %v194_v45 = vadd.f32 1.0, %v8112_v42 }
  0xa6   :  { %v6329_v59 = vpop.eup %6328  ;;  %5796 = vmatmul.mubr.msk.f32.gmra.mrb[62].mxu0 %vm2072_vm0, %v2616_v0  ;;  %2234 = vst.msk [vmem:[#allocation2 + $0x508] sm:$0xff] %vm2072_vm0, %v1977_v43  ;;  %2490 = vst.msk [vmem:[%s10818_s6 + $0x108] sm:$0xff] %vm2072_vm0, %v1977_v43  ;;  %v1978_v54 = vmul.f32 0.5, %v1757_v52  ;;  %v1759_v57 = vmul.f32 0.6931472, %v6327_v50  ;;  %6348 = vrcp.f32 %v321_v56  ;;  %v1217_v0 = vadd.f32 1.0, %v8103_v38 }
  0xa7   :  { %v6331_v21 = vpop.eup %6330  ;;  %3868 = vmatprep.mubr.f32.mxu0 %v7100_v11  ;;  %2107 = vst.msk [vmem:[#allocation2 + $0x110] sm:$0xff] %vm2072_vm0, %v954_v49  ;;  %2363 = vst.msk [vmem:[%s10817_s5 + $0x110] sm:$0xff] %vm2072_vm0, %v954_v49  ;;  %v955_v47 = vmul.f32 0.5, %v735_v55  ;;  %v737_v62 = vmul.f32 0.6931472, %v6329_v59  ;;  %6350 = vrcp.f32 %v1345_v8  ;;  %v195_v52 = vadd.f32 1.0, %v8126_v27 }
  0xa8   :  { %v6333_v51 = vpop.eup %6332  ;;  %5924 = vmatmul.mubr.msk.f32.gmra.mrb[62].mxu1 %vm2072_vm0, %v2744_v46  ;;  %2235 = vst.msk [vmem:[#allocation2 + $0x510] sm:$0xff] %vm2072_vm0, %v1978_v54  ;;  %2491 = vst.msk [vmem:[%s10818_s6 + $0x110] sm:$0xff] %vm2072_vm0, %v1978_v54  ;;  %v1979_v24 = vmul.f32 0.5, %v1759_v57  ;;  %v1761_v9 = vmul.f32 0.6931472, %v6331_v21  ;;  %6352 = vrcp.f32 %v322_v15  ;;  %v1219_v46 = vadd.f32 1.0, %v8138_v44 }
  0xa9   :  { %v6335_v58 = vpop.eup %6334  ;;  %4636 = vmatprep.mubr.f32.mxu1 %v7100_v11  ;;  %2108 = vst.msk [vmem:[#allocation2 + $0x118] sm:$0xff] %vm2072_vm0, %v955_v47  ;;  %2364 = vst.msk [vmem:[%s10817_s5 + $0x118] sm:$0xff] %vm2072_vm0, %v955_v47  ;;  %v956_v10 = vmul.f32 0.5, %v737_v62  ;;  %v739_v16 = vmul.f32 0.6931472, %v6333_v51  ;;  %6354 = vrcp.f32 %v1346_v3  ;;  %v196_v3 = vadd.f32 1.0, %v8150_v18 }
  0xaa   :  { %v6337_v60 = vpop.eup %6336  ;;  %5797 = vmatmul.mubr.msk.f32.gmra.mrb[64].mxu0 %vm2072_vm0, %v2617_v1  ;;  %2236 = vst.msk [vmem:[#allocation2 + $0x518] sm:$0xff] %vm2072_vm0, %v1979_v24  ;;  %2492 = vst.msk [vmem:[%s10818_s6 + $0x118] sm:$0xff] %vm2072_vm0, %v1979_v24  ;;  %v1980_v28 = vmul.f32 0.5, %v1761_v9  ;;  %v1763_v13 = vmul.f32 0.6931472, %v6335_v58  ;;  %6356 = vrcp.f32 %v323_v63  ;;  %v1220_v54 = vadd.f32 1.0, %v8162_v4 }
  0xab   :  { %v6339_v17 = vpop.eup %6338  ;;  %v2745_v30 = vld [vmem:[#allocation2 + $0x500] sm:$0xff]  ;;  %3874 = vmatprep.mubr.f32.mxu0 %v7100_v11  ;;  %2109 = vst.msk [vmem:[#allocation2 + $0x120] sm:$0xff] %vm2072_vm0, %v956_v10  ;;  %2365 = vst.msk [vmem:[%s10817_s5 + $0x120] sm:$0xff] %vm2072_vm0, %v956_v10  ;;  %v957_v22 = vmul.f32 0.5, %v739_v16  ;;  %v741_v5 = vmul.f32 0.6931472, %v6337_v60  ;;  %6358 = vrcp.f32 %v1347_v23 }
  0xac   :  { %v6341_v29 = vpop.eup %6340  ;;  %5925 = vmatmul.mubr.msk.f32.gmra.mrb[64].mxu1 %vm2072_vm0, %v2745_v30  ;;  %v2618_v36 = vld [vmem:[#allocation2 + $0x108] sm:$0xff]  ;;  %2237 = vst.msk [vmem:[#allocation2 + $0x520] sm:$0xff] %vm2072_vm0, %v1980_v28  ;;  %2493 = vst.msk [vmem:[%s10818_s6 + $0x120] sm:$0xff] %vm2072_vm0, %v1980_v28  ;;  %v1981_v20 = vmul.f32 0.5, %v1763_v13  ;;  %v1765_v41 = vmul.f32 0.6931472, %v6339_v17  ;;  %6360 = vrcp.f32 %v324_v7 }
  0xad   :  { %v6343_v37 = vpop.eup %6342  ;;  %4642 = vmatprep.mubr.f32.mxu1 %v7100_v11  ;;  %v2746_v14 = vld [vmem:[#allocation2 + $0x508] sm:$0xff]  ;;  %2110 = vst.msk [vmem:[#allocation2 + $0x128] sm:$0xff] %vm2072_vm0, %v957_v22  ;;  %2366 = vst.msk [vmem:[%s10817_s5 + $0x128] sm:$0xff] %vm2072_vm0, %v957_v22  ;;  %v958_v48 = vmul.f32 0.5, %v741_v5  ;;  %v487_v53 = vmul.f32 %v6341_v29, %v8097_v19  ;;  %6362 = vrcp.f32 %v1348_v12  ;;  %v197_v21 = vadd.f32 1.0, %v8174_v6  ;;  %v70_v4 = vld [vmem:[%s10812_s0 + $0x170] sm:$0xff] }
  0xae   :  { %v6345_v56 = vpop.eup %6344  ;;  %5798 = vmatmul.mubr.msk.f32.gmra.mrb[66].mxu0 %vm2072_vm0, %v2618_v36  ;;  %2238 = vst.msk [vmem:[#allocation2 + $0x528] sm:$0xff] %vm2072_vm0, %v1981_v20  ;;  %2494 = vst.msk [vmem:[%s10818_s6 + $0x128] sm:$0xff] %vm2072_vm0, %v1981_v20  ;;  %v1982_v2 = vmul.f32 0.5, %v1765_v41  ;;  %v1511_v39 = vmul.f32 %v6343_v37, %v8106_v32  ;;  %6364 = vrcp.f32 %v325_v25  ;;  %v2619_v33 = vld [vmem:[#allocation2 + $0x110] sm:$0xff]  ;;  %v1218_v32 = vadd.f32 1.0, %v8119_v61  ;;  %v1093_v1 = vld [vmem:[%s10813_s1 + $0x168] sm:$0xff] }
  0xaf   :  { %v6347_v19 = vpop.eup %6346  ;;  %3880 = vmatprep.mubr.f32.mxu0 %v7100_v11  ;;  %2111 = vst.msk [vmem:[#allocation2 + $0x130] sm:$0xff] %vm2072_vm0, %v958_v48  ;;  %2367 = vst.msk [vmem:[%s10817_s5 + $0x130] sm:$0xff] %vm2072_vm0, %v958_v48  ;;  %6366 = vlog2.f32 %v487_v53  ;;  %v489_v26 = vmul.f32 %v6345_v56, %v192_v35  ;;  %v2747_v43 = vld [vmem:[#allocation2 + $0x510] sm:$0xff]  ;;  %v1349_v7 = vsub.f32 1.0, %v1093_v1  ;;  %v8268_v58 = vld [vmem:[%s10812_s0 + $0x178] sm:$0xff]  ;;  %v326_v60 = vsub.f32 1.0, %v70_v4 }
  0xb0   :  { %v6349_v8 = vpop.eup %6348  ;;  %5926 = vmatmul.mubr.msk.f32.gmra.mrb[66].mxu1 %vm2072_vm0, %v2746_v14  ;;  %2239 = vst.msk [vmem:[#allocation2 + $0x530] sm:$0xff] %vm2072_vm0, %v1982_v2  ;;  %2495 = vst.msk [vmem:[%s10818_s6 + $0x130] sm:$0xff] %vm2072_vm0, %v1982_v2  ;;  %6368 = vlog2.f32 %v1511_v39  ;;  %v1513_v38 = vmul.f32 %v6347_v19, %v1216_v34  ;;  %v2620_v55 = vld [vmem:[#allocation2 + $0x118] sm:$0xff]  ;;  %v8262_v6 = vld [vmem:[%s10813_s1 + $0x170] sm:$0xff]  ;;  %v8277_v17 = vadd.f32 1.0, %v1093_v1  ;;  %v8286_v36 = vadd.f32 1.0, %v70_v4 }
  0xb1   :  { %v6351_v40 = vpop.eup %6350  ;;  %4648 = vmatprep.mubr.f32.mxu1 %v7100_v11  ;;  %6370 = vlog2.f32 %v489_v26  ;;  %v491_v42 = vmul.f32 %v6349_v8, %v193_v31  ;;  %v2748_v63 = vld [vmem:[#allocation2 + $0x518] sm:$0xff]  ;;  %v1350_v30 = vsub.f32 1.0, %v8262_v6  ;;  %v8283_v22 = vld [vmem:[%s10812_s0 + $0x180] sm:$0xff]  ;;  %v327_v20 = vsub.f32 1.0, %v8268_v58  ;;  %v8299_v53 = vld [vmem:[%s10812_s0 + $0x188] sm:$0xff] }
  0xb2   :  { %v6353_v15 = vpop.eup %6352  ;;  %5799 = vmatmul.mubr.msk.f32.gmra.mrb[68].mxu0 %vm2072_vm0, %v2619_v33  ;;  %6372 = vlog2.f32 %v1513_v38  ;;  %v1515_v50 = vmul.f32 %v6351_v40, %v1217_v0  ;;  %v2621_v23 = vld [vmem:[#allocation2 + $0x120] sm:$0xff]  ;;  %v8274_v28 = vld [vmem:[%s10813_s1 + $0x178] sm:$0xff]  ;;  %v328_v0 = vsub.f32 1.0, %v8283_v22  ;;  %v8306_v19 = vld [vmem:[%s10813_s1 + $0x188] sm:$0xff] }
  0xb3   :  { %v6355_v49 = vpop.eup %6354  ;;  %3886 = vmatprep.mubr.f32.mxu0 %v7100_v11  ;;  %6374 = vlog2.f32 %v491_v42  ;;  %v493_v61 = vmul.f32 %v6353_v15, %v194_v45  ;;  %v2749_v16 = vld [vmem:[#allocation2 + $0x520] sm:$0xff]  ;;  %v1351_v48 = vsub.f32 1.0, %v8274_v28  ;;  %v8318_v38 = vld [vmem:[%s10812_s0 + $0x190] sm:$0xff] }
  0xb4   :  { %v6357_v59 = vpop.eup %6356  ;;  %5927 = vmatmul.mubr.msk.f32.gmra.mrb[68].mxu1 %vm2072_vm0, %v2747_v43  ;;  %6376 = vlog2.f32 %v1515_v50  ;;  %v1517_v27 = vmul.f32 %v6355_v49, %v1218_v32  ;;  %v2622_v35 = vld [vmem:[#allocation2 + $0x128] sm:$0xff]  ;;  %v8292_v41 = vld [vmem:[%s10813_s1 + $0x180] sm:$0xff]  ;;  %v8330_v15 = vld [vmem:[%s10813_s1 + $0x190] sm:$0xff] }
  0xb5   :  { %v6359_v57 = vpop.eup %6358  ;;  %4654 = vmatprep.mubr.f32.mxu1 %v7100_v11  ;;  %6378 = vlog2.f32 %v493_v61  ;;  %v495_v44 = vmul.f32 %v6357_v59, %v195_v52  ;;  %v2750_v56 = vld [vmem:[#allocation2 + $0x528] sm:$0xff]  ;;  %v1352_v8 = vsub.f32 1.0, %v8292_v41  ;;  %v329_v52 = vsub.f32 1.0, %v8299_v53  ;;  %v8342_v61 = vld [vmem:[%s10812_s0 + $0x198] sm:$0xff] }
  0xb6   :  { %v6361_v18 = vpop.eup %6360  ;;  %5800 = vmatmul.mubr.msk.f32.gmra.mrb[70].mxu0 %vm2072_vm0, %v2620_v55  ;;  %6380 = vlog2.f32 %v1517_v27  ;;  %v1519_v47 = vmul.f32 %v6359_v57, %v1219_v46  ;;  %v2623_v40 = vld [vmem:[#allocation2 + $0x130] sm:$0xff]  ;;  %v1353_v55 = vsub.f32 1.0, %v8306_v19  ;;  %v330_v57 = vsub.f32 1.0, %v8318_v38 }
  0xb7   :  { %v6363_v62 = vpop.eup %6362  ;;  %3892 = vmatprep.mubr.f32.mxu0 %v7100_v11  ;;  %6382 = vlog2.f32 %v495_v44  ;;  %v497_v51 = vmul.f32 %v6361_v18, %v196_v3  ;;  %v2751_v59 = vld [vmem:[#allocation2 + $0x530] sm:$0xff]  ;;  %v1354_v18 = vsub.f32 1.0, %v8330_v15 }
  0xb8   :  { %v6365_v24 = vpop.eup %6364  ;;  %5928 = vmatmul.mubr.msk.f32.gmra.mrb[70].mxu1 %vm2072_vm0, %v2748_v63  ;;  %6384 = vlog2.f32 %v1519_v47  ;;  %v1521_v9 = vmul.f32 %v6363_v62, %v1220_v54  ;;  %v8354_v63 = vld [vmem:[%s10813_s1 + $0x198] sm:$0xff] }
  0xb9   :  { %v6367_v10 = vpop.eup %6366  ;;  %4660 = vmatprep.mubr.f32.mxu1 %v7100_v11  ;;  %6386 = vlog2.f32 %v497_v51  ;;  %v499_v12 = vmul.f32 %v6365_v24, %v197_v21 }
  0xba   :  { %v6369_v13 = vpop.eup %6368  ;;  %5801 = vmatmul.mubr.msk.f32.gmra.mrb[72].mxu0 %vm2072_vm0, %v2621_v23  ;;  %v743_v25 = vmul.f32 0.6931472, %v6367_v10  ;;  %6388 = vlog2.f32 %v1521_v9  ;;  %v331_v23 = vsub.f32 1.0, %v8342_v61 }
  0xbb   :  { %v6371_v5 = vpop.eup %6370  ;;  %3898 = vmatprep.mubr.f32.mxu0 %v7100_v11  ;;  %v1767_v29 = vmul.f32 0.6931472, %v6369_v13  ;;  %6390 = vlog2.f32 %v499_v12  ;;  %v1222_v13 = vadd.f32 1.0, %v8262_v6 }
  0xbc   :  { %v6373_v34 = vpop.eup %6372  ;;  %5929 = vmatmul.mubr.msk.f32.gmra.mrb[72].mxu1 %vm2072_vm0, %v2749_v16  ;;  %v959_v37 = vmul.f32 0.5, %v743_v25  ;;  %v745_v14 = vmul.f32 0.6931472, %v6371_v5  ;;  %6392 = vrcp.f32 %v1349_v7  ;;  %v1355_v7 = vsub.f32 1.0, %v8354_v63 }
  0xbd   :  { %v6375_v31 = vpop.eup %6374  ;;  %4666 = vmatprep.mubr.f32.mxu1 %v7100_v11  ;;  %v1983_v2 = vmul.f32 0.5, %v1767_v29  ;;  %v1769_v39 = vmul.f32 0.6931472, %v6373_v34  ;;  %6394 = vrcp.f32 %v326_v60  ;;  %v199_v29 = vadd.f32 1.0, %v8268_v58 }
  0xbe   :  { %v6377_v33 = vpop.eup %6376  ;;  %5802 = vmatmul.mubr.msk.f32.gmra.mrb[74].mxu0 %vm2072_vm0, %v2622_v35  ;;  %2112 = vst.msk [vmem:[#allocation2 + $0x138] sm:$0xff] %vm2072_vm0, %v959_v37  ;;  %2368 = vst.msk [vmem:[%s10817_s5 + $0x138] sm:$0xff] %vm2072_vm0, %v959_v37  ;;  %v960_v26 = vmul.f32 0.5, %v745_v14  ;;  %v747_v45 = vmul.f32 0.6931472, %v6375_v31  ;;  %6396 = vrcp.f32 %v1350_v30  ;;  %v1223_v14 = vadd.f32 1.0, %v8274_v28 }
  0xbf   :  { %v6379_v32 = vpop.eup %6378  ;;  %3904 = vmatprep.mubr.f32.mxu0 %v7100_v11  ;;  %2240 = vst.msk [vmem:[#allocation2 + $0x538] sm:$0xff] %vm2072_vm0, %v1983_v2  ;;  %2496 = vst.msk [vmem:[%s10818_s6 + $0x138] sm:$0xff] %vm2072_vm0, %v1983_v2  ;;  %v1984_v43 = vmul.f32 0.5, %v1769_v39  ;;  %v1771_v42 = vmul.f32 0.6931472, %v6377_v33  ;;  %6398 = vrcp.f32 %v327_v20  ;;  %v1224_v39 = vadd.f32 1.0, %v8292_v41 }
  0xc0   :  { %v6381_v50 = vpop.eup %6380  ;;  %5930 = vmatmul.mubr.msk.f32.gmra.mrb[74].mxu1 %vm2072_vm0, %v2750_v56  ;;  %2113 = vst.msk [vmem:[#allocation2 + $0x140] sm:$0xff] %vm2072_vm0, %v960_v26  ;;  %2369 = vst.msk [vmem:[%s10817_s5 + $0x140] sm:$0xff] %vm2072_vm0, %v960_v26  ;;  %v961_v46 = vmul.f32 0.5, %v747_v45  ;;  %v749_v49 = vmul.f32 0.6931472, %v6379_v32  ;;  %6400 = vrcp.f32 %v1351_v48  ;;  %v200_v56 = vadd.f32 1.0, %v8283_v22 }
  0xc1   :  { %v6383_v3 = vpop.eup %6382  ;;  %4672 = vmatprep.mubr.f32.mxu1 %v7100_v11  ;;  %2241 = vst.msk [vmem:[#allocation2 + $0x540] sm:$0xff] %vm2072_vm0, %v1984_v43  ;;  %2497 = vst.msk [vmem:[%s10818_s6 + $0x140] sm:$0xff] %vm2072_vm0, %v1984_v43  ;;  %v1985_v27 = vmul.f32 0.5, %v1771_v42  ;;  %v1773_v54 = vmul.f32 0.6931472, %v6381_v50  ;;  %6402 = vrcp.f32 %v328_v0  ;;  %v1225_v45 = vadd.f32 1.0, %v8306_v19 }
  0xc2   :  { %v6385_v44 = vpop.eup %6384  ;;  %5803 = vmatmul.mubr.msk.f32.gmra.mrb[76].mxu0 %vm2072_vm0, %v2623_v40  ;;  %2114 = vst.msk [vmem:[#allocation2 + $0x148] sm:$0xff] %vm2072_vm0, %v961_v46  ;;  %2370 = vst.msk [vmem:[%s10817_s5 + $0x148] sm:$0xff] %vm2072_vm0, %v961_v46  ;;  %v962_v21 = vmul.f32 0.5, %v749_v49  ;;  %v751_v1 = vmul.f32 0.6931472, %v6383_v3  ;;  %6404 = vrcp.f32 %v1352_v8  ;;  %v202_v40 = vadd.f32 1.0, %v8318_v38 }
  0xc3   :  { %v6387_v47 = vpop.eup %6386  ;;  %3910 = vmatprep.mubr.f32.mxu0 %v7100_v11  ;;  %2242 = vst.msk [vmem:[#allocation2 + $0x548] sm:$0xff] %vm2072_vm0, %v1985_v27  ;;  %2498 = vst.msk [vmem:[%s10818_s6 + $0x148] sm:$0xff] %vm2072_vm0, %v1985_v27  ;;  %v1986_v4 = vmul.f32 0.5, %v1773_v54  ;;  %v1775_v62 = vmul.f32 0.6931472, %v6385_v44  ;;  %6406 = vrcp.f32 %v329_v52  ;;  %v1226_v52 = vadd.f32 1.0, %v8330_v15 }
  0xc4   :  { %v6389_v51 = vpop.eup %6388  ;;  %5931 = vmatmul.mubr.msk.f32.gmra.mrb[76].mxu1 %vm2072_vm0, %v2751_v59  ;;  %2115 = vst.msk [vmem:[#allocation2 + $0x150] sm:$0xff] %vm2072_vm0, %v962_v21  ;;  %2371 = vst.msk [vmem:[%s10817_s5 + $0x150] sm:$0xff] %vm2072_vm0, %v962_v21  ;;  %v963_v24 = vmul.f32 0.5, %v751_v1  ;;  %v753_v9 = vmul.f32 0.6931472, %v6387_v47  ;;  %6408 = vrcp.f32 %v1353_v55  ;;  %v203_v46 = vadd.f32 1.0, %v8342_v61 }
  0xc5   :  { %v6391_v10 = vpop.eup %6390  ;;  %4678 = vmatprep.mubr.f32.mxu1 %v7100_v11  ;;  %v2624_v16 = vld [vmem:[#allocation2 + $0x138] sm:$0xff]  ;;  %2243 = vst.msk [vmem:[#allocation2 + $0x550] sm:$0xff] %vm2072_vm0, %v1986_v4  ;;  %2499 = vst.msk [vmem:[%s10818_s6 + $0x150] sm:$0xff] %vm2072_vm0, %v1986_v4  ;;  %v1987_v12 = vmul.f32 0.5, %v1775_v62  ;;  %v1777_v60 = vmul.f32 0.6931472, %v6389_v51  ;;  %6410 = vrcp.f32 %v330_v57 }
  0xc6   :  { %v6393_v25 = vpop.eup %6392  ;;  %5804 = vmatmul.mubr.msk.f32.gmra.mrb[78].mxu0 %vm2072_vm0, %v2624_v16  ;;  %v2752_v30 = vld [vmem:[#allocation2 + $0x538] sm:$0xff]  ;;  %2116 = vst.msk [vmem:[#allocation2 + $0x158] sm:$0xff] %vm2072_vm0, %v963_v24  ;;  %2372 = vst.msk [vmem:[%s10817_s5 + $0x158] sm:$0xff] %vm2072_vm0, %v963_v24  ;;  %v964_v5 = vmul.f32 0.5, %v753_v9  ;;  %v755_v35 = vmul.f32 0.6931472, %v6391_v10  ;;  %6412 = vrcp.f32 %v1354_v18 }
  0xc7   :  { %v6395_v20 = vpop.eup %6394  ;;  %3916 = vmatprep.mubr.f32.mxu0 %v7100_v11  ;;  %v2625_v6 = vld [vmem:[#allocation2 + $0x140] sm:$0xff]  ;;  %2244 = vst.msk [vmem:[#allocation2 + $0x558] sm:$0xff] %vm2072_vm0, %v1987_v12  ;;  %2500 = vst.msk [vmem:[%s10818_s6 + $0x158] sm:$0xff] %vm2072_vm0, %v1987_v12  ;;  %v1988_v34 = vmul.f32 0.5, %v1777_v60  ;;  %v1523_v37 = vmul.f32 %v6393_v25, %v8277_v17  ;;  %6414 = vrcp.f32 %v331_v23  ;;  %v1227_v3 = vadd.f32 1.0, %v8354_v63  ;;  %v8442_v63 = vld [vmem:[%s10812_s0 + $0x1a8] sm:$0xff] }
  0xc8   :  { %v6397_v48 = vpop.eup %6396  ;;  %5932 = vmatmul.mubr.msk.f32.gmra.mrb[78].mxu1 %vm2072_vm0, %v2752_v30  ;;  %2117 = vst.msk [vmem:[#allocation2 + $0x160] sm:$0xff] %vm2072_vm0, %v964_v5  ;;  %2373 = vst.msk [vmem:[%s10817_s5 + $0x160] sm:$0xff] %vm2072_vm0, %v964_v5  ;;  %v965_v58 = vmul.f32 0.5, %v755_v35  ;;  %v501_v31 = vmul.f32 %v6395_v20, %v8286_v36  ;;  %6416 = vrcp.f32 %v1355_v7  ;;  %v2753_v28 = vld [vmem:[#allocation2 + $0x540] sm:$0xff]  ;;  %v201_v36 = vadd.f32 1.0, %v8299_v53  ;;  %v8448_v47 = vld [vmem:[%s10813_s1 + $0x1a8] sm:$0xff] }
  0xc9   :  { %v6399_v17 = vpop.eup %6398  ;;  %4684 = vmatprep.mubr.f32.mxu1 %v7100_v11  ;;  %2245 = vst.msk [vmem:[#allocation2 + $0x560] sm:$0xff] %vm2072_vm0, %v1988_v34  ;;  %2501 = vst.msk [vmem:[%s10818_s6 + $0x160] sm:$0xff] %vm2072_vm0, %v1988_v34  ;;  %6418 = vlog2.f32 %v1523_v37  ;;  %v1525_v2 = vmul.f32 %v6397_v48, %v1222_v13  ;;  %v2626_v26 = vld [vmem:[#allocation2 + $0x148] sm:$0xff]  ;;  %v76_v59 = vld [vmem:[%s10812_s0 + $0x1a0] sm:$0xff]  ;;  %v333_v16 = vsub.f32 1.0, %v8442_v63  ;;  %v1357_v5 = vsub.f32 1.0, %v8448_v47 }
  0xca   :  { %v6401_v0 = vpop.eup %6400  ;;  %5805 = vmatmul.mubr.msk.f32.gmra.mrb[80].mxu0 %vm2072_vm0, %v2625_v6  ;;  %2118 = vst.msk [vmem:[#allocation2 + $0x168] sm:$0xff] %vm2072_vm0, %v965_v58  ;;  %2374 = vst.msk [vmem:[%s10817_s5 + $0x168] sm:$0xff] %vm2072_vm0, %v965_v58  ;;  %6420 = vlog2.f32 %v501_v31  ;;  %v503_v22 = vmul.f32 %v6399_v17, %v199_v29  ;;  %v2754_v42 = vld [vmem:[#allocation2 + $0x548] sm:$0xff]  ;;  %v1100_v61 = vld [vmem:[%s10813_s1 + $0x1a0] sm:$0xff]  ;;  %v332_v18 = vsub.f32 1.0, %v76_v59  ;;  %v8457_v10 = vadd.f32 1.0, %v76_v59 }
  0xcb   :  { %v6403_v33 = vpop.eup %6402  ;;  %3922 = vmatprep.mubr.f32.mxu0 %v7100_v11  ;;  %6422 = vlog2.f32 %v1525_v2  ;;  %v1527_v41 = vmul.f32 %v6401_v0, %v1223_v14  ;;  %v2627_v55 = vld [vmem:[#allocation2 + $0x150] sm:$0xff]  ;;  %v1356_v51 = vsub.f32 1.0, %v1100_v61  ;;  %v8466_v30 = vadd.f32 1.0, %v1100_v61  ;;  %v8472_v35 = vld [vmem:[%s10812_s0 + $0x1b8] sm:$0xff]  ;;  %v8486_v17 = vld [vmem:[%s10812_s0 + $0x1c0] sm:$0xff] }
  0xcc   :  { %v6405_v8 = vpop.eup %6404  ;;  %5933 = vmatmul.mubr.msk.f32.gmra.mrb[80].mxu1 %vm2072_vm0, %v2753_v28  ;;  %6424 = vlog2.f32 %v503_v22  ;;  %v505_v32 = vmul.f32 %v6403_v33, %v200_v56  ;;  %v2755_v57 = vld [vmem:[#allocation2 + $0x550] sm:$0xff]  ;;  %v8479_v37 = vld [vmem:[%s10813_s1 + $0x1b8] sm:$0xff]  ;;  %v335_v0 = vsub.f32 1.0, %v8472_v35  ;;  %v8498_v22 = vld [vmem:[%s10813_s1 + $0x1c0] sm:$0xff] }
  0xcd   :  { %v6407_v43 = vpop.eup %6406  ;;  %4690 = vmatprep.mubr.f32.mxu1 %v7100_v11  ;;  %6426 = vlog2.f32 %v1527_v41  ;;  %v1529_v53 = vmul.f32 %v6405_v8, %v1224_v39  ;;  %v2628_v62 = vld [vmem:[#allocation2 + $0x158] sm:$0xff]  ;;  %v8454_v24 = vld [vmem:[%s10812_s0 + $0x1b0] sm:$0xff]  ;;  %v8510_v8 = vld [vmem:[%s10812_s0 + $0x1c8] sm:$0xff] }
  0xce   :  { %v6409_v50 = vpop.eup %6408  ;;  %5806 = vmatmul.mubr.msk.f32.gmra.mrb[82].mxu0 %vm2072_vm0, %v2626_v26  ;;  %6428 = vlog2.f32 %v505_v32  ;;  %v507_v19 = vmul.f32 %v6407_v43, %v201_v36  ;;  %v8463_v12 = vld [vmem:[%s10813_s1 + $0x1b0] sm:$0xff]  ;;  %v2756_v13 = vld [vmem:[#allocation2 + $0x558] sm:$0xff]  ;;  %v334_v34 = vsub.f32 1.0, %v8454_v24 }
  0xcf   :  { %v6411_v49 = vpop.eup %6410  ;;  %3928 = vmatprep.mubr.f32.mxu0 %v7100_v11  ;;  %6430 = vlog2.f32 %v1529_v53  ;;  %v1531_v38 = vmul.f32 %v6409_v50, %v1225_v45  ;;  %v2629_v48 = vld [vmem:[#allocation2 + $0x160] sm:$0xff]  ;;  %v1358_v56 = vsub.f32 1.0, %v8463_v12  ;;  %v1359_v45 = vsub.f32 1.0, %v8479_v37  ;;  %v8522_v53 = vld [vmem:[%s10813_s1 + $0x1c8] sm:$0xff] }
  0xd0   :  { %v6413_v15 = vpop.eup %6412  ;;  %5934 = vmatmul.mubr.msk.f32.gmra.mrb[82].mxu1 %vm2072_vm0, %v2754_v42  ;;  %6432 = vlog2.f32 %v507_v19  ;;  %v509_v27 = vmul.f32 %v6411_v49, %v202_v40  ;;  %v2757_v33 = vld [vmem:[#allocation2 + $0x560] sm:$0xff]  ;;  %v336_v42 = vsub.f32 1.0, %v8486_v17  ;;  %v1360_v49 = vsub.f32 1.0, %v8498_v22 }
  0xd1   :  { %v6415_v54 = vpop.eup %6414  ;;  %4696 = vmatprep.mubr.f32.mxu1 %v7100_v11  ;;  %6434 = vlog2.f32 %v1531_v38  ;;  %v1533_v44 = vmul.f32 %v6413_v15, %v1226_v52  ;;  %v2630_v50 = vld [vmem:[#allocation2 + $0x168] sm:$0xff]  ;;  %v337_v15 = vsub.f32 1.0, %v8510_v8 }
  0xd2   :  { %v6417_v21 = vpop.eup %6416  ;;  %5807 = vmatmul.mubr.msk.f32.gmra.mrb[84].mxu0 %vm2072_vm0, %v2627_v55  ;;  %6436 = vlog2.f32 %v509_v27  ;;  %v511_v1 = vmul.f32 %v6415_v54, %v203_v46  ;;  %v8534_v55 = vld [vmem:[%s10812_s0 + $0x1d0] sm:$0xff] }
  0xd3   :  { %v6419_v4 = vpop.eup %6418  ;;  %3934 = vmatprep.mubr.f32.mxu0 %v7100_v11  ;;  %6438 = vlog2.f32 %v1533_v44  ;;  %v1535_v23 = vmul.f32 %v6417_v21, %v1227_v3 }
  0xd4   :  { %v6421_v9 = vpop.eup %6420  ;;  %5935 = vmatmul.mubr.msk.f32.gmra.mrb[84].mxu1 %vm2072_vm0, %v2755_v57  ;;  %v1779_v7 = vmul.f32 0.6931472, %v6419_v4  ;;  %6440 = vlog2.f32 %v511_v1  ;;  %v1361_v57 = vsub.f32 1.0, %v8522_v53 }
  0xd5   :  { %v6423_v60 = vpop.eup %6422  ;;  %4702 = vmatprep.mubr.f32.mxu1 %v7100_v11  ;;  %v757_v25 = vmul.f32 0.6931472, %v6421_v9  ;;  %6442 = vlog2.f32 %v1535_v23  ;;  %v205_v9 = vadd.f32 1.0, %v8442_v63 }
  0xd6   :  { %v6425_v29 = vpop.eup %6424  ;;  %5808 = vmatmul.mubr.msk.f32.gmra.mrb[86].mxu0 %vm2072_vm0, %v2628_v62  ;;  %v1989_v20 = vmul.f32 0.5, %v1779_v7  ;;  %v1781_v6 = vmul.f32 0.6931472, %v6423_v60  ;;  %6444 = vrcp.f32 %v332_v18  ;;  %v338_v18 = vsub.f32 1.0, %v8534_v55 }
  0xd7   :  { %v6427_v14 = vpop.eup %6426  ;;  %3940 = vmatprep.mubr.f32.mxu0 %v7100_v11  ;;  %v966_v58 = vmul.f32 0.5, %v757_v25  ;;  %v759_v31 = vmul.f32 0.6931472, %v6425_v29  ;;  %6446 = vrcp.f32 %v1356_v51  ;;  %v1229_v25 = vadd.f32 1.0, %v8448_v47 }
  0xd8   :  { %v6429_v28 = vpop.eup %6428  ;;  %5936 = vmatmul.mubr.msk.f32.gmra.mrb[86].mxu1 %vm2072_vm0, %v2756_v13  ;;  %2246 = vst.msk [vmem:[#allocation2 + $0x568] sm:$0xff] %vm2072_vm0, %v1989_v20  ;;  %2502 = vst.msk [vmem:[%s10818_s6 + $0x168] sm:$0xff] %vm2072_vm0, %v1989_v20  ;;  %v1990_v2 = vmul.f32 0.5, %v1781_v6  ;;  %v1783_v39 = vmul.f32 0.6931472, %v6427_v14  ;;  %6448 = vrcp.f32 %v333_v16  ;;  %v206_v6 = vadd.f32 1.0, %v8454_v24 }
  0xd9   :  { %v6431_v36 = vpop.eup %6430  ;;  %4708 = vmatprep.mubr.f32.mxu1 %v7100_v11  ;;  %2119 = vst.msk [vmem:[#allocation2 + $0x170] sm:$0xff] %vm2072_vm0, %v966_v58  ;;  %2375 = vst.msk [vmem:[%s10817_s5 + $0x170] sm:$0xff] %vm2072_vm0, %v966_v58  ;;  %v967_v26 = vmul.f32 0.5, %v759_v31  ;;  %v761_v41 = vmul.f32 0.6931472, %v6429_v28  ;;  %6450 = vrcp.f32 %v1357_v5  ;;  %v207_v31 = vadd.f32 1.0, %v8472_v35 }
  0xda   :  { %v6433_v32 = vpop.eup %6432  ;;  %5809 = vmatmul.mubr.msk.f32.gmra.mrb[88].mxu0 %vm2072_vm0, %v2629_v48  ;;  %2247 = vst.msk [vmem:[#allocation2 + $0x570] sm:$0xff] %vm2072_vm0, %v1990_v2  ;;  %2503 = vst.msk [vmem:[%s10818_s6 + $0x170] sm:$0xff] %vm2072_vm0, %v1990_v2  ;;  %v1991_v40 = vmul.f32 0.5, %v1783_v39  ;;  %v1785_v43 = vmul.f32 0.6931472, %v6431_v36  ;;  %6452 = vrcp.f32 %v334_v34  ;;  %v1230_v48 = vadd.f32 1.0, %v8463_v12 }
  0xdb   :  { %v6435_v52 = vpop.eup %6434  ;;  %3946 = vmatprep.mubr.f32.mxu0 %v7100_v11  ;;  %2120 = vst.msk [vmem:[#allocation2 + $0x178] sm:$0xff] %vm2072_vm0, %v967_v26  ;;  %2376 = vst.msk [vmem:[%s10817_s5 + $0x178] sm:$0xff] %vm2072_vm0, %v967_v26  ;;  %v968_v19 = vmul.f32 0.5, %v761_v41  ;;  %v763_v46 = vmul.f32 0.6931472, %v6433_v32  ;;  %6454 = vrcp.f32 %v1358_v56  ;;  %v208_v39 = vadd.f32 1.0, %v8486_v17 }
  0xdc   :  { %v6437_v38 = vpop.eup %6436  ;;  %5937 = vmatmul.mubr.msk.f32.gmra.mrb[88].mxu1 %vm2072_vm0, %v2757_v33  ;;  %2248 = vst.msk [vmem:[#allocation2 + $0x578] sm:$0xff] %vm2072_vm0, %v1991_v40  ;;  %2504 = vst.msk [vmem:[%s10818_s6 + $0x178] sm:$0xff] %vm2072_vm0, %v1991_v40  ;;  %v1992_v3 = vmul.f32 0.5, %v1785_v43  ;;  %v1787_v59 = vmul.f32 0.6931472, %v6435_v52  ;;  %6456 = vrcp.f32 %v335_v0  ;;  %v1232_v33 = vadd.f32 1.0, %v8498_v22 }
  0xdd   :  { %v6439_v27 = vpop.eup %6438  ;;  %4714 = vmatprep.mubr.f32.mxu1 %v7100_v11  ;;  %2121 = vst.msk [vmem:[#allocation2 + $0x180] sm:$0xff] %vm2072_vm0, %v968_v19  ;;  %2377 = vst.msk [vmem:[%s10817_s5 + $0x180] sm:$0xff] %vm2072_vm0, %v968_v19  ;;  %v969_v61 = vmul.f32 0.5, %v763_v46  ;;  %v765_v54 = vmul.f32 0.6931472, %v6437_v38  ;;  %6458 = vrcp.f32 %v1359_v45  ;;  %v209_v45 = vadd.f32 1.0, %v8510_v8 }
  0xde   :  { %v6441_v44 = vpop.eup %6440  ;;  %5810 = vmatmul.mubr.msk.f32.gmra.mrb[90].mxu0 %vm2072_vm0, %v2630_v50  ;;  %2249 = vst.msk [vmem:[#allocation2 + $0x580] sm:$0xff] %vm2072_vm0, %v1992_v3  ;;  %2505 = vst.msk [vmem:[%s10818_s6 + $0x180] sm:$0xff] %vm2072_vm0, %v1992_v3  ;;  %v1993_v21 = vmul.f32 0.5, %v1787_v59  ;;  %v1789_v1 = vmul.f32 0.6931472, %v6439_v27  ;;  %6460 = vrcp.f32 %v336_v42  ;;  %v1233_v40 = vadd.f32 1.0, %v8522_v53 }
  0xdf   :  { %v6443_v4 = vpop.eup %6442  ;;  %v2758_v62 = vld [vmem:[#allocation2 + $0x568] sm:$0xff]  ;;  %3952 = vmatprep.mubr.f32.mxu0 %v7100_v11  ;;  %2122 = vst.msk [vmem:[#allocation2 + $0x188] sm:$0xff] %vm2072_vm0, %v969_v61  ;;  %2378 = vst.msk [vmem:[%s10817_s5 + $0x188] sm:$0xff] %vm2072_vm0, %v969_v61  ;;  %v970_v23 = vmul.f32 0.5, %v765_v54  ;;  %v767_v51 = vmul.f32 0.6931472, %v6441_v44  ;;  %6462 = vrcp.f32 %v1360_v49 }
  0xe0   :  { %v6445_v7 = vpop.eup %6444  ;;  %5938 = vmatmul.mubr.msk.f32.gmra.mrb[90].mxu1 %vm2072_vm0, %v2758_v62  ;;  %v2631_v16 = vld [vmem:[#allocation2 + $0x170] sm:$0xff]  ;;  %2250 = vst.msk [vmem:[#allocation2 + $0x588] sm:$0xff] %vm2072_vm0, %v1993_v21  ;;  %2506 = vst.msk [vmem:[%s10818_s6 + $0x188] sm:$0xff] %vm2072_vm0, %v1993_v21  ;;  %v1994_v60 = vmul.f32 0.5, %v1789_v1  ;;  %v1791_v13 = vmul.f32 0.6931472, %v6443_v4  ;;  %6464 = vrcp.f32 %v337_v15 }
  0xe1   :  { %v6447_v5 = vpop.eup %6446  ;;  %4720 = vmatprep.mubr.f32.mxu1 %v7100_v11  ;;  %v2759_v63 = vld [vmem:[#allocation2 + $0x570] sm:$0xff]  ;;  %2123 = vst.msk [vmem:[#allocation2 + $0x190] sm:$0xff] %vm2072_vm0, %v970_v23  ;;  %2379 = vst.msk [vmem:[%s10817_s5 + $0x190] sm:$0xff] %vm2072_vm0, %v970_v23  ;;  %v971_v29 = vmul.f32 0.5, %v767_v51  ;;  %v513_v20 = vmul.f32 %v6445_v7, %v8457_v10  ;;  %6466 = vrcp.f32 %v1361_v57  ;;  %v210_v52 = vadd.f32 1.0, %v8534_v55  ;;  %v83_v53 = vld [vmem:[%s10812_s0 + $0x1d8] sm:$0xff] }
  0xe2   :  { %v6449_v34 = vpop.eup %6448  ;;  %5811 = vmatmul.mubr.msk.f32.gmra.mrb[92].mxu0 %vm2072_vm0, %v2631_v16  ;;  %2251 = vst.msk [vmem:[#allocation2 + $0x590] sm:$0xff] %vm2072_vm0, %v1994_v60  ;;  %2507 = vst.msk [vmem:[%s10818_s6 + $0x190] sm:$0xff] %vm2072_vm0, %v1994_v60  ;;  %v1995_v47 = vmul.f32 0.5, %v1791_v13  ;;  %v1537_v14 = vmul.f32 %v6447_v5, %v8466_v30  ;;  %6468 = vrcp.f32 %v338_v18  ;;  %v2632_v24 = vld [vmem:[#allocation2 + $0x178] sm:$0xff]  ;;  %v1231_v30 = vadd.f32 1.0, %v8479_v37  ;;  %v1106_v50 = vld [vmem:[%s10813_s1 + $0x1d0] sm:$0xff] }
  0xe3   :  { %v6451_v10 = vpop.eup %6450  ;;  %3958 = vmatprep.mubr.f32.mxu0 %v7100_v11  ;;  %2124 = vst.msk [vmem:[#allocation2 + $0x198] sm:$0xff] %vm2072_vm0, %v971_v29  ;;  %2380 = vst.msk [vmem:[%s10817_s5 + $0x198] sm:$0xff] %vm2072_vm0, %v971_v29  ;;  %6470 = vlog2.f32 %v513_v20  ;;  %v515_v58 = vmul.f32 %v6449_v34, %v205_v9  ;;  %v2760_v2 = vld [vmem:[#allocation2 + $0x578] sm:$0xff]  ;;  %v1362_v15 = vsub.f32 1.0, %v1106_v50  ;;  %v8628_v27 = vld [vmem:[%s10812_s0 + $0x1e0] sm:$0xff]  ;;  %v339_v44 = vsub.f32 1.0, %v83_v53 }
  0xe4   :  { %v6453_v56 = vpop.eup %6452  ;;  %5939 = vmatmul.mubr.msk.f32.gmra.mrb[92].mxu1 %vm2072_vm0, %v2759_v63  ;;  %2252 = vst.msk [vmem:[#allocation2 + $0x598] sm:$0xff] %vm2072_vm0, %v1995_v47  ;;  %2508 = vst.msk [vmem:[%s10818_s6 + $0x198] sm:$0xff] %vm2072_vm0, %v1995_v47  ;;  %6472 = vlog2.f32 %v1537_v14  ;;  %v1539_v12 = vmul.f32 %v6451_v10, %v1229_v25  ;;  %v2633_v41 = vld [vmem:[#allocation2 + $0x180] sm:$0xff]  ;;  %v8622_v55 = vld [vmem:[%s10813_s1 + $0x1d8] sm:$0xff]  ;;  %v8637_v4 = vadd.f32 1.0, %v1106_v50  ;;  %v8646_v16 = vadd.f32 1.0, %v83_v53 }
  0xe5   :  { %v6455_v28 = vpop.eup %6454  ;;  %4726 = vmatprep.mubr.f32.mxu1 %v7100_v11  ;;  %6474 = vlog2.f32 %v515_v58  ;;  %v517_v35 = vmul.f32 %v6453_v56, %v206_v6  ;;  %v2761_v42 = vld [vmem:[#allocation2 + $0x580] sm:$0xff]  ;;  %v1363_v62 = vsub.f32 1.0, %v8622_v55  ;;  %v8643_v23 = vld [vmem:[%s10812_s0 + $0x1e8] sm:$0xff]  ;;  %v340_v60 = vsub.f32 1.0, %v8628_v27  ;;  %v8659_v20 = vld [vmem:[%s10812_s0 + $0x1f0] sm:$0xff] }
  0xe6   :  { %v6457_v0 = vpop.eup %6456  ;;  %5812 = vmatmul.mubr.msk.f32.gmra.mrb[94].mxu0 %vm2072_vm0, %v2632_v24  ;;  %6476 = vlog2.f32 %v1539_v12  ;;  %v1541_v36 = vmul.f32 %v6455_v28, %v1230_v48  ;;  %v2634_v49 = vld [vmem:[#allocation2 + $0x188] sm:$0xff]  ;;  %v8634_v21 = vld [vmem:[%s10813_s1 + $0x1e0] sm:$0xff]  ;;  %v341_v48 = vsub.f32 1.0, %v8643_v23  ;;  %v8666_v10 = vld [vmem:[%s10813_s1 + $0x1f0] sm:$0xff] }
  0xe7   :  { %v6459_v26 = vpop.eup %6458  ;;  %3964 = vmatprep.mubr.f32.mxu0 %v7100_v11  ;;  %6478 = vlog2.f32 %v517_v35  ;;  %v519_v37 = vmul.f32 %v6457_v0, %v207_v31  ;;  %v2762_v54 = vld [vmem:[#allocation2 + $0x588] sm:$0xff]  ;;  %v1364_v29 = vsub.f32 1.0, %v8634_v21  ;;  %v8678_v12 = vld [vmem:[%s10812_s0 + $0x1f8] sm:$0xff] }
  0xe8   :  { %v6461_v32 = vpop.eup %6460  ;;  %5940 = vmatmul.mubr.msk.f32.gmra.mrb[94].mxu1 %vm2072_vm0, %v2760_v2  ;;  %6480 = vlog2.f32 %v1541_v36  ;;  %v1543_v17 = vmul.f32 %v6459_v26, %v1231_v30  ;;  %v2635_v9 = vld [vmem:[#allocation2 + $0x190] sm:$0xff]  ;;  %v8652_v13 = vld [vmem:[%s10813_s1 + $0x1e8] sm:$0xff]  ;;  %v8690_v0 = vld [vmem:[%s10813_s1 + $0x1f8] sm:$0xff] }
  0xe9   :  { %v6463_v43 = vpop.eup %6462  ;;  %4732 = vmatprep.mubr.f32.mxu1 %v7100_v11  ;;  %6482 = vlog2.f32 %v519_v37  ;;  %v521_v22 = vmul.f32 %v6461_v32, %v208_v39  ;;  %v2763_v34 = vld [vmem:[#allocation2 + $0x590] sm:$0xff]  ;;  %v1365_v56 = vsub.f32 1.0, %v8652_v13  ;;  %v342_v39 = vsub.f32 1.0, %v8659_v20  ;;  %v8702_v37 = vld [vmem:[%s10812_s0 + $0x200] sm:$0xff] }
  0xea   :  { %v6465_v8 = vpop.eup %6464  ;;  %5813 = vmatmul.mubr.msk.f32.gmra.mrb[96].mxu0 %vm2072_vm0, %v2633_v41  ;;  %6484 = vlog2.f32 %v1543_v17  ;;  %v1545_v19 = vmul.f32 %v6463_v43, %v1232_v33  ;;  %v2636_v28 = vld [vmem:[#allocation2 + $0x198] sm:$0xff]  ;;  %v1366_v41 = vsub.f32 1.0, %v8666_v10  ;;  %v343_v43 = vsub.f32 1.0, %v8678_v12 }
  0xeb   :  { %v6467_v46 = vpop.eup %6466  ;;  %3970 = vmatprep.mubr.f32.mxu0 %v7100_v11  ;;  %6486 = vlog2.f32 %v521_v22  ;;  %v523_v38 = vmul.f32 %v6465_v8, %v209_v45  ;;  %v2764_v32 = vld [vmem:[#allocation2 + $0x598] sm:$0xff]  ;;  %v1367_v8 = vsub.f32 1.0, %v8690_v0 }
  0xec   :  { %v6469_v3 = vpop.eup %6468  ;;  %5941 = vmatmul.mubr.msk.f32.gmra.mrb[96].mxu1 %vm2072_vm0, %v2761_v42  ;;  %6488 = vlog2.f32 %v1545_v19  ;;  %v1547_v59 = vmul.f32 %v6467_v46, %v1233_v40  ;;  %v8714_v42 = vld [vmem:[%s10813_s1 + $0x200] sm:$0xff] }
  0xed   :  { %v6471_v61 = vpop.eup %6470  ;;  %4738 = vmatprep.mubr.f32.mxu1 %v7100_v11  ;;  %6490 = vlog2.f32 %v523_v38  ;;  %v525_v57 = vmul.f32 %v6469_v3, %v210_v52 }
  0xee   :  { %v6473_v1 = vpop.eup %6472  ;;  %5814 = vmatmul.mubr.msk.f32.gmra.mrb[98].mxu0 %vm2072_vm0, %v2634_v49  ;;  %v769_v18 = vmul.f32 0.6931472, %v6471_v61  ;;  %6492 = vlog2.f32 %v1547_v59  ;;  %v344_v49 = vsub.f32 1.0, %v8702_v37 }
  0xef   :  { %v6475_v51 = vpop.eup %6474  ;;  %3976 = vmatprep.mubr.f32.mxu0 %v7100_v11  ;;  %v1793_v7 = vmul.f32 0.6931472, %v6473_v1  ;;  %6494 = vlog2.f32 %v525_v57  ;;  %v1235_v1 = vadd.f32 1.0, %v8622_v55 }
  0xf0   :  { %v6477_v25 = vpop.eup %6476  ;;  %5942 = vmatmul.mubr.msk.f32.gmra.mrb[98].mxu1 %vm2072_vm0, %v2762_v54  ;;  %v972_v5 = vmul.f32 0.5, %v769_v18  ;;  %v771_v63 = vmul.f32 0.6931472, %v6475_v51  ;;  %6496 = vrcp.f32 %v1362_v15  ;;  %v1368_v15 = vsub.f32 1.0, %v8714_v42 }
  0xf1   :  { %v6479_v6 = vpop.eup %6478  ;;  %4744 = vmatprep.mubr.f32.mxu1 %v7100_v11  ;;  %v1996_v47 = vmul.f32 0.5, %v1793_v7  ;;  %v1795_v14 = vmul.f32 0.6931472, %v6477_v25  ;;  %6498 = vrcp.f32 %v339_v44  ;;  %v212_v7 = vadd.f32 1.0, %v8628_v27 }
  0xf2   :  { %v6481_v24 = vpop.eup %6480  ;;  %5815 = vmatmul.mubr.msk.f32.gmra.mrb[100].mxu0 %vm2072_vm0, %v2635_v9  ;;  %2125 = vst.msk [vmem:[#allocation2 + $0x1a0] sm:$0xff] %vm2072_vm0, %v972_v5  ;;  %2381 = vst.msk [vmem:[%s10817_s5 + $0x1a0] sm:$0xff] %vm2072_vm0, %v972_v5  ;;  %v973_v58 = vmul.f32 0.5, %v771_v63  ;;  %v773_v31 = vmul.f32 0.6931472, %v6479_v6  ;;  %6500 = vrcp.f32 %v1363_v62  ;;  %v1236_v63 = vadd.f32 1.0, %v8634_v21 }
  0xf3   :  { %v6483_v30 = vpop.eup %6482  ;;  %3982 = vmatprep.mubr.f32.mxu0 %v7100_v11  ;;  %2253 = vst.msk [vmem:[#allocation2 + $0x5a0] sm:$0xff] %vm2072_vm0, %v1996_v47  ;;  %2509 = vst.msk [vmem:[%s10818_s6 + $0x1a0] sm:$0xff] %vm2072_vm0, %v1996_v47  ;;  %v1997_v2 = vmul.f32 0.5, %v1795_v14  ;;  %v1797_v35 = vmul.f32 0.6931472, %v6481_v24  ;;  %6502 = vrcp.f32 %v340_v60 }
  0xf4   :  { %v6485_v36 = vpop.eup %6484  ;;  %5943 = vmatmul.mubr.msk.f32.gmra.mrb[100].mxu1 %vm2072_vm0, %v2763_v34  ;;  %2126 = vst.msk [vmem:[#allocation2 + $0x1a8] sm:$0xff] %vm2072_vm0, %v973_v58  ;;  %2382 = vst.msk [vmem:[%s10817_s5 + $0x1a8] sm:$0xff] %vm2072_vm0, %v973_v58  ;;  %v974_v33 = vmul.f32 0.5, %v773_v31  ;;  %v775_v26 = vmul.f32 0.6931472, %v6483_v30  ;;  %6504 = vrcp.f32 %v1364_v29  ;;  %v213_v34 = vadd.f32 1.0, %v8643_v23 }
  0xf5   :  { %v6487_v45 = vpop.eup %6486  ;;  %4750 = vmatprep.mubr.f32.mxu1 %v7100_v11  ;;  %2254 = vst.msk [vmem:[#allocation2 + $0x5a8] sm:$0xff] %vm2072_vm0, %v1997_v2  ;;  %2510 = vst.msk [vmem:[%s10818_s6 + $0x1a8] sm:$0xff] %vm2072_vm0, %v1997_v2  ;;  %v1998_v17 = vmul.f32 0.5, %v1797_v35  ;;  %v1799_v40 = vmul.f32 0.6931472, %v6485_v36  ;;  %6506 = vrcp.f32 %v341_v48  ;;  %v1237_v48 = vadd.f32 1.0, %v8652_v13 }
  0xf6   :  { %v6489_v22 = vpop.eup %6488  ;;  %5816 = vmatmul.mubr.msk.f32.gmra.mrb[102].mxu0 %vm2072_vm0, %v2636_v28  ;;  %2127 = vst.msk [vmem:[#allocation2 + $0x1b0] sm:$0xff] %vm2072_vm0, %v974_v33  ;;  %2383 = vst.msk [vmem:[%s10817_s5 + $0x1b0] sm:$0xff] %vm2072_vm0, %v974_v33  ;;  %v975_v52 = vmul.f32 0.5, %v775_v26  ;;  %v777_v50 = vmul.f32 0.6931472, %v6487_v45  ;;  %6508 = vrcp.f32 %v1365_v56  ;;  %v214_v31 = vadd.f32 1.0, %v8659_v20 }
  0xf7   :  { %v6491_v19 = vpop.eup %6490  ;;  %3988 = vmatprep.mubr.f32.mxu0 %v7100_v11  ;;  %2255 = vst.msk [vmem:[#allocation2 + $0x5b0] sm:$0xff] %vm2072_vm0, %v1998_v17  ;;  %2511 = vst.msk [vmem:[%s10818_s6 + $0x1b0] sm:$0xff] %vm2072_vm0, %v1998_v17  ;;  %v1999_v53 = vmul.f32 0.5, %v1799_v40  ;;  %v1801_v46 = vmul.f32 0.6931472, %v6489_v22  ;;  %6510 = vrcp.f32 %v342_v39  ;;  %v1238_v2 = vadd.f32 1.0, %v8666_v10 }
  0xf8   :  { %v6493_v38 = vpop.eup %6492  ;;  %5944 = vmatmul.mubr.msk.f32.gmra.mrb[102].mxu1 %vm2072_vm0, %v2764_v32  ;;  %2128 = vst.msk [vmem:[#allocation2 + $0x1b8] sm:$0xff] %vm2072_vm0, %v975_v52  ;;  %2384 = vst.msk [vmem:[%s10817_s5 + $0x1b8] sm:$0xff] %vm2072_vm0, %v975_v52  ;;  %v976_v3 = vmul.f32 0.5, %v777_v50  ;;  %v779_v59 = vmul.f32 0.6931472, %v6491_v19  ;;  %6512 = vrcp.f32 %v1366_v41  ;;  %v215_v36 = vadd.f32 1.0, %v8678_v12 }
  0xf9   :  { %v6495_v61 = vpop.eup %6494  ;;  %4756 = vmatprep.mubr.f32.mxu1 %v7100_v11  ;;  %v2637_v54 = vld [vmem:[#allocation2 + $0x1a0] sm:$0xff]  ;;  %2256 = vst.msk [vmem:[#allocation2 + $0x5b8] sm:$0xff] %vm2072_vm0, %v1999_v53  ;;  %2512 = vst.msk [vmem:[%s10818_s6 + $0x1b8] sm:$0xff] %vm2072_vm0, %v1999_v53  ;;  %v2000_v57 = vmul.f32 0.5, %v1801_v46  ;;  %v1803_v44 = vmul.f32 0.6931472, %v6493_v38  ;;  %6514 = vrcp.f32 %v343_v43 }
  0xfa   :  { %v6497_v18 = vpop.eup %6496  ;;  %5817 = vmatmul.mubr.msk.f32.gmra.mrb[104].mxu0 %vm2072_vm0, %v2637_v54  ;;  %v2765_v62 = vld [vmem:[#allocation2 + $0x5a0] sm:$0xff]  ;;  %2129 = vst.msk [vmem:[#allocation2 + $0x1c0] sm:$0xff] %vm2072_vm0, %v976_v3  ;;  %2385 = vst.msk [vmem:[%s10817_s5 + $0x1c0] sm:$0xff] %vm2072_vm0, %v976_v3  ;;  %v977_v51 = vmul.f32 0.5, %v779_v59  ;;  %v781_v9 = vmul.f32 0.6931472, %v6495_v61  ;;  %6516 = vrcp.f32 %v1367_v8 }
  0xfb   :  { %v6499_v60 = vpop.eup %6498  ;;  %3994 = vmatprep.mubr.f32.mxu0 %v7100_v11  ;;  %v2638_v55 = vld [vmem:[#allocation2 + $0x1a8] sm:$0xff]  ;;  %2257 = vst.msk [vmem:[#allocation2 + $0x5c0] sm:$0xff] %vm2072_vm0, %v2000_v57  ;;  %2513 = vst.msk [vmem:[%s10818_s6 + $0x1c0] sm:$0xff] %vm2072_vm0, %v2000_v57  ;;  %v2001_v25 = vmul.f32 0.5, %v1803_v44  ;;  %v1549_v5 = vmul.f32 %v6497_v18, %v8637_v4  ;;  %6518 = vrcp.f32 %v344_v49  ;;  %v1239_v45 = vadd.f32 1.0, %v8690_v0  ;;  %v8804_v3 = vld [vmem:[%s10812_s0 + $0x210] sm:$0xff] }
  0xfc   :  { %v6501_v29 = vpop.eup %6500  ;;  %5945 = vmatmul.mubr.msk.f32.gmra.mrb[104].mxu1 %vm2072_vm0, %v2765_v62  ;;  %2130 = vst.msk [vmem:[#allocation2 + $0x1c8] sm:$0xff] %vm2072_vm0, %v977_v51  ;;  %2386 = vst.msk [vmem:[%s10817_s5 + $0x1c8] sm:$0xff] %vm2072_vm0, %v977_v51  ;;  %v978_v27 = vmul.f32 0.5, %v781_v9  ;;  %v527_v6 = vmul.f32 %v6499_v60, %v8646_v16  ;;  %6520 = vrcp.f32 %v1368_v15  ;;  %v3678_v47 = vpop.f32.mrb[0].mxu0  ;;  %v2766_v21 = vld [vmem:[#allocation2 + $0x5a8] sm:$0xff]  ;;  %v216_v43 = vadd.f32 1.0, %v8702_v37 }
  0xfd   :  { %v6503_v4 = vpop.eup %6502  ;;  %4762 = vmatprep.mubr.f32.mxu1 %v7100_v11  ;;  %2258 = vst.msk [vmem:[#allocation2 + $0x5c8] sm:$0xff] %vm2072_vm0, %v2001_v25  ;;  %2514 = vst.msk [vmem:[%s10818_s6 + $0x1c8] sm:$0xff] %vm2072_vm0, %v2001_v25  ;;  %6522 = vlog2.f32 %v1549_v5  ;;  %v1551_v14 = vmul.f32 %v6501_v29, %v1235_v1  ;;  %v4446_v23 = vpop.f32.mrb[0].mxu1  ;;  %v2639_v30 = vld [vmem:[#allocation2 + $0x1b0] sm:$0xff]  ;;  %v1240_v0 = vadd.f32 1.0, %v8714_v42  ;;  %v89_v8 = vld [vmem:[%s10812_s0 + $0x208] sm:$0xff] }
  0xfe   :  { %v6505_v16 = vpop.eup %6504  ;;  %5213 = vst [vmem:[#allocation3] sm:$0xff] %v3678_v47  ;;  %v3680_v24 = vpop.f32.mrb[1].mxu0  ;;  %5818 = vmatmul.mubr.msk.f32.gmra.mrb[106].mxu0 %vm2072_vm0, %v2638_v55  ;;  %2131 = vst.msk [vmem:[#allocation2 + $0x1d0] sm:$0xff] %vm2072_vm0, %v978_v27  ;;  %6524 = vlog2.f32 %v527_v6  ;;  %v529_v58 = vmul.f32 %v6503_v4, %v212_v7  ;;  %v2767_v26 = vld [vmem:[#allocation2 + $0x5b0] sm:$0xff]  ;;  %v8798_v53 = vld [vmem:[%s10813_s1 + $0x208] sm:$0xff]  ;;  %v345_v57 = vsub.f32 1.0, %v89_v8 }
  0xff   :  { %2387 = vst.msk [vmem:[%s10817_s5 + $0x1d0] sm:$0xff] %vm2072_vm0, %v978_v27  ;;  %v6507_v56 = vpop.eup %6506  ;;  %5469 = vst [vmem:[#allocation5] sm:$0xff] %v4446_v23  ;;  %v4448_v13 = vpop.f32.mrb[1].mxu1  ;;  %4000 = vmatprep.mubr.f32.mxu0 %v7100_v11  ;;  %6526 = vlog2.f32 %v1551_v14  ;;  %v1553_v28 = vmul.f32 %v6505_v16, %v1236_v63  ;;  %v2640_v52 = vld [vmem:[#allocation2 + $0x1b8] sm:$0xff]  ;;  %v8810_v44 = vld [vmem:[%s10813_s1 + $0x210] sm:$0xff]  ;;  %v1369_v9 = vsub.f32 1.0, %v8798_v53 }
 0x100   :  { %5214 = vst [vmem:[#allocation3 + $0x8] sm:$0xff] %v3680_v24  ;;  %v6509_v35 = vpop.eup %6508  ;;  %5470 = vst [vmem:[#allocation5 + $0x8] sm:$0xff] %v4448_v13  ;;  %5946 = vmatmul.mubr.msk.f32.gmra.mrb[106].mxu1 %vm2072_vm0, %v2766_v21  ;;  %6528 = vlog2.f32 %v529_v58  ;;  %v531_v39 = vmul.f32 %v6507_v56, %v213_v34  ;;  %v3684_v33 = vpop.f32.mrb[2].mxu0  ;;  %v2768_v42 = vld [vmem:[#allocation2 + $0x5b8] sm:$0xff]  ;;  %v8825_v5 = vadd.f32 1.0, %v89_v8  ;;  %v346_v63 = vsub.f32 1.0, %v8804_v3 }
 0x101   :  { %v6511_v20 = vpop.eup %6510  ;;  %4768 = vmatprep.mubr.f32.mxu1 %v7100_v11  ;;  %6530 = vlog2.f32 %v1553_v28  ;;  %v1555_v41 = vmul.f32 %v6509_v35, %v1237_v48  ;;  %5215 = vst [vmem:[#allocation3 + $0x10] sm:$0xff] %v3684_v33  ;;  %v4452_v10 = vpop.f32.mrb[2].mxu1  ;;  %v2641_v62 = vld [vmem:[#allocation2 + $0x1c0] sm:$0xff]  ;;  %v8817_v7 = vld [vmem:[%s10812_s0 + $0x218] sm:$0xff]  ;;  %v8840_v21 = vadd.f32 1.0, %v8798_v53  ;;  %v1370_v14 = vsub.f32 1.0, %v8810_v44 }
 0x102   :  { %v6513_v32 = vpop.eup %6512  ;;  %v3686_v17 = vpop.f32.mrb[3].mxu0  ;;  %5819 = vmatmul.mubr.msk.f32.gmra.mrb[108].mxu0 %vm2072_vm0, %v2639_v30  ;;  %6532 = vlog2.f32 %v531_v39  ;;  %v533_v40 = vmul.f32 %v6511_v20, %v214_v31  ;;  %5471 = vst [vmem:[#allocation5 + $0x10] sm:$0xff] %v4452_v10  ;;  %v8822_v60 = vld [vmem:[%s10813_s1 + $0x218] sm:$0xff]  ;;  %v8831_v29 = vld [vmem:[%s10812_s0 + $0x220] sm:$0xff]  ;;  %v8846_v48 = vld [vmem:[%s10812_s0 + $0x228] sm:$0xff]  ;;  %v347_v56 = vsub.f32 1.0, %v8817_v7 }
 0x103   :  { %v6515_v12 = vpop.eup %6514  ;;  %5216 = vst [vmem:[#allocation3 + $0x18] sm:$0xff] %v3686_v17  ;;  %v4454_v22 = vpop.f32.mrb[3].mxu1  ;;  %4006 = vmatprep.mubr.f32.mxu0 %v7100_v11  ;;  %6534 = vlog2.f32 %v1555_v41  ;;  %v1557_v50 = vmul.f32 %v6513_v32, %v1238_v2  ;;  %v8836_v27 = vld [vmem:[%s10813_s1 + $0x220] sm:$0xff]  ;;  %v8853_v13 = vld [vmem:[%s10813_s1 + $0x228] sm:$0xff]  ;;  %v348_v41 = vsub.f32 1.0, %v8831_v29  ;;  %v8872_v32 = vld [vmem:[%s10813_s1 + $0x230] sm:$0xff] }
 0x104   :  { %v6517_v19 = vpop.eup %6516  ;;  %5472 = vst [vmem:[#allocation5 + $0x18] sm:$0xff] %v4454_v22  ;;  %5947 = vmatmul.mubr.msk.f32.gmra.mrb[108].mxu1 %vm2072_vm0, %v2767_v26  ;;  %6536 = vlog2.f32 %v533_v40  ;;  %v535_v37 = vmul.f32 %v6515_v12, %v215_v36  ;;  %v3690_v49 = vpop.f32.mrb[4].mxu0  ;;  %v2769_v4 = vld [vmem:[#allocation2 + $0x5c0] sm:$0xff]  ;;  %v2642_v2 = vld [vmem:[#allocation2 + $0x1c8] sm:$0xff]  ;;  %v1371_v36 = vsub.f32 1.0, %v8822_v60  ;;  %v1372_v22 = vsub.f32 1.0, %v8836_v27 }
 0x105   :  { %v6519_v46 = vpop.eup %6518  ;;  %4774 = vmatprep.mubr.f32.mxu1 %v7100_v11  ;;  %6538 = vlog2.f32 %v1557_v50  ;;  %v1559_v38 = vmul.f32 %v6517_v19, %v1239_v45  ;;  %5217 = vst [vmem:[#allocation3 + $0x20] sm:$0xff] %v3690_v49  ;;  %v4458_v15 = vpop.f32.mrb[4].mxu1  ;;  %v8867_v45 = vld [vmem:[%s10812_s0 + $0x230] sm:$0xff]  ;;  %v2770_v40 = vld [vmem:[#allocation2 + $0x5c8] sm:$0xff]  ;;  %v349_v53 = vsub.f32 1.0, %v8846_v48 }
 0x106   :  { %v6521_v59 = vpop.eup %6520  ;;  %v3692_v61 = vpop.f32.mrb[5].mxu0  ;;  %5820 = vmatmul.mubr.msk.f32.gmra.mrb[110].mxu0 %vm2072_vm0, %v2640_v52  ;;  %6540 = vlog2.f32 %v535_v37  ;;  %v537_v54 = vmul.f32 %v6519_v46, %v216_v43  ;;  %5473 = vst [vmem:[#allocation5 + $0x20] sm:$0xff] %v4458_v15  ;;  %v8884_v52 = vld [vmem:[%s10812_s0 + $0x238] sm:$0xff]  ;;  %v1373_v15 = vsub.f32 1.0, %v8853_v13 }
 0x107   :  { %v6523_v1 = vpop.eup %6522  ;;  %5218 = vst [vmem:[#allocation3 + $0x28] sm:$0xff] %v3692_v61  ;;  %v4460_v18 = vpop.f32.mrb[5].mxu1  ;;  %4012 = vmatprep.mubr.f32.mxu0 %v7100_v11  ;;  %6542 = vlog2.f32 %v1559_v38  ;;  %v1561_v51 = vmul.f32 %v6521_v59, %v1240_v0 }
 0x108   :  { %v6525_v55 = vpop.eup %6524  ;;  %5474 = vst [vmem:[#allocation5 + $0x28] sm:$0xff] %v4460_v18  ;;  %5948 = vmatmul.mubr.msk.f32.gmra.mrb[110].mxu1 %vm2072_vm0, %v2768_v42  ;;  %v1805_v25 = vmul.f32 0.6931472, %v6523_v1  ;;  %6544 = vlog2.f32 %v537_v54  ;;  %v3696_v34 = vpop.f32.mrb[6].mxu0  ;;  %v2643_v42 = vld [vmem:[#allocation2 + $0x1d0] sm:$0xff]  ;;  %v350_v1 = vsub.f32 1.0, %v8867_v45 }
 0x109   :  { %v6527_v6 = vpop.eup %6526  ;;  %4780 = vmatprep.mubr.f32.mxu1 %v7100_v11  ;;  %v783_v47 = vmul.f32 0.6931472, %v6525_v55  ;;  %6546 = vlog2.f32 %v1561_v51  ;;  %5219 = vst [vmem:[#allocation3 + $0x30] sm:$0xff] %v3696_v34  ;;  %v4464_v23 = vpop.f32.mrb[6].mxu1  ;;  %v1374_v55 = vsub.f32 1.0, %v8872_v32 }
 0x10a   :  { %v6529_v16 = vpop.eup %6528  ;;  %v3698_v24 = vpop.f32.mrb[7].mxu0  ;;  %5821 = vmatmul.mubr.msk.f32.gmra.mrb[112].mxu0 %vm2072_vm0, %v2641_v62  ;;  %v2002_v58 = vmul.f32 0.5, %v1805_v25  ;;  %v1807_v31 = vmul.f32 0.6931472, %v6527_v6  ;;  %6548 = vrcp.f32 %v345_v57  ;;  %5475 = vst [vmem:[#allocation5 + $0x30] sm:$0xff] %v4464_v23 }
 0x10b   :  { %v6531_v30 = vpop.eup %6530  ;;  %5220 = vst [vmem:[#allocation3 + $0x38] sm:$0xff] %v3698_v24  ;;  %v4466_v28 = vpop.f32.mrb[7].mxu1  ;;  %4018 = vmatprep.mubr.f32.mxu0 %v7100_v11  ;;  %v979_v35 = vmul.f32 0.5, %v783_v47  ;;  %v785_v39 = vmul.f32 0.6931472, %v6529_v16  ;;  %6550 = vrcp.f32 %v1369_v9  ;;  %v351_v47 = vsub.f32 1.0, %v8884_v52 }
 0x10c   :  { %v6533_v20 = vpop.eup %6532  ;;  %5476 = vst [vmem:[#allocation5 + $0x38] sm:$0xff] %v4466_v28  ;;  %5949 = vmatmul.mubr.msk.f32.gmra.mrb[112].mxu1 %vm2072_vm0, %v2769_v4  ;;  %2259 = vst.msk [vmem:[#allocation2 + $0x5d0] sm:$0xff] %vm2072_vm0, %v2002_v58  ;;  %v2003_v33 = vmul.f32 0.5, %v1807_v31  ;;  %v1809_v26 = vmul.f32 0.6931472, %v6531_v30  ;;  %6552 = vrcp.f32 %v346_v63  ;;  %v3702_v17 = vpop.f32.mrb[8].mxu0 }
 0x10d   :  { %2515 = vst.msk [vmem:[%s10818_s6 + $0x1d0] sm:$0xff] %vm2072_vm0, %v2002_v58  ;;  %v6535_v10 = vpop.eup %6534  ;;  %4786 = vmatprep.mubr.f32.mxu1 %v7100_v11  ;;  %2132 = vst.msk [vmem:[#allocation2 + $0x1d8] sm:$0xff] %vm2072_vm0, %v979_v35  ;;  %v980_v43 = vmul.f32 0.5, %v785_v39  ;;  %v787_v12 = vmul.f32 0.6931472, %v6533_v20  ;;  %6554 = vrcp.f32 %v1370_v14  ;;  %v4470_v0 = vpop.f32.mrb[8].mxu1 }
 0x10e   :  { %2388 = vst.msk [vmem:[%s10817_s5 + $0x1d8] sm:$0xff] %vm2072_vm0, %v979_v35  ;;  %v6537_v50 = vpop.eup %6536  ;;  %5221 = vst [vmem:[#allocation3 + $0x40] sm:$0xff] %v3702_v17  ;;  %v3704_v8 = vpop.f32.mrb[9].mxu0  ;;  %5822 = vmatmul.mubr.msk.f32.gmra.mrb[114].mxu0 %vm2072_vm0, %v2642_v2  ;;  %v2004_v19 = vmul.f32 0.5, %v1809_v26  ;;  %v1811_v37 = vmul.f32 0.6931472, %v6535_v10  ;;  %6556 = vrcp.f32 %v347_v56 }
 0x10f   :  { %2260 = vst.msk [vmem:[#allocation2 + $0x5d8] sm:$0xff] %vm2072_vm0, %v2003_v33  ;;  %2516 = vst.msk [vmem:[%s10818_s6 + $0x1d8] sm:$0xff] %vm2072_vm0, %v2003_v33  ;;  %v6539_v46 = vpop.eup %6538  ;;  %v4472_v49 = vpop.f32.mrb[9].mxu1  ;;  %4024 = vmatprep.mubr.f32.mxu0 %v7100_v11  ;;  %v981_v38 = vmul.f32 0.5, %v787_v12  ;;  %v789_v59 = vmul.f32 0.6931472, %v6537_v50  ;;  %6558 = vrcp.f32 %v1371_v36 }
 0x110   :  { %5477 = vst [vmem:[#allocation5 + $0x40] sm:$0xff] %v4470_v0  ;;  %5222 = vst [vmem:[#allocation3 + $0x48] sm:$0xff] %v3704_v8  ;;  %v6541_v61 = vpop.eup %6540  ;;  %5950 = vmatmul.mubr.msk.f32.gmra.mrb[114].mxu1 %vm2072_vm0, %v2770_v40  ;;  %v2005_v54 = vmul.f32 0.5, %v1811_v37  ;;  %v1813_v57 = vmul.f32 0.6931472, %v6539_v46  ;;  %6560 = vrcp.f32 %v348_v41  ;;  %v3708_v62 = vpop.f32.mrb[10].mxu0 }
 0x111   :  { %2133 = vst.msk [vmem:[#allocation2 + $0x1e0] sm:$0xff] %vm2072_vm0, %v980_v43  ;;  %2389 = vst.msk [vmem:[%s10817_s5 + $0x1e0] sm:$0xff] %vm2072_vm0, %v980_v43  ;;  %v6543_v18 = vpop.eup %6542  ;;  %4792 = vmatprep.mubr.f32.mxu1 %v7100_v11  ;;  %v982_v51 = vmul.f32 0.5, %v789_v59  ;;  %v791_v9 = vmul.f32 0.6931472, %v6541_v61  ;;  %6562 = vrcp.f32 %v1372_v22  ;;  %v4476_v63 = vpop.f32.mrb[10].mxu1 }
 0x112   :  { %5478 = vst [vmem:[#allocation5 + $0x48] sm:$0xff] %v4472_v49  ;;  %2261 = vst.msk [vmem:[#allocation2 + $0x5e0] sm:$0xff] %vm2072_vm0, %v2004_v19  ;;  %v6545_v25 = vpop.eup %6544  ;;  %v3710_v6 = vpop.f32.mrb[11].mxu0  ;;  %5823 = vmatmul.mubr.msk.f32.gmra.mrb[116].mxu0 %vm2072_vm0, %v2643_v42  ;;  %v2006_v34 = vmul.f32 0.5, %v1813_v57  ;;  %v1815_v4 = vmul.f32 0.6931472, %v6543_v18  ;;  %6564 = vrcp.f32 %v349_v53 }
 0x113   :  { %2517 = vst.msk [vmem:[%s10818_s6 + $0x1e0] sm:$0xff] %vm2072_vm0, %v2004_v19  ;;  %2134 = vst.msk [vmem:[#allocation2 + $0x1e8] sm:$0xff] %vm2072_vm0, %v981_v38  ;;  %v6547_v14 = vpop.eup %6546  ;;  %v4478_v16 = vpop.f32.mrb[11].mxu1  ;;  %v2771_v23 = vld [vmem:[#allocation2 + $0x5d0] sm:$0xff]  ;;  %4030 = vmatprep.mubr.f32.mxu0 %v7100_v11  ;;  %v983_v24 = vmul.f32 0.5, %v791_v9  ;;  %v218_v31 = vadd.f32 1.0, %v8804_v3  ;;  %6566 = vrcp.f32 %v1373_v15 }
 0x114   :  { %2390 = vst.msk [vmem:[%s10817_s5 + $0x1e8] sm:$0xff] %vm2072_vm0, %v981_v38  ;;  %5223 = vst [vmem:[#allocation3 + $0x50] sm:$0xff] %v3708_v62  ;;  %v793_v58 = vmul.f32 0.6931472, %v6545_v25  ;;  %v6549_v56 = vpop.eup %6548  ;;  %5951 = vmatmul.mubr.msk.f32.gmra.mrb[116].mxu1 %vm2072_vm0, %v2771_v23  ;;  %v2644_v30 = vld [vmem:[#allocation2 + $0x1d8] sm:$0xff]  ;;  %v2007_v28 = vmul.f32 0.5, %v1815_v4  ;;  %6568 = vrcp.f32 %v350_v1 }
 0x115   :  { %2262 = vst.msk [vmem:[#allocation2 + $0x5e8] sm:$0xff] %vm2072_vm0, %v2005_v54  ;;  %2518 = vst.msk [vmem:[%s10818_s6 + $0x1e8] sm:$0xff] %vm2072_vm0, %v2005_v54  ;;  %v1817_v2 = vmul.f32 0.6931472, %v6547_v14  ;;  %v1242_v35 = vadd.f32 1.0, %v8810_v44  ;;  %v6551_v39 = vpop.eup %6550  ;;  %v3714_v3 = vpop.f32.mrb[12].mxu0  ;;  %4798 = vmatprep.mubr.f32.mxu1 %v7100_v11  ;;  %v539_v33 = vmul.f32 %v6549_v56, %v8825_v5  ;;  %6570 = vrcp.f32 %v1374_v55 }
 0x116   :  { %5479 = vst [vmem:[#allocation5 + $0x50] sm:$0xff] %v4476_v63  ;;  %5224 = vst [vmem:[#allocation3 + $0x58] sm:$0xff] %v3710_v6  ;;  %v2772_v36 = vld [vmem:[#allocation2 + $0x5d8] sm:$0xff]  ;;  %v984_v20 = vmul.f32 0.5, %v793_v58  ;;  %v219_v26 = vadd.f32 1.0, %v8817_v7  ;;  %v6553_v44 = vpop.eup %6552  ;;  %v3716_v41 = vpop.f32.mrb[13].mxu0  ;;  %5824 = vmatmul.mubr.msk.f32.gmra.mrb[118].mxu0 %vm2072_vm0, %v2644_v30  ;;  %v1563_v17 = vmul.f32 %v6551_v39, %v8840_v21  ;;  %6572 = vrcp.f32 %v351_v47 }
 0x117   :  { %2135 = vst.msk [vmem:[#allocation2 + $0x1f0] sm:$0xff] %vm2072_vm0, %v982_v51  ;;  %2391 = vst.msk [vmem:[%s10817_s5 + $0x1f0] sm:$0xff] %vm2072_vm0, %v982_v51  ;;  %v2008_v10 = vmul.f32 0.5, %v1817_v2  ;;  %v1243_v5 = vadd.f32 1.0, %v8822_v60  ;;  %v6555_v7 = vpop.eup %6554  ;;  %v4482_v40 = vpop.f32.mrb[12].mxu1  ;;  %4036 = vmatprep.mubr.f32.mxu0 %v7100_v11  ;;  %6574 = vlog2.f32 %v539_v33  ;;  %v541_v12 = vmul.f32 %v6553_v44, %v218_v31  ;;  %v8982_v6 = vld [vmem:[%s10812_s0 + $0x240] sm:$0xff] }
 0x118   :  { %5480 = vst [vmem:[#allocation5 + $0x58] sm:$0xff] %v4478_v16  ;;  %2263 = vst.msk [vmem:[#allocation2 + $0x5f0] sm:$0xff] %vm2072_vm0, %v2006_v34  ;;  %v2645_v43 = vld [vmem:[#allocation2 + $0x1e0] sm:$0xff]  ;;  %v220_v21 = vadd.f32 1.0, %v8831_v29  ;;  %v6557_v22 = vpop.eup %6556  ;;  %v4484_v60 = vpop.f32.mrb[13].mxu1  ;;  %5952 = vmatmul.mubr.msk.f32.gmra.mrb[118].mxu1 %vm2072_vm0, %v2772_v36  ;;  %6576 = vlog2.f32 %v1563_v17  ;;  %v1565_v50 = vmul.f32 %v6555_v7, %v1242_v35  ;;  %v1244_v0 = vadd.f32 1.0, %v8836_v27 }
 0x119   :  { %2519 = vst.msk [vmem:[%s10818_s6 + $0x1f0] sm:$0xff] %vm2072_vm0, %v2006_v34  ;;  %2136 = vst.msk [vmem:[#allocation2 + $0x1f8] sm:$0xff] %vm2072_vm0, %v983_v24  ;;  %v6559_v8 = vpop.eup %6558  ;;  %v3720_v19 = vpop.f32.mrb[14].mxu0  ;;  %4804 = vmatprep.mubr.f32.mxu1 %v7100_v11  ;;  %v2773_v29 = vld [vmem:[#allocation2 + $0x5e0] sm:$0xff]  ;;  %6578 = vlog2.f32 %v541_v12  ;;  %v543_v37 = vmul.f32 %v6557_v22, %v219_v26  ;;  %v221_v53 = vadd.f32 1.0, %v8846_v48  ;;  %v1245_v38 = vadd.f32 1.0, %v8853_v13 }
 0x11a   :  { %2392 = vst.msk [vmem:[%s10817_s5 + $0x1f8] sm:$0xff] %vm2072_vm0, %v983_v24  ;;  %5225 = vst [vmem:[#allocation3 + $0x60] sm:$0xff] %v3714_v3  ;;  %v6561_v46 = vpop.eup %6560  ;;  %v3722_v49 = vpop.f32.mrb[15].mxu0  ;;  %5825 = vmatmul.mubr.msk.f32.gmra.mrb[120].mxu0 %vm2072_vm0, %v2645_v43  ;;  %6580 = vlog2.f32 %v1565_v50  ;;  %v1567_v42 = vmul.f32 %v6559_v8, %v1243_v5  ;;  %v2646_v15 = vld [vmem:[#allocation2 + $0x1e8] sm:$0xff]  ;;  %v222_v54 = vadd.f32 1.0, %v8867_v45  ;;  %v1246_v18 = vadd.f32 1.0, %v8872_v32 }
 0x11b   :  { %2264 = vst.msk [vmem:[#allocation2 + $0x5f8] sm:$0xff] %vm2072_vm0, %v2007_v28  ;;  %2520 = vst.msk [vmem:[%s10818_s6 + $0x1f8] sm:$0xff] %vm2072_vm0, %v2007_v28  ;;  %v6563_v27 = vpop.eup %6562  ;;  %v4488_v59 = vpop.f32.mrb[14].mxu1  ;;  %4042 = vmatprep.mubr.f32.mxu0 %v7100_v11  ;;  %6582 = vlog2.f32 %v543_v37  ;;  %v545_v61 = vmul.f32 %v6561_v46, %v220_v21  ;;  %v223_v55 = vadd.f32 1.0, %v8884_v52  ;;  %v1119_v45 = vld [vmem:[%s10813_s1 + $0x238] sm:$0xff]  ;;  %v8988_v14 = vld [vmem:[%s10813_s1 + $0x240] sm:$0xff] }
 0x11c   :  { %5226 = vst [vmem:[#allocation3 + $0x68] sm:$0xff] %v3716_v41  ;;  %2137 = vst.msk [vmem:[#allocation2 + $0x200] sm:$0xff] %vm2072_vm0, %v984_v20  ;;  %v6565_v48 = vpop.eup %6564  ;;  %v4490_v57 = vpop.f32.mrb[15].mxu1  ;;  %5953 = vmatmul.mubr.msk.f32.gmra.mrb[120].mxu1 %vm2072_vm0, %v2773_v29  ;;  %6584 = vlog2.f32 %v1567_v42  ;;  %v1569_v1 = vmul.f32 %v6563_v27, %v1244_v0  ;;  %v2774_v51 = vld [vmem:[#allocation2 + $0x5e8] sm:$0xff]  ;;  %v1375_v58 = vsub.f32 1.0, %v1119_v45  ;;  %v352_v39 = vsub.f32 1.0, %v8982_v6 }
 0x11d   :  { %2393 = vst.msk [vmem:[%s10817_s5 + $0x200] sm:$0xff] %vm2072_vm0, %v984_v20  ;;  %5481 = vst [vmem:[#allocation5 + $0x60] sm:$0xff] %v4482_v40  ;;  %v6567_v13 = vpop.eup %6566  ;;  %v3726_v62 = vpop.f32.mrb[16].mxu0  ;;  %4810 = vmatprep.mubr.f32.mxu1 %v7100_v11  ;;  %6586 = vlog2.f32 %v545_v61  ;;  %v547_v9 = vmul.f32 %v6565_v48, %v221_v53  ;;  %v8994_v31 = vld [vmem:[%s10812_s0 + $0x248] sm:$0xff]  ;;  %v9006_v3 = vld [vmem:[%s10812_s0 + $0x250] sm:$0xff]  ;;  %v9014_v44 = vadd.f32 1.0, %v1119_v45 }
 0x11e   :  { %2265 = vst.msk [vmem:[#allocation2 + $0x600] sm:$0xff] %vm2072_vm0, %v2008_v10  ;;  %2521 = vst.msk [vmem:[%s10818_s6 + $0x200] sm:$0xff] %vm2072_vm0, %v2008_v10  ;;  %v6569_v25 = vpop.eup %6568  ;;  %v3728_v63 = vpop.f32.mrb[17].mxu0  ;;  %5826 = vmatmul.mubr.msk.f32.gmra.mrb[122].mxu0 %vm2072_vm0, %v2646_v15  ;;  %6588 = vlog2.f32 %v1569_v1  ;;  %v1571_v32 = vmul.f32 %v6567_v13, %v1245_v38  ;;  %v2647_v52 = vld [vmem:[#allocation2 + $0x1f0] sm:$0xff]  ;;  %v8999_v56 = vld [vmem:[%s10813_s1 + $0x248] sm:$0xff]  ;;  %v1376_v41 = vsub.f32 1.0, %v8988_v14 }
 0x11f   :  { %5482 = vst [vmem:[#allocation5 + $0x68] sm:$0xff] %v4484_v60  ;;  %5227 = vst [vmem:[#allocation3 + $0x70] sm:$0xff] %v3720_v19  ;;  %v6571_v34 = vpop.eup %6570  ;;  %v4494_v4 = vpop.f32.mrb[16].mxu1  ;;  %4048 = vmatprep.mubr.f32.mxu0 %v7100_v11  ;;  %6590 = vlog2.f32 %v547_v9  ;;  %v549_v47 = vmul.f32 %v6569_v25, %v222_v54  ;;  %v2775_v2 = vld [vmem:[#allocation2 + $0x5f0] sm:$0xff]  ;;  %v9020_v10 = vld [vmem:[%s10812_s0 + $0x258] sm:$0xff]  ;;  %v9024_v43 = vadd.f32 1.0, %v8982_v6 }
 0x120   :  { %5228 = vst [vmem:[#allocation3 + $0x78] sm:$0xff] %v3722_v49  ;;  %5483 = vst [vmem:[#allocation5 + $0x70] sm:$0xff] %v4488_v59  ;;  %v6573_v16 = vpop.eup %6572  ;;  %v4496_v23 = vpop.f32.mrb[17].mxu1  ;;  %5954 = vmatmul.mubr.msk.f32.gmra.mrb[122].mxu1 %vm2072_vm0, %v2774_v51  ;;  %6592 = vlog2.f32 %v1571_v32  ;;  %v1573_v24 = vmul.f32 %v6571_v34, %v1246_v18  ;;  %v9011_v36 = vld [vmem:[%s10813_s1 + $0x250] sm:$0xff]  ;;  %v2648_v7 = vld [vmem:[#allocation2 + $0x1f8] sm:$0xff]  ;;  %v353_v12 = vsub.f32 1.0, %v8994_v31 }
 0x121   :  { %5484 = vst [vmem:[#allocation5 + $0x78] sm:$0xff] %v4490_v57  ;;  %5229 = vst [vmem:[#allocation3 + $0x80] sm:$0xff] %v3726_v62  ;;  %v6575_v30 = vpop.eup %6574  ;;  %v3732_v28 = vpop.f32.mrb[18].mxu0  ;;  %4816 = vmatprep.mubr.f32.mxu1 %v7100_v11  ;;  %6594 = vlog2.f32 %v549_v47  ;;  %v551_v35 = vmul.f32 %v6573_v16, %v223_v55  ;;  %v9030_v21 = vld [vmem:[%s10813_s1 + $0x258] sm:$0xff]  ;;  %v1377_v8 = vsub.f32 1.0, %v8999_v56  ;;  %v9037_v19 = vld [vmem:[%s10812_s0 + $0x260] sm:$0xff] }
 0x122   :  { %5230 = vst [vmem:[#allocation3 + $0x88] sm:$0xff] %v3728_v63  ;;  %5485 = vst [vmem:[#allocation5 + $0x80] sm:$0xff] %v4494_v4  ;;  %v6577_v20 = vpop.eup %6576  ;;  %v3734_v33 = vpop.f32.mrb[19].mxu0  ;;  %5827 = vmatmul.mubr.msk.f32.gmra.mrb[124].mxu0 %vm2072_vm0, %v2647_v52  ;;  %v795_v26 = vmul.f32 0.6931472, %v6575_v30  ;;  %6596 = vlog2.f32 %v1573_v24  ;;  %v2776_v53 = vld [vmem:[#allocation2 + $0x5f8] sm:$0xff] }
 0x123   :  { %5486 = vst [vmem:[#allocation5 + $0x88] sm:$0xff] %v4496_v23  ;;  %5231 = vst [vmem:[#allocation3 + $0x90] sm:$0xff] %v3732_v28  ;;  %v6579_v17 = vpop.eup %6578  ;;  %v4500_v5 = vpop.f32.mrb[18].mxu1  ;;  %4054 = vmatprep.mubr.f32.mxu0 %v7100_v11  ;;  %v1819_v40 = vmul.f32 0.6931472, %v6577_v20  ;;  %6598 = vlog2.f32 %v551_v35  ;;  %v354_v42 = vsub.f32 1.0, %v9006_v3 }
 0x124   :  { %5232 = vst [vmem:[#allocation3 + $0x98] sm:$0xff] %v3734_v33  ;;  %v6581_v22 = vpop.eup %6580  ;;  %5487 = vst [vmem:[#allocation5 + $0x90] sm:$0xff] %v4500_v5  ;;  %v4502_v60 = vpop.f32.mrb[19].mxu1  ;;  %5955 = vmatmul.mubr.msk.f32.gmra.mrb[124].mxu1 %vm2072_vm0, %v2775_v2  ;;  %v985_v50 = vmul.f32 0.5, %v795_v26  ;;  %v797_v0 = vmul.f32 0.6931472, %v6579_v17  ;;  %6600 = vrcp.f32 %v1375_v58 }
 0x125   :  { %v6583_v29 = vpop.eup %6582  ;;  %5488 = vst [vmem:[#allocation5 + $0x98] sm:$0xff] %v4502_v60  ;;  %v3738_v37 = vpop.f32.mrb[20].mxu0  ;;  %4822 = vmatprep.mubr.f32.mxu1 %v7100_v11  ;;  %v2009_v46 = vmul.f32 0.5, %v1819_v40  ;;  %v1821_v49 = vmul.f32 0.6931472, %v6581_v22  ;;  %6602 = vrcp.f32 %v352_v39  ;;  %v9044_v38 = vld [vmem:[%s10813_s1 + $0x260] sm:$0xff] }
 0x126   :  { %v6585_v27 = vpop.eup %6584  ;;  %5233 = vst [vmem:[#allocation3 + $0xa0] sm:$0xff] %v3738_v37  ;;  %v3740_v59 = vpop.f32.mrb[21].mxu0  ;;  %5828 = vmatmul.mubr.msk.f32.gmra.mrb[126].mxu0 %vm2072_vm0, %v2648_v7  ;;  %2138 = vst.msk [vmem:[#allocation2 + $0x208] sm:$0xff] %vm2072_vm0, %v985_v50  ;;  %v986_v15 = vmul.f32 0.5, %v797_v0  ;;  %v799_v61 = vmul.f32 0.6931472, %v6583_v29  ;;  %6604 = vrcp.f32 %v1376_v41 }
 0x127   :  { %2394 = vst.msk [vmem:[%s10817_s5 + $0x208] sm:$0xff] %vm2072_vm0, %v985_v50  ;;  %v1378_v54 = vsub.f32 1.0, %v9011_v36  ;;  %v9056_v48 = vld [vmem:[%s10812_s0 + $0x268] sm:$0xff]  ;;  %v6587_v57 = vpop.eup %6586  ;;  %v4506_v1 = vpop.f32.mrb[20].mxu1  ;;  %5234 = vst [vmem:[#allocation3 + $0xa8] sm:$0xff] %v3740_v59  ;;  %4060 = vmatprep.mubr.f32.mxu0 %v7100_v11  ;;  %v2649_v18 = vld [vmem:[#allocation2 + $0x200] sm:$0xff]  ;;  %6606 = vrcp.f32 %v353_v12 }
 0x128   :  { %2266 = vst.msk [vmem:[#allocation2 + $0x608] sm:$0xff] %vm2072_vm0, %v2009_v46  ;;  %2522 = vst.msk [vmem:[%s10818_s6 + $0x208] sm:$0xff] %vm2072_vm0, %v2009_v46  ;;  %v2010_v13 = vmul.f32 0.5, %v1821_v49  ;;  %v1823_v62 = vmul.f32 0.6931472, %v6585_v27  ;;  %v355_v51 = vsub.f32 1.0, %v9020_v10  ;;  %v6589_v9 = vpop.eup %6588  ;;  %5956 = vmatmul.mubr.msk.f32.gmra.mrb[126].mxu1 %vm2072_vm0, %v2776_v53  ;;  %6608 = vrcp.f32 %v1377_v8 }
 0x129   :  { %5489 = vst [vmem:[#allocation5 + $0xa0] sm:$0xff] %v4506_v1  ;;  %v4508_v55 = vpop.f32.mrb[21].mxu1  ;;  %2139 = vst.msk [vmem:[#allocation2 + $0x210] sm:$0xff] %vm2072_vm0, %v986_v15  ;;  %v987_v45 = vmul.f32 0.5, %v799_v61  ;;  %v801_v25 = vmul.f32 0.6931472, %v6587_v57  ;;  %v6591_v6 = vpop.eup %6590  ;;  %4828 = vmatprep.mubr.f32.mxu1 %v7100_v11  ;;  %6610 = vrcp.f32 %v354_v42 }
 0x12a   :  { %2395 = vst.msk [vmem:[%s10817_s5 + $0x210] sm:$0xff] %vm2072_vm0, %v986_v15  ;;  %v1379_v63 = vsub.f32 1.0, %v9030_v21  ;;  %v9075_v32 = vld [vmem:[%s10813_s1 + $0x268] sm:$0xff]  ;;  %5490 = vst [vmem:[#allocation5 + $0xa8] sm:$0xff] %v4508_v55  ;;  %v3744_v34 = vpop.f32.mrb[22].mxu0  ;;  %v2777_v4 = vld [vmem:[#allocation2 + $0x600] sm:$0xff]  ;;  %v6593_v23 = vpop.eup %6592  ;;  %5829 = vmatmul.mubr.msk.f32.gmra.mrb[128].mxu0 %vm2072_vm0, %v2649_v18  ;;  %6612 = vrcp.f32 %v1378_v54 }
 0x12b   :  { %2267 = vst.msk [vmem:[#allocation2 + $0x610] sm:$0xff] %vm2072_vm0, %v2010_v13  ;;  %2523 = vst.msk [vmem:[%s10818_s6 + $0x210] sm:$0xff] %vm2072_vm0, %v2010_v13  ;;  %v2011_v52 = vmul.f32 0.5, %v1823_v62  ;;  %v1825_v47 = vmul.f32 0.6931472, %v6589_v9  ;;  %v356_v16 = vsub.f32 1.0, %v9037_v19  ;;  %v6595_v2 = vpop.eup %6594  ;;  %4066 = vmatprep.mubr.f32.mxu0 %v7100_v11  ;;  %6614 = vrcp.f32 %v355_v51 }
 0x12c   :  { %5235 = vst [vmem:[#allocation3 + $0xb0] sm:$0xff] %v3744_v34  ;;  %v3746_v24 = vpop.f32.mrb[23].mxu0  ;;  %2140 = vst.msk [vmem:[#allocation2 + $0x218] sm:$0xff] %vm2072_vm0, %v987_v45  ;;  %v988_v58 = vmul.f32 0.5, %v801_v25  ;;  %v803_v30 = vmul.f32 0.6931472, %v6591_v6  ;;  %v6597_v26 = vpop.eup %6596  ;;  %5957 = vmatmul.mubr.msk.f32.gmra.mrb[128].mxu1 %vm2072_vm0, %v2777_v4  ;;  %6616 = vrcp.f32 %v1379_v63 }
 0x12d   :  { %2396 = vst.msk [vmem:[%s10817_s5 + $0x218] sm:$0xff] %vm2072_vm0, %v987_v45  ;;  %v1380_v28 = vsub.f32 1.0, %v9044_v38  ;;  %v4512_v35 = vpop.f32.mrb[22].mxu1  ;;  %5236 = vst [vmem:[#allocation3 + $0xb8] sm:$0xff] %v3746_v24  ;;  %v2012_v39 = vmul.f32 0.5, %v1825_v47  ;;  %v357_v33 = vsub.f32 1.0, %v9056_v48  ;;  %v6599_v40 = vpop.eup %6598  ;;  %4834 = vmatprep.mubr.f32.mxu1 %v7100_v11  ;;  %6618 = vrcp.f32 %v356_v16 }
 0x12e   :  { %2268 = vst.msk [vmem:[#allocation2 + $0x618] sm:$0xff] %vm2072_vm0, %v2011_v52  ;;  %2524 = vst.msk [vmem:[%s10818_s6 + $0x218] sm:$0xff] %vm2072_vm0, %v2011_v52  ;;  %v1827_v20 = vmul.f32 0.6931472, %v6593_v23  ;;  %v4514_v41 = vpop.f32.mrb[23].mxu1  ;;  %v989_v17 = vmul.f32 0.5, %v803_v30  ;;  %v6601_v8 = vpop.eup %6600 }
 0x12f   :  { %5491 = vst [vmem:[#allocation5 + $0xb0] sm:$0xff] %v4512_v35  ;;  %2141 = vst.msk [vmem:[#allocation2 + $0x220] sm:$0xff] %vm2072_vm0, %v988_v58  ;;  %v805_v5 = vmul.f32 0.6931472, %v6595_v2  ;;  %v1381_v7 = vsub.f32 1.0, %v9075_v32  ;;  %v3750_v12 = vpop.f32.mrb[24].mxu0  ;;  %6620 = vrcp.f32 %v1380_v28  ;;  %v1575_v15 = vmul.f32 %v6601_v8, %v9014_v44 }
 0x130   :  { %2397 = vst.msk [vmem:[%s10817_s5 + $0x220] sm:$0xff] %vm2072_vm0, %v988_v58  ;;  %5492 = vst [vmem:[#allocation5 + $0xb8] sm:$0xff] %v4514_v41  ;;  %v2650_v22 = vld [vmem:[#allocation2 + $0x208] sm:$0xff]  ;;  %v2013_v60 = vmul.f32 0.5, %v1827_v20  ;;  %v1829_v50 = vmul.f32 0.6931472, %v6597_v26  ;;  %6622 = vrcp.f32 %v357_v33 }
 0x131   :  { %2269 = vst.msk [vmem:[#allocation2 + $0x620] sm:$0xff] %vm2072_vm0, %v2012_v39  ;;  %2525 = vst.msk [vmem:[%s10818_s6 + $0x220] sm:$0xff] %vm2072_vm0, %v2012_v39  ;;  %v1248_v0 = vadd.f32 1.0, %v8988_v14  ;;  %v3752_v29 = vpop.f32.mrb[25].mxu0  ;;  %5830 = vmatmul.mubr.msk.f32.gmra.mrb[130].mxu0 %vm2072_vm0, %v2650_v22  ;;  %v2778_v37 = vld [vmem:[#allocation2 + $0x608] sm:$0xff]  ;;  %v990_v53 = vmul.f32 0.5, %v805_v5  ;;  %v6603_v14 = vpop.eup %6602  ;;  %6624 = vrcp.f32 %v1381_v7 }
 0x132   :  { %5237 = vst [vmem:[#allocation3 + $0xc0] sm:$0xff] %v3750_v12  ;;  %2142 = vst.msk [vmem:[#allocation2 + $0x228] sm:$0xff] %vm2072_vm0, %v989_v17  ;;  %v807_v46 = vmul.f32 0.6931472, %v6599_v40  ;;  %v225_v49 = vadd.f32 1.0, %v8994_v31  ;;  %v4518_v42 = vpop.f32.mrb[24].mxu1  ;;  %4072 = vmatprep.mubr.f32.mxu0 %v7100_v11  ;;  %v6605_v31 = vpop.eup %6604  ;;  %5958 = vmatmul.mubr.msk.f32.gmra.mrb[130].mxu1 %vm2072_vm0, %v2778_v37  ;;  %v553_v1 = vmul.f32 %v6603_v14, %v9024_v43  ;;  %6626 = vlog2.f32 %v1575_v15 }
 0x133   :  { %2398 = vst.msk [vmem:[%s10817_s5 + $0x228] sm:$0xff] %vm2072_vm0, %v989_v17  ;;  %5238 = vst [vmem:[#allocation3 + $0xc8] sm:$0xff] %v3752_v29  ;;  %v2651_v27 = vld [vmem:[#allocation2 + $0x210] sm:$0xff]  ;;  %v2014_v59 = vmul.f32 0.5, %v1829_v50  ;;  %v1249_v61 = vadd.f32 1.0, %v8999_v56  ;;  %v4520_v54 = vpop.f32.mrb[25].mxu1  ;;  %v6607_v56 = vpop.eup %6606  ;;  %4840 = vmatprep.mubr.f32.mxu1 %v7100_v11  ;;  %v1577_v62 = vmul.f32 %v6605_v31, %v1248_v0 }
 0x134   :  { %2270 = vst.msk [vmem:[#allocation2 + $0x628] sm:$0xff] %vm2072_vm0, %v2013_v60  ;;  %2526 = vst.msk [vmem:[%s10818_s6 + $0x228] sm:$0xff] %vm2072_vm0, %v2013_v60  ;;  %v991_v57 = vmul.f32 0.5, %v807_v46  ;;  %v226_v44 = vadd.f32 1.0, %v9006_v3  ;;  %v3756_v18 = vpop.f32.mrb[26].mxu0  ;;  %v2779_v13 = vld [vmem:[#allocation2 + $0x610] sm:$0xff]  ;;  %v6609_v51 = vpop.eup %6608  ;;  %6628 = vlog2.f32 %v553_v1  ;;  %v555_v9 = vmul.f32 %v6607_v56, %v225_v49 }
 0x135   :  { %5493 = vst [vmem:[#allocation5 + $0xc0] sm:$0xff] %v4518_v42  ;;  %2143 = vst.msk [vmem:[#allocation2 + $0x230] sm:$0xff] %vm2072_vm0, %v990_v53  ;;  %v1250_v43 = vadd.f32 1.0, %v9011_v36  ;;  %v3758_v3 = vpop.f32.mrb[27].mxu0  ;;  %5831 = vmatmul.mubr.msk.f32.gmra.mrb[132].mxu0 %vm2072_vm0, %v2651_v27  ;;  %v227_v55 = vadd.f32 1.0, %v9020_v10  ;;  %v6611_v45 = vpop.eup %6610  ;;  %v2652_v36 = vld [vmem:[#allocation2 + $0x218] sm:$0xff]  ;;  %6630 = vlog2.f32 %v1577_v62  ;;  %v1579_v63 = vmul.f32 %v6609_v51, %v1249_v61 }
 0x136   :  { %2399 = vst.msk [vmem:[%s10817_s5 + $0x230] sm:$0xff] %vm2072_vm0, %v990_v53  ;;  %5494 = vst [vmem:[#allocation5 + $0xc8] sm:$0xff] %v4520_v54  ;;  %v4524_v25 = vpop.f32.mrb[26].mxu1  ;;  %4078 = vmatprep.mubr.f32.mxu0 %v7100_v11  ;;  %v1251_v6 = vadd.f32 1.0, %v9030_v21  ;;  %v6613_v34 = vpop.eup %6612  ;;  %5959 = vmatmul.mubr.msk.f32.gmra.mrb[132].mxu1 %vm2072_vm0, %v2779_v13  ;;  %6632 = vlog2.f32 %v555_v9  ;;  %v557_v52 = vmul.f32 %v6611_v45, %v226_v44  ;;  %v228_v47 = vadd.f32 1.0, %v9037_v19  ;;  %v2780_v23 = vld [vmem:[#allocation2 + $0x618] sm:$0xff] }
 0x137   :  { %2271 = vst.msk [vmem:[#allocation2 + $0x630] sm:$0xff] %vm2072_vm0, %v2014_v59  ;;  %2527 = vst.msk [vmem:[%s10818_s6 + $0x230] sm:$0xff] %vm2072_vm0, %v2014_v59  ;;  %v4526_v4 = vpop.f32.mrb[27].mxu1  ;;  %v6615_v10 = vpop.eup %6614  ;;  %4846 = vmatprep.mubr.f32.mxu1 %v7100_v11  ;;  %6634 = vlog2.f32 %v1579_v63  ;;  %v1581_v24 = vmul.f32 %v6613_v34, %v1250_v43  ;;  %v1252_v58 = vadd.f32 1.0, %v9044_v38  ;;  %v229_v2 = vadd.f32 1.0, %v9056_v48  ;;  %v9160_v19 = vld [vmem:[%s10812_s0 + $0x270] sm:$0xff] }
 0x138   :  { %5239 = vst [vmem:[#allocation3 + $0xd0] sm:$0xff] %v3756_v18  ;;  %2144 = vst.msk [vmem:[#allocation2 + $0x238] sm:$0xff] %vm2072_vm0, %v991_v57  ;;  %v3762_v16 = vpop.f32.mrb[28].mxu0  ;;  %v6617_v21 = vpop.eup %6616  ;;  %6636 = vlog2.f32 %v557_v52  ;;  %v559_v28 = vmul.f32 %v6615_v10, %v227_v55  ;;  %v9165_v35 = vld [vmem:[%s10813_s1 + $0x270] sm:$0xff]  ;;  %v2653_v20 = vld [vmem:[#allocation2 + $0x220] sm:$0xff]  ;;  %v1253_v48 = vadd.f32 1.0, %v9075_v32 }
 0x139   :  { %2400 = vst.msk [vmem:[%s10817_s5 + $0x238] sm:$0xff] %vm2072_vm0, %v991_v57  ;;  %5240 = vst [vmem:[#allocation3 + $0xd8] sm:$0xff] %v3758_v3  ;;  %v3764_v30 = vpop.f32.mrb[29].mxu0  ;;  %5832 = vmatmul.mubr.msk.f32.gmra.mrb[134].mxu0 %vm2072_vm0, %v2652_v36  ;;  %v6619_v38 = vpop.eup %6618  ;;  %6638 = vlog2.f32 %v1581_v24  ;;  %v1583_v33 = vmul.f32 %v6617_v21, %v1251_v6  ;;  %v9172_v26 = vld [vmem:[%s10812_s0 + $0x278] sm:$0xff]  ;;  %v2781_v12 = vld [vmem:[#allocation2 + $0x620] sm:$0xff]  ;;  %v358_v60 = vsub.f32 1.0, %v9160_v19 }
 0x13a   :  { %5495 = vst [vmem:[#allocation5 + $0xd0] sm:$0xff] %v4524_v25  ;;  %5496 = vst [vmem:[#allocation5 + $0xd8] sm:$0xff] %v4526_v4  ;;  %v4530_v39 = vpop.f32.mrb[28].mxu1  ;;  %4084 = vmatprep.mubr.f32.mxu0 %v7100_v11  ;;  %v9177_v41 = vld [vmem:[%s10813_s1 + $0x278] sm:$0xff]  ;;  %v6621_v17 = vpop.eup %6620  ;;  %5960 = vmatmul.mubr.msk.f32.gmra.mrb[134].mxu1 %vm2072_vm0, %v2780_v23  ;;  %6640 = vlog2.f32 %v559_v28  ;;  %v561_v7 = vmul.f32 %v6619_v38, %v228_v47  ;;  %v1382_v50 = vsub.f32 1.0, %v9165_v35  ;;  %v9186_v0 = vld [vmem:[%s10812_s0 + $0x280] sm:$0xff] }
 0x13b   :  { %5241 = vst [vmem:[#allocation3 + $0xe0] sm:$0xff] %v3762_v16  ;;  %5242 = vst [vmem:[#allocation3 + $0xe8] sm:$0xff] %v3764_v30  ;;  %v4532_v5 = vpop.f32.mrb[29].mxu1  ;;  %v6623_v40 = vpop.eup %6622  ;;  %4852 = vmatprep.mubr.f32.mxu1 %v7100_v11  ;;  %6642 = vlog2.f32 %v1583_v33  ;;  %v1585_v22 = vmul.f32 %v6621_v17, %v1252_v58  ;;  %v9191_v8 = vld [vmem:[%s10813_s1 + $0x280] sm:$0xff]  ;;  %v359_v46 = vsub.f32 1.0, %v9172_v26  ;;  %v1383_v49 = vsub.f32 1.0, %v9177_v41 }
 0x13c   :  { %5497 = vst [vmem:[#allocation5 + $0xe0] sm:$0xff] %v4530_v39  ;;  %5498 = vst [vmem:[#allocation5 + $0xe8] sm:$0xff] %v4532_v5  ;;  %v3768_v32 = vpop.f32.mrb[30].mxu0  ;;  %v6625_v29 = vpop.eup %6624  ;;  %6644 = vlog2.f32 %v561_v7  ;;  %v563_v53 = vmul.f32 %v6623_v40, %v229_v2  ;;  %v9199_v14 = vld [vmem:[%s10812_s0 + $0x288] sm:$0xff]  ;;  %v9203_v61 = vadd.f32 1.0, %v9160_v19  ;;  %v9206_v31 = vadd.f32 1.0, %v9165_v35 }
 0x13d   :  { %5243 = vst [vmem:[#allocation3 + $0xf0] sm:$0xff] %v3768_v32  ;;  %v3770_v37 = vpop.f32.mrb[31].mxu0  ;;  %5833 = vmatmul.mubr.msk.f32.gmra.mrb[136].mxu0 %vm2072_vm0, %v2653_v20  ;;  %v6627_v42 = vpop.eup %6626  ;;  %v2654_v59 = vld [vmem:[#allocation2 + $0x228] sm:$0xff]  ;;  %6646 = vlog2.f32 %v1585_v22  ;;  %v1587_v15 = vmul.f32 %v6625_v29, %v1253_v48  ;;  %v360_v56 = vsub.f32 1.0, %v9186_v0  ;;  %v1384_v18 = vsub.f32 1.0, %v9191_v8  ;;  %v9221_v9 = vld [vmem:[%s10812_s0 + $0x290] sm:$0xff] }
 0x13e   :  { %v4536_v27 = vpop.f32.mrb[30].mxu1  ;;  %5244 = vst [vmem:[#allocation3 + $0xf8] sm:$0xff] %v3770_v37  ;;  %4090 = vmatprep.mubr.f32.mxu0 %v7100_v11  ;;  %v9211_v54 = vld [vmem:[%s10813_s1 + $0x288] sm:$0xff]  ;;  %v6629_v57 = vpop.eup %6628  ;;  %5961 = vmatmul.mubr.msk.f32.gmra.mrb[136].mxu1 %vm2072_vm0, %v2781_v12  ;;  %v1831_v44 = vmul.f32 0.6931472, %v6627_v42  ;;  %6648 = vlog2.f32 %v563_v53  ;;  %v361_v3 = vsub.f32 1.0, %v9199_v14 }
 0x13f   :  { %5499 = vst [vmem:[#allocation5 + $0xf0] sm:$0xff] %v4536_v27  ;;  %v4538_v1 = vpop.f32.mrb[31].mxu1  ;;  %v6631_v13 = vpop.eup %6630  ;;  %4858 = vmatprep.mubr.f32.mxu1 %v7100_v11  ;;  %v2782_v43 = vld [vmem:[#allocation2 + $0x628] sm:$0xff]  ;;  %v809_v51 = vmul.f32 0.6931472, %v6629_v57  ;;  %6650 = vlog2.f32 %v1587_v15  ;;  %v1385_v63 = vsub.f32 1.0, %v9211_v54 }
 0x140   :  { %5500 = vst [vmem:[#allocation5 + $0xf8] sm:$0xff] %v4538_v1  ;;  %v3774_v62 = vpop.f32.mrb[32].mxu0  ;;  %v6633_v55 = vpop.eup %6632  ;;  %v2015_v25 = vmul.f32 0.5, %v1831_v44  ;;  %v1833_v36 = vmul.f32 0.6931472, %v6631_v13  ;;  %6652 = vrcp.f32 %v358_v60  ;;  %v2655_v4 = vld [vmem:[#allocation2 + $0x230] sm:$0xff] }
 0x141   :  { %5245 = vst [vmem:[#allocation3 + $0x100] sm:$0xff] %v3774_v62  ;;  %v3776_v45 = vpop.f32.mrb[33].mxu0  ;;  %5834 = vmatmul.mubr.msk.f32.gmra.mrb[138].mxu0 %vm2072_vm0, %v2654_v59  ;;  %v6635_v6 = vpop.eup %6634  ;;  %v992_v52 = vmul.f32 0.5, %v809_v51  ;;  %v811_v47 = vmul.f32 0.6931472, %v6633_v55  ;;  %6654 = vrcp.f32 %v1382_v50  ;;  %v9229_v10 = vld [vmem:[%s10813_s1 + $0x290] sm:$0xff] }
 0x142   :  { %v4542_v34 = vpop.f32.mrb[32].mxu1  ;;  %5246 = vst [vmem:[#allocation3 + $0x108] sm:$0xff] %v3776_v45  ;;  %4096 = vmatprep.mubr.f32.mxu0 %v7100_v11  ;;  %v6637_v16 = vpop.eup %6636  ;;  %5962 = vmatmul.mubr.msk.f32.gmra.mrb[138].mxu1 %vm2072_vm0, %v2782_v43  ;;  %2272 = vst.msk [vmem:[#allocation2 + $0x638] sm:$0xff] %vm2072_vm0, %v2015_v25  ;;  %v2016_v24 = vmul.f32 0.5, %v1833_v36  ;;  %v1835_v58 = vmul.f32 0.6931472, %v6635_v6  ;;  %6656 = vrcp.f32 %v359_v46 }
 0x143   :  { %5501 = vst [vmem:[#allocation5 + $0x100] sm:$0xff] %v4542_v34  ;;  %v4544_v23 = vpop.f32.mrb[33].mxu1  ;;  %2528 = vst.msk [vmem:[%s10818_s6 + $0x238] sm:$0xff] %vm2072_vm0, %v2015_v25  ;;  %v362_v21 = vsub.f32 1.0, %v9221_v9  ;;  %v6639_v30 = vpop.eup %6638  ;;  %4864 = vmatprep.mubr.f32.mxu1 %v7100_v11  ;;  %v2783_v2 = vld [vmem:[#allocation2 + $0x630] sm:$0xff]  ;;  %v993_v19 = vmul.f32 0.5, %v811_v47  ;;  %6658 = vrcp.f32 %v1383_v49 }
 0x144   :  { %5502 = vst [vmem:[#allocation5 + $0x108] sm:$0xff] %v4544_v23  ;;  %v3780_v28 = vpop.f32.mrb[34].mxu0  ;;  %2145 = vst.msk [vmem:[#allocation2 + $0x240] sm:$0xff] %vm2072_vm0, %v992_v52  ;;  %v813_v35 = vmul.f32 0.6931472, %v6637_v16  ;;  %v9249_v38 = vld [vmem:[%s10812_s0 + $0x298] sm:$0xff]  ;;  %v6641_v39 = vpop.eup %6640  ;;  %6660 = vrcp.f32 %v360_v56 }
 0x145   :  { %2401 = vst.msk [vmem:[%s10817_s5 + $0x240] sm:$0xff] %vm2072_vm0, %v992_v52  ;;  %5247 = vst [vmem:[#allocation3 + $0x110] sm:$0xff] %v3780_v28  ;;  %v3782_v20 = vpop.f32.mrb[35].mxu0  ;;  %5835 = vmatmul.mubr.msk.f32.gmra.mrb[140].mxu0 %vm2072_vm0, %v2655_v4  ;;  %v2017_v33 = vmul.f32 0.5, %v1835_v58  ;;  %v1837_v48 = vmul.f32 0.6931472, %v6639_v30  ;;  %v6643_v7 = vpop.eup %6642  ;;  %6662 = vrcp.f32 %v1384_v18 }
 0x146   :  { %2273 = vst.msk [vmem:[#allocation2 + $0x640] sm:$0xff] %vm2072_vm0, %v2016_v24  ;;  %2529 = vst.msk [vmem:[%s10818_s6 + $0x240] sm:$0xff] %vm2072_vm0, %v2016_v24  ;;  %v1386_v17 = vsub.f32 1.0, %v9229_v10  ;;  %v9261_v5 = vld [vmem:[%s10813_s1 + $0x298] sm:$0xff]  ;;  %v4548_v40 = vpop.f32.mrb[34].mxu1  ;;  %4102 = vmatprep.mubr.f32.mxu0 %v7100_v11  ;;  %v994_v12 = vmul.f32 0.5, %v813_v35  ;;  %v6645_v50 = vpop.eup %6644  ;;  %5963 = vmatmul.mubr.msk.f32.gmra.mrb[140].mxu1 %vm2072_vm0, %v2783_v2  ;;  %6664 = vrcp.f32 %v361_v3 }
 0x147   :  { %5248 = vst [vmem:[#allocation3 + $0x118] sm:$0xff] %v3782_v20  ;;  %v2656_v32 = vld [vmem:[#allocation2 + $0x238] sm:$0xff]  ;;  %2146 = vst.msk [vmem:[#allocation2 + $0x248] sm:$0xff] %vm2072_vm0, %v993_v19  ;;  %v815_v22 = vmul.f32 0.6931472, %v6641_v39  ;;  %v9274_v60 = vld [vmem:[%s10812_s0 + $0x2a0] sm:$0xff]  ;;  %v6647_v49 = vpop.eup %6646  ;;  %4870 = vmatprep.mubr.f32.mxu1 %v7100_v11  ;;  %6666 = vrcp.f32 %v1385_v63 }
 0x148   :  { %2402 = vst.msk [vmem:[%s10817_s5 + $0x248] sm:$0xff] %vm2072_vm0, %v993_v19  ;;  %5503 = vst [vmem:[#allocation5 + $0x110] sm:$0xff] %v4548_v40  ;;  %v4550_v29 = vpop.f32.mrb[35].mxu1  ;;  %v2018_v37 = vmul.f32 0.5, %v1837_v48  ;;  %v1839_v53 = vmul.f32 0.6931472, %v6643_v7  ;;  %v6649_v57 = vpop.eup %6648  ;;  %6668 = vrcp.f32 %v362_v21 }
 0x149   :  { %2274 = vst.msk [vmem:[#allocation2 + $0x648] sm:$0xff] %vm2072_vm0, %v2017_v33  ;;  %2530 = vst.msk [vmem:[%s10818_s6 + $0x248] sm:$0xff] %vm2072_vm0, %v2017_v33  ;;  %v363_v46 = vsub.f32 1.0, %v9249_v38  ;;  %v3786_v42 = vpop.f32.mrb[36].mxu0  ;;  %v995_v27 = vmul.f32 0.5, %v815_v22  ;;  %v1387_v15 = vsub.f32 1.0, %v9261_v5  ;;  %5836 = vmatmul.mubr.msk.f32.gmra.mrb[142].mxu0 %vm2072_vm0, %v2656_v32  ;;  %v6651_v13 = vpop.eup %6650  ;;  %6670 = vrcp.f32 %v1386_v17 }
 0x14a   :  { %5504 = vst [vmem:[#allocation5 + $0x118] sm:$0xff] %v4550_v29  ;;  %2147 = vst.msk [vmem:[#allocation2 + $0x250] sm:$0xff] %vm2072_vm0, %v994_v12  ;;  %v817_v59 = vmul.f32 0.6931472, %v6645_v50  ;;  %v3788_v1 = vpop.f32.mrb[37].mxu0  ;;  %v2019_v44 = vmul.f32 0.5, %v1839_v53  ;;  %4108 = vmatprep.mubr.f32.mxu0 %v7100_v11  ;;  %v6653_v45 = vpop.eup %6652 }
 0x14b   :  { %2403 = vst.msk [vmem:[%s10817_s5 + $0x250] sm:$0xff] %vm2072_vm0, %v994_v12  ;;  %5249 = vst [vmem:[#allocation3 + $0x120] sm:$0xff] %v3786_v42  ;;  %v1841_v56 = vmul.f32 0.6931472, %v6647_v49  ;;  %v364_v18 = vsub.f32 1.0, %v9274_v60  ;;  %v4554_v62 = vpop.f32.mrb[36].mxu1  ;;  %6672 = vrcp.f32 %v363_v46  ;;  %v565_v16 = vmul.f32 %v6653_v45, %v9203_v61 }
 0x14c   :  { %2275 = vst.msk [vmem:[#allocation2 + $0x650] sm:$0xff] %vm2072_vm0, %v2018_v37  ;;  %2531 = vst.msk [vmem:[%s10818_s6 + $0x250] sm:$0xff] %vm2072_vm0, %v2018_v37  ;;  %v2784_v43 = vld [vmem:[#allocation2 + $0x638] sm:$0xff]  ;;  %v996_v51 = vmul.f32 0.5, %v817_v59  ;;  %v819_v3 = vmul.f32 0.6931472, %v6649_v57  ;;  %6674 = vrcp.f32 %v1387_v15 }
 0x14d   :  { %5250 = vst [vmem:[#allocation3 + $0x128] sm:$0xff] %v3788_v1  ;;  %2148 = vst.msk [vmem:[#allocation2 + $0x258] sm:$0xff] %vm2072_vm0, %v995_v27  ;;  %v231_v55 = vadd.f32 1.0, %v9172_v26  ;;  %v4556_v25 = vpop.f32.mrb[37].mxu1  ;;  %5964 = vmatmul.mubr.msk.f32.gmra.mrb[142].mxu1 %vm2072_vm0, %v2784_v43  ;;  %v2657_v36 = vld [vmem:[#allocation2 + $0x240] sm:$0xff]  ;;  %v2020_v63 = vmul.f32 0.5, %v1841_v56  ;;  %v6655_v26 = vpop.eup %6654  ;;  %6676 = vrcp.f32 %v364_v18 }
 0x14e   :  { %2404 = vst.msk [vmem:[%s10817_s5 + $0x258] sm:$0xff] %vm2072_vm0, %v995_v27  ;;  %5505 = vst [vmem:[#allocation5 + $0x120] sm:$0xff] %v4554_v62  ;;  %v1843_v6 = vmul.f32 0.6931472, %v6651_v13  ;;  %v1255_v34 = vadd.f32 1.0, %v9177_v41  ;;  %v3792_v4 = vpop.f32.mrb[38].mxu0  ;;  %4876 = vmatprep.mubr.f32.mxu1 %v7100_v11  ;;  %v6657_v41 = vpop.eup %6656  ;;  %5837 = vmatmul.mubr.msk.f32.gmra.mrb[144].mxu0 %vm2072_vm0, %v2657_v36  ;;  %v1589_v21 = vmul.f32 %v6655_v26, %v9206_v31  ;;  %6678 = vlog2.f32 %v565_v16 }
 0x14f   :  { %2276 = vst.msk [vmem:[#allocation2 + $0x658] sm:$0xff] %vm2072_vm0, %v2019_v44  ;;  %2532 = vst.msk [vmem:[%s10818_s6 + $0x258] sm:$0xff] %vm2072_vm0, %v2019_v44  ;;  %v2785_v52 = vld [vmem:[#allocation2 + $0x640] sm:$0xff]  ;;  %v997_v47 = vmul.f32 0.5, %v819_v3  ;;  %v232_v23 = vadd.f32 1.0, %v9186_v0  ;;  %v3794_v24 = vpop.f32.mrb[39].mxu0  ;;  %v6659_v0 = vpop.eup %6658  ;;  %4114 = vmatprep.mubr.f32.mxu0 %v7100_v11  ;;  %v567_v2 = vmul.f32 %v6657_v41, %v231_v55 }
 0x150   :  { %5506 = vst [vmem:[#allocation5 + $0x128] sm:$0xff] %v4556_v25  ;;  %2149 = vst.msk [vmem:[#allocation2 + $0x260] sm:$0xff] %vm2072_vm0, %v996_v51  ;;  %v2021_v58 = vmul.f32 0.5, %v1843_v6  ;;  %v1256_v61 = vadd.f32 1.0, %v9191_v8  ;;  %v4560_v30 = vpop.f32.mrb[38].mxu1  ;;  %v2658_v28 = vld [vmem:[#allocation2 + $0x248] sm:$0xff]  ;;  %v6661_v19 = vpop.eup %6660  ;;  %6680 = vlog2.f32 %v1589_v21  ;;  %v1591_v35 = vmul.f32 %v6659_v0, %v1255_v34 }
 0x151   :  { %2405 = vst.msk [vmem:[%s10817_s5 + $0x260] sm:$0xff] %vm2072_vm0, %v996_v51  ;;  %5251 = vst [vmem:[#allocation3 + $0x130] sm:$0xff] %v3792_v4  ;;  %v233_v31 = vadd.f32 1.0, %v9199_v14  ;;  %v4562_v8 = vpop.f32.mrb[39].mxu1  ;;  %5965 = vmatmul.mubr.msk.f32.gmra.mrb[144].mxu1 %vm2072_vm0, %v2785_v52  ;;  %v1257_v39 = vadd.f32 1.0, %v9211_v54  ;;  %v6663_v20 = vpop.eup %6662  ;;  %v2786_v14 = vld [vmem:[#allocation2 + $0x648] sm:$0xff]  ;;  %6682 = vlog2.f32 %v567_v2  ;;  %v569_v48 = vmul.f32 %v6661_v19, %v232_v23 }
 0x152   :  { %2277 = vst.msk [vmem:[#allocation2 + $0x660] sm:$0xff] %vm2072_vm0, %v2020_v63  ;;  %2533 = vst.msk [vmem:[%s10818_s6 + $0x260] sm:$0xff] %vm2072_vm0, %v2020_v63  ;;  %v3798_v33 = vpop.f32.mrb[40].mxu0  ;;  %4882 = vmatprep.mubr.f32.mxu1 %v7100_v11  ;;  %v234_v17 = vadd.f32 1.0, %v9221_v9  ;;  %v6665_v7 = vpop.eup %6664  ;;  %5838 = vmatmul.mubr.msk.f32.gmra.mrb[146].mxu0 %vm2072_vm0, %v2658_v28  ;;  %6684 = vlog2.f32 %v1591_v35  ;;  %v1593_v32 = vmul.f32 %v6663_v20, %v1256_v61  ;;  %v1258_v12 = vadd.f32 1.0, %v9229_v10  ;;  %v2659_v50 = vld [vmem:[#allocation2 + $0x250] sm:$0xff] }
 0x153   :  { %5252 = vst [vmem:[#allocation3 + $0x138] sm:$0xff] %v3794_v24  ;;  %2150 = vst.msk [vmem:[#allocation2 + $0x268] sm:$0xff] %vm2072_vm0, %v997_v47  ;;  %v3800_v40 = vpop.f32.mrb[41].mxu0  ;;  %v6667_v54 = vpop.eup %6666  ;;  %4120 = vmatprep.mubr.f32.mxu0 %v7100_v11  ;;  %6686 = vlog2.f32 %v569_v48  ;;  %v571_v29 = vmul.f32 %v6665_v7, %v233_v31  ;;  %v235_v37 = vadd.f32 1.0, %v9249_v38  ;;  %v1259_v49 = vadd.f32 1.0, %v9261_v5  ;;  %v9356_v10 = vld [vmem:[%s10813_s1 + $0x2a0] sm:$0xff] }
 0x154   :  { %2406 = vst.msk [vmem:[%s10817_s5 + $0x268] sm:$0xff] %vm2072_vm0, %v997_v47  ;;  %5507 = vst [vmem:[#allocation5 + $0x130] sm:$0xff] %v4560_v30  ;;  %v4566_v22 = vpop.f32.mrb[40].mxu1  ;;  %v6669_v9 = vpop.eup %6668  ;;  %6688 = vlog2.f32 %v1593_v32  ;;  %v1595_v46 = vmul.f32 %v6667_v54, %v1257_v39  ;;  %v9361_v42 = vld [vmem:[%s10812_s0 + $0x2a8] sm:$0xff]  ;;  %v2787_v59 = vld [vmem:[#allocation2 + $0x650] sm:$0xff]  ;;  %v236_v5 = vadd.f32 1.0, %v9274_v60 }
 0x155   :  { %2278 = vst.msk [vmem:[#allocation2 + $0x668] sm:$0xff] %vm2072_vm0, %v2021_v58  ;;  %2534 = vst.msk [vmem:[%s10818_s6 + $0x268] sm:$0xff] %vm2072_vm0, %v2021_v58  ;;  %v4568_v53 = vpop.f32.mrb[41].mxu1  ;;  %5966 = vmatmul.mubr.msk.f32.gmra.mrb[146].mxu1 %vm2072_vm0, %v2786_v14  ;;  %v6671_v38 = vpop.eup %6670  ;;  %6690 = vlog2.f32 %v571_v29  ;;  %v573_v15 = vmul.f32 %v6669_v9, %v234_v17  ;;  %v9368_v57 = vld [vmem:[%s10813_s1 + $0x2a8] sm:$0xff]  ;;  %v9373_v1 = vld [vmem:[%s10812_s0 + $0x2b0] sm:$0xff]  ;;  %v1388_v3 = vsub.f32 1.0, %v9356_v10 }
 0x156   :  { %5508 = vst [vmem:[#allocation5 + $0x138] sm:$0xff] %v4562_v8  ;;  %5253 = vst [vmem:[#allocation3 + $0x140] sm:$0xff] %v3798_v33  ;;  %v3804_v27 = vpop.f32.mrb[42].mxu0  ;;  %4888 = vmatprep.mubr.f32.mxu1 %v7100_v11  ;;  %v6673_v44 = vpop.eup %6672  ;;  %5839 = vmatmul.mubr.msk.f32.gmra.mrb[148].mxu0 %vm2072_vm0, %v2659_v50  ;;  %6692 = vlog2.f32 %v1595_v46  ;;  %v1597_v18 = vmul.f32 %v6671_v38, %v1258_v12  ;;  %v9379_v60 = vld [vmem:[%s10813_s1 + $0x2b0] sm:$0xff]  ;;  %v2660_v43 = vld [vmem:[#allocation2 + $0x258] sm:$0xff]  ;;  %v365_v55 = vsub.f32 1.0, %v9361_v42 }
 0x157   :  { %5254 = vst [vmem:[#allocation3 + $0x148] sm:$0xff] %v3800_v40  ;;  %5509 = vst [vmem:[#allocation5 + $0x140] sm:$0xff] %v4566_v22  ;;  %v3806_v56 = vpop.f32.mrb[43].mxu0  ;;  %v6675_v13 = vpop.eup %6674  ;;  %4126 = vmatprep.mubr.f32.mxu0 %v7100_v11  ;;  %6694 = vlog2.f32 %v573_v15  ;;  %v575_v51 = vmul.f32 %v6673_v44, %v235_v37  ;;  %v9387_v45 = vld [vmem:[%s10812_s0 + $0x2b8] sm:$0xff]  ;;  %v1389_v34 = vsub.f32 1.0, %v9368_v57  ;;  %v366_v26 = vsub.f32 1.0, %v9373_v1 }
 0x158   :  { %5510 = vst [vmem:[#allocation5 + $0x148] sm:$0xff] %v4568_v53  ;;  %5255 = vst [vmem:[#allocation3 + $0x150] sm:$0xff] %v3804_v27  ;;  %v4572_v62 = vpop.f32.mrb[42].mxu1  ;;  %v9392_v25 = vld [vmem:[%s10813_s1 + $0x2b8] sm:$0xff]  ;;  %v6677_v36 = vpop.eup %6676  ;;  %6696 = vlog2.f32 %v1597_v18  ;;  %v1599_v6 = vmul.f32 %v6675_v13, %v1259_v49  ;;  %v9399_v23 = vadd.f32 1.0, %v9356_v10  ;;  %v1390_v41 = vsub.f32 1.0, %v9379_v60 }
 0x159   :  { %5256 = vst [vmem:[#allocation3 + $0x158] sm:$0xff] %v3806_v56  ;;  %5511 = vst [vmem:[#allocation5 + $0x150] sm:$0xff] %v4572_v62  ;;  %v4574_v63 = vpop.f32.mrb[43].mxu1  ;;  %5967 = vmatmul.mubr.msk.f32.gmra.mrb[148].mxu1 %vm2072_vm0, %v2787_v59  ;;  %v6679_v4 = vpop.eup %6678  ;;  %v2788_v47 = vld [vmem:[#allocation2 + $0x658] sm:$0xff]  ;;  %6698 = vlog2.f32 %v575_v51  ;;  %v577_v16 = vmul.f32 %v6677_v36, %v236_v5  ;;  %v9405_v24 = vld [vmem:[%s10812_s0 + $0x2c0] sm:$0xff]  ;;  %v367_v0 = vsub.f32 1.0, %v9387_v45 }
 0x15a   :  { %5512 = vst [vmem:[#allocation5 + $0x158] sm:$0xff] %v4574_v63  ;;  %v3810_v52 = vpop.f32.mrb[44].mxu0  ;;  %4894 = vmatprep.mubr.f32.mxu1 %v7100_v11  ;;  %v6681_v58 = vpop.eup %6680  ;;  %5840 = vmatmul.mubr.msk.f32.gmra.mrb[150].mxu0 %vm2072_vm0, %v2660_v43  ;;  %v821_v61 = vmul.f32 0.6931472, %v6679_v4  ;;  %6700 = vlog2.f32 %v1599_v6  ;;  %v1391_v30 = vsub.f32 1.0, %v9392_v25  ;;  %v2661_v31 = vld [vmem:[#allocation2 + $0x260] sm:$0xff] }
 0x15b   :  { %5257 = vst [vmem:[#allocation3 + $0x160] sm:$0xff] %v3810_v52  ;;  %v3812_v21 = vpop.f32.mrb[45].mxu0  ;;  %v6683_v28 = vpop.eup %6682  ;;  %4132 = vmatprep.mubr.f32.mxu0 %v7100_v11  ;;  %v1845_v19 = vmul.f32 0.6931472, %v6681_v58  ;;  %6702 = vlog2.f32 %v577_v16  ;;  %v9412_v8 = vadd.f32 1.0, %v9361_v42  ;;  %v9417_v35 = vld [vmem:[%s10813_s1 + $0x2c0] sm:$0xff] }
 0x15c   :  { %v4578_v2 = vpop.f32.mrb[44].mxu1  ;;  %5258 = vst [vmem:[#allocation3 + $0x168] sm:$0xff] %v3812_v21  ;;  %v6685_v39 = vpop.eup %6684  ;;  %v998_v33 = vmul.f32 0.5, %v821_v61  ;;  %v823_v14 = vmul.f32 0.6931472, %v6683_v28  ;;  %6704 = vrcp.f32 %v1388_v3  ;;  %v368_v48 = vsub.f32 1.0, %v9405_v24 }
 0x15d   :  { %5513 = vst [vmem:[#allocation5 + $0x160] sm:$0xff] %v4578_v2  ;;  %v4580_v20 = vpop.f32.mrb[45].mxu1  ;;  %5968 = vmatmul.mubr.msk.f32.gmra.mrb[150].mxu1 %vm2072_vm0, %v2788_v47  ;;  %v6687_v17 = vpop.eup %6686  ;;  %v2789_v40 = vld [vmem:[#allocation2 + $0x660] sm:$0xff]  ;;  %v2022_v32 = vmul.f32 0.5, %v1845_v19  ;;  %v1847_v12 = vmul.f32 0.6931472, %v6685_v39  ;;  %6706 = vrcp.f32 %v365_v55 }
 0x15e   :  { %5514 = vst [vmem:[#allocation5 + $0x168] sm:$0xff] %v4580_v20  ;;  %v3816_v7 = vpop.f32.mrb[46].mxu0  ;;  %4900 = vmatprep.mubr.f32.mxu1 %v7100_v11  ;;  %v9425_v54 = vld [vmem:[%s10812_s0 + $0x2c8] sm:$0xff]  ;;  %v6689_v22 = vpop.eup %6688  ;;  %5841 = vmatmul.mubr.msk.f32.gmra.mrb[152].mxu0 %vm2072_vm0, %v2661_v31  ;;  %2151 = vst.msk [vmem:[#allocation2 + $0x270] sm:$0xff] %vm2072_vm0, %v998_v33  ;;  %v999_v29 = vmul.f32 0.5, %v823_v14  ;;  %6708 = vrcp.f32 %v1389_v34  ;;  %v1392_v9 = vsub.f32 1.0, %v9417_v35 }
 0x15f   :  { %5259 = vst [vmem:[#allocation3 + $0x170] sm:$0xff] %v3816_v7  ;;  %v3818_v50 = vpop.f32.mrb[47].mxu0  ;;  %2407 = vst.msk [vmem:[%s10817_s5 + $0x270] sm:$0xff] %vm2072_vm0, %v998_v33  ;;  %v825_v37 = vmul.f32 0.6931472, %v6687_v17  ;;  %v6691_v53 = vpop.eup %6690  ;;  %4138 = vmatprep.mubr.f32.mxu0 %v7100_v11  ;;  %v2662_v49 = vld [vmem:[#allocation2 + $0x268] sm:$0xff]  ;;  %6710 = vrcp.f32 %v366_v26 }
 0x160   :  { %v4584_v46 = vpop.f32.mrb[46].mxu1  ;;  %5260 = vst [vmem:[#allocation3 + $0x178] sm:$0xff] %v3818_v50  ;;  %2279 = vst.msk [vmem:[#allocation2 + $0x670] sm:$0xff] %vm2072_vm0, %v2022_v32  ;;  %v2023_v10 = vmul.f32 0.5, %v1847_v12  ;;  %v1849_v42 = vmul.f32 0.6931472, %v6689_v22  ;;  %v6693_v27 = vpop.eup %6692  ;;  %6712 = vrcp.f32 %v1390_v41 }
 0x161   :  { %2535 = vst.msk [vmem:[%s10818_s6 + $0x270] sm:$0xff] %vm2072_vm0, %v2022_v32  ;;  %v9445_v38 = vld [vmem:[%s10813_s1 + $0x2c8] sm:$0xff]  ;;  %5515 = vst [vmem:[#allocation5 + $0x170] sm:$0xff] %v4584_v46  ;;  %v4586_v59 = vpop.f32.mrb[47].mxu1  ;;  %5969 = vmatmul.mubr.msk.f32.gmra.mrb[152].mxu1 %vm2072_vm0, %v2789_v40  ;;  %v1000_v15 = vmul.f32 0.5, %v825_v37  ;;  %v369_v44 = vsub.f32 1.0, %v9425_v54  ;;  %v6695_v18 = vpop.eup %6694  ;;  %6714 = vrcp.f32 %v367_v0 }
 0x162   :  { %2152 = vst.msk [vmem:[#allocation2 + $0x278] sm:$0xff] %vm2072_vm0, %v999_v29  ;;  %2408 = vst.msk [vmem:[%s10817_s5 + $0x278] sm:$0xff] %vm2072_vm0, %v999_v29  ;;  %v827_v5 = vmul.f32 0.6931472, %v6691_v53  ;;  %v9459_v56 = vld [vmem:[%s10812_s0 + $0x2d0] sm:$0xff]  ;;  %v3822_v13 = vpop.f32.mrb[48].mxu0  ;;  %4906 = vmatprep.mubr.f32.mxu1 %v7100_v11  ;;  %v6697_v55 = vpop.eup %6696  ;;  %5842 = vmatmul.mubr.msk.f32.gmra.mrb[154].mxu0 %vm2072_vm0, %v2662_v49  ;;  %6716 = vrcp.f32 %v1391_v30 }
 0x163   :  { %5516 = vst [vmem:[#allocation5 + $0x178] sm:$0xff] %v4586_v59  ;;  %v2790_v62 = vld [vmem:[#allocation2 + $0x668] sm:$0xff]  ;;  %2280 = vst.msk [vmem:[#allocation2 + $0x678] sm:$0xff] %vm2072_vm0, %v2023_v10  ;;  %v2024_v43 = vmul.f32 0.5, %v1849_v42  ;;  %v1851_v51 = vmul.f32 0.6931472, %v6693_v27  ;;  %v6699_v26 = vpop.eup %6698  ;;  %4144 = vmatprep.mubr.f32.mxu0 %v7100_v11  ;;  %6718 = vrcp.f32 %v368_v48 }
 0x164   :  { %2536 = vst.msk [vmem:[%s10818_s6 + $0x278] sm:$0xff] %vm2072_vm0, %v2023_v10  ;;  %v9472_v3 = vld [vmem:[%s10813_s1 + $0x2d0] sm:$0xff]  ;;  %5261 = vst [vmem:[#allocation3 + $0x180] sm:$0xff] %v3822_v13  ;;  %v3824_v36 = vpop.f32.mrb[49].mxu0  ;;  %v1001_v63 = vmul.f32 0.5, %v827_v5  ;;  %v1393_v34 = vsub.f32 1.0, %v9445_v38  ;;  %v6701_v41 = vpop.eup %6700  ;;  %6720 = vrcp.f32 %v1392_v9 }
 0x165   :  { %2153 = vst.msk [vmem:[#allocation2 + $0x280] sm:$0xff] %vm2072_vm0, %v1000_v15  ;;  %2409 = vst.msk [vmem:[%s10817_s5 + $0x280] sm:$0xff] %vm2072_vm0, %v1000_v15  ;;  %v829_v6 = vmul.f32 0.6931472, %v6695_v18  ;;  %v4590_v4 = vpop.f32.mrb[48].mxu1  ;;  %v2025_v52 = vmul.f32 0.5, %v1851_v51  ;;  %5970 = vmatmul.mubr.msk.f32.gmra.mrb[154].mxu1 %vm2072_vm0, %v2790_v62  ;;  %v6703_v30 = vpop.eup %6702  ;;  %6722 = vrcp.f32 %v369_v44 }
 0x166   :  { %5262 = vst [vmem:[#allocation3 + $0x188] sm:$0xff] %v3824_v36  ;;  %2281 = vst.msk [vmem:[#allocation2 + $0x680] sm:$0xff] %vm2072_vm0, %v2024_v43  ;;  %v1853_v47 = vmul.f32 0.6931472, %v6697_v55  ;;  %v370_v16 = vsub.f32 1.0, %v9459_v56  ;;  %v4592_v58 = vpop.f32.mrb[49].mxu1  ;;  %4912 = vmatprep.mubr.f32.mxu1 %v7100_v11  ;;  %v6705_v20 = vpop.eup %6704  ;;  %6724 = vrcp.f32 %v1393_v34 }
 0x167   :  { %2537 = vst.msk [vmem:[%s10818_s6 + $0x280] sm:$0xff] %vm2072_vm0, %v2024_v43  ;;  %5517 = vst [vmem:[#allocation5 + $0x180] sm:$0xff] %v4590_v4  ;;  %v1002_v21 = vmul.f32 0.5, %v829_v6  ;;  %v831_v61 = vmul.f32 0.6931472, %v6699_v26  ;;  %v1394_v0 = vsub.f32 1.0, %v9472_v3  ;;  %v1601_v22 = vmul.f32 %v6705_v20, %v9399_v23 }
 0x168   :  { %2154 = vst.msk [vmem:[#allocation2 + $0x288] sm:$0xff] %vm2072_vm0, %v1001_v63  ;;  %2410 = vst.msk [vmem:[%s10817_s5 + $0x288] sm:$0xff] %vm2072_vm0, %v1001_v63  ;;  %v3828_v28 = vpop.f32.mrb[50].mxu0  ;;  %v2663_v2 = vld [vmem:[#allocation2 + $0x270] sm:$0xff]  ;;  %v2026_v31 = vmul.f32 0.5, %v1853_v47  ;;  %v1261_v39 = vadd.f32 1.0, %v9368_v57  ;;  %v6707_v57 = vpop.eup %6706  ;;  %6726 = vrcp.f32 %v370_v16 }
 0x169   :  { %5518 = vst [vmem:[#allocation5 + $0x188] sm:$0xff] %v4592_v58  ;;  %2282 = vst.msk [vmem:[#allocation2 + $0x688] sm:$0xff] %vm2072_vm0, %v2025_v52  ;;  %v1855_v19 = vmul.f32 0.6931472, %v6701_v41  ;;  %v3830_v33 = vpop.f32.mrb[51].mxu0  ;;  %5843 = vmatmul.mubr.msk.f32.gmra.mrb[156].mxu0 %vm2072_vm0, %v2663_v2  ;;  %v2791_v14 = vld [vmem:[#allocation2 + $0x670] sm:$0xff]  ;;  %v579_v9 = vmul.f32 %v6707_v57, %v9412_v8  ;;  %6728 = vrcp.f32 %v1394_v0 }
 0x16a   :  { %2538 = vst.msk [vmem:[%s10818_s6 + $0x288] sm:$0xff] %vm2072_vm0, %v2025_v52  ;;  %5263 = vst [vmem:[#allocation3 + $0x190] sm:$0xff] %v3828_v28  ;;  %v1003_v48 = vmul.f32 0.5, %v831_v61  ;;  %v833_v17 = vmul.f32 0.6931472, %v6703_v30  ;;  %v238_v7 = vadd.f32 1.0, %v9373_v1  ;;  %4150 = vmatprep.mubr.f32.mxu0 %v7100_v11  ;;  %v6709_v1 = vpop.eup %6708  ;;  %5971 = vmatmul.mubr.msk.f32.gmra.mrb[156].mxu1 %vm2072_vm0, %v2791_v14  ;;  %6730 = vlog2.f32 %v1601_v22 }
 0x16b   :  { %2155 = vst.msk [vmem:[#allocation2 + $0x290] sm:$0xff] %vm2072_vm0, %v1002_v21  ;;  %2411 = vst.msk [vmem:[%s10817_s5 + $0x290] sm:$0xff] %vm2072_vm0, %v1002_v21  ;;  %v4596_v40 = vpop.f32.mrb[50].mxu1  ;;  %v2664_v32 = vld [vmem:[#allocation2 + $0x278] sm:$0xff]  ;;  %v2027_v12 = vmul.f32 0.5, %v1855_v19  ;;  %v1262_v50 = vadd.f32 1.0, %v9379_v60  ;;  %v6711_v60 = vpop.eup %6710  ;;  %4918 = vmatprep.mubr.f32.mxu1 %v7100_v11  ;;  %v1603_v49 = vmul.f32 %v6709_v1, %v1261_v39  ;;  %6732 = vlog2.f32 %v579_v9 }
 0x16c   :  { %5264 = vst [vmem:[#allocation3 + $0x198] sm:$0xff] %v3830_v33  ;;  %2283 = vst.msk [vmem:[#allocation2 + $0x690] sm:$0xff] %vm2072_vm0, %v2026_v31  ;;  %v4598_v29 = vpop.f32.mrb[51].mxu1  ;;  %v1004_v37 = vmul.f32 0.5, %v833_v17  ;;  %v239_v23 = vadd.f32 1.0, %v9387_v45  ;;  %v3834_v53 = vpop.f32.mrb[52].mxu0  ;;  %v581_v42 = vmul.f32 %v6711_v60, %v238_v7 }
 0x16d   :  { %2539 = vst.msk [vmem:[%s10818_s6 + $0x290] sm:$0xff] %vm2072_vm0, %v2026_v31  ;;  %5519 = vst [vmem:[#allocation5 + $0x190] sm:$0xff] %v4596_v40  ;;  %v2792_v46 = vld [vmem:[#allocation2 + $0x678] sm:$0xff]  ;;  %v1263_v8 = vadd.f32 1.0, %v9392_v25  ;;  %v6713_v10 = vpop.eup %6712  ;;  %v3836_v45 = vpop.f32.mrb[53].mxu0  ;;  %5844 = vmatmul.mubr.msk.f32.gmra.mrb[158].mxu0 %vm2072_vm0, %v2664_v32  ;;  %v240_v27 = vadd.f32 1.0, %v9405_v24  ;;  %6734 = vlog2.f32 %v1603_v49 }
 0x16e   :  { %2156 = vst.msk [vmem:[#allocation2 + $0x298] sm:$0xff] %vm2072_vm0, %v1003_v48  ;;  %2412 = vst.msk [vmem:[%s10817_s5 + $0x298] sm:$0xff] %vm2072_vm0, %v1003_v48  ;;  %v6715_v59 = vpop.eup %6714  ;;  %v4602_v15 = vpop.f32.mrb[52].mxu1  ;;  %4156 = vmatprep.mubr.f32.mxu0 %v7100_v11  ;;  %v2665_v25 = vld [vmem:[#allocation2 + $0x280] sm:$0xff]  ;;  %v1605_v5 = vmul.f32 %v6713_v10, %v1262_v50  ;;  %v1264_v44 = vadd.f32 1.0, %v9417_v35  ;;  %5972 = vmatmul.mubr.msk.f32.gmra.mrb[158].mxu1 %vm2072_vm0, %v2792_v46  ;;  %6736 = vlog2.f32 %v581_v42  ;;  %v241_v43 = vadd.f32 1.0, %v9425_v54 }
 0x16f   :  { %5520 = vst [vmem:[#allocation5 + $0x198] sm:$0xff] %v4598_v29  ;;  %2284 = vst.msk [vmem:[#allocation2 + $0x698] sm:$0xff] %vm2072_vm0, %v2027_v12  ;;  %v6717_v18 = vpop.eup %6716  ;;  %v4604_v13 = vpop.f32.mrb[53].mxu1  ;;  %v583_v62 = vmul.f32 %v6715_v59, %v239_v23  ;;  %4924 = vmatprep.mubr.f32.mxu1 %v7100_v11  ;;  %v2793_v55 = vld [vmem:[#allocation2 + $0x680] sm:$0xff]  ;;  %v1265_v63 = vadd.f32 1.0, %v9445_v38  ;;  %v242_v26 = vadd.f32 1.0, %v9459_v56 }
 0x170   :  { %2540 = vst.msk [vmem:[%s10818_s6 + $0x298] sm:$0xff] %vm2072_vm0, %v2027_v12  ;;  %5265 = vst [vmem:[#allocation3 + $0x1a0] sm:$0xff] %v3834_v53  ;;  %v6719_v24 = vpop.eup %6718  ;;  %v3840_v51 = vpop.f32.mrb[54].mxu0  ;;  %6738 = vlog2.f32 %v1605_v5  ;;  %v1607_v36 = vmul.f32 %v6717_v18, %v1263_v8  ;;  %v9554_v54 = vld [vmem:[%s10812_s0 + $0x2d8] sm:$0xff]  ;;  %v2666_v47 = vld [vmem:[#allocation2 + $0x288] sm:$0xff]  ;;  %v1266_v56 = vadd.f32 1.0, %v9472_v3 }
 0x171   :  { %2157 = vst.msk [vmem:[#allocation2 + $0x2a0] sm:$0xff] %vm2072_vm0, %v1004_v37  ;;  %2413 = vst.msk [vmem:[%s10817_s5 + $0x2a0] sm:$0xff] %vm2072_vm0, %v1004_v37  ;;  %v6721_v35 = vpop.eup %6720  ;;  %v3842_v6 = vpop.f32.mrb[55].mxu0  ;;  %5845 = vmatmul.mubr.msk.f32.gmra.mrb[160].mxu0 %vm2072_vm0, %v2665_v25  ;;  %6740 = vlog2.f32 %v583_v62  ;;  %v585_v34 = vmul.f32 %v6719_v24, %v240_v27  ;;  %v9559_v4 = vld [vmem:[%s10813_s1 + $0x2d8] sm:$0xff]  ;;  %v9566_v41 = vld [vmem:[%s10812_s0 + $0x2e0] sm:$0xff]  ;;  %v371_v39 = vsub.f32 1.0, %v9554_v54 }
 0x172   :  { %5266 = vst [vmem:[#allocation3 + $0x1a8] sm:$0xff] %v3836_v45  ;;  %5521 = vst [vmem:[#allocation5 + $0x1a0] sm:$0xff] %v4602_v15  ;;  %v6723_v38 = vpop.eup %6722  ;;  %v4608_v52 = vpop.f32.mrb[54].mxu1  ;;  %4162 = vmatprep.mubr.f32.mxu0 %v7100_v11  ;;  %6742 = vlog2.f32 %v1607_v36  ;;  %v1609_v16 = vmul.f32 %v6721_v35, %v1264_v44  ;;  %v9571_v58 = vld [vmem:[%s10813_s1 + $0x2e0] sm:$0xff]  ;;  %5973 = vmatmul.mubr.msk.f32.gmra.mrb[160].mxu1 %vm2072_vm0, %v2793_v55  ;;  %v9577_v3 = vld [vmem:[%s10812_s0 + $0x2e8] sm:$0xff]  ;;  %v1395_v20 = vsub.f32 1.0, %v9559_v4 }
 0x173   :  { %5522 = vst [vmem:[#allocation5 + $0x1a8] sm:$0xff] %v4604_v13  ;;  %5267 = vst [vmem:[#allocation3 + $0x1b0] sm:$0xff] %v3840_v51  ;;  %v6725_v21 = vpop.eup %6724  ;;  %v4610_v61 = vpop.f32.mrb[55].mxu1  ;;  %6744 = vlog2.f32 %v585_v34  ;;  %v587_v0 = vmul.f32 %v6723_v38, %v241_v43  ;;  %v9582_v30 = vld [vmem:[%s10813_s1 + $0x2e8] sm:$0xff]  ;;  %4930 = vmatprep.mubr.f32.mxu1 %v7100_v11  ;;  %v372_v17 = vsub.f32 1.0, %v9566_v41  ;;  %v1396_v7 = vsub.f32 1.0, %v9571_v58 }
 0x174   :  { %5268 = vst [vmem:[#allocation3 + $0x1b8] sm:$0xff] %v3842_v6  ;;  %5523 = vst [vmem:[#allocation5 + $0x1b0] sm:$0xff] %v4608_v52  ;;  %v6727_v28 = vpop.eup %6726  ;;  %v3846_v2 = vpop.f32.mrb[56].mxu0  ;;  %v2794_v31 = vld [vmem:[#allocation2 + $0x688] sm:$0xff]  ;;  %6746 = vlog2.f32 %v1609_v16  ;;  %v1611_v19 = vmul.f32 %v6725_v21, %v1265_v63  ;;  %v9593_v57 = vld [vmem:[%s10812_s0 + $0x2f0] sm:$0xff]  ;;  %v373_v50 = vsub.f32 1.0, %v9577_v3 }
 0x175   :  { %5524 = vst [vmem:[#allocation5 + $0x1b8] sm:$0xff] %v4610_v61  ;;  %v6729_v33 = vpop.eup %6728  ;;  %5269 = vst [vmem:[#allocation3 + $0x1c0] sm:$0xff] %v3846_v2  ;;  %v3848_v14 = vpop.f32.mrb[57].mxu0  ;;  %5846 = vmatmul.mubr.msk.f32.gmra.mrb[162].mxu0 %vm2072_vm0, %v2666_v47  ;;  %6748 = vlog2.f32 %v587_v0  ;;  %v589_v48 = vmul.f32 %v6727_v28, %v242_v26  ;;  %v2667_v12 = vld [vmem:[#allocation2 + $0x290] sm:$0xff]  ;;  %v1397_v1 = vsub.f32 1.0, %v9582_v30  ;;  %v9605_v60 = vadd.f32 1.0, %v9554_v54 }
 0x176   :  { %v6731_v40 = vpop.eup %6730  ;;  %v4614_v32 = vpop.f32.mrb[56].mxu1  ;;  %5270 = vst [vmem:[#allocation3 + $0x1c8] sm:$0xff] %v3848_v14  ;;  %4168 = vmatprep.mubr.f32.mxu0 %v7100_v11  ;;  %6750 = vlog2.f32 %v1611_v19  ;;  %v1613_v22 = vmul.f32 %v6729_v33, %v1266_v56  ;;  %v9601_v29 = vld [vmem:[%s10813_s1 + $0x2f0] sm:$0xff]  ;;  %5974 = vmatmul.mubr.msk.f32.gmra.mrb[162].mxu1 %vm2072_vm0, %v2794_v31  ;;  %v9608_v53 = vadd.f32 1.0, %v9559_v4  ;;  %v374_v45 = vsub.f32 1.0, %v9593_v57  ;;  %v9615_v42 = vld [vmem:[%s10812_s0 + $0x2f8] sm:$0xff] }
 0x177   :  { %v6733_v37 = vpop.eup %6732  ;;  %5525 = vst [vmem:[#allocation5 + $0x1c0] sm:$0xff] %v4614_v32  ;;  %v4616_v9 = vpop.f32.mrb[57].mxu1  ;;  %v1857_v23 = vmul.f32 0.6931472, %v6731_v40  ;;  %6752 = vlog2.f32 %v589_v48  ;;  %4936 = vmatprep.mubr.f32.mxu1 %v7100_v11  ;;  %v2795_v8 = vld [vmem:[#allocation2 + $0x690] sm:$0xff]  ;;  %v1398_v5 = vsub.f32 1.0, %v9601_v29 }
 0x178   :  { %v6735_v46 = vpop.eup %6734  ;;  %5526 = vst [vmem:[#allocation5 + $0x1c8] sm:$0xff] %v4616_v9  ;;  %v3852_v49 = vpop.f32.mrb[58].mxu0  ;;  %v835_v10 = vmul.f32 0.6931472, %v6733_v37  ;;  %6754 = vlog2.f32 %v1613_v22  ;;  %v2668_v13 = vld [vmem:[#allocation2 + $0x298] sm:$0xff]  ;;  %v375_v35 = vsub.f32 1.0, %v9615_v42 }
 0x179   :  { %v6737_v27 = vpop.eup %6736  ;;  %5271 = vst [vmem:[#allocation3 + $0x1d0] sm:$0xff] %v3852_v49  ;;  %v3854_v59 = vpop.f32.mrb[59].mxu0  ;;  %5847 = vmatmul.mubr.msk.f32.gmra.mrb[164].mxu0 %vm2072_vm0, %v2667_v12  ;;  %v2028_v15 = vmul.f32 0.5, %v1857_v23  ;;  %v1859_v25 = vmul.f32 0.6931472, %v6735_v46  ;;  %6756 = vrcp.f32 %v371_v39  ;;  %v9623_v24 = vld [vmem:[%s10813_s1 + $0x2f8] sm:$0xff] }
 0x17a   :  { %v6739_v44 = vpop.eup %6738  ;;  %v4620_v18 = vpop.f32.mrb[58].mxu1  ;;  %5272 = vst [vmem:[#allocation3 + $0x1d8] sm:$0xff] %v3854_v59  ;;  %4174 = vmatprep.mubr.f32.mxu0 %v7100_v11  ;;  %v1005_v62 = vmul.f32 0.5, %v835_v10  ;;  %v837_v43 = vmul.f32 0.6931472, %v6737_v27  ;;  %6758 = vrcp.f32 %v1395_v20  ;;  %5975 = vmatmul.mubr.msk.f32.gmra.mrb[164].mxu1 %vm2072_vm0, %v2795_v8  ;;  %v2796_v26 = vld [vmem:[#allocation2 + $0x698] sm:$0xff] }
 0x17b   :  { %v6741_v51 = vpop.eup %6740  ;;  %5527 = vst [vmem:[#allocation5 + $0x1d0] sm:$0xff] %v4620_v18  ;;  %v4622_v55 = vpop.f32.mrb[59].mxu1  ;;  %2285 = vst.msk [vmem:[#allocation2 + $0x6a0] sm:$0xff] %vm2072_vm0, %v2028_v15  ;;  %v2029_v36 = vmul.f32 0.5, %v1859_v25  ;;  %v1861_v63 = vmul.f32 0.6931472, %v6739_v44  ;;  %6760 = vrcp.f32 %v372_v17  ;;  %4942 = vmatprep.mubr.f32.mxu1 %v7100_v11 }
 0x17c   :  { %2541 = vst.msk [vmem:[%s10818_s6 + $0x2a0] sm:$0xff] %vm2072_vm0, %v2028_v15  ;;  %v6743_v6 = vpop.eup %6742  ;;  %5528 = vst [vmem:[#allocation5 + $0x1d8] sm:$0xff] %v4622_v55  ;;  %v3858_v34 = vpop.f32.mrb[60].mxu0  ;;  %v1006_v54 = vmul.f32 0.5, %v837_v43  ;;  %v839_v4 = vmul.f32 0.6931472, %v6741_v51  ;;  %6762 = vrcp.f32 %v1396_v7 }
 0x17d   :  { %2158 = vst.msk [vmem:[#allocation2 + $0x2a8] sm:$0xff] %vm2072_vm0, %v1005_v62  ;;  %2414 = vst.msk [vmem:[%s10817_s5 + $0x2a8] sm:$0xff] %vm2072_vm0, %v1005_v62  ;;  %v9643_v38 = vld [vmem:[%s10812_s0 + $0x300] sm:$0xff]  ;;  %v6745_v52 = vpop.eup %6744  ;;  %v3860_v47 = vpop.f32.mrb[61].mxu0  ;;  %5848 = vmatmul.mubr.msk.f32.gmra.mrb[166].mxu0 %vm2072_vm0, %v2668_v13  ;;  %v2030_v16 = vmul.f32 0.5, %v1861_v63  ;;  %6764 = vrcp.f32 %v373_v50  ;;  %v1399_v21 = vsub.f32 1.0, %v9623_v24 }
 0x17e   :  { %5273 = vst [vmem:[#allocation3 + $0x1e0] sm:$0xff] %v3858_v34  ;;  %2286 = vst.msk [vmem:[#allocation2 + $0x6a8] sm:$0xff] %vm2072_vm0, %v2029_v36  ;;  %v1863_v56 = vmul.f32 0.6931472, %v6743_v6  ;;  %v9657_v61 = vld [vmem:[%s10813_s1 + $0x300] sm:$0xff]  ;;  %v6747_v0 = vpop.eup %6746  ;;  %v4626_v28 = vpop.f32.mrb[60].mxu1  ;;  %4180 = vmatprep.mubr.f32.mxu0 %v7100_v11  ;;  %6766 = vrcp.f32 %v1397_v1  ;;  %5976 = vmatmul.mubr.msk.f32.gmra.mrb[166].mxu1 %vm2072_vm0, %v2796_v26 }
 0x17f   :  { %2542 = vst.msk [vmem:[%s10818_s6 + $0x2a8] sm:$0xff] %vm2072_vm0, %v2029_v36  ;;  %5274 = vst [vmem:[#allocation3 + $0x1e8] sm:$0xff] %v3860_v47  ;;  %v2669_v2 = vld [vmem:[#allocation2 + $0x2a0] sm:$0xff]  ;;  %v1007_v31 = vmul.f32 0.5, %v839_v4  ;;  %v841_v19 = vmul.f32 0.6931472, %v6745_v52  ;;  %v6749_v20 = vpop.eup %6748  ;;  %6768 = vrcp.f32 %v374_v45  ;;  %4948 = vmatprep.mubr.f32.mxu1 %v7100_v11 }
 0x180   :  { %2159 = vst.msk [vmem:[#allocation2 + $0x2b0] sm:$0xff] %vm2072_vm0, %v1006_v54  ;;  %2415 = vst.msk [vmem:[%s10817_s5 + $0x2b0] sm:$0xff] %vm2072_vm0, %v1006_v54  ;;  %v9670_v39 = vld [vmem:[%s10812_s0 + $0x308] sm:$0xff]  ;;  %v4628_v33 = vpop.f32.mrb[61].mxu1  ;;  %v2031_v14 = vmul.f32 0.5, %v1863_v56  ;;  %v376_v17 = vsub.f32 1.0, %v9643_v38  ;;  %v6751_v7 = vpop.eup %6750  ;;  %6770 = vrcp.f32 %v1398_v5 }
 0x181   :  { %5529 = vst [vmem:[#allocation5 + $0x1e0] sm:$0xff] %v4626_v28  ;;  %2287 = vst.msk [vmem:[#allocation2 + $0x6b0] sm:$0xff] %vm2072_vm0, %v2030_v16  ;;  %v1865_v48 = vmul.f32 0.6931472, %v6747_v0  ;;  %v3864_v40 = vpop.f32.mrb[62].mxu0  ;;  %v1008_v32 = vmul.f32 0.5, %v841_v19  ;;  %v6753_v50 = vpop.eup %6752  ;;  %5849 = vmatmul.mubr.msk.f32.gmra.mrb[168].mxu0 %vm2072_vm0, %v2669_v2  ;;  %6772 = vrcp.f32 %v375_v35 }
 0x182   :  { %2543 = vst.msk [vmem:[%s10818_s6 + $0x2b0] sm:$0xff] %vm2072_vm0, %v2030_v16  ;;  %5530 = vst [vmem:[#allocation5 + $0x1e8] sm:$0xff] %v4628_v33  ;;  %v843_v12 = vmul.f32 0.6931472, %v6749_v20  ;;  %v1400_v22 = vsub.f32 1.0, %v9657_v61  ;;  %v3866_v1 = vpop.f32.mrb[63].mxu0  ;;  %v6755_v46 = vpop.eup %6754  ;;  %4186 = vmatprep.mubr.f32.mxu0 %v7100_v11  ;;  %6774 = vrcp.f32 %v1399_v21 }
 0x183   :  { %2160 = vst.msk [vmem:[#allocation2 + $0x2b8] sm:$0xff] %vm2072_vm0, %v1007_v31  ;;  %2416 = vst.msk [vmem:[%s10817_s5 + $0x2b8] sm:$0xff] %vm2072_vm0, %v1007_v31  ;;  %v2032_v37 = vmul.f32 0.5, %v1865_v48  ;;  %v1867_v9 = vmul.f32 0.6931472, %v6751_v7  ;;  %v377_v23 = vsub.f32 1.0, %v9670_v39  ;;  %v6757_v59 = vpop.eup %6756  ;;  %6776 = vrcp.f32 %v376_v17 }
 0x184   :  { %5275 = vst [vmem:[#allocation3 + $0x1f0] sm:$0xff] %v3864_v40  ;;  %2288 = vst.msk [vmem:[#allocation2 + $0x6b8] sm:$0xff] %vm2072_vm0, %v2031_v14  ;;  %v4632_v49 = vpop.f32.mrb[62].mxu1  ;;  %v2797_v8 = vld [vmem:[#allocation2 + $0x6a0] sm:$0xff]  ;;  %v1009_v10 = vmul.f32 0.5, %v843_v12  ;;  %v244_v27 = vadd.f32 1.0, %v9566_v41  ;;  %v6759_v41 = vpop.eup %6758  ;;  %v591_v51 = vmul.f32 %v6757_v59, %v9605_v60  ;;  %6778 = vrcp.f32 %v1400_v22 }
 0x185   :  { %2544 = vst.msk [vmem:[%s10818_s6 + $0x2b8] sm:$0xff] %vm2072_vm0, %v2031_v14  ;;  %5276 = vst [vmem:[#allocation3 + $0x1f8] sm:$0xff] %v3866_v1  ;;  %v845_v45 = vmul.f32 0.6931472, %v6753_v50  ;;  %v4634_v15 = vpop.f32.mrb[63].mxu1  ;;  %5977 = vmatmul.mubr.msk.f32.gmra.mrb[168].mxu1 %vm2072_vm0, %v2797_v8  ;;  %v2670_v25 = vld [vmem:[#allocation2 + $0x2a8] sm:$0xff]  ;;  %v1615_v35 = vmul.f32 %v6759_v41, %v9608_v53  ;;  %6780 = vrcp.f32 %v377_v23 }
 0x186   :  { %2161 = vst.msk [vmem:[#allocation2 + $0x2c0] sm:$0xff] %vm2072_vm0, %v1008_v32  ;;  %2417 = vst.msk [vmem:[%s10817_s5 + $0x2c0] sm:$0xff] %vm2072_vm0, %v1008_v32  ;;  %v2033_v5 = vmul.f32 0.5, %v1867_v9  ;;  %v1869_v44 = vmul.f32 0.6931472, %v6755_v46  ;;  %v1268_v18 = vadd.f32 1.0, %v9571_v58  ;;  %4954 = vmatprep.mubr.f32.mxu1 %v7100_v11  ;;  %v6761_v58 = vpop.eup %6760  ;;  %5850 = vmatmul.mubr.msk.f32.gmra.mrb[170].mxu0 %vm2072_vm0, %v2670_v25  ;;  %6782 = vlog2.f32 %v591_v51 }
 0x187   :  { %5531 = vst [vmem:[#allocation5 + $0x1f0] sm:$0xff] %v4632_v49  ;;  %2289 = vst.msk [vmem:[#allocation2 + $0x6c0] sm:$0xff] %vm2072_vm0, %v2032_v37  ;;  %v3870_v13 = vpop.f32.mrb[64].mxu0  ;;  %v2798_v62 = vld [vmem:[#allocation2 + $0x6a8] sm:$0xff]  ;;  %v1010_v43 = vmul.f32 0.5, %v845_v45  ;;  %v245_v55 = vadd.f32 1.0, %v9577_v3  ;;  %v6763_v3 = vpop.eup %6762  ;;  %4192 = vmatprep.mubr.f32.mxu0 %v7100_v11  ;;  %v593_v26 = vmul.f32 %v6761_v58, %v244_v27  ;;  %6784 = vlog2.f32 %v1615_v35 }
 0x188   :  { %2545 = vst.msk [vmem:[%s10818_s6 + $0x2c0] sm:$0xff] %vm2072_vm0, %v2032_v37  ;;  %5532 = vst [vmem:[#allocation5 + $0x1f8] sm:$0xff] %v4634_v15  ;;  %v3872_v36 = vpop.f32.mrb[65].mxu0  ;;  %v2034_v63 = vmul.f32 0.5, %v1869_v44  ;;  %v1269_v60 = vadd.f32 1.0, %v9582_v30  ;;  %v4638_v6 = vpop.f32.mrb[64].mxu1  ;;  %v1617_v4 = vmul.f32 %v6763_v3, %v1268_v18 }
 0x189   :  { %2162 = vst.msk [vmem:[#allocation2 + $0x2c8] sm:$0xff] %vm2072_vm0, %v1009_v10  ;;  %2418 = vst.msk [vmem:[%s10817_s5 + $0x2c8] sm:$0xff] %vm2072_vm0, %v1009_v10  ;;  %v2671_v34 = vld [vmem:[#allocation2 + $0x2b0] sm:$0xff]  ;;  %v246_v53 = vadd.f32 1.0, %v9593_v57  ;;  %v6765_v54 = vpop.eup %6764  ;;  %v4640_v30 = vpop.f32.mrb[65].mxu1  ;;  %5978 = vmatmul.mubr.msk.f32.gmra.mrb[170].mxu1 %vm2072_vm0, %v2798_v62  ;;  %v1270_v52 = vadd.f32 1.0, %v9601_v29  ;;  %6786 = vlog2.f32 %v593_v26 }
 0x18a   :  { %5277 = vst [vmem:[#allocation3 + $0x200] sm:$0xff] %v3870_v13  ;;  %2290 = vst.msk [vmem:[#allocation2 + $0x6c8] sm:$0xff] %vm2072_vm0, %v2033_v5  ;;  %v6767_v47 = vpop.eup %6766  ;;  %v3876_v16 = vpop.f32.mrb[66].mxu0  ;;  %4960 = vmatprep.mubr.f32.mxu1 %v7100_v11  ;;  %v2799_v57 = vld [vmem:[#allocation2 + $0x6b0] sm:$0xff]  ;;  %v595_v56 = vmul.f32 %v6765_v54, %v245_v55  ;;  %v247_v21 = vadd.f32 1.0, %v9615_v42  ;;  %5851 = vmatmul.mubr.msk.f32.gmra.mrb[172].mxu0 %vm2072_vm0, %v2671_v34  ;;  %6788 = vlog2.f32 %v1617_v4  ;;  %v1271_v31 = vadd.f32 1.0, %v9623_v24 }
 0x18b   :  { %2546 = vst.msk [vmem:[%s10818_s6 + $0x2c8] sm:$0xff] %vm2072_vm0, %v2033_v5  ;;  %5278 = vst [vmem:[#allocation3 + $0x208] sm:$0xff] %v3872_v36  ;;  %v6769_v0 = vpop.eup %6768  ;;  %v3878_v28 = vpop.f32.mrb[67].mxu0  ;;  %v1619_v2 = vmul.f32 %v6767_v47, %v1269_v60  ;;  %4198 = vmatprep.mubr.f32.mxu0 %v7100_v11  ;;  %v2672_v20 = vld [vmem:[#allocation2 + $0x2b8] sm:$0xff]  ;;  %v248_v14 = vadd.f32 1.0, %v9643_v38  ;;  %v1272_v7 = vadd.f32 1.0, %v9657_v61 }
 0x18c   :  { %2163 = vst.msk [vmem:[#allocation2 + $0x2d0] sm:$0xff] %vm2072_vm0, %v1010_v43  ;;  %2419 = vst.msk [vmem:[%s10817_s5 + $0x2d0] sm:$0xff] %vm2072_vm0, %v1010_v43  ;;  %v6771_v29 = vpop.eup %6770  ;;  %v4644_v19 = vpop.f32.mrb[66].mxu1  ;;  %6790 = vlog2.f32 %v595_v56  ;;  %v597_v33 = vmul.f32 %v6769_v0, %v246_v53  ;;  %v9752_v24 = vld [vmem:[%s10813_s1 + $0x308] sm:$0xff]  ;;  %v9757_v40 = vld [vmem:[%s10812_s0 + $0x310] sm:$0xff]  ;;  %v249_v61 = vadd.f32 1.0, %v9670_v39 }
 0x18d   :  { %5533 = vst [vmem:[#allocation5 + $0x200] sm:$0xff] %v4638_v6  ;;  %2291 = vst.msk [vmem:[#allocation2 + $0x6d0] sm:$0xff] %vm2072_vm0, %v2034_v63  ;;  %v6773_v42 = vpop.eup %6772  ;;  %v4646_v48 = vpop.f32.mrb[67].mxu1  ;;  %5979 = vmatmul.mubr.msk.f32.gmra.mrb[172].mxu1 %vm2072_vm0, %v2799_v57  ;;  %6792 = vlog2.f32 %v1619_v2  ;;  %v1621_v17 = vmul.f32 %v6771_v29, %v1270_v52  ;;  %v2800_v12 = vld [vmem:[#allocation2 + $0x6b8] sm:$0xff]  ;;  %v9764_v50 = vld [vmem:[%s10813_s1 + $0x310] sm:$0xff]  ;;  %v1401_v45 = vsub.f32 1.0, %v9752_v24 }
 0x18e   :  { %2547 = vst.msk [vmem:[%s10818_s6 + $0x2d0] sm:$0xff] %vm2072_vm0, %v2034_v63  ;;  %5534 = vst [vmem:[#allocation5 + $0x208] sm:$0xff] %v4640_v30  ;;  %v6775_v38 = vpop.eup %6774  ;;  %v3882_v32 = vpop.f32.mrb[68].mxu0  ;;  %4966 = vmatprep.mubr.f32.mxu1 %v7100_v11  ;;  %6794 = vlog2.f32 %v597_v33  ;;  %v599_v22 = vmul.f32 %v6773_v42, %v247_v21  ;;  %v9769_v1 = vld [vmem:[%s10812_s0 + $0x318] sm:$0xff]  ;;  %5852 = vmatmul.mubr.msk.f32.gmra.mrb[174].mxu0 %vm2072_vm0, %v2672_v20  ;;  %v2673_v8 = vld [vmem:[#allocation2 + $0x2c0] sm:$0xff]  ;;  %v378_v27 = vsub.f32 1.0, %v9757_v40 }
 0x18f   :  { %5279 = vst [vmem:[#allocation3 + $0x210] sm:$0xff] %v3876_v16  ;;  %5280 = vst [vmem:[#allocation3 + $0x218] sm:$0xff] %v3878_v28  ;;  %v6777_v37 = vpop.eup %6776  ;;  %v3884_v9 = vpop.f32.mrb[69].mxu0  ;;  %6796 = vlog2.f32 %v1621_v17  ;;  %v1623_v23 = vmul.f32 %v6775_v38, %v1271_v31  ;;  %v9775_v39 = vld [vmem:[%s10813_s1 + $0x318] sm:$0xff]  ;;  %4204 = vmatprep.mubr.f32.mxu0 %v7100_v11  ;;  %v9783_v59 = vld [vmem:[%s10812_s0 + $0x320] sm:$0xff]  ;;  %v1402_v18 = vsub.f32 1.0, %v9764_v50 }
 0x190   :  { %5535 = vst [vmem:[#allocation5 + $0x210] sm:$0xff] %v4644_v19  ;;  %5536 = vst [vmem:[#allocation5 + $0x218] sm:$0xff] %v4646_v48  ;;  %v6779_v46 = vpop.eup %6778  ;;  %v4650_v49 = vpop.f32.mrb[68].mxu1  ;;  %6798 = vlog2.f32 %v599_v22  ;;  %v601_v10 = vmul.f32 %v6777_v37, %v248_v14  ;;  %v9788_v15 = vld [vmem:[%s10813_s1 + $0x320] sm:$0xff]  ;;  %v379_v41 = vsub.f32 1.0, %v9769_v1  ;;  %v9795_v55 = vadd.f32 1.0, %v9752_v24 }
 0x191   :  { %5281 = vst [vmem:[#allocation3 + $0x220] sm:$0xff] %v3882_v32  ;;  %5282 = vst [vmem:[#allocation3 + $0x228] sm:$0xff] %v3884_v9  ;;  %v6781_v25 = vpop.eup %6780  ;;  %v4652_v5 = vpop.f32.mrb[69].mxu1  ;;  %5980 = vmatmul.mubr.msk.f32.gmra.mrb[174].mxu1 %vm2072_vm0, %v2800_v12  ;;  %6800 = vlog2.f32 %v1623_v23  ;;  %v1625_v44 = vmul.f32 %v6779_v46, %v1272_v7  ;;  %v2801_v43 = vld [vmem:[#allocation2 + $0x6c0] sm:$0xff]  ;;  %v1403_v58 = vsub.f32 1.0, %v9775_v39  ;;  %v9801_v36 = vld [vmem:[%s10812_s0 + $0x328] sm:$0xff] }
 0x192   :  { %5537 = vst [vmem:[#allocation5 + $0x220] sm:$0xff] %v4650_v49  ;;  %v6783_v13 = vpop.eup %6782  ;;  %5538 = vst [vmem:[#allocation5 + $0x228] sm:$0xff] %v4652_v5  ;;  %v3888_v62 = vpop.f32.mrb[70].mxu0  ;;  %4972 = vmatprep.mubr.f32.mxu1 %v7100_v11  ;;  %6802 = vlog2.f32 %v601_v10  ;;  %v603_v51 = vmul.f32 %v6781_v25, %v249_v61  ;;  %5853 = vmatmul.mubr.msk.f32.gmra.mrb[176].mxu0 %vm2072_vm0, %v2673_v8  ;;  %v380_v3 = vsub.f32 1.0, %v9783_v59  ;;  %v1404_v6 = vsub.f32 1.0, %v9788_v15  ;;  %v2674_v53 = vld [vmem:[#allocation2 + $0x2c8] sm:$0xff] }
 0x193   :  { %v6785_v63 = vpop.eup %6784  ;;  %5283 = vst [vmem:[#allocation3 + $0x230] sm:$0xff] %v3888_v62  ;;  %v3890_v35 = vpop.f32.mrb[71].mxu0  ;;  %v847_v60 = vmul.f32 0.6931472, %v6783_v13  ;;  %6804 = vlog2.f32 %v1625_v44  ;;  %4210 = vmatprep.mubr.f32.mxu0 %v7100_v11  ;;  %v9808_v30 = vadd.f32 1.0, %v9757_v40  ;;  %v9813_v4 = vld [vmem:[%s10813_s1 + $0x328] sm:$0xff] }
 0x194   :  { %v6787_v34 = vpop.eup %6786  ;;  %v4656_v26 = vpop.f32.mrb[70].mxu1  ;;  %5284 = vst [vmem:[#allocation3 + $0x238] sm:$0xff] %v3890_v35  ;;  %v1871_v54 = vmul.f32 0.6931472, %v6785_v63  ;;  %6806 = vlog2.f32 %v603_v51  ;;  %v381_v56 = vsub.f32 1.0, %v9801_v36  ;;  %v2802_v28 = vld [vmem:[#allocation2 + $0x6c8] sm:$0xff] }
 0x195   :  { %v6789_v52 = vpop.eup %6788  ;;  %5539 = vst [vmem:[#allocation5 + $0x230] sm:$0xff] %v4656_v26  ;;  %v4658_v47 = vpop.f32.mrb[71].mxu1  ;;  %5981 = vmatmul.mubr.msk.f32.gmra.mrb[176].mxu1 %vm2072_vm0, %v2801_v43  ;;  %v1011_v16 = vmul.f32 0.5, %v847_v60  ;;  %v849_v57 = vmul.f32 0.6931472, %v6787_v34  ;;  %6808 = vrcp.f32 %v1401_v45  ;;  %v9821_v29 = vld [vmem:[%s10812_s0 + $0x330] sm:$0xff] }
 0x196   :  { %v6791_v21 = vpop.eup %6790  ;;  %5540 = vst [vmem:[#allocation5 + $0x238] sm:$0xff] %v4658_v47  ;;  %v3894_v0 = vpop.f32.mrb[72].mxu0  ;;  %4978 = vmatprep.mubr.f32.mxu1 %v7100_v11  ;;  %v2035_v2 = vmul.f32 0.5, %v1871_v54  ;;  %v1873_v31 = vmul.f32 0.6931472, %v6789_v52  ;;  %6810 = vrcp.f32 %v378_v27  ;;  %5854 = vmatmul.mubr.msk.f32.gmra.mrb[178].mxu0 %vm2072_vm0, %v2674_v53  ;;  %v1405_v42 = vsub.f32 1.0, %v9813_v4 }
 0x197   :  { %v6793_v19 = vpop.eup %6792  ;;  %5285 = vst [vmem:[#allocation3 + $0x240] sm:$0xff] %v3894_v0  ;;  %v3896_v20 = vpop.f32.mrb[73].mxu0  ;;  %2164 = vst.msk [vmem:[#allocation2 + $0x2d8] sm:$0xff] %vm2072_vm0, %v1011_v16  ;;  %v1012_v33 = vmul.f32 0.5, %v849_v57  ;;  %v851_v14 = vmul.f32 0.6931472, %v6791_v21  ;;  %6812 = vrcp.f32 %v1402_v18  ;;  %4216 = vmatprep.mubr.f32.mxu0 %v7100_v11 }
 0x198   :  { %2420 = vst.msk [vmem:[%s10817_s5 + $0x2d8] sm:$0xff] %vm2072_vm0, %v1011_v16  ;;  %v6795_v48 = vpop.eup %6794  ;;  %v4662_v17 = vpop.f32.mrb[72].mxu1  ;;  %5286 = vst [vmem:[#allocation3 + $0x248] sm:$0xff] %v3896_v20  ;;  %v2675_v7 = vld [vmem:[#allocation2 + $0x2d0] sm:$0xff]  ;;  %v2036_v24 = vmul.f32 0.5, %v1873_v31  ;;  %6814 = vrcp.f32 %v379_v41  ;;  %v382_v37 = vsub.f32 1.0, %v9821_v29 }
 0x199   :  { %2292 = vst.msk [vmem:[#allocation2 + $0x6d8] sm:$0xff] %vm2072_vm0, %v2035_v2  ;;  %2548 = vst.msk [vmem:[%s10818_s6 + $0x2d8] sm:$0xff] %vm2072_vm0, %v2035_v2  ;;  %v1875_v40 = vmul.f32 0.6931472, %v6793_v19  ;;  %v9841_v38 = vld [vmem:[%s10813_s1 + $0x330] sm:$0xff]  ;;  %v6797_v32 = vpop.eup %6796  ;;  %v4664_v12 = vpop.f32.mrb[73].mxu1  ;;  %5982 = vmatmul.mubr.msk.f32.gmra.mrb[178].mxu1 %vm2072_vm0, %v2802_v28  ;;  %6816 = vrcp.f32 %v1403_v58 }
 0x19a   :  { %5541 = vst [vmem:[#allocation5 + $0x240] sm:$0xff] %v4662_v17  ;;  %2165 = vst.msk [vmem:[#allocation2 + $0x2e0] sm:$0xff] %vm2072_vm0, %v1012_v33  ;;  %v1013_v22 = vmul.f32 0.5, %v851_v14  ;;  %v853_v61 = vmul.f32 0.6931472, %v6795_v48  ;;  %v9855_v9 = vld [vmem:[%s10812_s0 + $0x338] sm:$0xff]  ;;  %v6799_v23 = vpop.eup %6798  ;;  %4984 = vmatprep.mubr.f32.mxu1 %v7100_v11  ;;  %6818 = vrcp.f32 %v380_v3  ;;  %5855 = vmatmul.mubr.msk.f32.gmra.mrb[180].mxu0 %vm2072_vm0, %v2675_v7 }
 0x19b   :  { %2421 = vst.msk [vmem:[%s10817_s5 + $0x2e0] sm:$0xff] %vm2072_vm0, %v1012_v33  ;;  %5542 = vst [vmem:[#allocation5 + $0x248] sm:$0xff] %v4664_v12  ;;  %v3900_v46 = vpop.f32.mrb[74].mxu0  ;;  %v2803_v49 = vld [vmem:[#allocation2 + $0x6d0] sm:$0xff]  ;;  %v2037_v8 = vmul.f32 0.5, %v1875_v40  ;;  %v9868_v45 = vld [vmem:[%s10813_s1 + $0x338] sm:$0xff]  ;;  %v6801_v27 = vpop.eup %6800  ;;  %6820 = vrcp.f32 %v1404_v6  ;;  %4222 = vmatprep.mubr.f32.mxu0 %v7100_v11 }
 0x19c   :  { %2293 = vst.msk [vmem:[#allocation2 + $0x6e0] sm:$0xff] %vm2072_vm0, %v2036_v24  ;;  %2549 = vst.msk [vmem:[%s10818_s6 + $0x2e0] sm:$0xff] %vm2072_vm0, %v2036_v24  ;;  %v1877_v10 = vmul.f32 0.6931472, %v6797_v32  ;;  %v3902_v25 = vpop.f32.mrb[75].mxu0  ;;  %v1014_v5 = vmul.f32 0.5, %v853_v61  ;;  %v6803_v41 = vpop.eup %6802  ;;  %6822 = vrcp.f32 %v381_v56 }
 0x19d   :  { %5287 = vst [vmem:[#allocation3 + $0x250] sm:$0xff] %v3900_v46  ;;  %2166 = vst.msk [vmem:[#allocation2 + $0x2e8] sm:$0xff] %vm2072_vm0, %v1013_v22  ;;  %v855_v44 = vmul.f32 0.6931472, %v6799_v23  ;;  %v1406_v18 = vsub.f32 1.0, %v9841_v38  ;;  %v4668_v13 = vpop.f32.mrb[74].mxu1  ;;  %v6805_v58 = vpop.eup %6804  ;;  %5983 = vmatmul.mubr.msk.f32.gmra.mrb[180].mxu1 %vm2072_vm0, %v2803_v49  ;;  %6824 = vrcp.f32 %v1405_v42 }
 0x19e   :  { %2422 = vst.msk [vmem:[%s10817_s5 + $0x2e8] sm:$0xff] %vm2072_vm0, %v1013_v22  ;;  %5288 = vst [vmem:[#allocation3 + $0x258] sm:$0xff] %v3902_v25  ;;  %v2038_v62 = vmul.f32 0.5, %v1877_v10  ;;  %v1879_v43 = vmul.f32 0.6931472, %v6801_v27  ;;  %v383_v51 = vsub.f32 1.0, %v9855_v9  ;;  %v6807_v6 = vpop.eup %6806  ;;  %4990 = vmatprep.mubr.f32.mxu1 %v7100_v11  ;;  %6826 = vrcp.f32 %v382_v37 }
 0x19f   :  { %2294 = vst.msk [vmem:[#allocation2 + $0x6e8] sm:$0xff] %vm2072_vm0, %v2037_v8  ;;  %2550 = vst.msk [vmem:[%s10818_s6 + $0x2e8] sm:$0xff] %vm2072_vm0, %v2037_v8  ;;  %v4670_v63 = vpop.f32.mrb[75].mxu1  ;;  %v1015_v35 = vmul.f32 0.5, %v855_v44  ;;  %v857_v60 = vmul.f32 0.6931472, %v6803_v41  ;;  %v6809_v47 = vpop.eup %6808  ;;  %6828 = vrcp.f32 %v1406_v18 }
 0x1a0   :  { %5543 = vst [vmem:[#allocation5 + $0x250] sm:$0xff] %v4668_v13  ;;  %2167 = vst.msk [vmem:[#allocation2 + $0x2f0] sm:$0xff] %vm2072_vm0, %v1014_v5  ;;  %v1407_v3 = vsub.f32 1.0, %v9868_v45  ;;  %v3906_v34 = vpop.f32.mrb[76].mxu0  ;;  %v2676_v26 = vld [vmem:[#allocation2 + $0x2d8] sm:$0xff]  ;;  %v2039_v53 = vmul.f32 0.5, %v1879_v43  ;;  %v1627_v19 = vmul.f32 %v6809_v47, %v9795_v55  ;;  %6830 = vrcp.f32 %v383_v51 }
 0x1a1   :  { %2423 = vst.msk [vmem:[%s10817_s5 + $0x2f0] sm:$0xff] %vm2072_vm0, %v1014_v5  ;;  %5544 = vst [vmem:[#allocation5 + $0x258] sm:$0xff] %v4670_v63  ;;  %v1881_v54 = vmul.f32 0.6931472, %v6805_v58  ;;  %v1274_v52 = vadd.f32 1.0, %v9764_v50  ;;  %v3908_v16 = vpop.f32.mrb[77].mxu0  ;;  %5856 = vmatmul.mubr.msk.f32.gmra.mrb[182].mxu0 %vm2072_vm0, %v2676_v26  ;;  %v6811_v50 = vpop.eup %6810 }
 0x1a2   :  { %2295 = vst.msk [vmem:[#allocation2 + $0x6f0] sm:$0xff] %vm2072_vm0, %v2038_v62  ;;  %2551 = vst.msk [vmem:[%s10818_s6 + $0x2f0] sm:$0xff] %vm2072_vm0, %v2038_v62  ;;  %v2804_v57 = vld [vmem:[#allocation2 + $0x6d8] sm:$0xff]  ;;  %v1016_v56 = vmul.f32 0.5, %v857_v60  ;;  %v859_v21 = vmul.f32 0.6931472, %v6807_v6  ;;  %4228 = vmatprep.mubr.f32.mxu0 %v7100_v11  ;;  %v605_v42 = vmul.f32 %v6811_v50, %v9808_v30  ;;  %6832 = vrcp.f32 %v1407_v3 }
 0x1a3   :  { %5289 = vst [vmem:[#allocation3 + $0x260] sm:$0xff] %v3906_v34  ;;  %2168 = vst.msk [vmem:[#allocation2 + $0x2f8] sm:$0xff] %vm2072_vm0, %v1015_v35  ;;  %v251_v0 = vadd.f32 1.0, %v9769_v1  ;;  %v4674_v28 = vpop.f32.mrb[76].mxu1  ;;  %v2677_v2 = vld [vmem:[#allocation2 + $0x2e0] sm:$0xff]  ;;  %v2040_v31 = vmul.f32 0.5, %v1881_v54  ;;  %v6813_v1 = vpop.eup %6812  ;;  %5984 = vmatmul.mubr.msk.f32.gmra.mrb[182].mxu1 %vm2072_vm0, %v2804_v57  ;;  %6834 = vlog2.f32 %v1627_v19 }
 0x1a4   :  { %2424 = vst.msk [vmem:[%s10817_s5 + $0x2f8] sm:$0xff] %vm2072_vm0, %v1015_v35  ;;  %5290 = vst [vmem:[#allocation3 + $0x268] sm:$0xff] %v3908_v16  ;;  %v1275_v20 = vadd.f32 1.0, %v9775_v39  ;;  %v4676_v33 = vpop.f32.mrb[77].mxu1  ;;  %v1017_v14 = vmul.f32 0.5, %v859_v21  ;;  %v252_v55 = vadd.f32 1.0, %v9783_v59  ;;  %v6815_v39 = vpop.eup %6814  ;;  %4996 = vmatprep.mubr.f32.mxu1 %v7100_v11  ;;  %v1629_v7 = vmul.f32 %v6813_v1, %v1274_v52 }
 0x1a5   :  { %2296 = vst.msk [vmem:[#allocation2 + $0x6f8] sm:$0xff] %vm2072_vm0, %v2039_v53  ;;  %2552 = vst.msk [vmem:[%s10818_s6 + $0x2f8] sm:$0xff] %vm2072_vm0, %v2039_v53  ;;  %v3912_v48 = vpop.f32.mrb[78].mxu0  ;;  %v2805_v17 = vld [vmem:[#allocation2 + $0x6e0] sm:$0xff]  ;;  %v1276_v30 = vadd.f32 1.0, %v9788_v15  ;;  %v6817_v24 = vpop.eup %6816  ;;  %5857 = vmatmul.mubr.msk.f32.gmra.mrb[184].mxu0 %vm2072_vm0, %v2677_v2  ;;  %6836 = vlog2.f32 %v605_v42  ;;  %v607_v40 = vmul.f32 %v6815_v39, %v251_v0  ;;  %v253_v32 = vadd.f32 1.0, %v9801_v36 }
 0x1a6   :  { %5545 = vst [vmem:[#allocation5 + $0x260] sm:$0xff] %v4674_v28  ;;  %2169 = vst.msk [vmem:[#allocation2 + $0x300] sm:$0xff] %vm2072_vm0, %v1016_v56  ;;  %v3914_v59 = vpop.f32.mrb[79].mxu0  ;;  %v6819_v12 = vpop.eup %6818  ;;  %4234 = vmatprep.mubr.f32.mxu0 %v7100_v11  ;;  %v2678_v15 = vld [vmem:[#allocation2 + $0x2e8] sm:$0xff]  ;;  %6838 = vlog2.f32 %v1629_v7  ;;  %v1631_v61 = vmul.f32 %v6817_v24, %v1275_v20  ;;  %v1277_v37 = vadd.f32 1.0, %v9813_v4  ;;  %v254_v8 = vadd.f32 1.0, %v9821_v29 }
 0x1a7   :  { %2425 = vst.msk [vmem:[%s10817_s5 + $0x300] sm:$0xff] %vm2072_vm0, %v1016_v56  ;;  %5546 = vst [vmem:[#allocation5 + $0x268] sm:$0xff] %v4676_v33  ;;  %v4680_v22 = vpop.f32.mrb[78].mxu1  ;;  %v6821_v23 = vpop.eup %6820  ;;  %5985 = vmatmul.mubr.msk.f32.gmra.mrb[184].mxu1 %vm2072_vm0, %v2805_v17  ;;  %6840 = vlog2.f32 %v607_v40  ;;  %v609_v49 = vmul.f32 %v6819_v12, %v252_v55  ;;  %v2806_v27 = vld [vmem:[#allocation2 + $0x6e8] sm:$0xff]  ;;  %v1278_v5 = vadd.f32 1.0, %v9841_v38  ;;  %v255_v41 = vadd.f32 1.0, %v9855_v9 }
 0x1a8   :  { %2297 = vst.msk [vmem:[#allocation2 + $0x700] sm:$0xff] %vm2072_vm0, %v2040_v31  ;;  %2553 = vst.msk [vmem:[%s10818_s6 + $0x300] sm:$0xff] %vm2072_vm0, %v2040_v31  ;;  %v4682_v46 = vpop.f32.mrb[79].mxu1  ;;  %v6823_v36 = vpop.eup %6822  ;;  %5002 = vmatprep.mubr.f32.mxu1 %v7100_v11  ;;  %6842 = vlog2.f32 %v1631_v61  ;;  %v1633_v25 = vmul.f32 %v6821_v23, %v1276_v30  ;;  %v9950_v29 = vld [vmem:[%s10812_s0 + $0x340] sm:$0xff]  ;;  %v2679_v43 = vld [vmem:[#allocation2 + $0x2f0] sm:$0xff]  ;;  %v1279_v9 = vadd.f32 1.0, %v9868_v45 }
 0x1a9   :  { %5291 = vst [vmem:[#allocation3 + $0x270] sm:$0xff] %v3912_v48  ;;  %2170 = vst.msk [vmem:[#allocation2 + $0x308] sm:$0xff] %vm2072_vm0, %v1017_v14  ;;  %v3918_v10 = vpop.f32.mrb[80].mxu0  ;;  %v6825_v4 = vpop.eup %6824  ;;  %5858 = vmatmul.mubr.msk.f32.gmra.mrb[186].mxu0 %vm2072_vm0, %v2678_v15  ;;  %6844 = vlog2.f32 %v609_v49  ;;  %v611_v18 = vmul.f32 %v6823_v36, %v253_v32  ;;  %v9955_v13 = vld [vmem:[%s10813_s1 + $0x340] sm:$0xff]  ;;  %v9962_v58 = vld [vmem:[%s10812_s0 + $0x348] sm:$0xff]  ;;  %v384_v54 = vsub.f32 1.0, %v9950_v29 }
 0x1aa   :  { %2426 = vst.msk [vmem:[%s10817_s5 + $0x308] sm:$0xff] %vm2072_vm0, %v1017_v14  ;;  %5292 = vst [vmem:[#allocation3 + $0x278] sm:$0xff] %v3914_v59  ;;  %v3920_v44 = vpop.f32.mrb[81].mxu0  ;;  %v6827_v38 = vpop.eup %6826  ;;  %4240 = vmatprep.mubr.f32.mxu0 %v7100_v11  ;;  %6846 = vlog2.f32 %v1633_v25  ;;  %v1635_v51 = vmul.f32 %v6825_v4, %v1277_v37  ;;  %v9967_v63 = vld [vmem:[%s10813_s1 + $0x348] sm:$0xff]  ;;  %v9973_v45 = vld [vmem:[%s10812_s0 + $0x350] sm:$0xff]  ;;  %v1408_v52 = vsub.f32 1.0, %v9955_v13 }
 0x1ab   :  { %5547 = vst [vmem:[#allocation5 + $0x270] sm:$0xff] %v4680_v22  ;;  %5548 = vst [vmem:[#allocation5 + $0x278] sm:$0xff] %v4682_v46  ;;  %v4686_v62 = vpop.f32.mrb[80].mxu1  ;;  %v6829_v35 = vpop.eup %6828  ;;  %5986 = vmatmul.mubr.msk.f32.gmra.mrb[186].mxu1 %vm2072_vm0, %v2806_v27  ;;  %6848 = vlog2.f32 %v611_v18  ;;  %v613_v3 = vmul.f32 %v6827_v38, %v254_v8  ;;  %v2807_v26 = vld [vmem:[#allocation2 + $0x6f0] sm:$0xff]  ;;  %v385_v21 = vsub.f32 1.0, %v9962_v58  ;;  %v1409_v0 = vsub.f32 1.0, %v9967_v63 }
 0x1ac   :  { %5293 = vst [vmem:[#allocation3 + $0x280] sm:$0xff] %v3918_v10  ;;  %5294 = vst [vmem:[#allocation3 + $0x288] sm:$0xff] %v3920_v44  ;;  %v4688_v60 = vpop.f32.mrb[81].mxu1  ;;  %v6831_v6 = vpop.eup %6830  ;;  %5008 = vmatprep.mubr.f32.mxu1 %v7100_v11  ;;  %6850 = vlog2.f32 %v1635_v51  ;;  %v1637_v53 = vmul.f32 %v6829_v35, %v1278_v5  ;;  %v9981_v47 = vld [vmem:[%s10813_s1 + $0x350] sm:$0xff]  ;;  %v9989_v50 = vld [vmem:[%s10812_s0 + $0x358] sm:$0xff]  ;;  %v9993_v20 = vadd.f32 1.0, %v9950_v29 }
 0x1ad   :  { %5549 = vst [vmem:[#allocation5 + $0x280] sm:$0xff] %v4686_v62  ;;  %5550 = vst [vmem:[#allocation5 + $0x288] sm:$0xff] %v4688_v60  ;;  %v3924_v34 = vpop.f32.mrb[82].mxu0  ;;  %v6833_v16 = vpop.eup %6832  ;;  %5859 = vmatmul.mubr.msk.f32.gmra.mrb[188].mxu0 %vm2072_vm0, %v2679_v43  ;;  %6852 = vlog2.f32 %v613_v3  ;;  %v615_v56 = vmul.f32 %v6831_v6, %v255_v41  ;;  %v2680_v31 = vld [vmem:[#allocation2 + $0x2f8] sm:$0xff]  ;;  %v386_v1 = vsub.f32 1.0, %v9973_v45  ;;  %v10003_v39 = vadd.f32 1.0, %v9955_v13 }
 0x1ae   :  { %5295 = vst [vmem:[#allocation3 + $0x290] sm:$0xff] %v3924_v34  ;;  %v3926_v57 = vpop.f32.mrb[83].mxu0  ;;  %v6835_v28 = vpop.eup %6834  ;;  %4246 = vmatprep.mubr.f32.mxu0 %v7100_v11  ;;  %6854 = vlog2.f32 %v1637_v53  ;;  %v1639_v19 = vmul.f32 %v6833_v16, %v1279_v9  ;;  %v9999_v33 = vld [vmem:[%s10813_s1 + $0x358] sm:$0xff]  ;;  %v1410_v48 = vsub.f32 1.0, %v9981_v47  ;;  %v387_v59 = vsub.f32 1.0, %v9989_v50  ;;  %v10011_v40 = vld [vmem:[%s10812_s0 + $0x360] sm:$0xff] }
 0x1af   :  { %v4692_v2 = vpop.f32.mrb[82].mxu1  ;;  %5296 = vst [vmem:[#allocation3 + $0x298] sm:$0xff] %v3926_v57  ;;  %v6837_v14 = vpop.eup %6836  ;;  %5987 = vmatmul.mubr.msk.f32.gmra.mrb[188].mxu1 %vm2072_vm0, %v2807_v26  ;;  %v1883_v55 = vmul.f32 0.6931472, %v6835_v28  ;;  %6856 = vlog2.f32 %v615_v56  ;;  %v2808_v30 = vld [vmem:[#allocation2 + $0x6f8] sm:$0xff]  ;;  %v1411_v61 = vsub.f32 1.0, %v9999_v33 }
 0x1b0   :  { %5551 = vst [vmem:[#allocation5 + $0x290] sm:$0xff] %v4692_v2  ;;  %v4694_v42 = vpop.f32.mrb[83].mxu1  ;;  %v6839_v17 = vpop.eup %6838  ;;  %5014 = vmatprep.mubr.f32.mxu1 %v7100_v11  ;;  %v861_v24 = vmul.f32 0.6931472, %v6837_v14  ;;  %6858 = vlog2.f32 %v1639_v19  ;;  %v2681_v46 = vld [vmem:[#allocation2 + $0x300] sm:$0xff]  ;;  %v388_v4 = vsub.f32 1.0, %v10011_v40 }
 0x1b1   :  { %5552 = vst [vmem:[#allocation5 + $0x298] sm:$0xff] %v4694_v42  ;;  %v3930_v7 = vpop.f32.mrb[84].mxu0  ;;  %v6841_v32 = vpop.eup %6840  ;;  %5860 = vmatmul.mubr.msk.f32.gmra.mrb[190].mxu0 %vm2072_vm0, %v2680_v31  ;;  %v2041_v22 = vmul.f32 0.5, %v1883_v55  ;;  %v1885_v15 = vmul.f32 0.6931472, %v6839_v17  ;;  %6860 = vrcp.f32 %v384_v54  ;;  %v10019_v36 = vld [vmem:[%s10813_s1 + $0x360] sm:$0xff] }
 0x1b2   :  { %5297 = vst [vmem:[#allocation3 + $0x2a0] sm:$0xff] %v3930_v7  ;;  %v3932_v12 = vpop.f32.mrb[85].mxu0  ;;  %v6843_v37 = vpop.eup %6842  ;;  %4252 = vmatprep.mubr.f32.mxu0 %v7100_v11  ;;  %v1018_v49 = vmul.f32 0.5, %v861_v24  ;;  %v863_v8 = vmul.f32 0.6931472, %v6841_v32  ;;  %6862 = vrcp.f32 %v1408_v52  ;;  %v2809_v41 = vld [vmem:[#allocation2 + $0x700] sm:$0xff] }
 0x1b3   :  { %v4698_v23 = vpop.f32.mrb[84].mxu1  ;;  %5298 = vst [vmem:[#allocation3 + $0x2a8] sm:$0xff] %v3932_v12  ;;  %v6845_v10 = vpop.eup %6844  ;;  %5988 = vmatmul.mubr.msk.f32.gmra.mrb[190].mxu1 %vm2072_vm0, %v2808_v30  ;;  %2298 = vst.msk [vmem:[#allocation2 + $0x708] sm:$0xff] %vm2072_vm0, %v2041_v22  ;;  %v2042_v25 = vmul.f32 0.5, %v1885_v15  ;;  %v1887_v5 = vmul.f32 0.6931472, %v6843_v37  ;;  %6864 = vrcp.f32 %v385_v21 }
 0x1b4   :  { %5553 = vst [vmem:[#allocation5 + $0x2a0] sm:$0xff] %v4698_v23  ;;  %v4700_v27 = vpop.f32.mrb[85].mxu1  ;;  %2554 = vst.msk [vmem:[%s10818_s6 + $0x308] sm:$0xff] %vm2072_vm0, %v2041_v22  ;;  %v6847_v44 = vpop.eup %6846  ;;  %5020 = vmatprep.mubr.f32.mxu1 %v7100_v11  ;;  %v1019_v29 = vmul.f32 0.5, %v863_v8  ;;  %v865_v13 = vmul.f32 0.6931472, %v6845_v10  ;;  %6866 = vrcp.f32 %v1409_v0 }
 0x1b5   :  { %5554 = vst [vmem:[#allocation5 + $0x2a8] sm:$0xff] %v4700_v27  ;;  %v3936_v18 = vpop.f32.mrb[86].mxu0  ;;  %2171 = vst.msk [vmem:[#allocation2 + $0x310] sm:$0xff] %vm2072_vm0, %v1018_v49  ;;  %v10039_v38 = vld [vmem:[%s10812_s0 + $0x368] sm:$0xff]  ;;  %v6849_v62 = vpop.eup %6848  ;;  %5861 = vmatmul.mubr.msk.f32.gmra.mrb[192].mxu0 %vm2072_vm0, %v2681_v46  ;;  %v2043_v51 = vmul.f32 0.5, %v1887_v5  ;;  %6868 = vrcp.f32 %v386_v1  ;;  %v1412_v35 = vsub.f32 1.0, %v10019_v36 }
 0x1b6   :  { %2427 = vst.msk [vmem:[%s10817_s5 + $0x310] sm:$0xff] %vm2072_vm0, %v1018_v49  ;;  %5299 = vst [vmem:[#allocation3 + $0x2b0] sm:$0xff] %v3936_v18  ;;  %v3938_v43 = vpop.f32.mrb[87].mxu0  ;;  %v1889_v9 = vmul.f32 0.6931472, %v6847_v44  ;;  %v10053_v60 = vld [vmem:[%s10813_s1 + $0x368] sm:$0xff]  ;;  %v6851_v3 = vpop.eup %6850  ;;  %4258 = vmatprep.mubr.f32.mxu0 %v7100_v11  ;;  %6870 = vrcp.f32 %v1410_v48 }
 0x1b7   :  { %2299 = vst.msk [vmem:[#allocation2 + $0x710] sm:$0xff] %vm2072_vm0, %v2042_v25  ;;  %2555 = vst.msk [vmem:[%s10818_s6 + $0x310] sm:$0xff] %vm2072_vm0, %v2042_v25  ;;  %v4704_v6 = vpop.f32.mrb[86].mxu1  ;;  %v2682_v34 = vld [vmem:[#allocation2 + $0x308] sm:$0xff]  ;;  %v1020_v26 = vmul.f32 0.5, %v865_v13  ;;  %v10066_v54 = vld [vmem:[%s10812_s0 + $0x370] sm:$0xff]  ;;  %v6853_v52 = vpop.eup %6852  ;;  %5989 = vmatmul.mubr.msk.f32.gmra.mrb[192].mxu1 %vm2072_vm0, %v2809_v41  ;;  %6872 = vrcp.f32 %v387_v59 }
 0x1b8   :  { %5300 = vst [vmem:[#allocation3 + $0x2b8] sm:$0xff] %v3938_v43  ;;  %2172 = vst.msk [vmem:[#allocation2 + $0x318] sm:$0xff] %vm2072_vm0, %v1019_v29  ;;  %v867_v53 = vmul.f32 0.6931472, %v6849_v62  ;;  %v4706_v16 = vpop.f32.mrb[87].mxu1  ;;  %v2044_v57 = vmul.f32 0.5, %v1889_v9  ;;  %v6855_v0 = vpop.eup %6854  ;;  %5026 = vmatprep.mubr.f32.mxu1 %v7100_v11  ;;  %6874 = vrcp.f32 %v1411_v61 }
 0x1b9   :  { %2428 = vst.msk [vmem:[%s10817_s5 + $0x318] sm:$0xff] %vm2072_vm0, %v1019_v29  ;;  %5555 = vst [vmem:[#allocation5 + $0x2b0] sm:$0xff] %v4704_v6  ;;  %v1891_v56 = vmul.f32 0.6931472, %v6851_v3  ;;  %v389_v21 = vsub.f32 1.0, %v10039_v38  ;;  %v3942_v28 = vpop.f32.mrb[88].mxu0  ;;  %v6857_v1 = vpop.eup %6856  ;;  %5862 = vmatmul.mubr.msk.f32.gmra.mrb[194].mxu0 %vm2072_vm0, %v2682_v34  ;;  %6876 = vrcp.f32 %v388_v4 }
 0x1ba   :  { %2300 = vst.msk [vmem:[#allocation2 + $0x718] sm:$0xff] %vm2072_vm0, %v2043_v51  ;;  %2556 = vst.msk [vmem:[%s10818_s6 + $0x318] sm:$0xff] %vm2072_vm0, %v2043_v51  ;;  %v1021_v2 = vmul.f32 0.5, %v867_v53  ;;  %v869_v31 = vmul.f32 0.6931472, %v6853_v52  ;;  %v1413_v19 = vsub.f32 1.0, %v10053_v60  ;;  %v6859_v17 = vpop.eup %6858  ;;  %4264 = vmatprep.mubr.f32.mxu0 %v7100_v11  ;;  %6878 = vrcp.f32 %v1412_v35 }
 0x1bb   :  { %5556 = vst [vmem:[#allocation5 + $0x2b8] sm:$0xff] %v4706_v16  ;;  %2173 = vst.msk [vmem:[#allocation2 + $0x320] sm:$0xff] %vm2072_vm0, %v1020_v26  ;;  %v3944_v14 = vpop.f32.mrb[89].mxu0  ;;  %v2045_v42 = vmul.f32 0.5, %v1891_v56  ;;  %v1893_v55 = vmul.f32 0.6931472, %v6855_v0  ;;  %v6861_v12 = vpop.eup %6860  ;;  %6880 = vrcp.f32 %v389_v21 }
 0x1bc   :  { %2429 = vst.msk [vmem:[%s10817_s5 + $0x320] sm:$0xff] %vm2072_vm0, %v1020_v26  ;;  %5301 = vst [vmem:[#allocation3 + $0x2c0] sm:$0xff] %v3942_v28  ;;  %v390_v48 = vsub.f32 1.0, %v10066_v54  ;;  %v4710_v7 = vpop.f32.mrb[88].mxu1  ;;  %v2810_v30 = vld [vmem:[#allocation2 + $0x708] sm:$0xff]  ;;  %v1022_v24 = vmul.f32 0.5, %v869_v31  ;;  %v617_v10 = vmul.f32 %v6861_v12, %v9993_v20  ;;  %6882 = vrcp.f32 %v1413_v19 }
 0x1bd   :  { %2301 = vst.msk [vmem:[#allocation2 + $0x720] sm:$0xff] %vm2072_vm0, %v2044_v57  ;;  %2557 = vst.msk [vmem:[%s10818_s6 + $0x320] sm:$0xff] %vm2072_vm0, %v2044_v57  ;;  %v871_v59 = vmul.f32 0.6931472, %v6857_v1  ;;  %v257_v32 = vadd.f32 1.0, %v9962_v58  ;;  %v4712_v22 = vpop.f32.mrb[89].mxu1  ;;  %5990 = vmatmul.mubr.msk.f32.gmra.mrb[194].mxu1 %vm2072_vm0, %v2810_v30  ;;  %v6863_v58 = vpop.eup %6862 }
 0x1be   :  { %5302 = vst [vmem:[#allocation3 + $0x2c8] sm:$0xff] %v3944_v14  ;;  %2174 = vst.msk [vmem:[#allocation2 + $0x328] sm:$0xff] %vm2072_vm0, %v1021_v2  ;;  %v2683_v15 = vld [vmem:[#allocation2 + $0x310] sm:$0xff]  ;;  %v2046_v61 = vmul.f32 0.5, %v1893_v55  ;;  %v1895_v37 = vmul.f32 0.6931472, %v6859_v17  ;;  %5032 = vmatprep.mubr.f32.mxu1 %v7100_v11  ;;  %v1641_v4 = vmul.f32 %v6863_v58, %v10003_v39  ;;  %6884 = vrcp.f32 %v390_v48 }
 0x1bf   :  { %2430 = vst.msk [vmem:[%s10817_s5 + $0x328] sm:$0xff] %vm2072_vm0, %v1021_v2  ;;  %5557 = vst [vmem:[#allocation5 + $0x2c0] sm:$0xff] %v4710_v7  ;;  %v1281_v23 = vadd.f32 1.0, %v9967_v63  ;;  %v3948_v46 = vpop.f32.mrb[90].mxu0  ;;  %v2811_v49 = vld [vmem:[#allocation2 + $0x710] sm:$0xff]  ;;  %v1023_v8 = vmul.f32 0.5, %v871_v59  ;;  %v6865_v63 = vpop.eup %6864  ;;  %5863 = vmatmul.mubr.msk.f32.gmra.mrb[196].mxu0 %vm2072_vm0, %v2683_v15  ;;  %6886 = vlog2.f32 %v617_v10 }
 0x1c0   :  { %2302 = vst.msk [vmem:[#allocation2 + $0x728] sm:$0xff] %vm2072_vm0, %v2045_v42  ;;  %2558 = vst.msk [vmem:[%s10818_s6 + $0x328] sm:$0xff] %vm2072_vm0, %v2045_v42  ;;  %v258_v27 = vadd.f32 1.0, %v9973_v45  ;;  %v3950_v25 = vpop.f32.mrb[91].mxu0  ;;  %v2047_v5 = vmul.f32 0.5, %v1895_v37  ;;  %v1282_v20 = vadd.f32 1.0, %v9981_v47  ;;  %v6867_v45 = vpop.eup %6866  ;;  %4270 = vmatprep.mubr.f32.mxu0 %v7100_v11  ;;  %v619_v41 = vmul.f32 %v6865_v63, %v257_v32 }
 0x1c1   :  { %5558 = vst [vmem:[#allocation5 + $0x2c8] sm:$0xff] %v4712_v22  ;;  %2175 = vst.msk [vmem:[#allocation2 + $0x330] sm:$0xff] %vm2072_vm0, %v1022_v24  ;;  %v4716_v44 = vpop.f32.mrb[90].mxu1  ;;  %v2684_v18 = vld [vmem:[#allocation2 + $0x318] sm:$0xff]  ;;  %v259_v39 = vadd.f32 1.0, %v9989_v50  ;;  %v6869_v29 = vpop.eup %6868  ;;  %5991 = vmatmul.mubr.msk.f32.gmra.mrb[196].mxu1 %vm2072_vm0, %v2811_v49  ;;  %6888 = vlog2.f32 %v1641_v4  ;;  %v1643_v13 = vmul.f32 %v6867_v45, %v1281_v23  ;;  %v1283_v62 = vadd.f32 1.0, %v9999_v33 }
 0x1c2   :  { %2431 = vst.msk [vmem:[%s10817_s5 + $0x330] sm:$0xff] %vm2072_vm0, %v1022_v24  ;;  %5303 = vst [vmem:[#allocation3 + $0x2d0] sm:$0xff] %v3948_v46  ;;  %v4718_v47 = vpop.f32.mrb[91].mxu1  ;;  %v6871_v43 = vpop.eup %6870  ;;  %5038 = vmatprep.mubr.f32.mxu1 %v7100_v11  ;;  %v2812_v50 = vld [vmem:[#allocation2 + $0x718] sm:$0xff]  ;;  %6890 = vlog2.f32 %v619_v41  ;;  %v621_v9 = vmul.f32 %v6869_v29, %v258_v27  ;;  %v260_v35 = vadd.f32 1.0, %v10011_v40  ;;  %v1284_v26 = vadd.f32 1.0, %v10019_v36 }
 0x1c3   :  { %2303 = vst.msk [vmem:[#allocation2 + $0x730] sm:$0xff] %vm2072_vm0, %v2046_v61  ;;  %2559 = vst.msk [vmem:[%s10818_s6 + $0x330] sm:$0xff] %vm2072_vm0, %v2046_v61  ;;  %v3954_v51 = vpop.f32.mrb[92].mxu0  ;;  %v6873_v3 = vpop.eup %6872  ;;  %5864 = vmatmul.mubr.msk.f32.gmra.mrb[198].mxu0 %vm2072_vm0, %v2684_v18  ;;  %6892 = vlog2.f32 %v1643_v13  ;;  %v1645_v34 = vmul.f32 %v6871_v43, %v1282_v20  ;;  %v2685_v52 = vld [vmem:[#allocation2 + $0x320] sm:$0xff]  ;;  %v261_v57 = vadd.f32 1.0, %v10039_v38  ;;  %v1285_v0 = vadd.f32 1.0, %v10053_v60 }
 0x1c4   :  { %5304 = vst [vmem:[#allocation3 + $0x2d8] sm:$0xff] %v3950_v25  ;;  %2176 = vst.msk [vmem:[#allocation2 + $0x338] sm:$0xff] %vm2072_vm0, %v1023_v8  ;;  %v3956_v6 = vpop.f32.mrb[93].mxu0  ;;  %v6875_v33 = vpop.eup %6874  ;;  %4276 = vmatprep.mubr.f32.mxu0 %v7100_v11  ;;  %6894 = vlog2.f32 %v621_v9  ;;  %v623_v16 = vmul.f32 %v6873_v3, %v259_v39  ;;  %v10148_v36 = vld [vmem:[%s10813_s1 + $0x370] sm:$0xff]  ;;  %v10153_v28 = vld [vmem:[%s10812_s0 + $0x378] sm:$0xff]  ;;  %v262_v60 = vadd.f32 1.0, %v10066_v54 }
 0x1c5   :  { %2432 = vst.msk [vmem:[%s10817_s5 + $0x338] sm:$0xff] %vm2072_vm0, %v1023_v8  ;;  %5559 = vst [vmem:[#allocation5 + $0x2d0] sm:$0xff] %v4716_v44  ;;  %v4722_v53 = vpop.f32.mrb[92].mxu1  ;;  %v6877_v40 = vpop.eup %6876  ;;  %5992 = vmatmul.mubr.msk.f32.gmra.mrb[198].mxu1 %vm2072_vm0, %v2812_v50  ;;  %6896 = vlog2.f32 %v1645_v34  ;;  %v1647_v21 = vmul.f32 %v6875_v33, %v1283_v62  ;;  %v2813_v31 = vld [vmem:[#allocation2 + $0x720] sm:$0xff]  ;;  %v10160_v1 = vld [vmem:[%s10813_s1 + $0x378] sm:$0xff]  ;;  %v1414_v59 = vsub.f32 1.0, %v10148_v36 }
 0x1c6   :  { %2304 = vst.msk [vmem:[#allocation2 + $0x738] sm:$0xff] %vm2072_vm0, %v2047_v5  ;;  %2560 = vst.msk [vmem:[%s10818_s6 + $0x338] sm:$0xff] %vm2072_vm0, %v2047_v5  ;;  %v4724_v56 = vpop.f32.mrb[93].mxu1  ;;  %v6879_v38 = vpop.eup %6878  ;;  %5044 = vmatprep.mubr.f32.mxu1 %v7100_v11  ;;  %6898 = vlog2.f32 %v623_v16  ;;  %v625_v19 = vmul.f32 %v6877_v40, %v260_v35  ;;  %v10165_v14 = vld [vmem:[%s10812_s0 + $0x380] sm:$0xff]  ;;  %v2686_v30 = vld [vmem:[#allocation2 + $0x328] sm:$0xff]  ;;  %v391_v32 = vsub.f32 1.0, %v10153_v28 }
 0x1c7   :  { %5560 = vst [vmem:[#allocation5 + $0x2d8] sm:$0xff] %v4718_v47  ;;  %5305 = vst [vmem:[#allocation3 + $0x2e0] sm:$0xff] %v3954_v51  ;;  %v3960_v2 = vpop.f32.mrb[94].mxu0  ;;  %v6881_v42 = vpop.eup %6880  ;;  %5865 = vmatmul.mubr.msk.f32.gmra.mrb[200].mxu0 %vm2072_vm0, %v2685_v52  ;;  %6900 = vlog2.f32 %v1647_v21  ;;  %v1649_v48 = vmul.f32 %v6879_v38, %v1284_v26  ;;  %v10171_v54 = vld [vmem:[%s10813_s1 + $0x380] sm:$0xff]  ;;  %v10179_v12 = vld [vmem:[%s10812_s0 + $0x388] sm:$0xff]  ;;  %v1415_v23 = vsub.f32 1.0, %v10160_v1 }
 0x1c8   :  { %5306 = vst [vmem:[#allocation3 + $0x2e8] sm:$0xff] %v3956_v6  ;;  %5561 = vst [vmem:[#allocation5 + $0x2e0] sm:$0xff] %v4722_v53  ;;  %v3962_v55 = vpop.f32.mrb[95].mxu0  ;;  %v6883_v17 = vpop.eup %6882  ;;  %4282 = vmatprep.mubr.f32.mxu0 %v7100_v11  ;;  %6902 = vlog2.f32 %v625_v19  ;;  %v627_v24 = vmul.f32 %v6881_v42, %v261_v57  ;;  %v10184_v22 = vld [vmem:[%s10813_s1 + $0x388] sm:$0xff]  ;;  %v392_v58 = vsub.f32 1.0, %v10165_v14  ;;  %v10191_v27 = vadd.f32 1.0, %v10148_v36 }
 0x1c9   :  { %5562 = vst [vmem:[#allocation5 + $0x2e8] sm:$0xff] %v4724_v56  ;;  %5307 = vst [vmem:[#allocation3 + $0x2f0] sm:$0xff] %v3960_v2  ;;  %v4728_v7 = vpop.f32.mrb[94].mxu1  ;;  %v6885_v15 = vpop.eup %6884  ;;  %5993 = vmatmul.mubr.msk.f32.gmra.mrb[200].mxu1 %vm2072_vm0, %v2813_v31  ;;  %6904 = vlog2.f32 %v1649_v48  ;;  %v1651_v37 = vmul.f32 %v6883_v17, %v1285_v0  ;;  %v2814_v8 = vld [vmem:[#allocation2 + $0x728] sm:$0xff]  ;;  %v1416_v63 = vsub.f32 1.0, %v10171_v54  ;;  %v10197_v25 = vld [vmem:[%s10812_s0 + $0x390] sm:$0xff] }
 0x1ca   :  { %5308 = vst [vmem:[#allocation3 + $0x2f8] sm:$0xff] %v3962_v55  ;;  %5563 = vst [vmem:[#allocation5 + $0x2f0] sm:$0xff] %v4728_v7  ;;  %v4730_v61 = vpop.f32.mrb[95].mxu1  ;;  %v6887_v46 = vpop.eup %6886  ;;  %5050 = vmatprep.mubr.f32.mxu1 %v7100_v11  ;;  %6906 = vlog2.f32 %v627_v24  ;;  %v629_v10 = vmul.f32 %v6885_v15, %v262_v60  ;;  %v393_v45 = vsub.f32 1.0, %v10179_v12  ;;  %v1417_v44 = vsub.f32 1.0, %v10184_v22  ;;  %v2687_v39 = vld [vmem:[#allocation2 + $0x330] sm:$0xff] }
 0x1cb   :  { %5564 = vst [vmem:[#allocation5 + $0x2f8] sm:$0xff] %v4730_v61  ;;  %v3966_v49 = vpop.f32.mrb[96].mxu0  ;;  %v6889_v5 = vpop.eup %6888  ;;  %5866 = vmatmul.mubr.msk.f32.gmra.mrb[202].mxu0 %vm2072_vm0, %v2686_v30  ;;  %v873_v20 = vmul.f32 0.6931472, %v6887_v46  ;;  %6908 = vlog2.f32 %v1651_v37  ;;  %v10204_v47 = vadd.f32 1.0, %v10153_v28  ;;  %v10209_v13 = vld [vmem:[%s10813_s1 + $0x390] sm:$0xff] }
 0x1cc   :  { %5309 = vst [vmem:[#allocation3 + $0x300] sm:$0xff] %v3966_v49  ;;  %v3968_v4 = vpop.f32.mrb[97].mxu0  ;;  %v6891_v18 = vpop.eup %6890  ;;  %4288 = vmatprep.mubr.f32.mxu0 %v7100_v11  ;;  %v1897_v29 = vmul.f32 0.6931472, %v6889_v5  ;;  %6910 = vlog2.f32 %v629_v10  ;;  %v394_v9 = vsub.f32 1.0, %v10197_v25  ;;  %v2815_v6 = vld [vmem:[#allocation2 + $0x730] sm:$0xff] }
 0x1cd   :  { %v4734_v41 = vpop.f32.mrb[96].mxu1  ;;  %5310 = vst [vmem:[#allocation3 + $0x308] sm:$0xff] %v3968_v4  ;;  %v6893_v62 = vpop.eup %6892  ;;  %5994 = vmatmul.mubr.msk.f32.gmra.mrb[202].mxu1 %vm2072_vm0, %v2814_v8  ;;  %v1024_v51 = vmul.f32 0.5, %v873_v20  ;;  %v875_v50 = vmul.f32 0.6931472, %v6891_v18  ;;  %6912 = vrcp.f32 %v1414_v59  ;;  %v10217_v33 = vld [vmem:[%s10812_s0 + $0x398] sm:$0xff] }
 0x1ce   :  { %5565 = vst [vmem:[#allocation5 + $0x300] sm:$0xff] %v4734_v41  ;;  %v4736_v43 = vpop.f32.mrb[97].mxu1  ;;  %v6895_v35 = vpop.eup %6894  ;;  %5056 = vmatprep.mubr.f32.mxu1 %v7100_v11  ;;  %v2048_v34 = vmul.f32 0.5, %v1897_v29  ;;  %v1899_v26 = vmul.f32 0.6931472, %v6893_v62  ;;  %6914 = vrcp.f32 %v391_v32  ;;  %v1418_v40 = vsub.f32 1.0, %v10209_v13 }
 0x1cf   :  { %5566 = vst [vmem:[#allocation5 + $0x308] sm:$0xff] %v4736_v43  ;;  %v3972_v3 = vpop.f32.mrb[98].mxu0  ;;  %v6897_v53 = vpop.eup %6896  ;;  %5867 = vmatmul.mubr.msk.f32.gmra.mrb[204].mxu0 %vm2072_vm0, %v2687_v39  ;;  %2177 = vst.msk [vmem:[#allocation2 + $0x340] sm:$0xff] %vm2072_vm0, %v1024_v51  ;;  %v1025_v16 = vmul.f32 0.5, %v875_v50  ;;  %v877_v57 = vmul.f32 0.6931472, %v6895_v35  ;;  %6916 = vrcp.f32 %v1415_v23 }
 0x1d0   :  { %5311 = vst [vmem:[#allocation3 + $0x310] sm:$0xff] %v3972_v3  ;;  %v3974_v52 = vpop.f32.mrb[99].mxu0  ;;  %2433 = vst.msk [vmem:[%s10817_s5 + $0x340] sm:$0xff] %vm2072_vm0, %v1024_v51  ;;  %v6899_v56 = vpop.eup %6898  ;;  %4294 = vmatprep.mubr.f32.mxu0 %v7100_v11  ;;  %v2688_v0 = vld [vmem:[#allocation2 + $0x338] sm:$0xff]  ;;  %v2049_v36 = vmul.f32 0.5, %v1899_v26  ;;  %6918 = vrcp.f32 %v392_v58  ;;  %v395_v42 = vsub.f32 1.0, %v10217_v33 }
 0x1d1   :  { %v4740_v21 = vpop.f32.mrb[98].mxu1  ;;  %5312 = vst [vmem:[#allocation3 + $0x318] sm:$0xff] %v3974_v52  ;;  %2305 = vst.msk [vmem:[#allocation2 + $0x740] sm:$0xff] %vm2072_vm0, %v2048_v34  ;;  %v1901_v28 = vmul.f32 0.6931472, %v6897_v53  ;;  %v10237_v38 = vld [vmem:[%s10813_s1 + $0x398] sm:$0xff]  ;;  %v6901_v2 = vpop.eup %6900  ;;  %5995 = vmatmul.mubr.msk.f32.gmra.mrb[204].mxu1 %vm2072_vm0, %v2815_v6  ;;  %6920 = vrcp.f32 %v1416_v63 }
 0x1d2   :  { %2561 = vst.msk [vmem:[%s10818_s6 + $0x340] sm:$0xff] %vm2072_vm0, %v2048_v34  ;;  %5567 = vst [vmem:[#allocation5 + $0x310] sm:$0xff] %v4740_v21  ;;  %v4742_v31 = vpop.f32.mrb[99].mxu1  ;;  %v1026_v19 = vmul.f32 0.5, %v877_v57  ;;  %v879_v60 = vmul.f32 0.6931472, %v6899_v56  ;;  %v6903_v48 = vpop.eup %6902  ;;  %5062 = vmatprep.mubr.f32.mxu1 %v7100_v11  ;;  %6922 = vrcp.f32 %v393_v45 }
 0x1d3   :  { %2178 = vst.msk [vmem:[#allocation2 + $0x348] sm:$0xff] %vm2072_vm0, %v1025_v16  ;;  %2434 = vst.msk [vmem:[%s10817_s5 + $0x348] sm:$0xff] %vm2072_vm0, %v1025_v16  ;;  %v10251_v55 = vld [vmem:[%s10812_s0 + $0x3a0] sm:$0xff]  ;;  %v3978_v17 = vpop.f32.mrb[100].mxu0  ;;  %v2816_v7 = vld [vmem:[#allocation2 + $0x738] sm:$0xff]  ;;  %v2050_v30 = vmul.f32 0.5, %v1901_v28  ;;  %v6905_v32 = vpop.eup %6904  ;;  %5868 = vmatmul.mubr.msk.f32.gmra.mrb[206].mxu0 %vm2072_vm0, %v2688_v0  ;;  %6924 = vrcp.f32 %v1417_v44 }
 0x1d4   :  { %5568 = vst [vmem:[#allocation5 + $0x318] sm:$0xff] %v4742_v31  ;;  %2306 = vst.msk [vmem:[#allocation2 + $0x748] sm:$0xff] %vm2072_vm0, %v2049_v36  ;;  %v1903_v24 = vmul.f32 0.6931472, %v6901_v2  ;;  %v10264_v59 = vld [vmem:[%s10813_s1 + $0x3a0] sm:$0xff]  ;;  %v3980_v15 = vpop.f32.mrb[101].mxu0  ;;  %v6907_v58 = vpop.eup %6906  ;;  %4300 = vmatprep.mubr.f32.mxu0 %v7100_v11  ;;  %6926 = vrcp.f32 %v394_v9 }
 0x1d5   :  { %2562 = vst.msk [vmem:[%s10818_s6 + $0x348] sm:$0xff] %vm2072_vm0, %v2049_v36  ;;  %5313 = vst [vmem:[#allocation3 + $0x320] sm:$0xff] %v3978_v17  ;;  %v1027_v61 = vmul.f32 0.5, %v879_v60  ;;  %v881_v37 = vmul.f32 0.6931472, %v6903_v48  ;;  %v1419_v23 = vsub.f32 1.0, %v10237_v38  ;;  %v6909_v63 = vpop.eup %6908  ;;  %5996 = vmatmul.mubr.msk.f32.gmra.mrb[206].mxu1 %vm2072_vm0, %v2816_v7  ;;  %6928 = vrcp.f32 %v1418_v40 }
 0x1d6   :  { %2179 = vst.msk [vmem:[#allocation2 + $0x350] sm:$0xff] %vm2072_vm0, %v1026_v19  ;;  %2435 = vst.msk [vmem:[%s10817_s5 + $0x350] sm:$0xff] %vm2072_vm0, %v1026_v19  ;;  %v4746_v46 = vpop.f32.mrb[100].mxu1  ;;  %v2051_v49 = vmul.f32 0.5, %v1903_v24  ;;  %v1905_v8 = vmul.f32 0.6931472, %v6905_v32  ;;  %v6911_v44 = vpop.eup %6910  ;;  %5068 = vmatprep.mubr.f32.mxu1 %v7100_v11  ;;  %6930 = vrcp.f32 %v395_v42 }
 0x1d7   :  { %5314 = vst [vmem:[#allocation3 + $0x328] sm:$0xff] %v3980_v15  ;;  %2307 = vst.msk [vmem:[#allocation2 + $0x750] sm:$0xff] %vm2072_vm0, %v2050_v30  ;;  %v396_v10 = vsub.f32 1.0, %v10251_v55  ;;  %v4748_v5 = vpop.f32.mrb[101].mxu1  ;;  %v1028_v4 = vmul.f32 0.5, %v881_v37  ;;  %v1420_v45 = vsub.f32 1.0, %v10264_v59  ;;  %v6913_v43 = vpop.eup %6912  ;;  %6932 = vrcp.f32 %v1419_v23 }
 0x1d8   :  { %2563 = vst.msk [vmem:[%s10818_s6 + $0x350] sm:$0xff] %vm2072_vm0, %v2050_v30  ;;  %5569 = vst [vmem:[#allocation5 + $0x320] sm:$0xff] %v4746_v46  ;;  %v883_v20 = vmul.f32 0.6931472, %v6907_v58  ;;  %v3984_v18 = vpop.f32.mrb[102].mxu0  ;;  %v2689_v41 = vld [vmem:[#allocation2 + $0x340] sm:$0xff]  ;;  %v1653_v53 = vmul.f32 %v6913_v43, %v10191_v27 }
 0x1d9   :  { %2180 = vst.msk [vmem:[#allocation2 + $0x358] sm:$0xff] %vm2072_vm0, %v1027_v61  ;;  %2436 = vst.msk [vmem:[%s10817_s5 + $0x358] sm:$0xff] %vm2072_vm0, %v1027_v61  ;;  %v2052_v39 = vmul.f32 0.5, %v1905_v8  ;;  %v1907_v29 = vmul.f32 0.6931472, %v6909_v63  ;;  %v1287_v62 = vadd.f32 1.0, %v10160_v1  ;;  %5869 = vmatmul.mubr.msk.f32.gmra.mrb[208].mxu0 %vm2072_vm0, %v2689_v41  ;;  %v6915_v1 = vpop.eup %6914  ;;  %6934 = vrcp.f32 %v396_v10 }
 0x1da   :  { %5570 = vst [vmem:[#allocation5 + $0x328] sm:$0xff] %v4748_v5  ;;  %2308 = vst.msk [vmem:[#allocation2 + $0x758] sm:$0xff] %vm2072_vm0, %v2051_v49  ;;  %v3986_v51 = vpop.f32.mrb[103].mxu0  ;;  %v2817_v50 = vld [vmem:[#allocation2 + $0x740] sm:$0xff]  ;;  %v1029_v9 = vmul.f32 0.5, %v883_v20  ;;  %v264_v3 = vadd.f32 1.0, %v10165_v14  ;;  %4306 = vmatprep.mubr.f32.mxu0 %v7100_v11  ;;  %v6917_v14 = vpop.eup %6916  ;;  %v631_v40 = vmul.f32 %v6915_v1, %v10204_v47  ;;  %6936 = vrcp.f32 %v1420_v45 }
 0x1db   :  { %2564 = vst.msk [vmem:[%s10818_s6 + $0x358] sm:$0xff] %vm2072_vm0, %v2051_v49  ;;  %5315 = vst [vmem:[#allocation3 + $0x330] sm:$0xff] %v3984_v18  ;;  %v885_v35 = vmul.f32 0.6931472, %v6911_v44  ;;  %v4752_v6 = vpop.f32.mrb[102].mxu1  ;;  %v2690_v34 = vld [vmem:[#allocation2 + $0x348] sm:$0xff]  ;;  %5997 = vmatmul.mubr.msk.f32.gmra.mrb[208].mxu1 %vm2072_vm0, %v2817_v50  ;;  %6938 = vlog2.f32 %v1653_v53  ;;  %v1655_v0 = vmul.f32 %v6917_v14, %v1287_v62 }
 0x1dc   :  { %2181 = vst.msk [vmem:[#allocation2 + $0x360] sm:$0xff] %vm2072_vm0, %v1028_v4  ;;  %2437 = vst.msk [vmem:[%s10817_s5 + $0x360] sm:$0xff] %vm2072_vm0, %v1028_v4  ;;  %v2053_v26 = vmul.f32 0.5, %v1907_v29  ;;  %v1288_v52 = vadd.f32 1.0, %v10171_v54  ;;  %v4754_v16 = vpop.f32.mrb[103].mxu1  ;;  %v265_v27 = vadd.f32 1.0, %v10179_v12  ;;  %v6919_v54 = vpop.eup %6918  ;;  %5074 = vmatprep.mubr.f32.mxu1 %v7100_v11  ;;  %6940 = vlog2.f32 %v631_v40 }
 0x1dd   :  { %5316 = vst [vmem:[#allocation3 + $0x338] sm:$0xff] %v3986_v51  ;;  %2309 = vst.msk [vmem:[#allocation2 + $0x760] sm:$0xff] %vm2072_vm0, %v2052_v39  ;;  %v1030_v57 = vmul.f32 0.5, %v885_v35  ;;  %v3990_v56 = vpop.f32.mrb[104].mxu0  ;;  %v2818_v21 = vld [vmem:[#allocation2 + $0x748] sm:$0xff]  ;;  %v1289_v47 = vadd.f32 1.0, %v10184_v22  ;;  %v6921_v36 = vpop.eup %6920  ;;  %5870 = vmatmul.mubr.msk.f32.gmra.mrb[210].mxu0 %vm2072_vm0, %v2690_v34  ;;  %v633_v28 = vmul.f32 %v6919_v54, %v264_v3  ;;  %6942 = vlog2.f32 %v1655_v0 }
 0x1de   :  { %2565 = vst.msk [vmem:[%s10818_s6 + $0x360] sm:$0xff] %vm2072_vm0, %v2052_v39  ;;  %5571 = vst [vmem:[#allocation5 + $0x330] sm:$0xff] %v4752_v6  ;;  %v3992_v12 = vpop.f32.mrb[105].mxu0  ;;  %v266_v2 = vadd.f32 1.0, %v10197_v25  ;;  %v6923_v31 = vpop.eup %6922  ;;  %4312 = vmatprep.mubr.f32.mxu0 %v7100_v11  ;;  %v2691_v22 = vld [vmem:[#allocation2 + $0x350] sm:$0xff]  ;;  %v1657_v60 = vmul.f32 %v6921_v36, %v1288_v52  ;;  %v1290_v42 = vadd.f32 1.0, %v10209_v13 }
 0x1df   :  { %2182 = vst.msk [vmem:[#allocation2 + $0x368] sm:$0xff] %vm2072_vm0, %v1029_v9  ;;  %2438 = vst.msk [vmem:[%s10817_s5 + $0x368] sm:$0xff] %vm2072_vm0, %v1029_v9  ;;  %v4758_v19 = vpop.f32.mrb[104].mxu1  ;;  %v6925_v48 = vpop.eup %6924  ;;  %5998 = vmatmul.mubr.msk.f32.gmra.mrb[210].mxu1 %vm2072_vm0, %v2818_v21  ;;  %6944 = vlog2.f32 %v633_v28  ;;  %v635_v7 = vmul.f32 %v6923_v31, %v265_v27  ;;  %v267_v30 = vadd.f32 1.0, %v10217_v33  ;;  %v2819_v32 = vld [vmem:[#allocation2 + $0x750] sm:$0xff]  ;;  %v1291_v61 = vadd.f32 1.0, %v10237_v38 }
 0x1e0   :  { %5572 = vst [vmem:[#allocation5 + $0x338] sm:$0xff] %v4754_v16  ;;  %2310 = vst.msk [vmem:[#allocation2 + $0x768] sm:$0xff] %vm2072_vm0, %v2053_v26  ;;  %v4760_v17 = vpop.f32.mrb[105].mxu1  ;;  %v6927_v25 = vpop.eup %6926  ;;  %5080 = vmatprep.mubr.f32.mxu1 %v7100_v11  ;;  %6946 = vlog2.f32 %v1657_v60  ;;  %v1659_v15 = vmul.f32 %v6925_v48, %v1289_v47  ;;  %v268_v58 = vadd.f32 1.0, %v10251_v55  ;;  %v10346_v33 = vld [vmem:[%s10812_s0 + $0x3a8] sm:$0xff]  ;;  %v2692_v8 = vld [vmem:[#allocation2 + $0x358] sm:$0xff] }
 0x1e1   :  { %2566 = vst.msk [vmem:[%s10818_s6 + $0x368] sm:$0xff] %vm2072_vm0, %v2053_v26  ;;  %5317 = vst [vmem:[#allocation3 + $0x340] sm:$0xff] %v3990_v56  ;;  %v3996_v24 = vpop.f32.mrb[106].mxu0  ;;  %v6929_v13 = vpop.eup %6928  ;;  %5871 = vmatmul.mubr.msk.f32.gmra.mrb[212].mxu0 %vm2072_vm0, %v2691_v22  ;;  %6948 = vlog2.f32 %v635_v7  ;;  %v637_v23 = vmul.f32 %v6927_v25, %v266_v2  ;;  %v10351_v46 = vld [vmem:[%s10813_s1 + $0x3a8] sm:$0xff]  ;;  %v1292_v55 = vadd.f32 1.0, %v10264_v59  ;;  %v10358_v63 = vld [vmem:[%s10812_s0 + $0x3b0] sm:$0xff] }
 0x1e2   :  { %2183 = vst.msk [vmem:[#allocation2 + $0x370] sm:$0xff] %vm2072_vm0, %v1030_v57  ;;  %2439 = vst.msk [vmem:[%s10817_s5 + $0x370] sm:$0xff] %vm2072_vm0, %v1030_v57  ;;  %v3998_v37 = vpop.f32.mrb[107].mxu0  ;;  %v6931_v38 = vpop.eup %6930  ;;  %4318 = vmatprep.mubr.f32.mxu0 %v7100_v11  ;;  %6950 = vlog2.f32 %v1659_v15  ;;  %v1661_v10 = vmul.f32 %v6929_v13, %v1290_v42  ;;  %v10363_v5 = vld [vmem:[%s10813_s1 + $0x3b0] sm:$0xff]  ;;  %v10369_v59 = vld [vmem:[%s10812_s0 + $0x3b8] sm:$0xff]  ;;  %v397_v29 = vsub.f32 1.0, %v10346_v33 }
 0x1e3   :  { %5318 = vst [vmem:[#allocation3 + $0x348] sm:$0xff] %v3992_v12  ;;  %5573 = vst [vmem:[#allocation5 + $0x340] sm:$0xff] %v4758_v19  ;;  %v4764_v49 = vpop.f32.mrb[106].mxu1  ;;  %v6933_v4 = vpop.eup %6932  ;;  %5999 = vmatmul.mubr.msk.f32.gmra.mrb[212].mxu1 %vm2072_vm0, %v2819_v32  ;;  %6952 = vlog2.f32 %v637_v23  ;;  %v639_v45 = vmul.f32 %v6931_v38, %v267_v30  ;;  %v2820_v41 = vld [vmem:[#allocation2 + $0x758] sm:$0xff]  ;;  %v1421_v62 = vsub.f32 1.0, %v10351_v46  ;;  %v398_v35 = vsub.f32 1.0, %v10358_v63 }
 0x1e4   :  { %5574 = vst [vmem:[#allocation5 + $0x348] sm:$0xff] %v4760_v17  ;;  %5319 = vst [vmem:[#allocation3 + $0x350] sm:$0xff] %v3996_v24  ;;  %v4766_v20 = vpop.f32.mrb[107].mxu1  ;;  %v6935_v44 = vpop.eup %6934  ;;  %5086 = vmatprep.mubr.f32.mxu1 %v7100_v11  ;;  %6954 = vlog2.f32 %v1661_v10  ;;  %v1663_v39 = vmul.f32 %v6933_v4, %v1291_v61  ;;  %v10377_v43 = vld [vmem:[%s10813_s1 + $0x3b8] sm:$0xff]  ;;  %v1422_v3 = vsub.f32 1.0, %v10363_v5  ;;  %v10385_v1 = vld [vmem:[%s10812_s0 + $0x3c0] sm:$0xff] }
 0x1e5   :  { %5320 = vst [vmem:[#allocation3 + $0x358] sm:$0xff] %v3998_v37  ;;  %5575 = vst [vmem:[#allocation5 + $0x350] sm:$0xff] %v4764_v49  ;;  %v4002_v18 = vpop.f32.mrb[108].mxu0  ;;  %v6937_v51 = vpop.eup %6936  ;;  %5872 = vmatmul.mubr.msk.f32.gmra.mrb[214].mxu0 %vm2072_vm0, %v2692_v8  ;;  %6956 = vlog2.f32 %v639_v45  ;;  %v641_v9 = vmul.f32 %v6935_v44, %v268_v58  ;;  %v2693_v26 = vld [vmem:[#allocation2 + $0x360] sm:$0xff]  ;;  %v10389_v52 = vadd.f32 1.0, %v10346_v33  ;;  %v399_v14 = vsub.f32 1.0, %v10369_v59 }
 0x1e6   :  { %5576 = vst [vmem:[#allocation5 + $0x358] sm:$0xff] %v4766_v20  ;;  %5321 = vst [vmem:[#allocation3 + $0x360] sm:$0xff] %v4002_v18  ;;  %v4004_v50 = vpop.f32.mrb[109].mxu0  ;;  %v6939_v6 = vpop.eup %6938  ;;  %4324 = vmatprep.mubr.f32.mxu0 %v7100_v11  ;;  %6958 = vlog2.f32 %v1663_v39  ;;  %v1665_v53 = vmul.f32 %v6937_v51, %v1292_v55  ;;  %v10395_v16 = vld [vmem:[%s10813_s1 + $0x3c0] sm:$0xff]  ;;  %v10399_v54 = vadd.f32 1.0, %v10351_v46  ;;  %v1423_v56 = vsub.f32 1.0, %v10377_v43 }
 0x1e7   :  { %v4770_v34 = vpop.f32.mrb[108].mxu1  ;;  %5322 = vst [vmem:[#allocation3 + $0x368] sm:$0xff] %v4004_v50  ;;  %v6941_v57 = vpop.eup %6940  ;;  %6000 = vmatmul.mubr.msk.f32.gmra.mrb[214].mxu1 %vm2072_vm0, %v2820_v41  ;;  %v1909_v27 = vmul.f32 0.6931472, %v6939_v6  ;;  %6960 = vlog2.f32 %v641_v9  ;;  %v2821_v47 = vld [vmem:[#allocation2 + $0x760] sm:$0xff]  ;;  %v400_v12 = vsub.f32 1.0, %v10385_v1 }
 0x1e8   :  { %5577 = vst [vmem:[#allocation5 + $0x360] sm:$0xff] %v4770_v34  ;;  %v4772_v40 = vpop.f32.mrb[109].mxu1  ;;  %v6943_v21 = vpop.eup %6942  ;;  %5092 = vmatprep.mubr.f32.mxu1 %v7100_v11  ;;  %v887_v36 = vmul.f32 0.6931472, %v6941_v57  ;;  %6962 = vlog2.f32 %v1665_v53  ;;  %v10407_v28 = vld [vmem:[%s10812_s0 + $0x3c8] sm:$0xff]  ;;  %v1424_v60 = vsub.f32 1.0, %v10395_v16 }
 0x1e9   :  { %5578 = vst [vmem:[#allocation5 + $0x368] sm:$0xff] %v4772_v40  ;;  %v4008_v0 = vpop.f32.mrb[110].mxu0  ;;  %v6945_v2 = vpop.eup %6944  ;;  %5873 = vmatmul.mubr.msk.f32.gmra.mrb[216].mxu0 %vm2072_vm0, %v2693_v26  ;;  %v2054_v19 = vmul.f32 0.5, %v1909_v27  ;;  %v1911_v22 = vmul.f32 0.6931472, %v6943_v21  ;;  %6964 = vrcp.f32 %v397_v29  ;;  %v2694_v17 = vld [vmem:[#allocation2 + $0x368] sm:$0xff] }
 0x1ea   :  { %5323 = vst [vmem:[#allocation3 + $0x370] sm:$0xff] %v4008_v0  ;;  %v4010_v31 = vpop.f32.mrb[111].mxu0  ;;  %v6947_v42 = vpop.eup %6946  ;;  %4330 = vmatprep.mubr.f32.mxu0 %v7100_v11  ;;  %v1031_v7 = vmul.f32 0.5, %v887_v36  ;;  %v889_v30 = vmul.f32 0.6931472, %v6945_v2  ;;  %6966 = vrcp.f32 %v1421_v62  ;;  %v10415_v25 = vld [vmem:[%s10813_s1 + $0x3c8] sm:$0xff] }
 0x1eb   :  { %v4776_v48 = vpop.f32.mrb[110].mxu1  ;;  %5324 = vst [vmem:[#allocation3 + $0x378] sm:$0xff] %v4010_v31  ;;  %v6949_v24 = vpop.eup %6948  ;;  %6001 = vmatmul.mubr.msk.f32.gmra.mrb[216].mxu1 %vm2072_vm0, %v2821_v47  ;;  %2311 = vst.msk [vmem:[#allocation2 + $0x770] sm:$0xff] %vm2072_vm0, %v2054_v19  ;;  %v2055_v15 = vmul.f32 0.5, %v1911_v22  ;;  %v1913_v61 = vmul.f32 0.6931472, %v6947_v42  ;;  %6968 = vrcp.f32 %v398_v35 }
 0x1ec   :  { %5579 = vst [vmem:[#allocation5 + $0x370] sm:$0xff] %v4776_v48  ;;  %v4778_v32 = vpop.f32.mrb[111].mxu1  ;;  %2567 = vst.msk [vmem:[%s10818_s6 + $0x370] sm:$0xff] %vm2072_vm0, %v2054_v19  ;;  %v401_v13 = vsub.f32 1.0, %v10407_v28  ;;  %v6951_v37 = vpop.eup %6950  ;;  %5098 = vmatprep.mubr.f32.mxu1 %v7100_v11  ;;  %v2822_v58 = vld [vmem:[#allocation2 + $0x768] sm:$0xff]  ;;  %v1032_v33 = vmul.f32 0.5, %v889_v30  ;;  %6970 = vrcp.f32 %v1422_v3 }
 0x1ed   :  { %5580 = vst [vmem:[#allocation5 + $0x378] sm:$0xff] %v4778_v32  ;;  %v4014_v23 = vpop.f32.mrb[112].mxu0  ;;  %2184 = vst.msk [vmem:[#allocation2 + $0x378] sm:$0xff] %vm2072_vm0, %v1031_v7  ;;  %v891_v46 = vmul.f32 0.6931472, %v6949_v24  ;;  %v10435_v38 = vld [vmem:[%s10812_s0 + $0x3d0] sm:$0xff]  ;;  %v6953_v49 = vpop.eup %6952  ;;  %5874 = vmatmul.mubr.msk.f32.gmra.mrb[218].mxu0 %vm2072_vm0, %v2694_v17  ;;  %6972 = vrcp.f32 %v399_v14 }
 0x1ee   :  { %2440 = vst.msk [vmem:[%s10817_s5 + $0x378] sm:$0xff] %vm2072_vm0, %v1031_v7  ;;  %5325 = vst [vmem:[#allocation3 + $0x380] sm:$0xff] %v4014_v23  ;;  %v4016_v8 = vpop.f32.mrb[113].mxu0  ;;  %v2056_v10 = vmul.f32 0.5, %v1913_v61  ;;  %v1915_v55 = vmul.f32 0.6931472, %v6951_v37  ;;  %v6955_v45 = vpop.eup %6954  ;;  %4336 = vmatprep.mubr.f32.mxu0 %v7100_v11  ;;  %6974 = vrcp.f32 %v1423_v56 }
 0x1ef   :  { %2312 = vst.msk [vmem:[#allocation2 + $0x778] sm:$0xff] %vm2072_vm0, %v2055_v15  ;;  %2568 = vst.msk [vmem:[%s10818_s6 + $0x378] sm:$0xff] %vm2072_vm0, %v2055_v15  ;;  %v1425_v4 = vsub.f32 1.0, %v10415_v25  ;;  %v10449_v20 = vld [vmem:[%s10813_s1 + $0x3d0] sm:$0xff]  ;;  %v4782_v44 = vpop.f32.mrb[112].mxu1  ;;  %v1033_v41 = vmul.f32 0.5, %v891_v46  ;;  %v6957_v62 = vpop.eup %6956  ;;  %6002 = vmatmul.mubr.msk.f32.gmra.mrb[218].mxu1 %vm2072_vm0, %v2822_v58  ;;  %6976 = vrcp.f32 %v400_v12 }
 0x1f0   :  { %5326 = vst [vmem:[#allocation3 + $0x388] sm:$0xff] %v4016_v8  ;;  %v2695_v18 = vld [vmem:[#allocation2 + $0x370] sm:$0xff]  ;;  %2185 = vst.msk [vmem:[#allocation2 + $0x380] sm:$0xff] %vm2072_vm0, %v1032_v33  ;;  %v893_v39 = vmul.f32 0.6931472, %v6953_v49  ;;  %v10462_v29 = vld [vmem:[%s10812_s0 + $0x3d8] sm:$0xff]  ;;  %v6959_v3 = vpop.eup %6958  ;;  %5104 = vmatprep.mubr.f32.mxu1 %v7100_v11  ;;  %6978 = vrcp.f32 %v1424_v60 }
 0x1f1   :  { %2441 = vst.msk [vmem:[%s10817_s5 + $0x380] sm:$0xff] %vm2072_vm0, %v1032_v33  ;;  %5581 = vst [vmem:[#allocation5 + $0x380] sm:$0xff] %v4782_v44  ;;  %v4784_v51 = vpop.f32.mrb[113].mxu1  ;;  %v2057_v50 = vmul.f32 0.5, %v1915_v55  ;;  %v1917_v9 = vmul.f32 0.6931472, %v6955_v45  ;;  %v6961_v14 = vpop.eup %6960  ;;  %5875 = vmatmul.mubr.msk.f32.gmra.mrb[220].mxu0 %vm2072_vm0, %v2695_v18  ;;  %6980 = vrcp.f32 %v401_v13 }
 0x1f2   :  { %2313 = vst.msk [vmem:[#allocation2 + $0x780] sm:$0xff] %vm2072_vm0, %v2056_v10  ;;  %2569 = vst.msk [vmem:[%s10818_s6 + $0x380] sm:$0xff] %vm2072_vm0, %v2056_v10  ;;  %v402_v35 = vsub.f32 1.0, %v10435_v38  ;;  %v4020_v6 = vpop.f32.mrb[114].mxu0  ;;  %v1034_v34 = vmul.f32 0.5, %v893_v39  ;;  %v1426_v53 = vsub.f32 1.0, %v10449_v20  ;;  %v6963_v21 = vpop.eup %6962  ;;  %4342 = vmatprep.mubr.f32.mxu0 %v7100_v11  ;;  %6982 = vrcp.f32 %v1425_v4 }
 0x1f3   :  { %5582 = vst [vmem:[#allocation5 + $0x388] sm:$0xff] %v4784_v51  ;;  %2186 = vst.msk [vmem:[#allocation2 + $0x388] sm:$0xff] %vm2072_vm0, %v1033_v41  ;;  %v895_v26 = vmul.f32 0.6931472, %v6957_v62  ;;  %v4022_v57 = vpop.f32.mrb[115].mxu0  ;;  %v2058_v40 = vmul.f32 0.5, %v1917_v9  ;;  %v6965_v31 = vpop.eup %6964 }
 0x1f4   :  { %2442 = vst.msk [vmem:[%s10817_s5 + $0x388] sm:$0xff] %vm2072_vm0, %v1033_v41  ;;  %5327 = vst [vmem:[#allocation3 + $0x390] sm:$0xff] %v4020_v6  ;;  %v1919_v27 = vmul.f32 0.6931472, %v6959_v3  ;;  %v403_v56 = vsub.f32 1.0, %v10462_v29  ;;  %v4788_v0 = vpop.f32.mrb[114].mxu1  ;;  %6984 = vrcp.f32 %v402_v35  ;;  %v643_v24 = vmul.f32 %v6965_v31, %v10389_v52 }
 0x1f5   :  { %2314 = vst.msk [vmem:[#allocation2 + $0x788] sm:$0xff] %vm2072_vm0, %v2057_v50  ;;  %2570 = vst.msk [vmem:[%s10818_s6 + $0x388] sm:$0xff] %vm2072_vm0, %v2057_v50  ;;  %v2823_v47 = vld [vmem:[#allocation2 + $0x770] sm:$0xff]  ;;  %v1035_v36 = vmul.f32 0.5, %v895_v26  ;;  %v897_v12 = vmul.f32 0.6931472, %v6961_v14  ;;  %6986 = vrcp.f32 %v1426_v53 }
 0x1f6   :  { %5328 = vst [vmem:[#allocation3 + $0x398] sm:$0xff] %v4022_v57  ;;  %2187 = vst.msk [vmem:[#allocation2 + $0x390] sm:$0xff] %vm2072_vm0, %v1034_v34  ;;  %v270_v2 = vadd.f32 1.0, %v10358_v63  ;;  %v4790_v19 = vpop.f32.mrb[115].mxu1  ;;  %6003 = vmatmul.mubr.msk.f32.gmra.mrb[220].mxu1 %vm2072_vm0, %v2823_v47  ;;  %v2696_v22 = vld [vmem:[#allocation2 + $0x378] sm:$0xff]  ;;  %v2059_v60 = vmul.f32 0.5, %v1919_v27  ;;  %v6967_v63 = vpop.eup %6966  ;;  %6988 = vrcp.f32 %v403_v56 }
 0x1f7   :  { %2443 = vst.msk [vmem:[%s10817_s5 + $0x390] sm:$0xff] %vm2072_vm0, %v1034_v34  ;;  %5583 = vst [vmem:[#allocation5 + $0x390] sm:$0xff] %v4788_v0  ;;  %v1921_v42 = vmul.f32 0.6931472, %v6963_v21  ;;  %v1294_v48 = vadd.f32 1.0, %v10363_v5  ;;  %v4026_v17 = vpop.f32.mrb[116].mxu0  ;;  %5110 = vmatprep.mubr.f32.mxu1 %v7100_v11  ;;  %v6969_v5 = vpop.eup %6968  ;;  %5876 = vmatmul.mubr.msk.f32.gmra.mrb[222].mxu0 %vm2072_vm0, %v2696_v22  ;;  %v1667_v13 = vmul.f32 %v6967_v63, %v10399_v54  ;;  %6990 = vlog2.f32 %v643_v24 }
 0x1f8   :  { %2315 = vst.msk [vmem:[#allocation2 + $0x790] sm:$0xff] %vm2072_vm0, %v2058_v40  ;;  %2571 = vst.msk [vmem:[%s10818_s6 + $0x390] sm:$0xff] %vm2072_vm0, %v2058_v40  ;;  %v2824_v7 = vld [vmem:[#allocation2 + $0x778] sm:$0xff]  ;;  %v1036_v30 = vmul.f32 0.5, %v897_v12  ;;  %v271_v32 = vadd.f32 1.0, %v10369_v59  ;;  %v4028_v15 = vpop.f32.mrb[117].mxu0  ;;  %v6971_v59 = vpop.eup %6970  ;;  %4348 = vmatprep.mubr.f32.mxu0 %v7100_v11  ;;  %v645_v58 = vmul.f32 %v6969_v5, %v270_v2 }
 0x1f9   :  { %5584 = vst [vmem:[#allocation5 + $0x398] sm:$0xff] %v4790_v19  ;;  %2188 = vst.msk [vmem:[#allocation2 + $0x398] sm:$0xff] %vm2072_vm0, %v1035_v36  ;;  %v2060_v61 = vmul.f32 0.5, %v1921_v42  ;;  %v1295_v52 = vadd.f32 1.0, %v10377_v43  ;;  %v4794_v37 = vpop.f32.mrb[116].mxu1  ;;  %v2697_v23 = vld [vmem:[#allocation2 + $0x380] sm:$0xff]  ;;  %v6973_v33 = vpop.eup %6972  ;;  %6992 = vlog2.f32 %v1667_v13  ;;  %v1669_v46 = vmul.f32 %v6971_v59, %v1294_v48 }
 0x1fa   :  { %2444 = vst.msk [vmem:[%s10817_s5 + $0x398] sm:$0xff] %vm2072_vm0, %v1035_v36  ;;  %5329 = vst [vmem:[#allocation3 + $0x3a0] sm:$0xff] %v4026_v17  ;;  %v272_v54 = vadd.f32 1.0, %v10385_v1  ;;  %v4796_v43 = vpop.f32.mrb[117].mxu1  ;;  %6004 = vmatmul.mubr.msk.f32.gmra.mrb[222].mxu1 %vm2072_vm0, %v2824_v7  ;;  %v1296_v49 = vadd.f32 1.0, %v10395_v16  ;;  %v6975_v8 = vpop.eup %6974  ;;  %v2825_v1 = vld [vmem:[#allocation2 + $0x780] sm:$0xff]  ;;  %6994 = vlog2.f32 %v645_v58  ;;  %v647_v55 = vmul.f32 %v6973_v33, %v271_v32 }
 0x1fb   :  { %2316 = vst.msk [vmem:[#allocation2 + $0x798] sm:$0xff] %vm2072_vm0, %v2059_v60  ;;  %2572 = vst.msk [vmem:[%s10818_s6 + $0x398] sm:$0xff] %vm2072_vm0, %v2059_v60  ;;  %v4032_v10 = vpop.f32.mrb[118].mxu0  ;;  %5116 = vmatprep.mubr.f32.mxu1 %v7100_v11  ;;  %v273_v4 = vadd.f32 1.0, %v10407_v28  ;;  %v6977_v45 = vpop.eup %6976  ;;  %5877 = vmatmul.mubr.msk.f32.gmra.mrb[224].mxu0 %vm2072_vm0, %v2697_v23  ;;  %6996 = vlog2.f32 %v1669_v46  ;;  %v1671_v18 = vmul.f32 %v6975_v8, %v1295_v52  ;;  %v1297_v41 = vadd.f32 1.0, %v10415_v25  ;;  %v2698_v62 = vld [vmem:[#allocation2 + $0x388] sm:$0xff] }
 0x1fc   :  { %5330 = vst [vmem:[#allocation3 + $0x3a8] sm:$0xff] %v4028_v15  ;;  %2189 = vst.msk [vmem:[#allocation2 + $0x3a0] sm:$0xff] %vm2072_vm0, %v1036_v30  ;;  %v4034_v44 = vpop.f32.mrb[119].mxu0  ;;  %v6979_v16 = vpop.eup %6978  ;;  %4354 = vmatprep.mubr.f32.mxu0 %v7100_v11  ;;  %6998 = vlog2.f32 %v647_v55  ;;  %v649_v51 = vmul.f32 %v6977_v45, %v272_v54  ;;  %v274_v50 = vadd.f32 1.0, %v10435_v38  ;;  %v1298_v3 = vadd.f32 1.0, %v10449_v20  ;;  %v2826_v34 = vld [vmem:[#allocation2 + $0x788] sm:$0xff] }
 0x1fd   :  { %2445 = vst.msk [vmem:[%s10817_s5 + $0x3a0] sm:$0xff] %vm2072_vm0, %v1036_v30  ;;  %5585 = vst [vmem:[#allocation5 + $0x3a0] sm:$0xff] %v4794_v37  ;;  %v4800_v39 = vpop.f32.mrb[118].mxu1  ;;  %v6981_v28 = vpop.eup %6980  ;;  %7000 = vlog2.f32 %v1671_v18  ;;  %v1673_v35 = vmul.f32 %v6979_v16, %v1296_v49  ;;  %v275_v53 = vadd.f32 1.0, %v10462_v29  ;;  %v10546_v38 = vld [vmem:[%s10813_s1 + $0x3d8] sm:$0xff]  ;;  %v10552_v40 = vld [vmem:[%s10812_s0 + $0x3e0] sm:$0xff] }
 0x1fe   :  { %2317 = vst.msk [vmem:[#allocation2 + $0x7a0] sm:$0xff] %vm2072_vm0, %v2060_v61  ;;  %2573 = vst.msk [vmem:[%s10818_s6 + $0x3a0] sm:$0xff] %vm2072_vm0, %v2060_v61  ;;  %v4802_v9 = vpop.f32.mrb[119].mxu1  ;;  %6005 = vmatmul.mubr.msk.f32.gmra.mrb[224].mxu1 %vm2072_vm0, %v2825_v1  ;;  %v6983_v25 = vpop.eup %6982  ;;  %7002 = vlog2.f32 %v649_v51  ;;  %v651_v26 = vmul.f32 %v6981_v28, %v273_v4  ;;  %v2699_v29 = vld [vmem:[#allocation2 + $0x390] sm:$0xff]  ;;  %v10558_v0 = vld [vmem:[%s10813_s1 + $0x3e0] sm:$0xff]  ;;  %v1427_v31 = vsub.f32 1.0, %v10546_v38 }
 0x1ff   :  { %5586 = vst [vmem:[#allocation5 + $0x3a8] sm:$0xff] %v4796_v43  ;;  %5331 = vst [vmem:[#allocation3 + $0x3b0] sm:$0xff] %v4032_v10  ;;  %v4038_v6 = vpop.f32.mrb[120].mxu0  ;;  %5122 = vmatprep.mubr.f32.mxu1 %v7100_v11  ;;  %v6985_v14 = vpop.eup %6984  ;;  %5878 = vmatmul.mubr.msk.f32.gmra.mrb[226].mxu0 %vm2072_vm0, %v2698_v62  ;;  %7004 = vlog2.f32 %v1673_v35  ;;  %v1675_v20 = vmul.f32 %v6983_v25, %v1297_v41  ;;  %v10563_v47 = vld [vmem:[%s10812_s0 + $0x3e8] sm:$0xff]  ;;  %v2827_v42 = vld [vmem:[#allocation2 + $0x790] sm:$0xff]  ;;  %v404_v63 = vsub.f32 1.0, %v10552_v40 }
 0x200   :  { %5332 = vst [vmem:[#allocation3 + $0x3b8] sm:$0xff] %v4034_v44  ;;  %5587 = vst [vmem:[#allocation5 + $0x3b0] sm:$0xff] %v4800_v39  ;;  %v4040_v57 = vpop.f32.mrb[121].mxu0  ;;  %v6987_v27 = vpop.eup %6986  ;;  %4360 = vmatprep.mubr.f32.mxu0 %v7100_v11  ;;  %7006 = vlog2.f32 %v651_v26  ;;  %v653_v21 = vmul.f32 %v6985_v14, %v274_v50  ;;  %v10570_v19 = vld [vmem:[%s10813_s1 + $0x3e8] sm:$0xff]  ;;  %v10577_v17 = vld [vmem:[%s10812_s0 + $0x3f0] sm:$0xff]  ;;  %v1428_v32 = vsub.f32 1.0, %v10558_v0 }
 0x201   :  { %5588 = vst [vmem:[#allocation5 + $0x3b8] sm:$0xff] %v4802_v9  ;;  %5333 = vst [vmem:[#allocation3 + $0x3c0] sm:$0xff] %v4038_v6  ;;  %v4806_v56 = vpop.f32.mrb[120].mxu1  ;;  %v6989_v36 = vpop.eup %6988  ;;  %7008 = vlog2.f32 %v1675_v20  ;;  %v1677_v2 = vmul.f32 %v6987_v27, %v1298_v3  ;;  %v405_v5 = vsub.f32 1.0, %v10563_v47  ;;  %v2700_v13 = vld [vmem:[#allocation2 + $0x398] sm:$0xff]  ;;  %v1429_v59 = vsub.f32 1.0, %v10570_v19 }
 0x202   :  { %5334 = vst [vmem:[#allocation3 + $0x3c8] sm:$0xff] %v4040_v57  ;;  %5589 = vst [vmem:[#allocation5 + $0x3c0] sm:$0xff] %v4806_v56  ;;  %v4808_v12 = vpop.f32.mrb[121].mxu1  ;;  %6006 = vmatmul.mubr.msk.f32.gmra.mrb[226].mxu1 %vm2072_vm0, %v2826_v34  ;;  %v6991_v22 = vpop.eup %6990  ;;  %7010 = vlog2.f32 %v653_v21  ;;  %v655_v48 = vmul.f32 %v6989_v36, %v275_v53  ;;  %v10587_v37 = vld [vmem:[%s10813_s1 + $0x3f0] sm:$0xff]  ;;  %v406_v43 = vsub.f32 1.0, %v10577_v17  ;;  %v10594_v46 = vld [vmem:[%s10812_s0 + $0x3f8] sm:$0xff] }
 0x203   :  { %5590 = vst [vmem:[#allocation5 + $0x3c8] sm:$0xff] %v4808_v12  ;;  %v4044_v60 = vpop.f32.mrb[122].mxu0  ;;  %5128 = vmatprep.mubr.f32.mxu1 %v7100_v11  ;;  %v6993_v7 = vpop.eup %6992  ;;  %5879 = vmatmul.mubr.msk.f32.gmra.mrb[228].mxu0 %vm2072_vm0, %v2699_v29  ;;  %v899_v24 = vmul.f32 0.6931472, %v6991_v22  ;;  %7012 = vlog2.f32 %v1677_v2  ;;  %v2828_v10 = vld [vmem:[#allocation2 + $0x798] sm:$0xff]  ;;  %v1430_v16 = vsub.f32 1.0, %v10587_v37 }
 0x204   :  { %5335 = vst [vmem:[#allocation3 + $0x3d0] sm:$0xff] %v4044_v60  ;;  %v4046_v30 = vpop.f32.mrb[123].mxu0  ;;  %v6995_v15 = vpop.eup %6994  ;;  %4366 = vmatprep.mubr.f32.mxu0 %v7100_v11  ;;  %v1923_v52 = vmul.f32 0.6931472, %v6993_v7  ;;  %7014 = vlog2.f32 %v655_v48  ;;  %v10600_v4 = vld [vmem:[%s10813_s1 + $0x3f8] sm:$0xff]  ;;  %v2701_v51 = vld [vmem:[#allocation2 + $0x3a0] sm:$0xff] }
 0x205   :  { %v4812_v61 = vpop.f32.mrb[122].mxu1  ;;  %5336 = vst [vmem:[#allocation3 + $0x3d8] sm:$0xff] %v4046_v30  ;;  %v6997_v23 = vpop.eup %6996  ;;  %v1037_v54 = vmul.f32 0.5, %v899_v24  ;;  %v901_v33 = vmul.f32 0.6931472, %v6995_v15  ;;  %7016 = vrcp.f32 %v1427_v31  ;;  %v407_v9 = vsub.f32 1.0, %v10594_v46 }
 0x206   :  { %5591 = vst [vmem:[#allocation5 + $0x3d0] sm:$0xff] %v4812_v61  ;;  %v4814_v58 = vpop.f32.mrb[123].mxu1  ;;  %6007 = vmatmul.mubr.msk.f32.gmra.mrb[228].mxu1 %vm2072_vm0, %v2827_v42  ;;  %v6999_v49 = vpop.eup %6998  ;;  %v2061_v1 = vmul.f32 0.5, %v1923_v52  ;;  %v1925_v55 = vmul.f32 0.6931472, %v6997_v23  ;;  %7018 = vrcp.f32 %v404_v63  ;;  %v1431_v34 = vsub.f32 1.0, %v10600_v4 }
 0x207   :  { %5592 = vst [vmem:[#allocation5 + $0x3d8] sm:$0xff] %v4814_v58  ;;  %v4050_v8 = vpop.f32.mrb[124].mxu0  ;;  %5134 = vmatprep.mubr.f32.mxu1 %v7100_v11  ;;  %v7001_v45 = vpop.eup %7000  ;;  %5880 = vmatmul.mubr.msk.f32.gmra.mrb[230].mxu0 %vm2072_vm0, %v2700_v13  ;;  %2190 = vst.msk [vmem:[#allocation2 + $0x3a8] sm:$0xff] %vm2072_vm0, %v1037_v54  ;;  %v1038_v18 = vmul.f32 0.5, %v901_v33  ;;  %v903_v41 = vmul.f32 0.6931472, %v6999_v49  ;;  %7020 = vrcp.f32 %v1428_v32 }
 0x208   :  { %5337 = vst [vmem:[#allocation3 + $0x3e0] sm:$0xff] %v4050_v8  ;;  %v4052_v44 = vpop.f32.mrb[125].mxu0  ;;  %2446 = vst.msk [vmem:[%s10817_s5 + $0x3a8] sm:$0xff] %vm2072_vm0, %v1037_v54  ;;  %v7003_v39 = vpop.eup %7002  ;;  %4372 = vmatprep.mubr.f32.mxu0 %v7100_v11  ;;  %v2062_v50 = vmul.f32 0.5, %v1925_v55  ;;  %v1927_v28 = vmul.f32 0.6931472, %v7001_v45  ;;  %7022 = vrcp.f32 %v405_v5 }
 0x209   :  { %v4818_v62 = vpop.f32.mrb[124].mxu1  ;;  %5338 = vst [vmem:[#allocation3 + $0x3e8] sm:$0xff] %v4052_v44  ;;  %2318 = vst.msk [vmem:[#allocation2 + $0x7a8] sm:$0xff] %vm2072_vm0, %v2061_v1  ;;  %v7005_v35 = vpop.eup %7004  ;;  %v1039_v25 = vmul.f32 0.5, %v903_v41  ;;  %v905_v6 = vmul.f32 0.6931472, %v7003_v39  ;;  %7024 = vrcp.f32 %v1429_v59 }
 0x20a   :  { %2574 = vst.msk [vmem:[%s10818_s6 + $0x3a8] sm:$0xff] %vm2072_vm0, %v2061_v1  ;;  %5593 = vst [vmem:[#allocation5 + $0x3e0] sm:$0xff] %v4818_v62  ;;  %v4820_v3 = vpop.f32.mrb[125].mxu1  ;;  %6008 = vmatmul.mubr.msk.f32.gmra.mrb[230].mxu1 %vm2072_vm0, %v2828_v10  ;;  %v7007_v26 = vpop.eup %7006  ;;  %v2829_v14 = vld [vmem:[#allocation2 + $0x7a0] sm:$0xff]  ;;  %v2063_v57 = vmul.f32 0.5, %v1927_v28  ;;  %7026 = vrcp.f32 %v406_v43  ;;  %v1299_v22 = vadd.f32 1.0, %v10546_v38 }
 0x20b   :  { %2191 = vst.msk [vmem:[#allocation2 + $0x3b0] sm:$0xff] %vm2072_vm0, %v1038_v18  ;;  %2447 = vst.msk [vmem:[%s10817_s5 + $0x3b0] sm:$0xff] %vm2072_vm0, %v1038_v18  ;;  %v4056_v53 = vpop.f32.mrb[126].mxu0  ;;  %5140 = vmatprep.mubr.f32.mxu1 %v7100_v11  ;;  %v1929_v20 = vmul.f32 0.6931472, %v7005_v35  ;;  %v7009_v27 = vpop.eup %7008  ;;  %5881 = vmatmul.mubr.msk.f32.gmra.mrb[232].mxu0 %vm2072_vm0, %v2701_v51  ;;  %v1040_v29 = vmul.f32 0.5, %v905_v6  ;;  %7028 = vrcp.f32 %v1430_v16 }
 0x20c   :  { %5594 = vst [vmem:[#allocation5 + $0x3e8] sm:$0xff] %v4820_v3  ;;  %2319 = vst.msk [vmem:[#allocation2 + $0x7b0] sm:$0xff] %vm2072_vm0, %v2062_v50  ;;  %v4058_v56 = vpop.f32.mrb[127].mxu0  ;;  %v907_v21 = vmul.f32 0.6931472, %v7007_v26  ;;  %v7011_v36 = vpop.eup %7010  ;;  %4378 = vmatprep.mubr.f32.mxu0 %v7100_v11  ;;  %7030 = vrcp.f32 %v407_v9  ;;  %v276_v7 = vadd.f32 1.0, %v10552_v40 }
 0x20d   :  { %2575 = vst.msk [vmem:[%s10818_s6 + $0x3b0] sm:$0xff] %vm2072_vm0, %v2062_v50  ;;  %5339 = vst [vmem:[#allocation3 + $0x3f0] sm:$0xff] %v4056_v53  ;;  %v4824_v12 = vpop.f32.mrb[126].mxu1  ;;  %v2064_v2 = vmul.f32 0.5, %v1929_v20  ;;  %v1931_v31 = vmul.f32 0.6931472, %v7009_v27  ;;  %v7013_v60 = vpop.eup %7012  ;;  %7032 = vrcp.f32 %v1431_v34 }
 0x20e   :  { %2192 = vst.msk [vmem:[#allocation2 + $0x3b8] sm:$0xff] %vm2072_vm0, %v1039_v25  ;;  %2448 = vst.msk [vmem:[%s10817_s5 + $0x3b8] sm:$0xff] %vm2072_vm0, %v1039_v25  ;;  %v4826_v42 = vpop.f32.mrb[127].mxu1  ;;  %6009 = vmatmul.mubr.msk.f32.gmra.mrb[232].mxu1 %vm2072_vm0, %v2829_v14  ;;  %v1041_v48 = vmul.f32 0.5, %v907_v21  ;;  %v909_v63 = vmul.f32 0.6931472, %v7011_v36  ;;  %v7015_v30 = vpop.eup %7014 }
 0x20f   :  { %5340 = vst [vmem:[#allocation3 + $0x3f8] sm:$0xff] %v4058_v56  ;;  %2320 = vst.msk [vmem:[#allocation2 + $0x7b8] sm:$0xff] %vm2072_vm0, %v2063_v57  ;;  %v4062_v38 = vpop.f32.mrb[128].mxu0  ;;  %5146 = vmatprep.mubr.f32.mxu1 %v7100_v11  ;;  %v2702_v24 = vld [vmem:[#allocation2 + $0x3a8] sm:$0xff]  ;;  %v2065_v32 = vmul.f32 0.5, %v1931_v31  ;;  %v1300_v15 = vadd.f32 1.0, %v10558_v0  ;;  %v7017_v61 = vpop.eup %7016 }
 0x210   :  { %2576 = vst.msk [vmem:[%s10818_s6 + $0x3b8] sm:$0xff] %vm2072_vm0, %v2063_v57  ;;  %5595 = vst [vmem:[#allocation5 + $0x3f0] sm:$0xff] %v4824_v12  ;;  %v1933_v5 = vmul.f32 0.6931472, %v7013_v60  ;;  %v4064_v40 = vpop.f32.mrb[129].mxu0  ;;  %5882 = vmatmul.mubr.msk.f32.gmra.mrb[234].mxu0 %vm2072_vm0, %v2702_v24  ;;  %v2830_v13 = vld [vmem:[#allocation2 + $0x7a8] sm:$0xff]  ;;  %v7019_v58 = vpop.eup %7018  ;;  %v1679_v43 = vmul.f32 %v7017_v61, %v1299_v22 }
 0x211   :  { %2193 = vst.msk [vmem:[#allocation2 + $0x3c0] sm:$0xff] %vm2072_vm0, %v1040_v29  ;;  %2449 = vst.msk [vmem:[%s10817_s5 + $0x3c0] sm:$0xff] %vm2072_vm0, %v1040_v29  ;;  %v1042_v52 = vmul.f32 0.5, %v909_v63  ;;  %v911_v59 = vmul.f32 0.6931472, %v7015_v30  ;;  %v277_v23 = vadd.f32 1.0, %v10563_v47  ;;  %4384 = vmatprep.mubr.f32.mxu0 %v7100_v11  ;;  %v7021_v8 = vpop.eup %7020  ;;  %v657_v1 = vmul.f32 %v7019_v58, %v276_v7 }
 0x212   :  { %5596 = vst [vmem:[#allocation5 + $0x3f8] sm:$0xff] %v4826_v42  ;;  %2321 = vst.msk [vmem:[#allocation2 + $0x7c0] sm:$0xff] %vm2072_vm0, %v2064_v2  ;;  %v4830_v54 = vpop.f32.mrb[128].mxu1  ;;  %v2703_v0 = vld [vmem:[#allocation2 + $0x3b0] sm:$0xff]  ;;  %v2066_v33 = vmul.f32 0.5, %v1933_v5  ;;  %v1301_v49 = vadd.f32 1.0, %v10570_v19  ;;  %6010 = vmatmul.mubr.msk.f32.gmra.mrb[234].mxu1 %vm2072_vm0, %v2830_v13  ;;  %v7023_v45 = vpop.eup %7022  ;;  %7034 = vlog2.f32 %v1679_v43  ;;  %v1681_v18 = vmul.f32 %v7021_v8, %v1300_v15 }
 0x213   :  { %2577 = vst.msk [vmem:[%s10818_s6 + $0x3c0] sm:$0xff] %vm2072_vm0, %v2064_v2  ;;  %5341 = vst [vmem:[#allocation3 + $0x400] sm:$0xff] %v4062_v38  ;;  %v4832_v47 = vpop.f32.mrb[129].mxu1  ;;  %v1043_v10 = vmul.f32 0.5, %v911_v59  ;;  %v278_v55 = vadd.f32 1.0, %v10577_v17  ;;  %v4068_v44 = vpop.f32.mrb[130].mxu0  ;;  %5152 = vmatprep.mubr.f32.mxu1 %v7100_v11  ;;  %7036 = vlog2.f32 %v657_v1  ;;  %v659_v39 = vmul.f32 %v7023_v45, %v277_v23 }
 0x214   :  { %2194 = vst.msk [vmem:[#allocation2 + $0x3c8] sm:$0xff] %vm2072_vm0, %v1041_v48  ;;  %2450 = vst.msk [vmem:[%s10817_s5 + $0x3c8] sm:$0xff] %vm2072_vm0, %v1041_v48  ;;  %v2831_v19 = vld [vmem:[#allocation2 + $0x7b0] sm:$0xff]  ;;  %v1302_v41 = vadd.f32 1.0, %v10587_v37  ;;  %v7025_v16 = vpop.eup %7024  ;;  %v4070_v17 = vpop.f32.mrb[131].mxu0  ;;  %5883 = vmatmul.mubr.msk.f32.gmra.mrb[236].mxu0 %vm2072_vm0, %v2703_v0  ;;  %v279_v62 = vadd.f32 1.0, %v10594_v46  ;;  %7038 = vlog2.f32 %v1681_v18 }
 0x215   :  { %5342 = vst [vmem:[#allocation3 + $0x408] sm:$0xff] %v4064_v40  ;;  %2322 = vst.msk [vmem:[#allocation2 + $0x7c8] sm:$0xff] %vm2072_vm0, %v2065_v32  ;;  %v7027_v51 = vpop.eup %7026  ;;  %v4836_v50 = vpop.f32.mrb[130].mxu1  ;;  %4390 = vmatprep.mubr.f32.mxu0 %v7100_v11  ;;  %v2704_v37 = vld [vmem:[#allocation2 + $0x3b8] sm:$0xff]  ;;  %v1683_v28 = vmul.f32 %v7025_v16, %v1301_v49  ;;  %v1303_v9 = vadd.f32 1.0, %v10600_v4  ;;  %7040 = vlog2.f32 %v659_v39 }
 0x216   :  { %2578 = vst.msk [vmem:[%s10818_s6 + $0x3c8] sm:$0xff] %vm2072_vm0, %v2065_v32  ;;  %5597 = vst [vmem:[#allocation5 + $0x400] sm:$0xff] %v4830_v54  ;;  %v7029_v35 = vpop.eup %7028  ;;  %v4838_v3 = vpop.f32.mrb[131].mxu1  ;;  %6011 = vmatmul.mubr.msk.f32.gmra.mrb[236].mxu1 %vm2072_vm0, %v2831_v19  ;;  %v661_v25 = vmul.f32 %v7027_v51, %v278_v55  ;;  %v2832_v34 = vld [vmem:[#allocation2 + $0x7b8] sm:$0xff] }
 0x217   :  { %2195 = vst.msk [vmem:[#allocation2 + $0x3d0] sm:$0xff] %vm2072_vm0, %v1042_v52  ;;  %2451 = vst.msk [vmem:[%s10817_s5 + $0x3d0] sm:$0xff] %vm2072_vm0, %v1042_v52  ;;  %v7031_v6 = vpop.eup %7030  ;;  %v4074_v46 = vpop.f32.mrb[132].mxu0  ;;  %5158 = vmatprep.mubr.f32.mxu1 %v7100_v11  ;;  %7042 = vlog2.f32 %v1683_v28  ;;  %v1685_v26 = vmul.f32 %v7029_v35, %v1302_v41 }
 0x218   :  { %5598 = vst [vmem:[#allocation5 + $0x408] sm:$0xff] %v4832_v47  ;;  %2323 = vst.msk [vmem:[#allocation2 + $0x7d0] sm:$0xff] %vm2072_vm0, %v2066_v33  ;;  %v7033_v53 = vpop.eup %7032  ;;  %v4076_v14 = vpop.f32.mrb[133].mxu0  ;;  %5884 = vmatmul.mubr.msk.f32.gmra.mrb[238].mxu0 %vm2072_vm0, %v2704_v37  ;;  %7044 = vlog2.f32 %v661_v25  ;;  %v663_v4 = vmul.f32 %v7031_v6, %v279_v62  ;;  %v2705_v20 = vld [vmem:[#allocation2 + $0x3c0] sm:$0xff] }
 0x219   :  { %2579 = vst.msk [vmem:[%s10818_s6 + $0x3d0] sm:$0xff] %vm2072_vm0, %v2066_v33  ;;  %5343 = vst [vmem:[#allocation3 + $0x410] sm:$0xff] %v4068_v44  ;;  %v4842_v57 = vpop.f32.mrb[132].mxu1  ;;  %4396 = vmatprep.mubr.f32.mxu0 %v7100_v11  ;;  %7046 = vlog2.f32 %v1685_v26  ;;  %v1687_v27 = vmul.f32 %v7033_v53, %v1303_v9  ;;  %v4080_v29 = vpop.f32.mrb[134].mxu0  ;;  %v2833_v21 = vld [vmem:[#allocation2 + $0x7c0] sm:$0xff] }
 0x21a   :  { %2196 = vst.msk [vmem:[#allocation2 + $0x3d8] sm:$0xff] %vm2072_vm0, %v1043_v10  ;;  %2452 = vst.msk [vmem:[%s10817_s5 + $0x3d8] sm:$0xff] %vm2072_vm0, %v1043_v10  ;;  %v4844_v56 = vpop.f32.mrb[133].mxu1  ;;  %6012 = vmatmul.mubr.msk.f32.gmra.mrb[238].mxu1 %vm2072_vm0, %v2832_v34  ;;  %7048 = vlog2.f32 %v663_v4  ;;  %v4082_v36 = vpop.f32.mrb[135].mxu0 }
 0x21b   :  { %5344 = vst [vmem:[#allocation3 + $0x418] sm:$0xff] %v4070_v17  ;;  %5599 = vst [vmem:[#allocation5 + $0x410] sm:$0xff] %v4836_v50  ;;  %5164 = vmatprep.mubr.f32.mxu1 %v7100_v11  ;;  %7050 = vlog2.f32 %v1687_v27  ;;  %v4848_v2 = vpop.f32.mrb[134].mxu1  ;;  %v2706_v31 = vld [vmem:[#allocation2 + $0x3c8] sm:$0xff]  ;;  %v4086_v63 = vpop.f32.mrb[136].mxu0 }
 0x21c   :  { %5600 = vst [vmem:[#allocation5 + $0x418] sm:$0xff] %v4838_v3  ;;  %5345 = vst [vmem:[#allocation3 + $0x420] sm:$0xff] %v4074_v46  ;;  %5885 = vmatmul.mubr.msk.f32.gmra.mrb[240].mxu0 %vm2072_vm0, %v2705_v20  ;;  %v7035_v12 = vpop.eup %7034  ;;  %v4850_v60 = vpop.f32.mrb[135].mxu1  ;;  %v2834_v7 = vld [vmem:[#allocation2 + $0x7c8] sm:$0xff] }
 0x21d   :  { %5346 = vst [vmem:[#allocation3 + $0x428] sm:$0xff] %v4076_v14  ;;  %5601 = vst [vmem:[#allocation5 + $0x420] sm:$0xff] %v4842_v57  ;;  %4402 = vmatprep.mubr.f32.mxu0 %v7100_v11  ;;  %v7037_v22 = vpop.eup %7036  ;;  %v1935_v42 = vmul.f32 0.6931472, %v7035_v12  ;;  %v4088_v24 = vpop.f32.mrb[137].mxu0 }
 0x21e   :  { %5602 = vst [vmem:[#allocation5 + $0x428] sm:$0xff] %v4844_v56  ;;  %5347 = vst [vmem:[#allocation3 + $0x430] sm:$0xff] %v4080_v29  ;;  %6013 = vmatmul.mubr.msk.f32.gmra.mrb[240].mxu1 %vm2072_vm0, %v2833_v21  ;;  %v7039_v48 = vpop.eup %7038  ;;  %v913_v30 = vmul.f32 0.6931472, %v7037_v22  ;;  %v4854_v61 = vpop.f32.mrb[136].mxu1  ;;  %v2707_v40 = vld [vmem:[#allocation2 + $0x3d0] sm:$0xff] }
 0x21f   :  { %5348 = vst [vmem:[#allocation3 + $0x438] sm:$0xff] %v4082_v36  ;;  %5603 = vst [vmem:[#allocation5 + $0x430] sm:$0xff] %v4848_v2  ;;  %5170 = vmatprep.mubr.f32.mxu1 %v7100_v11  ;;  %v7041_v38 = vpop.eup %7040  ;;  %v2067_v32 = vmul.f32 0.5, %v1935_v42  ;;  %v1937_v5 = vmul.f32 0.6931472, %v7039_v48  ;;  %v4856_v23 = vpop.f32.mrb[137].mxu1 }
 0x220   :  { %5604 = vst [vmem:[#allocation5 + $0x438] sm:$0xff] %v4850_v60  ;;  %5349 = vst [vmem:[#allocation3 + $0x440] sm:$0xff] %v4086_v63  ;;  %5886 = vmatmul.mubr.msk.f32.gmra.mrb[242].mxu0 %vm2072_vm0, %v2706_v31  ;;  %v1044_v13 = vmul.f32 0.5, %v913_v30  ;;  %v915_v52 = vmul.f32 0.6931472, %v7041_v38  ;;  %v4092_v33 = vpop.f32.mrb[138].mxu0 }
 0x221   :  { %v7043_v15 = vpop.eup %7042  ;;  %5350 = vst [vmem:[#allocation3 + $0x448] sm:$0xff] %v4088_v24  ;;  %4408 = vmatprep.mubr.f32.mxu0 %v7100_v11  ;;  %5605 = vst [vmem:[#allocation5 + $0x440] sm:$0xff] %v4854_v61  ;;  %v2068_v58 = vmul.f32 0.5, %v1937_v5  ;;  %v2835_v43 = vld [vmem:[#allocation2 + $0x7d0] sm:$0xff]  ;;  %v4094_v10 = vpop.f32.mrb[139].mxu0  ;;  %v2708_v19 = vld [vmem:[#allocation2 + $0x3d8] sm:$0xff] }
 0x222   :  { %v7045_v59 = vpop.eup %7044  ;;  %6014 = vmatmul.mubr.msk.f32.gmra.mrb[242].mxu1 %vm2072_vm0, %v2834_v7  ;;  %2324 = vst.msk [vmem:[#allocation2 + $0x7d8] sm:$0xff] %vm2072_vm0, %v2067_v32  ;;  %2580 = vst.msk [vmem:[%s10818_s6 + $0x3d8] sm:$0xff] %vm2072_vm0, %v2067_v32  ;;  %v1939_v54 = vmul.f32 0.6931472, %v7043_v15  ;;  %v1045_v49 = vmul.f32 0.5, %v915_v52  ;;  %v4860_v44 = vpop.f32.mrb[138].mxu1 }
 0x223   :  { %v7047_v0 = vpop.eup %7046  ;;  %5606 = vst [vmem:[#allocation5 + $0x448] sm:$0xff] %v4856_v23  ;;  %5176 = vmatprep.mubr.f32.mxu1 %v7100_v11  ;;  %2197 = vst.msk [vmem:[#allocation2 + $0x3e0] sm:$0xff] %vm2072_vm0, %v1044_v13  ;;  %v917_v8 = vmul.f32 0.6931472, %v7045_v59  ;;  %v4862_v16 = vpop.f32.mrb[139].mxu1 }
 0x224   :  { %2453 = vst.msk [vmem:[%s10817_s5 + $0x3e0] sm:$0xff] %vm2072_vm0, %v1044_v13  ;;  %v7049_v47 = vpop.eup %7048  ;;  %5351 = vst [vmem:[#allocation3 + $0x450] sm:$0xff] %v4092_v33  ;;  %5887 = vmatmul.mubr.msk.f32.gmra.mrb[244].mxu0 %vm2072_vm0, %v2707_v40  ;;  %v2069_v1 = vmul.f32 0.5, %v1939_v54  ;;  %v1941_v55 = vmul.f32 0.6931472, %v7047_v0  ;;  %v4098_v62 = vpop.f32.mrb[140].mxu0 }
 0x225   :  { %2325 = vst.msk [vmem:[#allocation2 + $0x7e0] sm:$0xff] %vm2072_vm0, %v2068_v58  ;;  %2581 = vst.msk [vmem:[%s10818_s6 + $0x3e0] sm:$0xff] %vm2072_vm0, %v2068_v58  ;;  %v7051_v45 = vpop.eup %7050  ;;  %4414 = vmatprep.mubr.f32.mxu0 %v7100_v11  ;;  %v1046_v18 = vmul.f32 0.5, %v917_v8  ;;  %v919_v41 = vmul.f32 0.6931472, %v7049_v47  ;;  %v4100_v50 = vpop.f32.mrb[141].mxu0 }
 0x226   :  { %5352 = vst [vmem:[#allocation3 + $0x458] sm:$0xff] %v4094_v10  ;;  %2198 = vst.msk [vmem:[#allocation2 + $0x3e8] sm:$0xff] %vm2072_vm0, %v1045_v49  ;;  %6015 = vmatmul.mubr.msk.f32.gmra.mrb[244].mxu1 %vm2072_vm0, %v2835_v43  ;;  %v2070_v17 = vmul.f32 0.5, %v1941_v55  ;;  %v1943_v39 = vmul.f32 0.6931472, %v7051_v45  ;;  %v4866_v28 = vpop.f32.mrb[140].mxu1 }
 0x227   :  { %2454 = vst.msk [vmem:[%s10817_s5 + $0x3e8] sm:$0xff] %vm2072_vm0, %v1045_v49  ;;  %5607 = vst [vmem:[#allocation5 + $0x450] sm:$0xff] %v4860_v44  ;;  %5182 = vmatprep.mubr.f32.mxu1 %v7100_v11  ;;  %v1047_v51 = vmul.f32 0.5, %v919_v41  ;;  %v4868_v35 = vpop.f32.mrb[141].mxu1  ;;  %v4104_v25 = vpop.f32.mrb[142].mxu0 }
 0x228   :  { %2326 = vst.msk [vmem:[#allocation2 + $0x7e8] sm:$0xff] %vm2072_vm0, %v2069_v1  ;;  %2582 = vst.msk [vmem:[%s10818_s6 + $0x3e8] sm:$0xff] %vm2072_vm0, %v2069_v1  ;;  %5888 = vmatmul.mubr.msk.f32.gmra.mrb[246].mxu0 %vm2072_vm0, %v2708_v19  ;;  %v2071_v37 = vmul.f32 0.5, %v1943_v39  ;;  %v4106_v46 = vpop.f32.mrb[143].mxu0  ;;  %v4872_v34 = vpop.f32.mrb[142].mxu1 }
 0x229   :  { %5608 = vst [vmem:[#allocation5 + $0x458] sm:$0xff] %v4862_v16  ;;  %2199 = vst.msk [vmem:[#allocation2 + $0x3f0] sm:$0xff] %vm2072_vm0, %v1046_v18  ;;  %v2836_v9 = vld [vmem:[#allocation2 + $0x7d8] sm:$0xff]  ;;  %4420 = vmatprep.mubr.f32.mxu0 %v7100_v11  ;;  %v4874_v53 = vpop.f32.mrb[143].mxu1  ;;  %v4110_v14 = vpop.f32.mrb[144].mxu0 }
 0x22a   :  { %2455 = vst.msk [vmem:[%s10817_s5 + $0x3f0] sm:$0xff] %vm2072_vm0, %v1046_v18  ;;  %5353 = vst [vmem:[#allocation3 + $0x460] sm:$0xff] %v4098_v62  ;;  %6016 = vmatmul.mubr.msk.f32.gmra.mrb[246].mxu1 %vm2072_vm0, %v2836_v9  ;;  %v2709_v3 = vld [vmem:[#allocation2 + $0x3e0] sm:$0xff]  ;;  %v4112_v57 = vpop.f32.mrb[145].mxu0  ;;  %v4878_v20 = vpop.f32.mrb[144].mxu1 }
 0x22b   :  { %2327 = vst.msk [vmem:[#allocation2 + $0x7f0] sm:$0xff] %vm2072_vm0, %v2070_v17  ;;  %2583 = vst.msk [vmem:[%s10818_s6 + $0x3f0] sm:$0xff] %vm2072_vm0, %v2070_v17  ;;  %5188 = vmatprep.mubr.f32.mxu1 %v7100_v11  ;;  %v4880_v56 = vpop.f32.mrb[145].mxu1  ;;  %v4116_v29 = vpop.f32.mrb[146].mxu0 }
 0x22c   :  { %5354 = vst [vmem:[#allocation3 + $0x468] sm:$0xff] %v4100_v50  ;;  %2200 = vst.msk [vmem:[#allocation2 + $0x3f8] sm:$0xff] %vm2072_vm0, %v1047_v51  ;;  %v2837_v6 = vld [vmem:[#allocation2 + $0x7e0] sm:$0xff]  ;;  %5889 = vmatmul.mubr.msk.f32.gmra.mrb[248].mxu0 %vm2072_vm0, %v2709_v3  ;;  %v4118_v36 = vpop.f32.mrb[147].mxu0  ;;  %v4884_v12 = vpop.f32.mrb[146].mxu1 }
 0x22d   :  { %2456 = vst.msk [vmem:[%s10817_s5 + $0x3f8] sm:$0xff] %vm2072_vm0, %v1047_v51  ;;  %5609 = vst [vmem:[#allocation5 + $0x460] sm:$0xff] %v4866_v28  ;;  %4426 = vmatprep.mubr.f32.mxu0 %v7100_v11  ;;  %v2710_v26 = vld [vmem:[#allocation2 + $0x3e8] sm:$0xff]  ;;  %v4886_v31 = vpop.f32.mrb[147].mxu1  ;;  %v4122_v22 = vpop.f32.mrb[148].mxu0  ;;  %s7101_s5 = smov [#allocation3]  }
 0x22e   :  { %2328 = vst.msk [vmem:[#allocation2 + $0x7f8] sm:$0xff] %vm2072_vm0, %v2071_v37  ;;  %2584 = vst.msk [vmem:[%s10818_s6 + $0x3f8] sm:$0xff] %vm2072_vm0, %v2071_v37  ;;  %6017 = vmatmul.mubr.msk.f32.gmra.mrb[248].mxu1 %vm2072_vm0, %v2837_v6  ;;  %v4124_v42 = vpop.f32.mrb[149].mxu0  ;;  %v4890_v48 = vpop.f32.mrb[148].mxu1  ;;  %s5730_s6 = sshll.u32 %s7101_s5, 4  ;;  %s10774_s6 = int_to_ptr.vmem [resolvable:$true] %s5730_s6 }
 0x22f   :  { %5610 = vst [vmem:[#allocation5 + $0x468] sm:$0xff] %v4868_v35  ;;  %5355 = vst [vmem:[#allocation3 + $0x470] sm:$0xff] %v4104_v25  ;;  %5194 = vmatprep.mubr.f32.mxu1 %v7100_v11  ;;  %v2838_v4 = vld [vmem:[#allocation2 + $0x7e8] sm:$0xff]  ;;  %v4892_v63 = vpop.f32.mrb[149].mxu1  ;;  %v4128_v7 = vpop.f32.mrb[150].mxu0  ;;  %s7052_s22 = scalar_lea.vmem %s10774_s6, 32768  ;;  %p7057_p1 = scmp.lt.s32.totalorder %s10774_s6, %s10774_s6 }
 0x230   :  { %5356 = vst [vmem:[#allocation3 + $0x478] sm:$0xff] %v4106_v46  ;;  %5611 = vst [vmem:[#allocation5 + $0x470] sm:$0xff] %v4872_v34  ;;  %5890 = vmatmul.mubr.msk.f32.gmra.mrb[250].mxu0 %vm2072_vm0, %v2710_v26  ;;  %v2711_v27 = vld [vmem:[#allocation2 + $0x3f0] sm:$0xff]  ;;  %v4130_v30 = vpop.f32.mrb[151].mxu0  ;;  %v4896_v38 = vpop.f32.mrb[150].mxu1  ;;  %p7053_p0 = scmp.ne.s32.totalorder %s10774_s6, %s7052_s22  ;;  %p7058_p2 = scmp.lt.s32.totalorder %s7052_s22, %s7052_s22 }
 0x231   :  { %5612 = vst [vmem:[#allocation5 + $0x478] sm:$0xff] %v4874_v53  ;;  %5357 = vst [vmem:[#allocation3 + $0x480] sm:$0xff] %v4110_v14  ;;  %4432 = vmatprep.mubr.f32.mxu0 %v7100_v11  ;;  %v4898_v24 = vpop.f32.mrb[151].mxu1 }
 0x232   :  { %5358 = vst [vmem:[#allocation3 + $0x488] sm:$0xff] %v4112_v57  ;;  %5613 = vst [vmem:[#allocation5 + $0x480] sm:$0xff] %v4878_v20  ;;  %6018 = vmatmul.mubr.msk.f32.gmra.mrb[250].mxu1 %vm2072_vm0, %v2838_v4  ;;  %v2839_v21 = vld [vmem:[#allocation2 + $0x7f0] sm:$0xff]  ;;  %p7059_p3 = por %p7058_p2, %p7057_p1 }
 0x233   :  { %5614 = vst [vmem:[#allocation5 + $0x488] sm:$0xff] %v4880_v56  ;;  %5200 = vmatprep.mubr.f32.mxu1 %v7100_v11  ;;  %5359 = vst [vmem:[#allocation3 + $0x490] sm:$0xff] %v4116_v29  ;;  %v2712_v2 = vld [vmem:[#allocation2 + $0x3f8] sm:$0xff] }
 0x234   :  { %5891 = vmatmul.mubr.msk.f32.gmra.mrb[252].mxu0 %vm2072_vm0, %v2711_v27  ;;  %5360 = vst [vmem:[#allocation3 + $0x498] sm:$0xff] %v4118_v36  ;;  %5615 = vst [vmem:[#allocation5 + $0x490] sm:$0xff] %v4884_v12  ;;  %v4902_v5 = vpop.f32.mrb[152].mxu1  ;;  %p7060_p4 = pnand %p7059_p3, %p7053_p0 }
 0x235   :  { %4438 = vmatprep.mubr.f32.mxu0 %v7100_v11  ;;  %5616 = vst [vmem:[#allocation5 + $0x498] sm:$0xff] %v4886_v31  ;;  %v2840_v60 = vld [vmem:[#allocation2 + $0x7f8] sm:$0xff]  ;;  %5361 = vst [vmem:[#allocation3 + $0x4a0] sm:$0xff] %v4122_v22  ;;  %v4904_v15 = vpop.f32.mrb[153].mxu1 }
 0x236   :  { %6019 = vmatmul.mubr.msk.f32.gmra.mrb[252].mxu1 %vm2072_vm0, %v2839_v21  ;;  %5362 = vst [vmem:[#allocation3 + $0x4a8] sm:$0xff] %v4124_v42  ;;  %5617 = vst [vmem:[#allocation5 + $0x4a0] sm:$0xff] %v4890_v48 }
 0x237   :  { %5206 = vmatprep.mubr.f32.mxu1 %v7100_v11  ;;  %5618 = vst [vmem:[#allocation5 + $0x4a8] sm:$0xff] %v4892_v63  ;;  %5363 = vst [vmem:[#allocation3 + $0x4b0] sm:$0xff] %v4128_v7  ;;  %v4134_v11 = vpop.f32.mrb[152].mxu0 }
 0x238   :  { %5892 = vmatmul.mubr.msk.f32.gmra.mrb[254].mxu0 %vm2072_vm0, %v2712_v2  ;;  %5364 = vst [vmem:[#allocation3 + $0x4b8] sm:$0xff] %v4130_v30  ;;  %5619 = vst [vmem:[#allocation5 + $0x4b0] sm:$0xff] %v4896_v38  ;;  %v4136_v32 = vpop.f32.mrb[153].mxu0  ;;  %v4908_v13 = vpop.f32.mrb[154].mxu1 }
 0x239   :  { %5620 = vst [vmem:[#allocation5 + $0x4b8] sm:$0xff] %v4898_v24  ;;  %5365 = vst [vmem:[#allocation3 + $0x4c0] sm:$0xff] %v4134_v11  ;;  %v4140_v61 = vpop.f32.mrb[154].mxu0  ;;  %v4910_v52 = vpop.f32.mrb[155].mxu1 }
 0x23a   :  { %6020 = vmatmul.mubr.msk.f32.gmra.mrb[254].mxu1 %vm2072_vm0, %v2840_v60  ;;  %5366 = vst [vmem:[#allocation3 + $0x4c8] sm:$0xff] %v4136_v32  ;;  %5621 = vst [vmem:[#allocation5 + $0x4c0] sm:$0xff] %v4902_v5  ;;  %v4142_v40 = vpop.f32.mrb[155].mxu0 }
 0x23b   :  { %5622 = vst [vmem:[#allocation5 + $0x4c8] sm:$0xff] %v4904_v15  ;;  %5367 = vst [vmem:[#allocation3 + $0x4d0] sm:$0xff] %v4140_v61 }
 0x23c   :  { %5368 = vst [vmem:[#allocation3 + $0x4d8] sm:$0xff] %v4142_v40  ;;  %5623 = vst [vmem:[#allocation5 + $0x4d0] sm:$0xff] %v4908_v13  ;;  %v4146_v59 = vpop.f32.mrb[156].mxu0 }
 0x23d   :  { %5624 = vst [vmem:[#allocation5 + $0x4d8] sm:$0xff] %v4910_v52  ;;  %5369 = vst [vmem:[#allocation3 + $0x4e0] sm:$0xff] %v4146_v59  ;;  %v4148_v23 = vpop.f32.mrb[157].mxu0  ;;  %v4914_v58 = vpop.f32.mrb[156].mxu1 }
 0x23e   :  { %5370 = vst [vmem:[#allocation3 + $0x4e8] sm:$0xff] %v4148_v23  ;;  %5625 = vst [vmem:[#allocation5 + $0x4e0] sm:$0xff] %v4914_v58  ;;  %v4916_v54 = vpop.f32.mrb[157].mxu1 }
 0x23f   :  { %5626 = vst [vmem:[#allocation5 + $0x4e8] sm:$0xff] %v4916_v54 }
 0x240   :  { %v4152_v0 = vpop.f32.mrb[158].mxu0 }
 0x241   :  { %5371 = vst [vmem:[#allocation3 + $0x4f0] sm:$0xff] %v4152_v0  ;;  %v4154_v33 = vpop.f32.mrb[159].mxu0  ;;  %v4920_v43 = vpop.f32.mrb[158].mxu1 }
 0x242   :  { %5372 = vst [vmem:[#allocation3 + $0x4f8] sm:$0xff] %v4154_v33  ;;  %5627 = vst [vmem:[#allocation5 + $0x4f0] sm:$0xff] %v4920_v43  ;;  %v4922_v49 = vpop.f32.mrb[159].mxu1 }
 0x243   :  { %5628 = vst [vmem:[#allocation5 + $0x4f8] sm:$0xff] %v4922_v49 }
 0x244   :  { %v4158_v8 = vpop.f32.mrb[160].mxu0 }
 0x245   :  { %5373 = vst [vmem:[#allocation3 + $0x500] sm:$0xff] %v4158_v8  ;;  %v4160_v47 = vpop.f32.mrb[161].mxu0  ;;  %v4926_v10 = vpop.f32.mrb[160].mxu1 }
 0x246   :  { %5374 = vst [vmem:[#allocation3 + $0x508] sm:$0xff] %v4160_v47  ;;  %5629 = vst [vmem:[#allocation5 + $0x500] sm:$0xff] %v4926_v10  ;;  %v4928_v1 = vpop.f32.mrb[161].mxu1 }
 0x247   :  { %5630 = vst [vmem:[#allocation5 + $0x508] sm:$0xff] %v4928_v1 }
 0x248   :  { %v4164_v55 = vpop.f32.mrb[162].mxu0 }
 0x249   :  { %5375 = vst [vmem:[#allocation3 + $0x510] sm:$0xff] %v4164_v55  ;;  %v4166_v45 = vpop.f32.mrb[163].mxu0  ;;  %v4932_v44 = vpop.f32.mrb[162].mxu1 }
 0x24a   :  { %5376 = vst [vmem:[#allocation3 + $0x518] sm:$0xff] %v4166_v45  ;;  %5631 = vst [vmem:[#allocation5 + $0x510] sm:$0xff] %v4932_v44  ;;  %v4934_v19 = vpop.f32.mrb[163].mxu1 }
 0x24b   :  { %5632 = vst [vmem:[#allocation5 + $0x518] sm:$0xff] %v4934_v19 }
 0x24c   :  { %v4170_v18 = vpop.f32.mrb[164].mxu0 }
 0x24d   :  { %5377 = vst [vmem:[#allocation3 + $0x520] sm:$0xff] %v4170_v18  ;;  %v4172_v41 = vpop.f32.mrb[165].mxu0  ;;  %v4938_v16 = vpop.f32.mrb[164].mxu1 }
 0x24e   :  { %5378 = vst [vmem:[#allocation3 + $0x528] sm:$0xff] %v4172_v41  ;;  %5633 = vst [vmem:[#allocation5 + $0x520] sm:$0xff] %v4938_v16  ;;  %v4940_v17 = vpop.f32.mrb[165].mxu1 }
 0x24f   :  { %5634 = vst [vmem:[#allocation5 + $0x528] sm:$0xff] %v4940_v17 }
 0x250   :  { %v4176_v39 = vpop.f32.mrb[166].mxu0 }
 0x251   :  { %5379 = vst [vmem:[#allocation3 + $0x530] sm:$0xff] %v4176_v39  ;;  %v4178_v62 = vpop.f32.mrb[167].mxu0  ;;  %v4944_v51 = vpop.f32.mrb[166].mxu1 }
 0x252   :  { %5380 = vst [vmem:[#allocation3 + $0x538] sm:$0xff] %v4178_v62  ;;  %5635 = vst [vmem:[#allocation5 + $0x530] sm:$0xff] %v4944_v51  ;;  %v4946_v50 = vpop.f32.mrb[167].mxu1 }
 0x253   :  { %5636 = vst [vmem:[#allocation5 + $0x538] sm:$0xff] %v4946_v50 }
 0x254   :  { %v4182_v37 = vpop.f32.mrb[168].mxu0 }
 0x255   :  { %5381 = vst [vmem:[#allocation3 + $0x540] sm:$0xff] %v4182_v37  ;;  %v4184_v28 = vpop.f32.mrb[169].mxu0 }
 0x256   :  { %5382 = vst [vmem:[#allocation3 + $0x548] sm:$0xff] %v4184_v28 }
 0x258   :  { %v4950_v9 = vpop.f32.mrb[168].mxu1 }
 0x259   :  { %5637 = vst [vmem:[#allocation5 + $0x540] sm:$0xff] %v4950_v9  ;;  %v4952_v35 = vpop.f32.mrb[169].mxu1  ;;  %v4188_v3 = vpop.f32.mrb[170].mxu0 }
 0x25a   :  { %5638 = vst [vmem:[#allocation5 + $0x548] sm:$0xff] %v4952_v35  ;;  %5383 = vst [vmem:[#allocation3 + $0x550] sm:$0xff] %v4188_v3  ;;  %v4190_v25 = vpop.f32.mrb[171].mxu0 }
 0x25b   :  { %5384 = vst [vmem:[#allocation3 + $0x558] sm:$0xff] %v4190_v25 }
 0x25c   :  { %v4956_v6 = vpop.f32.mrb[170].mxu1 }
 0x25d   :  { %5639 = vst [vmem:[#allocation5 + $0x550] sm:$0xff] %v4956_v6  ;;  %v4958_v46 = vpop.f32.mrb[171].mxu1  ;;  %v4194_v34 = vpop.f32.mrb[172].mxu0 }
 0x25e   :  { %5640 = vst [vmem:[#allocation5 + $0x558] sm:$0xff] %v4958_v46  ;;  %5385 = vst [vmem:[#allocation3 + $0x560] sm:$0xff] %v4194_v34  ;;  %v4196_v26 = vpop.f32.mrb[173].mxu0 }
 0x25f   :  { %5386 = vst [vmem:[#allocation3 + $0x568] sm:$0xff] %v4196_v26 }
 0x260   :  { %v4962_v53 = vpop.f32.mrb[172].mxu1 }
 0x261   :  { %5641 = vst [vmem:[#allocation5 + $0x560] sm:$0xff] %v4962_v53  ;;  %v4964_v14 = vpop.f32.mrb[173].mxu1  ;;  %v4200_v4 = vpop.f32.mrb[174].mxu0 }
 0x262   :  { %5642 = vst [vmem:[#allocation5 + $0x568] sm:$0xff] %v4964_v14  ;;  %5387 = vst [vmem:[#allocation3 + $0x570] sm:$0xff] %v4200_v4  ;;  %v4202_v57 = vpop.f32.mrb[175].mxu0 }
 0x263   :  { %5388 = vst [vmem:[#allocation3 + $0x578] sm:$0xff] %v4202_v57 }
 0x264   :  { %v4968_v20 = vpop.f32.mrb[174].mxu1 }
 0x265   :  { %5643 = vst [vmem:[#allocation5 + $0x570] sm:$0xff] %v4968_v20  ;;  %v4970_v27 = vpop.f32.mrb[175].mxu1  ;;  %v4206_v56 = vpop.f32.mrb[176].mxu0 }
 0x266   :  { %5644 = vst [vmem:[#allocation5 + $0x578] sm:$0xff] %v4970_v27  ;;  %5389 = vst [vmem:[#allocation3 + $0x580] sm:$0xff] %v4206_v56  ;;  %v4208_v29 = vpop.f32.mrb[177].mxu0 }
 0x267   :  { %5390 = vst [vmem:[#allocation3 + $0x588] sm:$0xff] %v4208_v29 }
 0x268   :  { %v4974_v21 = vpop.f32.mrb[176].mxu1 }
 0x269   :  { %5645 = vst [vmem:[#allocation5 + $0x580] sm:$0xff] %v4974_v21  ;;  %v4976_v36 = vpop.f32.mrb[177].mxu1  ;;  %v4212_v12 = vpop.f32.mrb[178].mxu0 }
 0x26a   :  { %5646 = vst [vmem:[#allocation5 + $0x588] sm:$0xff] %v4976_v36  ;;  %5391 = vst [vmem:[#allocation3 + $0x590] sm:$0xff] %v4212_v12  ;;  %v4214_v2 = vpop.f32.mrb[179].mxu0 }
 0x26b   :  { %5392 = vst [vmem:[#allocation3 + $0x598] sm:$0xff] %v4214_v2 }
 0x26c   :  { %v4980_v31 = vpop.f32.mrb[178].mxu1 }
 0x26d   :  { %5647 = vst [vmem:[#allocation5 + $0x590] sm:$0xff] %v4980_v31  ;;  %v4982_v22 = vpop.f32.mrb[179].mxu1  ;;  %v4218_v60 = vpop.f32.mrb[180].mxu0 }
 0x26e   :  { %5648 = vst [vmem:[#allocation5 + $0x598] sm:$0xff] %v4982_v22  ;;  %5393 = vst [vmem:[#allocation3 + $0x5a0] sm:$0xff] %v4218_v60  ;;  %v4220_v42 = vpop.f32.mrb[181].mxu0 }
 0x26f   :  { %5394 = vst [vmem:[#allocation3 + $0x5a8] sm:$0xff] %v4220_v42 }
 0x270   :  { %v4986_v48 = vpop.f32.mrb[180].mxu1 }
 0x271   :  { %5649 = vst [vmem:[#allocation5 + $0x5a0] sm:$0xff] %v4986_v48  ;;  %v4988_v63 = vpop.f32.mrb[181].mxu1 }
 0x272   :  { %5650 = vst [vmem:[#allocation5 + $0x5a8] sm:$0xff] %v4988_v63 }
 0x274   :  { %v4224_v7 = vpop.f32.mrb[182].mxu0 }
 0x275   :  { %5395 = vst [vmem:[#allocation3 + $0x5b0] sm:$0xff] %v4224_v7  ;;  %v4226_v30 = vpop.f32.mrb[183].mxu0 }
 0x276   :  { %v4992_v38 = vpop.f32.mrb[182].mxu1  ;;  %5396 = vst [vmem:[#allocation3 + $0x5b8] sm:$0xff] %v4226_v30 }
 0x277   :  { %5651 = vst [vmem:[#allocation5 + $0x5b0] sm:$0xff] %v4992_v38  ;;  %v4994_v24 = vpop.f32.mrb[183].mxu1 }
 0x278   :  { %5652 = vst [vmem:[#allocation5 + $0x5b8] sm:$0xff] %v4994_v24  ;;  %v4230_v11 = vpop.f32.mrb[184].mxu0 }
 0x279   :  { %5397 = vst [vmem:[#allocation3 + $0x5c0] sm:$0xff] %v4230_v11  ;;  %v4232_v32 = vpop.f32.mrb[185].mxu0 }
 0x27a   :  { %v4998_v5 = vpop.f32.mrb[184].mxu1  ;;  %5398 = vst [vmem:[#allocation3 + $0x5c8] sm:$0xff] %v4232_v32 }
 0x27b   :  { %5653 = vst [vmem:[#allocation5 + $0x5c0] sm:$0xff] %v4998_v5  ;;  %v5000_v15 = vpop.f32.mrb[185].mxu1 }
 0x27c   :  { %5654 = vst [vmem:[#allocation5 + $0x5c8] sm:$0xff] %v5000_v15  ;;  %v4236_v61 = vpop.f32.mrb[186].mxu0 }
 0x27d   :  { %5399 = vst [vmem:[#allocation3 + $0x5d0] sm:$0xff] %v4236_v61  ;;  %v4238_v40 = vpop.f32.mrb[187].mxu0 }
 0x27e   :  { %v5004_v13 = vpop.f32.mrb[186].mxu1  ;;  %5400 = vst [vmem:[#allocation3 + $0x5d8] sm:$0xff] %v4238_v40 }
 0x27f   :  { %5655 = vst [vmem:[#allocation5 + $0x5d0] sm:$0xff] %v5004_v13  ;;  %v5006_v52 = vpop.f32.mrb[187].mxu1 }
 0x280   :  { %5656 = vst [vmem:[#allocation5 + $0x5d8] sm:$0xff] %v5006_v52  ;;  %v4242_v59 = vpop.f32.mrb[188].mxu0 }
 0x281   :  { %5401 = vst [vmem:[#allocation3 + $0x5e0] sm:$0xff] %v4242_v59  ;;  %v4244_v23 = vpop.f32.mrb[189].mxu0 }
 0x282   :  { %v5010_v58 = vpop.f32.mrb[188].mxu1  ;;  %5402 = vst [vmem:[#allocation3 + $0x5e8] sm:$0xff] %v4244_v23 }
 0x283   :  { %5657 = vst [vmem:[#allocation5 + $0x5e0] sm:$0xff] %v5010_v58  ;;  %v5012_v54 = vpop.f32.mrb[189].mxu1 }
 0x284   :  { %5658 = vst [vmem:[#allocation5 + $0x5e8] sm:$0xff] %v5012_v54  ;;  %v4248_v0 = vpop.f32.mrb[190].mxu0 }
 0x285   :  { %5403 = vst [vmem:[#allocation3 + $0x5f0] sm:$0xff] %v4248_v0  ;;  %v4250_v33 = vpop.f32.mrb[191].mxu0 }
 0x286   :  { %v5016_v43 = vpop.f32.mrb[190].mxu1  ;;  %5404 = vst [vmem:[#allocation3 + $0x5f8] sm:$0xff] %v4250_v33 }
 0x287   :  { %5659 = vst [vmem:[#allocation5 + $0x5f0] sm:$0xff] %v5016_v43  ;;  %v5018_v49 = vpop.f32.mrb[191].mxu1 }
 0x288   :  { %5660 = vst [vmem:[#allocation5 + $0x5f8] sm:$0xff] %v5018_v49  ;;  %v4254_v8 = vpop.f32.mrb[192].mxu0 }
 0x289   :  { %5405 = vst [vmem:[#allocation3 + $0x600] sm:$0xff] %v4254_v8  ;;  %v4256_v47 = vpop.f32.mrb[193].mxu0 }
 0x28a   :  { %v5022_v10 = vpop.f32.mrb[192].mxu1  ;;  %5406 = vst [vmem:[#allocation3 + $0x608] sm:$0xff] %v4256_v47 }
 0x28b   :  { %5661 = vst [vmem:[#allocation5 + $0x600] sm:$0xff] %v5022_v10  ;;  %v5024_v1 = vpop.f32.mrb[193].mxu1 }
 0x28c   :  { %5662 = vst [vmem:[#allocation5 + $0x608] sm:$0xff] %v5024_v1  ;;  %v4260_v55 = vpop.f32.mrb[194].mxu0 }
 0x28d   :  { %5407 = vst [vmem:[#allocation3 + $0x610] sm:$0xff] %v4260_v55  ;;  %v4262_v45 = vpop.f32.mrb[195].mxu0 }
 0x28e   :  { %5408 = vst [vmem:[#allocation3 + $0x618] sm:$0xff] %v4262_v45 }
 0x290   :  { %v5028_v44 = vpop.f32.mrb[194].mxu1 }
 0x291   :  { %5663 = vst [vmem:[#allocation5 + $0x610] sm:$0xff] %v5028_v44  ;;  %v5030_v19 = vpop.f32.mrb[195].mxu1 }
 0x292   :  { %5664 = vst [vmem:[#allocation5 + $0x618] sm:$0xff] %v5030_v19  ;;  %v4266_v18 = vpop.f32.mrb[196].mxu0 }
 0x293   :  { %5409 = vst [vmem:[#allocation3 + $0x620] sm:$0xff] %v4266_v18  ;;  %v4268_v41 = vpop.f32.mrb[197].mxu0 }
 0x294   :  { %v5034_v16 = vpop.f32.mrb[196].mxu1  ;;  %5410 = vst [vmem:[#allocation3 + $0x628] sm:$0xff] %v4268_v41 }
 0x295   :  { %5665 = vst [vmem:[#allocation5 + $0x620] sm:$0xff] %v5034_v16  ;;  %v5036_v17 = vpop.f32.mrb[197].mxu1 }
 0x296   :  { %5666 = vst [vmem:[#allocation5 + $0x628] sm:$0xff] %v5036_v17  ;;  %v4272_v39 = vpop.f32.mrb[198].mxu0 }
 0x297   :  { %5411 = vst [vmem:[#allocation3 + $0x630] sm:$0xff] %v4272_v39  ;;  %v4274_v62 = vpop.f32.mrb[199].mxu0 }
 0x298   :  { %v5040_v51 = vpop.f32.mrb[198].mxu1  ;;  %5412 = vst [vmem:[#allocation3 + $0x638] sm:$0xff] %v4274_v62 }
 0x299   :  { %5667 = vst [vmem:[#allocation5 + $0x630] sm:$0xff] %v5040_v51  ;;  %v5042_v50 = vpop.f32.mrb[199].mxu1 }
 0x29a   :  { %5668 = vst [vmem:[#allocation5 + $0x638] sm:$0xff] %v5042_v50  ;;  %v4278_v37 = vpop.f32.mrb[200].mxu0 }
 0x29b   :  { %5413 = vst [vmem:[#allocation3 + $0x640] sm:$0xff] %v4278_v37  ;;  %v4280_v28 = vpop.f32.mrb[201].mxu0 }
 0x29c   :  { %v5046_v9 = vpop.f32.mrb[200].mxu1  ;;  %5414 = vst [vmem:[#allocation3 + $0x648] sm:$0xff] %v4280_v28 }
 0x29d   :  { %5669 = vst [vmem:[#allocation5 + $0x640] sm:$0xff] %v5046_v9  ;;  %v5048_v35 = vpop.f32.mrb[201].mxu1 }
 0x29e   :  { %5670 = vst [vmem:[#allocation5 + $0x648] sm:$0xff] %v5048_v35  ;;  %v4284_v3 = vpop.f32.mrb[202].mxu0 }
 0x29f   :  { %5415 = vst [vmem:[#allocation3 + $0x650] sm:$0xff] %v4284_v3  ;;  %v4286_v25 = vpop.f32.mrb[203].mxu0 }
 0x2a0   :  { %v5052_v6 = vpop.f32.mrb[202].mxu1  ;;  %5416 = vst [vmem:[#allocation3 + $0x658] sm:$0xff] %v4286_v25 }
 0x2a1   :  { %5671 = vst [vmem:[#allocation5 + $0x650] sm:$0xff] %v5052_v6  ;;  %v5054_v46 = vpop.f32.mrb[203].mxu1 }
 0x2a2   :  { %5672 = vst [vmem:[#allocation5 + $0x658] sm:$0xff] %v5054_v46  ;;  %v4290_v34 = vpop.f32.mrb[204].mxu0 }
 0x2a3   :  { %5417 = vst [vmem:[#allocation3 + $0x660] sm:$0xff] %v4290_v34  ;;  %v4292_v26 = vpop.f32.mrb[205].mxu0 }
 0x2a4   :  { %v5058_v53 = vpop.f32.mrb[204].mxu1  ;;  %5418 = vst [vmem:[#allocation3 + $0x668] sm:$0xff] %v4292_v26 }
 0x2a5   :  { %5673 = vst [vmem:[#allocation5 + $0x660] sm:$0xff] %v5058_v53  ;;  %v5060_v14 = vpop.f32.mrb[205].mxu1 }
 0x2a6   :  { %5674 = vst [vmem:[#allocation5 + $0x668] sm:$0xff] %v5060_v14  ;;  %v4296_v4 = vpop.f32.mrb[206].mxu0 }
 0x2a7   :  { %5419 = vst [vmem:[#allocation3 + $0x670] sm:$0xff] %v4296_v4  ;;  %v4298_v57 = vpop.f32.mrb[207].mxu0 }
 0x2a8   :  { %v5064_v20 = vpop.f32.mrb[206].mxu1  ;;  %5420 = vst [vmem:[#allocation3 + $0x678] sm:$0xff] %v4298_v57 }
 0x2a9   :  { %5675 = vst [vmem:[#allocation5 + $0x670] sm:$0xff] %v5064_v20  ;;  %v5066_v27 = vpop.f32.mrb[207].mxu1 }
 0x2aa   :  { %5676 = vst [vmem:[#allocation5 + $0x678] sm:$0xff] %v5066_v27 }
 0x2ac   :  { %v4302_v56 = vpop.f32.mrb[208].mxu0 }
 0x2ad   :  { %5421 = vst [vmem:[#allocation3 + $0x680] sm:$0xff] %v4302_v56  ;;  %v4304_v29 = vpop.f32.mrb[209].mxu0 }
 0x2ae   :  { %v5070_v21 = vpop.f32.mrb[208].mxu1  ;;  %5422 = vst [vmem:[#allocation3 + $0x688] sm:$0xff] %v4304_v29 }
 0x2af   :  { %5677 = vst [vmem:[#allocation5 + $0x680] sm:$0xff] %v5070_v21  ;;  %v5072_v36 = vpop.f32.mrb[209].mxu1 }
 0x2b0   :  { %5678 = vst [vmem:[#allocation5 + $0x688] sm:$0xff] %v5072_v36  ;;  %v4308_v12 = vpop.f32.mrb[210].mxu0 }
 0x2b1   :  { %5423 = vst [vmem:[#allocation3 + $0x690] sm:$0xff] %v4308_v12  ;;  %v4310_v2 = vpop.f32.mrb[211].mxu0 }
 0x2b2   :  { %v5076_v31 = vpop.f32.mrb[210].mxu1  ;;  %5424 = vst [vmem:[#allocation3 + $0x698] sm:$0xff] %v4310_v2 }
 0x2b3   :  { %5679 = vst [vmem:[#allocation5 + $0x690] sm:$0xff] %v5076_v31  ;;  %v5078_v22 = vpop.f32.mrb[211].mxu1 }
 0x2b4   :  { %5680 = vst [vmem:[#allocation5 + $0x698] sm:$0xff] %v5078_v22  ;;  %v4314_v60 = vpop.f32.mrb[212].mxu0 }
 0x2b5   :  { %5425 = vst [vmem:[#allocation3 + $0x6a0] sm:$0xff] %v4314_v60  ;;  %v4316_v42 = vpop.f32.mrb[213].mxu0 }
 0x2b6   :  { %v5082_v48 = vpop.f32.mrb[212].mxu1  ;;  %5426 = vst [vmem:[#allocation3 + $0x6a8] sm:$0xff] %v4316_v42 }
 0x2b7   :  { %5681 = vst [vmem:[#allocation5 + $0x6a0] sm:$0xff] %v5082_v48  ;;  %v5084_v63 = vpop.f32.mrb[213].mxu1 }
 0x2b8   :  { %5682 = vst [vmem:[#allocation5 + $0x6a8] sm:$0xff] %v5084_v63  ;;  %v4320_v7 = vpop.f32.mrb[214].mxu0 }
 0x2b9   :  { %5427 = vst [vmem:[#allocation3 + $0x6b0] sm:$0xff] %v4320_v7  ;;  %v4322_v30 = vpop.f32.mrb[215].mxu0 }
 0x2ba   :  { %v5088_v38 = vpop.f32.mrb[214].mxu1  ;;  %5428 = vst [vmem:[#allocation3 + $0x6b8] sm:$0xff] %v4322_v30 }
 0x2bb   :  { %5683 = vst [vmem:[#allocation5 + $0x6b0] sm:$0xff] %v5088_v38  ;;  %v5090_v24 = vpop.f32.mrb[215].mxu1 }
 0x2bc   :  { %5684 = vst [vmem:[#allocation5 + $0x6b8] sm:$0xff] %v5090_v24  ;;  %v4326_v11 = vpop.f32.mrb[216].mxu0 }
 0x2bd   :  { %5429 = vst [vmem:[#allocation3 + $0x6c0] sm:$0xff] %v4326_v11  ;;  %v4328_v32 = vpop.f32.mrb[217].mxu0 }
 0x2be   :  { %v5094_v5 = vpop.f32.mrb[216].mxu1  ;;  %5430 = vst [vmem:[#allocation3 + $0x6c8] sm:$0xff] %v4328_v32 }
 0x2bf   :  { %5685 = vst [vmem:[#allocation5 + $0x6c0] sm:$0xff] %v5094_v5  ;;  %v5096_v15 = vpop.f32.mrb[217].mxu1 }
 0x2c0   :  { %5686 = vst [vmem:[#allocation5 + $0x6c8] sm:$0xff] %v5096_v15  ;;  %v4332_v61 = vpop.f32.mrb[218].mxu0 }
 0x2c1   :  { %5431 = vst [vmem:[#allocation3 + $0x6d0] sm:$0xff] %v4332_v61  ;;  %v4334_v40 = vpop.f32.mrb[219].mxu0 }
 0x2c2   :  { %v5100_v13 = vpop.f32.mrb[218].mxu1  ;;  %5432 = vst [vmem:[#allocation3 + $0x6d8] sm:$0xff] %v4334_v40 }
 0x2c3   :  { %5687 = vst [vmem:[#allocation5 + $0x6d0] sm:$0xff] %v5100_v13  ;;  %v5102_v52 = vpop.f32.mrb[219].mxu1 }
 0x2c4   :  { %5688 = vst [vmem:[#allocation5 + $0x6d8] sm:$0xff] %v5102_v52  ;;  %v4338_v59 = vpop.f32.mrb[220].mxu0 }
 0x2c5   :  { %5433 = vst [vmem:[#allocation3 + $0x6e0] sm:$0xff] %v4338_v59  ;;  %v4340_v23 = vpop.f32.mrb[221].mxu0 }
 0x2c6   :  { %5434 = vst [vmem:[#allocation3 + $0x6e8] sm:$0xff] %v4340_v23 }
 0x2c9   :  { %v5106_v58 = vpop.f32.mrb[220].mxu1 }
 0x2ca   :  { %5689 = vst [vmem:[#allocation5 + $0x6e0] sm:$0xff] %v5106_v58  ;;  %v5108_v54 = vpop.f32.mrb[221].mxu1  ;;  %v4344_v0 = vpop.f32.mrb[222].mxu0 }
 0x2cb   :  { %5690 = vst [vmem:[#allocation5 + $0x6e8] sm:$0xff] %v5108_v54  ;;  %5435 = vst [vmem:[#allocation3 + $0x6f0] sm:$0xff] %v4344_v0  ;;  %v4346_v33 = vpop.f32.mrb[223].mxu0 }
 0x2cc   :  { %5436 = vst [vmem:[#allocation3 + $0x6f8] sm:$0xff] %v4346_v33 }
 0x2cd   :  { %v5112_v43 = vpop.f32.mrb[222].mxu1 }
 0x2ce   :  { %5691 = vst [vmem:[#allocation5 + $0x6f0] sm:$0xff] %v5112_v43  ;;  %v5114_v49 = vpop.f32.mrb[223].mxu1  ;;  %v4350_v8 = vpop.f32.mrb[224].mxu0 }
 0x2cf   :  { %5692 = vst [vmem:[#allocation5 + $0x6f8] sm:$0xff] %v5114_v49  ;;  %5437 = vst [vmem:[#allocation3 + $0x700] sm:$0xff] %v4350_v8  ;;  %v4352_v47 = vpop.f32.mrb[225].mxu0 }
 0x2d0   :  { %5438 = vst [vmem:[#allocation3 + $0x708] sm:$0xff] %v4352_v47 }
 0x2d1   :  { %v5118_v10 = vpop.f32.mrb[224].mxu1 }
 0x2d2   :  { %5693 = vst [vmem:[#allocation5 + $0x700] sm:$0xff] %v5118_v10  ;;  %v5120_v1 = vpop.f32.mrb[225].mxu1  ;;  %v4356_v55 = vpop.f32.mrb[226].mxu0 }
 0x2d3   :  { %5694 = vst [vmem:[#allocation5 + $0x708] sm:$0xff] %v5120_v1  ;;  %5439 = vst [vmem:[#allocation3 + $0x710] sm:$0xff] %v4356_v55  ;;  %v4358_v45 = vpop.f32.mrb[227].mxu0 }
 0x2d4   :  { %5440 = vst [vmem:[#allocation3 + $0x718] sm:$0xff] %v4358_v45 }
 0x2d5   :  { %v5124_v44 = vpop.f32.mrb[226].mxu1 }
 0x2d6   :  { %5695 = vst [vmem:[#allocation5 + $0x710] sm:$0xff] %v5124_v44  ;;  %v5126_v19 = vpop.f32.mrb[227].mxu1  ;;  %v4362_v18 = vpop.f32.mrb[228].mxu0 }
 0x2d7   :  { %5696 = vst [vmem:[#allocation5 + $0x718] sm:$0xff] %v5126_v19  ;;  %5441 = vst [vmem:[#allocation3 + $0x720] sm:$0xff] %v4362_v18  ;;  %v4364_v41 = vpop.f32.mrb[229].mxu0 }
 0x2d8   :  { %5442 = vst [vmem:[#allocation3 + $0x728] sm:$0xff] %v4364_v41 }
 0x2d9   :  { %v5130_v16 = vpop.f32.mrb[228].mxu1 }
 0x2da   :  { %5697 = vst [vmem:[#allocation5 + $0x720] sm:$0xff] %v5130_v16  ;;  %v5132_v17 = vpop.f32.mrb[229].mxu1  ;;  %v4368_v39 = vpop.f32.mrb[230].mxu0 }
 0x2db   :  { %5698 = vst [vmem:[#allocation5 + $0x728] sm:$0xff] %v5132_v17  ;;  %5443 = vst [vmem:[#allocation3 + $0x730] sm:$0xff] %v4368_v39  ;;  %v4370_v62 = vpop.f32.mrb[231].mxu0 }
 0x2dc   :  { %5444 = vst [vmem:[#allocation3 + $0x738] sm:$0xff] %v4370_v62 }
 0x2dd   :  { %v5136_v51 = vpop.f32.mrb[230].mxu1 }
 0x2de   :  { %5699 = vst [vmem:[#allocation5 + $0x730] sm:$0xff] %v5136_v51  ;;  %v5138_v50 = vpop.f32.mrb[231].mxu1  ;;  %v4374_v37 = vpop.f32.mrb[232].mxu0 }
 0x2df   :  { %5700 = vst [vmem:[#allocation5 + $0x738] sm:$0xff] %v5138_v50  ;;  %5445 = vst [vmem:[#allocation3 + $0x740] sm:$0xff] %v4374_v37  ;;  %v4376_v28 = vpop.f32.mrb[233].mxu0 }
 0x2e0   :  { %5446 = vst [vmem:[#allocation3 + $0x748] sm:$0xff] %v4376_v28 }
 0x2e1   :  { %v5142_v9 = vpop.f32.mrb[232].mxu1 }
 0x2e2   :  { %5701 = vst [vmem:[#allocation5 + $0x740] sm:$0xff] %v5142_v9  ;;  %v5144_v35 = vpop.f32.mrb[233].mxu1 }
 0x2e3   :  { %5702 = vst [vmem:[#allocation5 + $0x748] sm:$0xff] %v5144_v35  ;;  %v4380_v3 = vpop.f32.mrb[234].mxu0 }
 0x2e4   :  { %5447 = vst [vmem:[#allocation3 + $0x750] sm:$0xff] %v4380_v3  ;;  %v4382_v25 = vpop.f32.mrb[235].mxu0 }
 0x2e5   :  { %v5148_v6 = vpop.f32.mrb[234].mxu1  ;;  %5448 = vst [vmem:[#allocation3 + $0x758] sm:$0xff] %v4382_v25 }
 0x2e6   :  { %5703 = vst [vmem:[#allocation5 + $0x750] sm:$0xff] %v5148_v6  ;;  %v5150_v46 = vpop.f32.mrb[235].mxu1 }
 0x2e7   :  { %5704 = vst [vmem:[#allocation5 + $0x758] sm:$0xff] %v5150_v46  ;;  %v4386_v34 = vpop.f32.mrb[236].mxu0 }
 0x2e8   :  { %5449 = vst [vmem:[#allocation3 + $0x760] sm:$0xff] %v4386_v34  ;;  %v4388_v26 = vpop.f32.mrb[237].mxu0 }
 0x2e9   :  { %v5154_v53 = vpop.f32.mrb[236].mxu1  ;;  %5450 = vst [vmem:[#allocation3 + $0x768] sm:$0xff] %v4388_v26 }
 0x2ea   :  { %5705 = vst [vmem:[#allocation5 + $0x760] sm:$0xff] %v5154_v53  ;;  %v5156_v14 = vpop.f32.mrb[237].mxu1 }
 0x2eb   :  { %5706 = vst [vmem:[#allocation5 + $0x768] sm:$0xff] %v5156_v14  ;;  %v4392_v4 = vpop.f32.mrb[238].mxu0 }
 0x2ec   :  { %5451 = vst [vmem:[#allocation3 + $0x770] sm:$0xff] %v4392_v4  ;;  %v4394_v57 = vpop.f32.mrb[239].mxu0 }
 0x2ed   :  { %v5160_v20 = vpop.f32.mrb[238].mxu1  ;;  %5452 = vst [vmem:[#allocation3 + $0x778] sm:$0xff] %v4394_v57 }
 0x2ee   :  { %5707 = vst [vmem:[#allocation5 + $0x770] sm:$0xff] %v5160_v20  ;;  %v5162_v27 = vpop.f32.mrb[239].mxu1 }
 0x2ef   :  { %5708 = vst [vmem:[#allocation5 + $0x778] sm:$0xff] %v5162_v27  ;;  %v4398_v56 = vpop.f32.mrb[240].mxu0 }
 0x2f0   :  { %5453 = vst [vmem:[#allocation3 + $0x780] sm:$0xff] %v4398_v56  ;;  %v4400_v29 = vpop.f32.mrb[241].mxu0 }
 0x2f1   :  { %v5166_v21 = vpop.f32.mrb[240].mxu1  ;;  %5454 = vst [vmem:[#allocation3 + $0x788] sm:$0xff] %v4400_v29 }
 0x2f2   :  { %5709 = vst [vmem:[#allocation5 + $0x780] sm:$0xff] %v5166_v21  ;;  %v5168_v36 = vpop.f32.mrb[241].mxu1 }
 0x2f3   :  { %5710 = vst [vmem:[#allocation5 + $0x788] sm:$0xff] %v5168_v36  ;;  %v4404_v12 = vpop.f32.mrb[242].mxu0 }
 0x2f4   :  { %5455 = vst [vmem:[#allocation3 + $0x790] sm:$0xff] %v4404_v12  ;;  %v4406_v2 = vpop.f32.mrb[243].mxu0 }
 0x2f5   :  { %v5172_v31 = vpop.f32.mrb[242].mxu1  ;;  %5456 = vst [vmem:[#allocation3 + $0x798] sm:$0xff] %v4406_v2 }
 0x2f6   :  { %5711 = vst [vmem:[#allocation5 + $0x790] sm:$0xff] %v5172_v31  ;;  %v5174_v22 = vpop.f32.mrb[243].mxu1 }
 0x2f7   :  { %5712 = vst [vmem:[#allocation5 + $0x798] sm:$0xff] %v5174_v22  ;;  %v4410_v60 = vpop.f32.mrb[244].mxu0 }
 0x2f8   :  { %5457 = vst [vmem:[#allocation3 + $0x7a0] sm:$0xff] %v4410_v60  ;;  %v4412_v42 = vpop.f32.mrb[245].mxu0 }
 0x2f9   :  { %v5178_v48 = vpop.f32.mrb[244].mxu1  ;;  %5458 = vst [vmem:[#allocation3 + $0x7a8] sm:$0xff] %v4412_v42 }
 0x2fa   :  { %5713 = vst [vmem:[#allocation5 + $0x7a0] sm:$0xff] %v5178_v48  ;;  %v5180_v63 = vpop.f32.mrb[245].mxu1 }
 0x2fb   :  { %5714 = vst [vmem:[#allocation5 + $0x7a8] sm:$0xff] %v5180_v63  ;;  %v4416_v7 = vpop.f32.mrb[246].mxu0 }
 0x2fc   :  { %5459 = vst [vmem:[#allocation3 + $0x7b0] sm:$0xff] %v4416_v7  ;;  %v4418_v30 = vpop.f32.mrb[247].mxu0 }
 0x2fd   :  { %v5184_v38 = vpop.f32.mrb[246].mxu1  ;;  %5460 = vst [vmem:[#allocation3 + $0x7b8] sm:$0xff] %v4418_v30 }
 0x2fe   :  { %5715 = vst [vmem:[#allocation5 + $0x7b0] sm:$0xff] %v5184_v38  ;;  %v5186_v24 = vpop.f32.mrb[247].mxu1 }
 0x2ff   :  { %5716 = vst [vmem:[#allocation5 + $0x7b8] sm:$0xff] %v5186_v24  ;;  %v4422_v11 = vpop.f32.mrb[248].mxu0 }
 0x300   :  { %5461 = vst [vmem:[#allocation3 + $0x7c0] sm:$0xff] %v4422_v11  ;;  %v4424_v32 = vpop.f32.mrb[249].mxu0 }
 0x301   :  { %v5190_v5 = vpop.f32.mrb[248].mxu1  ;;  %5462 = vst [vmem:[#allocation3 + $0x7c8] sm:$0xff] %v4424_v32 }
 0x302   :  { %5717 = vst [vmem:[#allocation5 + $0x7c0] sm:$0xff] %v5190_v5  ;;  %v5192_v15 = vpop.f32.mrb[249].mxu1 }
 0x303   :  { %5718 = vst [vmem:[#allocation5 + $0x7c8] sm:$0xff] %v5192_v15  ;;  %v4428_v61 = vpop.f32.mrb[250].mxu0 }
 0x304   :  { %5463 = vst [vmem:[#allocation3 + $0x7d0] sm:$0xff] %v4428_v61  ;;  %v4430_v40 = vpop.f32.mrb[251].mxu0 }
 0x305   :  { %v5196_v13 = vpop.f32.mrb[250].mxu1  ;;  %5464 = vst [vmem:[#allocation3 + $0x7d8] sm:$0xff] %v4430_v40 }
 0x306   :  { %5719 = vst [vmem:[#allocation5 + $0x7d0] sm:$0xff] %v5196_v13  ;;  %v5198_v52 = vpop.f32.mrb[251].mxu1 }
 0x307   :  { %5720 = vst [vmem:[#allocation5 + $0x7d8] sm:$0xff] %v5198_v52  ;;  %v4434_v59 = vpop.f32.mrb[252].mxu0 }
 0x308   :  { %5465 = vst [vmem:[#allocation3 + $0x7e0] sm:$0xff] %v4434_v59  ;;  %v4436_v23 = vpop.f32.mrb[253].mxu0 }
 0x309   :  { %v5202_v58 = vpop.f32.mrb[252].mxu1  ;;  %5466 = vst [vmem:[#allocation3 + $0x7e8] sm:$0xff] %v4436_v23 }
 0x30a   :  { %5721 = vst [vmem:[#allocation5 + $0x7e0] sm:$0xff] %v5202_v58  ;;  %v5204_v54 = vpop.f32.mrb[253].mxu1 }
 0x30b   :  { %5722 = vst [vmem:[#allocation5 + $0x7e8] sm:$0xff] %v5204_v54  ;;  %v4440_v0 = vpop.f32.mrb[254].mxu0 }
 0x30c   :  { %5467 = vst [vmem:[#allocation3 + $0x7f0] sm:$0xff] %v4440_v0  ;;  %v4442_v33 = vpop.f32.mrb[255].mxu0 }
 0x30d   :  { %v5208_v43 = vpop.f32.mrb[254].mxu1  ;;  %5468 = vst [vmem:[#allocation3 + $0x7f8] sm:$0xff] %v4442_v33 }
 0x30e   :  { %5723 = vst [vmem:[#allocation5 + $0x7f0] sm:$0xff] %v5208_v43  ;;  %v5210_v49 = vpop.f32.mrb[255].mxu1 }
 0x30f   :  { %7063 = shalt.err (!%p7060_p4)
}
 0x310   :  { %s7064_s25 = scalar_lea.hbm %s10815_s3, 32768 }
 0x311   :  { %p7065_p5 = scmp.ne.s32.totalorder %s10815_s3, %s7064_s25  ;;  %p7068_p6 = scmp.lt.u32.totalorder %s7064_s25, %s10815_s3 }
 0x313   :  { %p7070_p7 = pnand %p7068_p6, %p7065_p5 }
 0x315   :  { %7073 = shalt.err (!%p7070_p7)
}
 0x316   :  { %s7103_s0 = smov 256   ;;  %s7104_s30 = smov 16   ;;  %5724 = vst [vmem:[#allocation5 + $0x7f8] sm:$0xff] %v5210_v49 }
 0x317   :  { %5736 = dma.vmem_to_hbm [thread:$0]  %s10774_s6, 32768, %s10815_s3, [#allocation4], %s7103_s0, %s7103_s0, %s7104_s30  }
 0x318   :  { %s7074_s8 = scalar_lea.vmem %s10776_s21, 32768  ;;  %p7079_p9 = scmp.lt.s32.totalorder %s10776_s21, %s10776_s21 }
 0x319   :  { %p7075_p8 = scmp.ne.s32.totalorder %s10776_s21, %s7074_s8  ;;  %p7080_p10 = scmp.lt.s32.totalorder %s7074_s8, %s7074_s8 }
 0x31b   :  { %p7081_p11 = por %p7080_p10, %p7079_p9 }
 0x31d   :  { %p7082_p12 = pnand %p7081_p11, %p7075_p8 }
 0x31f   :  { %7085 = shalt.err (!%p7082_p12)
}
 0x320   :  { %s7086_s10 = scalar_lea.hbm %s10816_s4, 32768 }
 0x321   :  { %p7087_p13 = scmp.ne.s32.totalorder %s10816_s4, %s7086_s10  ;;  %p7090_p0 = scmp.lt.u32.totalorder %s7086_s10, %s10816_s4 }
 0x323   :  { %p7092_p1 = pnand %p7090_p0, %p7087_p13 }
 0x325   :  { %7095 = shalt.err (!%p7092_p1)
}
 0x326   :  { %5748 = dma.vmem_to_hbm [thread:$0]  %s10776_s21, 32768, %s10816_s4, [#allocation6], %s7103_s0, %s7103_s0, %s7104_s30  }
 0x327   :  { %7096 = dma.done.wait [#allocation4], 32768  }
 0x328   :  { %7097 = vsyncadd [#allocation4], 4294934528 }
 0x329   :  { %7098 = dma.done.wait [#allocation6], 32768  }
 0x32a   :  { %7099 = vsyncadd [#allocation6], 4294934528 }
 0x32b   :  { %5763 = vsyncpa [#allocation4], 1 }
 0x32c   :  { %5764 = vsyncpa [#allocation6], 1 }

</bundles_post_ra>
